<compile_context>
chip_gen: v5e
topology: v5e:2x2
jax: 0.10.0
libtpu: 0.0.40
codegen_flags: <defaults>
</compile_context>

<pallas_src>
import jax
import jax.numpy as jnp
from jax.experimental import pallas as pl
from jax.experimental.pallas import tpu as pltpu


BN_EPS = 1e-5

# Layer order:
#    0: embedding            (in   -> H)    relu
#  1,3,5: res-block fc1      (H    -> H)    relu
#  2,4,6: res-block fc2      (H    -> H)    +identity, relu
#    7: bottleneck fc1       (H    -> H/2)  relu
#    8: bottleneck fc2       (H/2  -> H/2)  relu
#    9: bottleneck fc3       (H/2  -> H)    +identity, relu
#   10: head fc1             (H    -> 64)   relu
#   11: head fc2             (64   -> 1)    sigmoid   (stored transposed (1,64))
NUM_LAYERS = 12


def _round_up(n, m):
    return ((n + m - 1) // m) * m


# ------------------------------ fused kernel -------------------------------

def _fused_net_kernel(x_ref, *rest):
    """rest = (w0, ..., w11, bias_pack_ref, o_ref)."""
    o_ref = rest[-1]
    b_ref = rest[-2]
    w = rest[:-2]

    cdt = w[0].dtype  # activations match weight dtype -> no per-step weight cast

    def dense(idx, x, residual=None, relu=True):
        dout = w[idx].shape[1]
        acc = jnp.dot(x, w[idx][...], preferred_element_type=jnp.float32)
        acc = acc + b_ref[idx:idx + 1, :dout]            # folded-BN bias (f32)
        if residual is not None:
            acc = acc + residual.astype(jnp.float32)     # elementwise in f32 (v5e-safe)
        if relu:
            acc = jnp.maximum(acc, 0.0)
        return acc.astype(cdt)

    h = dense(0, x_ref[...].astype(cdt))                 # embedding (in -> H), relu

    for blk in range(3):                                 # 3 plain residual blocks
        ident = h
        h = dense(2 + 2 * blk, dense(1 + 2 * blk, h), residual=ident)

    ident = h                                            # bottleneck residual block
    h = dense(9, dense(8, dense(7, h)), residual=ident)

    o = dense(10, h)                                     # head fc1 (H -> 64), relu

    # Head fc2 (64 -> 1) + sigmoid, done as VPU broadcast-mul + XLU lane-reduce
    # (not an N=1 MXU matmul), stored lane-dense as (tb//128, 128).
    g = o_ref.shape[1]
    o3 = o.astype(jnp.float32).reshape(g, 128, -1)           # leading-dim split: free
    wv = w[11][...].astype(jnp.float32).reshape(1, 1, -1)    # (1, 64) pre-transposed
    logits = jnp.sum(o3 * wv, axis=-1) + b_ref[11:12, 0:1]   # (g, 128)
    o_ref[...] = jax.nn.sigmoid(logits).astype(o_ref.dtype)[None]


# ------------------------------ host wrapper -------------------------------

def flight_delay_classifier(params, x, *, batch_tile=None):
    """Run the fused network.

    params: (weights, bias_pack) from fold_bn():
              weights  : 12 arrays, BN-folded, last one transposed to (1, 64)
              bias_pack: (12, max_dout) float32, BN-folded biases (zero padded)
    x:      (batch, input_dim) float32.
    """
    weights, bias_pack = params
    assert len(weights) == NUM_LAYERS
    batch, in_dim = x.shape
    cdt = weights[0].dtype

    # Batch-tile selection: big tiles amortize grid-step + MXU RHS-push overhead,
    # but keep >= 2 grid steps when the batch allows so the "parallel" batch axis
    # can shard across v7x's two TensorCores.
    if batch_tile is None:
        target = 1024 if jnp.dtype(cdt).itemsize <= 2 else 512
        half = max(128, _round_up(-(-batch // 2), 128))
        batch_tile = min(target, half)
    tb = max(128, _round_up(batch_tile, 128))

    grid = (pl.cdiv(batch, tb),)
    padded = grid[0] * tb                 # no host-side jnp.pad: ragged last tile,
                                          # junk rows sliced off the output below.

    vmem = pltpu.MemorySpace.VMEM
    in_specs = [pl.BlockSpec((tb, in_dim), lambda i: (i, 0), memory_space=vmem)]
    for wgt in weights:                   # constant index_map -> VMEM-resident
        in_specs.append(pl.BlockSpec(wgt.shape, lambda i: (0, 0), memory_space=vmem))
    in_specs.append(
        pl.BlockSpec(bias_pack.shape, lambda i: (0, 0), memory_space=vmem))

    # Lane-dense output: (grid, tb//128, 128); last two block dims == full dims.
    out_specs = pl.BlockSpec((1, tb // 128, 128), lambda i: (i, 0, 0),
                             memory_space=vmem)

    out3 = pl.pallas_call(
        _fused_net_kernel,
        out_shape=jax.ShapeDtypeStruct((grid[0], tb // 128, 128), jnp.float32),
        grid=grid,
        in_specs=in_specs,
        out_specs=out_specs,
        compiler_params=pltpu.CompilerParams(
            dimension_semantics=("parallel",),       # megacore on v7x
            vmem_limit_bytes=32 * 1024 * 1024,
        ),
    )(x, *weights, bias_pack)

    return out3.reshape(padded, 1)[:batch]


# ------------------------- parameter construction --------------------------

def make_raw_layers(key, input_dim, hidden_dim):
    """Raw (unfolded) params: list of (W, b, bn) with bn=(gamma,beta,mean,var) or None."""
    bdim = hidden_dim // 2
    dims = [
        (input_dim, hidden_dim),                               # embedding
        (hidden_dim, hidden_dim), (hidden_dim, hidden_dim),    # res block 1
        (hidden_dim, hidden_dim), (hidden_dim, hidden_dim),    # res block 2
        (hidden_dim, hidden_dim), (hidden_dim, hidden_dim),    # res block 3
        (hidden_dim, bdim), (bdim, bdim), (bdim, hidden_dim),  # bottleneck
        (hidden_dim, 64), (64, 1),                             # prediction head
    ]
    has_bn = [True] * 11 + [False]                             # final Linear has no BN
    layers = []
    for (d_in, d_out), bn in zip(dims, has_bn):
        key, kw, kb, kg, kbe, km, kv = jax.random.split(key, 7)
        w = jax.random.normal(kw, (d_in, d_out), jnp.float32) * 0.05
        b = jax.random.normal(kb, (d_out,), jnp.float32) * 0.01
        if bn:
            gamma = 1.0 + 0.1 * jax.random.normal(kg, (d_out,), jnp.float32)
            beta = 0.05 * jax.random.normal(kbe, (d_out,), jnp.float32)
            mean = 0.05 * jax.random.normal(km, (d_out,), jnp.float32)
            var = 1.0 + jnp.abs(0.1 * jax.random.normal(kv, (d_out,), jnp.float32))
            bn_p = (gamma, beta, mean, var)
        else:
            bn_p = None
        layers.append((w, b, bn_p))
    return layers


def fold_bn(raw_layers, dtype=jnp.float32):
    """Fold eval-mode BatchNorm into the Linear weights and prepare kernel params.

    dtype=jnp.bfloat16 is the production inference path on v6e/v7x (bf16 weights
    AND bf16 activations -> MXU-native rate, f32 accumulation inside the kernel).
    """
    weights, biases = [], []
    for w, b, bn in raw_layers:
        if bn is None:
            wf, cf = w, b
        else:
            gamma, beta, mean, var = bn
            scale = gamma / jnp.sqrt(var + BN_EPS)
            wf = w * scale[None, :]
            cf = (b - mean) * scale + beta
        weights.append(wf.astype(dtype))
        biases.append(cf.astype(jnp.float32))

    # Final (64, 1) weight stored transposed (1, 64): the head's last layer runs
    # as a VPU broadcast-mul + lane-reduce producing a lane-dense output.
    weights[-1] = weights[-1].T

    # Pack all biases into a single (12, max_dout) f32 VMEM-resident slab.
    max_dout = max(b.shape[0] for b in biases)
    bias_pack = jnp.zeros((NUM_LAYERS, max_dout), jnp.float32)
    for i, b in enumerate(biases):
        bias_pack = bias_pack.at[i, :b.shape[0]].set(b)
    return weights, bias_pack


# --------------------------- pure-JAX reference ----------------------------

def flight_delay_classifier_ref(raw_layers, x):
    """Reference with explicit (unfolded) BatchNorm in eval mode."""
    def layer(idx, x, residual=None, act="relu"):
        w, b, bn = raw_layers[idx]
        y = x @ w + b
        if bn is not None:
            gamma, beta, mean, var = bn
            y = (y - mean) / jnp.sqrt(var + BN_EPS) * gamma + beta
        if residual is not None:
            y = y + residual
        if act == "relu":
            y = jnp.maximum(y, 0.0)
        elif act == "sigmoid":
            y = jax.nn.sigmoid(y)
        return y

    h = layer(0, x)
    for blk in range(3):
        ident = h
        o = layer(1 + 2 * blk, h)
        h = layer(2 + 2 * blk, o, residual=ident)
    ident = h
    o = layer(7, h)
    o = layer(8, o)
    h = layer(9, o, residual=ident)
    o = layer(10, h)
    return layer(11, o, act="sigmoid")


# ---------------------------------- main ------------------------------------

if __name__ == "__main__":
    INPUT_DIM = 16
    HIDDEN_DIM = 256   # PyTorch default; fills the 256-wide MXU on v6e/v7x
    BATCH = 512        # -> 2 batch tiles of 256 rows (grid >= 2, megacore-shardable)

    key = jax.random.PRNGKey(0)
    kx, kp = jax.random.split(key)
    x = jax.random.normal(kx, (BATCH, INPUT_DIM), jnp.float32)

    raw = make_raw_layers(kp, INPUT_DIM, HIDDEN_DIM)
    ref = flight_delay_classifier_ref(raw, x)

    fwd = jax.jit(flight_delay_classifier)

    # fp32 path (tight numerical check against the unfolded-BN reference)
    params_f32 = fold_bn(raw, dtype=jnp.float32)
    out_f32 = jax.block_until_ready(fwd(params_f32, x))
    assert out_f32.shape == (BATCH, 1)
    assert jnp.allclose(out_f32, ref, atol=1e-4, rtol=1e-4), float(
        jnp.max(jnp.abs(out_f32 - ref)))

    # bf16 production path (bf16 weights + activations, f32 accumulation)
    params_bf16 = fold_bn(raw, dtype=jnp.bfloat16)
    out_bf16 = jax.block_until_ready(fwd(params_bf16, x))
    assert out_bf16.shape == (BATCH, 1)
    assert float(jnp.max(jnp.abs(out_bf16 - ref))) < 5e-2

    print("KERNEL_OK")
</pallas_src>

<mosaic_0001>
module attributes {stable_mosaic.version = 11 : i64} {
  func.func @_fused_net_kernel(%arg0: i32, %arg1: memref<256x16xf32, #tpu.memory_space<vmem>>, %arg2: memref<16x256xf32, #tpu.memory_space<vmem>>, %arg3: memref<256x256xf32, #tpu.memory_space<vmem>>, %arg4: memref<256x256xf32, #tpu.memory_space<vmem>>, %arg5: memref<256x256xf32, #tpu.memory_space<vmem>>, %arg6: memref<256x256xf32, #tpu.memory_space<vmem>>, %arg7: memref<256x256xf32, #tpu.memory_space<vmem>>, %arg8: memref<256x256xf32, #tpu.memory_space<vmem>>, %arg9: memref<256x128xf32, #tpu.memory_space<vmem>>, %arg10: memref<128x128xf32, #tpu.memory_space<vmem>>, %arg11: memref<128x256xf32, #tpu.memory_space<vmem>>, %arg12: memref<256x64xf32, #tpu.memory_space<vmem>>, %arg13: memref<1x64xf32, #tpu.memory_space<vmem>>, %arg14: memref<12x256xf32, #tpu.memory_space<vmem>>, %arg15: memref<1x2x128xf32, #tpu.memory_space<vmem>>) attributes {dimension_semantics = [#tpu.dimension_semantics<parallel>], iteration_bounds = array<i64: 2>, scalar_prefetch = 0 : i64, scratch_operands = 0 : i64, tpu.core_type = #tpu.core_type<tc>, window_params = [{transform_indices = @transform_0, window_bounds = array<i64: 256, 16>}, {pipeline_mode = #tpu.pipeline_mode<synchronous>, transform_indices = @transform_1, window_bounds = array<i64: 16, 256>}, {pipeline_mode = #tpu.pipeline_mode<synchronous>, transform_indices = @transform_2, window_bounds = array<i64: 256, 256>}, {pipeline_mode = #tpu.pipeline_mode<synchronous>, transform_indices = @transform_3, window_bounds = array<i64: 256, 256>}, {pipeline_mode = #tpu.pipeline_mode<synchronous>, transform_indices = @transform_4, window_bounds = array<i64: 256, 256>}, {pipeline_mode = #tpu.pipeline_mode<synchronous>, transform_indices = @transform_5, window_bounds = array<i64: 256, 256>}, {pipeline_mode = #tpu.pipeline_mode<synchronous>, transform_indices = @transform_6, window_bounds = array<i64: 256, 256>}, {pipeline_mode = #tpu.pipeline_mode<synchronous>, transform_indices = @transform_7, window_bounds = array<i64: 256, 256>}, {pipeline_mode = #tpu.pipeline_mode<synchronous>, transform_indices = @transform_8, window_bounds = array<i64: 256, 128>}, {pipeline_mode = #tpu.pipeline_mode<synchronous>, transform_indices = @transform_9, window_bounds = array<i64: 128, 128>}, {pipeline_mode = #tpu.pipeline_mode<synchronous>, transform_indices = @transform_10, window_bounds = array<i64: 128, 256>}, {pipeline_mode = #tpu.pipeline_mode<synchronous>, transform_indices = @transform_11, window_bounds = array<i64: 256, 64>}, {pipeline_mode = #tpu.pipeline_mode<synchronous>, transform_indices = @transform_12, window_bounds = array<i64: 1, 64>}, {pipeline_mode = #tpu.pipeline_mode<synchronous>, transform_indices = @transform_13, window_bounds = array<i64: 12, 256>}, {transform_indices = @transform_14, window_bounds = array<i64: 1, 2, 128>}]} {
    %c0 = arith.constant 0 : index
    %c0_0 = arith.constant 0 : index
    %0 = vector.load %arg1[%c0, %c0_0] : memref<256x16xf32, #tpu.memory_space<vmem>>, vector<256x16xf32>
    %c0_1 = arith.constant 0 : index
    %c0_2 = arith.constant 0 : index
    %1 = vector.load %arg2[%c0_1, %c0_2] : memref<16x256xf32, #tpu.memory_space<vmem>>, vector<16x256xf32>
    %cst = arith.constant dense<0.000000e+00> : vector<256x256xf32>
    %2 = tpu.matmul %0, %1, %cst {dimension_numbers = #tpu.dot_dimension_numbers<[1], [0], [0], [1], [0, 0, 1, 1], [], []>} : vector<256x16xf32>, vector<16x256xf32>, vector<256x256xf32> -> vector<256x256xf32>
    %c0_3 = arith.constant 0 : index
    %c0_4 = arith.constant 0 : index
    %3 = vector.load %arg14[%c0_3, %c0_4] : memref<12x256xf32, #tpu.memory_space<vmem>>, vector<1x256xf32>
    %4 = vector.broadcast %3 : vector<1x256xf32> to vector<256x256xf32>
    %5 = arith.addf %2, %4 : vector<256x256xf32>
    %cst_5 = arith.constant 0.000000e+00 : f32
    %6 = vector.broadcast %cst_5 : f32 to vector<256x256xf32>
    %7 = arith.maximumf %5, %6 : vector<256x256xf32>
    %c0_6 = arith.constant 0 : index
    %c0_7 = arith.constant 0 : index
    %8 = vector.load %arg3[%c0_6, %c0_7] : memref<256x256xf32, #tpu.memory_space<vmem>>, vector<256x256xf32>
    %cst_8 = arith.constant dense<0.000000e+00> : vector<256x256xf32>
    %9 = tpu.matmul %7, %8, %cst_8 {dimension_numbers = #tpu.dot_dimension_numbers<[1], [0], [0], [1], [0, 0, 1, 1], [], []>} : vector<256x256xf32>, vector<256x256xf32>, vector<256x256xf32> -> vector<256x256xf32>
    %c1 = arith.constant 1 : index
    %c0_9 = arith.constant 0 : index
    %10 = vector.load %arg14[%c1, %c0_9] : memref<12x256xf32, #tpu.memory_space<vmem>>, vector<1x256xf32>
    %11 = vector.broadcast %10 : vector<1x256xf32> to vector<256x256xf32>
    %12 = arith.addf %9, %11 : vector<256x256xf32>
    %cst_10 = arith.constant 0.000000e+00 : f32
    %13 = vector.broadcast %cst_10 : f32 to vector<256x256xf32>
    %14 = arith.maximumf %12, %13 : vector<256x256xf32>
    %c0_11 = arith.constant 0 : index
    %c0_12 = arith.constant 0 : index
    %15 = vector.load %arg4[%c0_11, %c0_12] : memref<256x256xf32, #tpu.memory_space<vmem>>, vector<256x256xf32>
    %cst_13 = arith.constant dense<0.000000e+00> : vector<256x256xf32>
    %16 = tpu.matmul %14, %15, %cst_13 {dimension_numbers = #tpu.dot_dimension_numbers<[1], [0], [0], [1], [0, 0, 1, 1], [], []>} : vector<256x256xf32>, vector<256x256xf32>, vector<256x256xf32> -> vector<256x256xf32>
    %c2 = arith.constant 2 : index
    %c0_14 = arith.constant 0 : index
    %17 = vector.load %arg14[%c2, %c0_14] : memref<12x256xf32, #tpu.memory_space<vmem>>, vector<1x256xf32>
    %18 = vector.broadcast %17 : vector<1x256xf32> to vector<256x256xf32>
    %19 = arith.addf %16, %18 : vector<256x256xf32>
    %20 = arith.addf %19, %7 : vector<256x256xf32>
    %cst_15 = arith.constant 0.000000e+00 : f32
    %21 = vector.broadcast %cst_15 : f32 to vector<256x256xf32>
    %22 = arith.maximumf %20, %21 : vector<256x256xf32>
    %c0_16 = arith.constant 0 : index
    %c0_17 = arith.constant 0 : index
    %23 = vector.load %arg5[%c0_16, %c0_17] : memref<256x256xf32, #tpu.memory_space<vmem>>, vector<256x256xf32>
    %cst_18 = arith.constant dense<0.000000e+00> : vector<256x256xf32>
    %24 = tpu.matmul %22, %23, %cst_18 {dimension_numbers = #tpu.dot_dimension_numbers<[1], [0], [0], [1], [0, 0, 1, 1], [], []>} : vector<256x256xf32>, vector<256x256xf32>, vector<256x256xf32> -> vector<256x256xf32>
    %c3 = arith.constant 3 : index
    %c0_19 = arith.constant 0 : index
    %25 = vector.load %arg14[%c3, %c0_19] : memref<12x256xf32, #tpu.memory_space<vmem>>, vector<1x256xf32>
    %26 = vector.broadcast %25 : vector<1x256xf32> to vector<256x256xf32>
    %27 = arith.addf %24, %26 : vector<256x256xf32>
    %cst_20 = arith.constant 0.000000e+00 : f32
    %28 = vector.broadcast %cst_20 : f32 to vector<256x256xf32>
    %29 = arith.maximumf %27, %28 : vector<256x256xf32>
    %c0_21 = arith.constant 0 : index
    %c0_22 = arith.constant 0 : index
    %30 = vector.load %arg6[%c0_21, %c0_22] : memref<256x256xf32, #tpu.memory_space<vmem>>, vector<256x256xf32>
    %cst_23 = arith.constant dense<0.000000e+00> : vector<256x256xf32>
    %31 = tpu.matmul %29, %30, %cst_23 {dimension_numbers = #tpu.dot_dimension_numbers<[1], [0], [0], [1], [0, 0, 1, 1], [], []>} : vector<256x256xf32>, vector<256x256xf32>, vector<256x256xf32> -> vector<256x256xf32>
    %c4 = arith.constant 4 : index
    %c0_24 = arith.constant 0 : index
    %32 = vector.load %arg14[%c4, %c0_24] : memref<12x256xf32, #tpu.memory_space<vmem>>, vector<1x256xf32>
    %33 = vector.broadcast %32 : vector<1x256xf32> to vector<256x256xf32>
    %34 = arith.addf %31, %33 : vector<256x256xf32>
    %35 = arith.addf %34, %22 : vector<256x256xf32>
    %cst_25 = arith.constant 0.000000e+00 : f32
    %36 = vector.broadcast %cst_25 : f32 to vector<256x256xf32>
    %37 = arith.maximumf %35, %36 : vector<256x256xf32>
    %c0_26 = arith.constant 0 : index
    %c0_27 = arith.constant 0 : index
    %38 = vector.load %arg7[%c0_26, %c0_27] : memref<256x256xf32, #tpu.memory_space<vmem>>, vector<256x256xf32>
    %cst_28 = arith.constant dense<0.000000e+00> : vector<256x256xf32>
    %39 = tpu.matmul %37, %38, %cst_28 {dimension_numbers = #tpu.dot_dimension_numbers<[1], [0], [0], [1], [0, 0, 1, 1], [], []>} : vector<256x256xf32>, vector<256x256xf32>, vector<256x256xf32> -> vector<256x256xf32>
    %c5 = arith.constant 5 : index
    %c0_29 = arith.constant 0 : index
    %40 = vector.load %arg14[%c5, %c0_29] : memref<12x256xf32, #tpu.memory_space<vmem>>, vector<1x256xf32>
    %41 = vector.broadcast %40 : vector<1x256xf32> to vector<256x256xf32>
    %42 = arith.addf %39, %41 : vector<256x256xf32>
    %cst_30 = arith.constant 0.000000e+00 : f32
    %43 = vector.broadcast %cst_30 : f32 to vector<256x256xf32>
    %44 = arith.maximumf %42, %43 : vector<256x256xf32>
    %c0_31 = arith.constant 0 : index
    %c0_32 = arith.constant 0 : index
    %45 = vector.load %arg8[%c0_31, %c0_32] : memref<256x256xf32, #tpu.memory_space<vmem>>, vector<256x256xf32>
    %cst_33 = arith.constant dense<0.000000e+00> : vector<256x256xf32>
    %46 = tpu.matmul %44, %45, %cst_33 {dimension_numbers = #tpu.dot_dimension_numbers<[1], [0], [0], [1], [0, 0, 1, 1], [], []>} : vector<256x256xf32>, vector<256x256xf32>, vector<256x256xf32> -> vector<256x256xf32>
    %c6 = arith.constant 6 : index
    %c0_34 = arith.constant 0 : index
    %47 = vector.load %arg14[%c6, %c0_34] : memref<12x256xf32, #tpu.memory_space<vmem>>, vector<1x256xf32>
    %48 = vector.broadcast %47 : vector<1x256xf32> to vector<256x256xf32>
    %49 = arith.addf %46, %48 : vector<256x256xf32>
    %50 = arith.addf %49, %37 : vector<256x256xf32>
    %cst_35 = arith.constant 0.000000e+00 : f32
    %51 = vector.broadcast %cst_35 : f32 to vector<256x256xf32>
    %52 = arith.maximumf %50, %51 : vector<256x256xf32>
    %c0_36 = arith.constant 0 : index
    %c0_37 = arith.constant 0 : index
    %53 = vector.load %arg9[%c0_36, %c0_37] : memref<256x128xf32, #tpu.memory_space<vmem>>, vector<256x128xf32>
    %cst_38 = arith.constant dense<0.000000e+00> : vector<256x128xf32>
    %54 = tpu.matmul %52, %53, %cst_38 {dimension_numbers = #tpu.dot_dimension_numbers<[1], [0], [0], [1], [0, 0, 1, 1], [], []>} : vector<256x256xf32>, vector<256x128xf32>, vector<256x128xf32> -> vector<256x128xf32>
    %c7 = arith.constant 7 : index
    %c0_39 = arith.constant 0 : index
    %55 = vector.load %arg14[%c7, %c0_39] : memref<12x256xf32, #tpu.memory_space<vmem>>, vector<1x128xf32>
    %56 = vector.broadcast %55 : vector<1x128xf32> to vector<256x128xf32>
    %57 = arith.addf %54, %56 : vector<256x128xf32>
    %cst_40 = arith.constant 0.000000e+00 : f32
    %58 = vector.broadcast %cst_40 : f32 to vector<256x128xf32>
    %59 = arith.maximumf %57, %58 : vector<256x128xf32>
    %c0_41 = arith.constant 0 : index
    %c0_42 = arith.constant 0 : index
    %60 = vector.load %arg10[%c0_41, %c0_42] : memref<128x128xf32, #tpu.memory_space<vmem>>, vector<128x128xf32>
    %cst_43 = arith.constant dense<0.000000e+00> : vector<256x128xf32>
    %61 = tpu.matmul %59, %60, %cst_43 {dimension_numbers = #tpu.dot_dimension_numbers<[1], [0], [0], [1], [0, 0, 1, 1], [], []>} : vector<256x128xf32>, vector<128x128xf32>, vector<256x128xf32> -> vector<256x128xf32>
    %c8 = arith.constant 8 : index
    %c0_44 = arith.constant 0 : index
    %62 = vector.load %arg14[%c8, %c0_44] : memref<12x256xf32, #tpu.memory_space<vmem>>, vector<1x128xf32>
    %63 = vector.broadcast %62 : vector<1x128xf32> to vector<256x128xf32>
    %64 = arith.addf %61, %63 : vector<256x128xf32>
    %cst_45 = arith.constant 0.000000e+00 : f32
    %65 = vector.broadcast %cst_45 : f32 to vector<256x128xf32>
    %66 = arith.maximumf %64, %65 : vector<256x128xf32>
    %c0_46 = arith.constant 0 : index
    %c0_47 = arith.constant 0 : index
    %67 = vector.load %arg11[%c0_46, %c0_47] : memref<128x256xf32, #tpu.memory_space<vmem>>, vector<128x256xf32>
    %cst_48 = arith.constant dense<0.000000e+00> : vector<256x256xf32>
    %68 = tpu.matmul %66, %67, %cst_48 {dimension_numbers = #tpu.dot_dimension_numbers<[1], [0], [0], [1], [0, 0, 1, 1], [], []>} : vector<256x128xf32>, vector<128x256xf32>, vector<256x256xf32> -> vector<256x256xf32>
    %c9 = arith.constant 9 : index
    %c0_49 = arith.constant 0 : index
    %69 = vector.load %arg14[%c9, %c0_49] : memref<12x256xf32, #tpu.memory_space<vmem>>, vector<1x256xf32>
    %70 = vector.broadcast %69 : vector<1x256xf32> to vector<256x256xf32>
    %71 = arith.addf %68, %70 : vector<256x256xf32>
    %72 = arith.addf %71, %52 : vector<256x256xf32>
    %cst_50 = arith.constant 0.000000e+00 : f32
    %73 = vector.broadcast %cst_50 : f32 to vector<256x256xf32>
    %74 = arith.maximumf %72, %73 : vector<256x256xf32>
    %c0_51 = arith.constant 0 : index
    %c0_52 = arith.constant 0 : index
    %75 = vector.load %arg12[%c0_51, %c0_52] : memref<256x64xf32, #tpu.memory_space<vmem>>, vector<256x64xf32>
    %cst_53 = arith.constant dense<0.000000e+00> : vector<256x64xf32>
    %76 = tpu.matmul %74, %75, %cst_53 {dimension_numbers = #tpu.dot_dimension_numbers<[1], [0], [0], [1], [0, 0, 1, 1], [], []>} : vector<256x256xf32>, vector<256x64xf32>, vector<256x64xf32> -> vector<256x64xf32>
    %c10 = arith.constant 10 : index
    %c0_54 = arith.constant 0 : index
    %77 = vector.load %arg14[%c10, %c0_54] : memref<12x256xf32, #tpu.memory_space<vmem>>, vector<1x64xf32>
    %78 = vector.broadcast %77 : vector<1x64xf32> to vector<256x64xf32>
    %79 = arith.addf %76, %78 : vector<256x64xf32>
    %cst_55 = arith.constant 0.000000e+00 : f32
    %80 = vector.broadcast %cst_55 : f32 to vector<256x64xf32>
    %81 = arith.maximumf %79, %80 : vector<256x64xf32>
    %82 = vector.shape_cast %81 : vector<256x64xf32> to vector<2x128x64xf32>
    %c0_56 = arith.constant 0 : index
    %c0_57 = arith.constant 0 : index
    %83 = vector.load %arg13[%c0_56, %c0_57] : memref<1x64xf32, #tpu.memory_space<vmem>>, vector<1x64xf32>
    %84 = vector.shape_cast %83 : vector<1x64xf32> to vector<1x1x64xf32>
    %85 = vector.broadcast %84 : vector<1x1x64xf32> to vector<2x128x64xf32>
    %86 = arith.mulf %82, %85 : vector<2x128x64xf32>
    %cst_58 = arith.constant dense<0.000000e+00> : vector<2x128xf32>
    %87 = vector.multi_reduction <add>, %86, %cst_58 [2] : vector<2x128x64xf32> to vector<2x128xf32>
    %c11 = arith.constant 11 : index
    %c0_59 = arith.constant 0 : index
    %88 = vector.load %arg14[%c11, %c0_59] : memref<12x256xf32, #tpu.memory_space<vmem>>, vector<1x1xf32>
    %89 = vector.broadcast %88 : vector<1x1xf32> to vector<2x128xf32>
    %90 = arith.addf %87, %89 : vector<2x128xf32>
    %91 = arith.negf %90 : vector<2x128xf32>
    %92 = math.exp %91 : vector<2x128xf32>
    %cst_60 = arith.constant 1.000000e+00 : f32
    %93 = vector.broadcast %cst_60 : f32 to vector<2x128xf32>
    %94 = arith.addf %93, %92 : vector<2x128xf32>
    %95 = arith.divf %93, %94 : vector<2x128xf32>
    %96 = vector.shape_cast %95 : vector<2x128xf32> to vector<1x2x128xf32>
    %c0_61 = arith.constant 0 : index
    %c0_62 = arith.constant 0 : index
    %c0_63 = arith.constant 0 : index
    %97 = vector.load %arg15[%c0_61, %c0_62, %c0_63] : memref<1x2x128xf32, #tpu.memory_space<vmem>>, vector<1x2x128xf32>
    tpu.vector_store %arg15[%c0_61, %c0_62, %c0_63], %96 {strides = array<i32>} : memref<1x2x128xf32, #tpu.memory_space<vmem>>, vector<1x2x128xf32>,
    return
  }
  func.func @transform_0(%arg0: i32) -> (i32, i32) {
    %c0_i32 = arith.constant 0 : i32
    %c0_i32_0 = arith.constant 0 : i32
    return %arg0, %c0_i32 : i32, i32
  }
  func.func @transform_1(%arg0: i32) -> (i32, i32) {
    %c0_i32 = arith.constant 0 : i32
    %c0_i32_0 = arith.constant 0 : i32
    %c0_i32_1 = arith.constant 0 : i32
    return %c0_i32, %c0_i32_0 : i32, i32
  }
  func.func @transform_2(%arg0: i32) -> (i32, i32) {
    %c0_i32 = arith.constant 0 : i32
    %c0_i32_0 = arith.constant 0 : i32
    %c0_i32_1 = arith.constant 0 : i32
    return %c0_i32, %c0_i32_0 : i32, i32
  }
  func.func @transform_3(%arg0: i32) -> (i32, i32) {
    %c0_i32 = arith.constant 0 : i32
    %c0_i32_0 = arith.constant 0 : i32
    %c0_i32_1 = arith.constant 0 : i32
    return %c0_i32, %c0_i32_0 : i32, i32
  }
  func.func @transform_4(%arg0: i32) -> (i32, i32) {
    %c0_i32 = arith.constant 0 : i32
    %c0_i32_0 = arith.constant 0 : i32
    %c0_i32_1 = arith.constant 0 : i32
    return %c0_i32, %c0_i32_0 : i32, i32
  }
  func.func @transform_5(%arg0: i32) -> (i32, i32) {
    %c0_i32 = arith.constant 0 : i32
    %c0_i32_0 = arith.constant 0 : i32
    %c0_i32_1 = arith.constant 0 : i32
    return %c0_i32, %c0_i32_0 : i32, i32
  }
  func.func @transform_6(%arg0: i32) -> (i32, i32) {
    %c0_i32 = arith.constant 0 : i32
    %c0_i32_0 = arith.constant 0 : i32
    %c0_i32_1 = arith.constant 0 : i32
    return %c0_i32, %c0_i32_0 : i32, i32
  }
  func.func @transform_7(%arg0: i32) -> (i32, i32) {
    %c0_i32 = arith.constant 0 : i32
    %c0_i32_0 = arith.constant 0 : i32
    %c0_i32_1 = arith.constant 0 : i32
    return %c0_i32, %c0_i32_0 : i32, i32
  }
  func.func @transform_8(%arg0: i32) -> (i32, i32) {
    %c0_i32 = arith.constant 0 : i32
    %c0_i32_0 = arith.constant 0 : i32
    %c0_i32_1 = arith.constant 0 : i32
    return %c0_i32, %c0_i32_0 : i32, i32
  }
  func.func @transform_9(%arg0: i32) -> (i32, i32) {
    %c0_i32 = arith.constant 0 : i32
    %c0_i32_0 = arith.constant 0 : i32
    %c0_i32_1 = arith.constant 0 : i32
    return %c0_i32, %c0_i32_0 : i32, i32
  }
  func.func @transform_10(%arg0: i32) -> (i32, i32) {
    %c0_i32 = arith.constant 0 : i32
    %c0_i32_0 = arith.constant 0 : i32
    %c0_i32_1 = arith.constant 0 : i32
    return %c0_i32, %c0_i32_0 : i32, i32
  }
  func.func @transform_11(%arg0: i32) -> (i32, i32) {
    %c0_i32 = arith.constant 0 : i32
    %c0_i32_0 = arith.constant 0 : i32
    %c0_i32_1 = arith.constant 0 : i32
    return %c0_i32, %c0_i32_0 : i32, i32
  }
  func.func @transform_12(%arg0: i32) -> (i32, i32) {
    %c0_i32 = arith.constant 0 : i32
    %c0_i32_0 = arith.constant 0 : i32
    %c0_i32_1 = arith.constant 0 : i32
    return %c0_i32, %c0_i32_0 : i32, i32
  }
  func.func @transform_13(%arg0: i32) -> (i32, i32) {
    %c0_i32 = arith.constant 0 : i32
    %c0_i32_0 = arith.constant 0 : i32
    %c0_i32_1 = arith.constant 0 : i32
    return %c0_i32, %c0_i32_0 : i32, i32
  }
  func.func @transform_14(%arg0: i32) -> (i32, i32, i32) {
    %c0_i32 = arith.constant 0 : i32
    %c0_i32_0 = arith.constant 0 : i32
    %c0_i32_1 = arith.constant 0 : i32
    return %arg0, %c0_i32, %c0_i32_0 : i32, i32, i32
  }
}

</mosaic_0001>

<bundles_post_ra>
// kernel: flight_delay_classifier.1
= control target key start
LH: loop header
LB: loop body
LE: loop exit
PB: predicated region body
PF: predicated region fallthrough
CT: control target
= control target key end

     0   :  { %s14124_s0 = inlined_call_operand.vmem [shape: f32[512,16], index: 0, kind: input, shape index: {}]   ;;  %s14125_s1 = inlined_call_operand.hbm [shape: f32[16,256], index: 1, kind: input, shape index: {}]   ;;  %s14126_s2 = inlined_call_operand.vmem [shape: f32[256,256], index: 2, kind: input, shape index: {}]   ;;  %s14127_s3 = inlined_call_operand.hbm [shape: f32[256,256], index: 3, kind: input, shape index: {}]   ;;  %s14128_s4 = inlined_call_operand.hbm [shape: f32[256,256], index: 4, kind: input, shape index: {}]   ;;  %s14129_s5 = inlined_call_operand.hbm [shape: f32[256,256], index: 5, kind: input, shape index: {}]   ;;  %s14130_s6 = inlined_call_operand.hbm [shape: f32[256,256], index: 6, kind: input, shape index: {}]   ;;  %s14131_s7 = inlined_call_operand.hbm [shape: f32[256,256], index: 7, kind: input, shape index: {}]   ;;  %s14132_s8 = inlined_call_operand.vmem [shape: f32[256,128], index: 8, kind: input, shape index: {}]   ;;  %s14133_s9 = inlined_call_operand.vmem [shape: f32[128,128], index: 9, kind: input, shape index: {}]   ;;  %s14134_s10 = inlined_call_operand.hbm [shape: f32[128,256], index: 10, kind: input, shape index: {}]   ;;  %s14135_s11 = inlined_call_operand.vmem [shape: f32[256,64], index: 11, kind: input, shape index: {}]   ;;  %s14136_s12 = inlined_call_operand.vmem [shape: f32[1,64], index: 12, kind: input, shape index: {}]   ;;  %s14137_s13 = inlined_call_operand.hbm [shape: f32[12,256], index: 13, kind: input, shape index: {}]   ;;  %s14138_s14 = inlined_call_operand.hbm [shape: f32[2,2,128], index: 14, kind: output, shape index: {}]  }
   0x1   :  { %14536 = sst [smem:[#allocation110_spill]] %s14127_s3 }
   0x2   :  { %14537 = sst [smem:[#allocation111_spill]] %s14129_s5 }
   0x3   :  { %19 = vsyncpa [#allocation3], 0 }
   0x4   :  { %20 = vsyncpa [#allocation6], 0 }
   0x5   :  { %21 = vsyncpa [#allocation9], 0 }
   0x6   :  { %22 = vsyncpa [#allocation12], 0 }
   0x7   :  { %23 = vsyncpa [#allocation15], 0 }
   0x8   :  { %24 = vsyncpa [#allocation4], 0 }
   0x9   :  { %26 = vsyncpa [#allocation4 + $0x1], 0  ;;  %s7755_s29 = smov 0   ;;  %s7757_s30 = smov 0  }
   0xa   :  { %s7759_s15 = smov 0   ;;  %s7761_s16 = smov 0  }
   0xb LB: > { %14538 = sst [smem:[#allocation23_spill]] %s7655_s29  ;;  %s7776_s17 = sadd.s32 4294967295, %s7667_s16   ;;  %s7667_s16 = sphi %s7761_s16, %s15385_s16   ;;  %s7663_s15 = sphi %s7759_s15, %s15387_s15   ;;  %s7659_s30 = sphi %s7757_s30, %s15389_s30   ;;  %s7655_s29 = sphi %s7755_s29, %s15388_s29  }
   0xc   : > { %14539 = sst [smem:[#allocation24_spill]] %s7663_s15  ;;  %s6944_s18 = sadd.s32 4294967294, %s7667_s16  }
   0xd   : > { %14540 = sst [smem:[#allocation25_spill]] %s7667_s16  ;;  %s7780_s19 = sadd.s32 1, %s7667_s16  }
   0xe   : > { %14541 = sst [smem:[#allocation26_spill]] %s7780_s19  ;;  %s338_s20 = sadd.s32 1, %s7663_s15 }
   0xf   : > { %s335_s21 = ssub.s32 %s7667_s16, %s7780_s19  ;;  %p348_p0 = scmp.ne.s32.totalorder %s7663_s15, %s7659_s30 }
  0x10   : > { %p336_p1 = scmp.eq.s32.totalorder %s335_s21, 0  ;;  %p349_p2 = scmp.eq.s32.totalorder %s7776_s17, 1 }
  0x11   : > { %p354_p3 = scmp.ne.s32.totalorder %s7659_s30, %s7655_s29  ;;  %p355_p4 = scmp.eq.s32.totalorder %s6944_s18, 1 }
  0x12   : > { %s7791_s22 = scalar_select %p336_p1, %s7663_s15, %s338_s20  }
  0x13   : > { %p7793_p5 = por %p349_p2, %p348_p0  ;;  %p7797_p6 = por %p355_p4, %p354_p3 }
  0x14   : > { %14542 = sst [smem:[#allocation27_spill]] %s7791_s22  ;;  %p6945_p7 = scmp.ge.s32.totalorder %s7667_s16, 1 }
  0x15   : > { %s14543_s23 = scalar_select %p7793_p5, 1, 0 }
  0x16   : > { %s14545_s24 = scalar_select %p7797_p6, 1, 0 }
  0x17   : > { %14544 = sst [smem:[#allocation28_spill]] %s14543_s23  ;;  %p362_p8 = scmp.lt.s32.totalorder %s7667_s16, 3 }
  0x18   : > { %14546 = sst [smem:[#allocation29_spill]] %s14545_s24  ;;  %p7152_p9 = scmp.eq.s32.totalorder %s7776_s17, 0 }
  0x19   : > { %p7804_p10 = pnand %p6945_p7, %p362_p8  ;;  %s14548_s3 = sld [smem:[#allocation110_spill]] }
  0x1a   : > { %s14549_s5 = sld [smem:[#allocation111_spill]]  ;;  %s7669_s15 = smov [#allocation5]  }
  0x1b   : > { %p7123_p11 = pneg %p7804_p10  ;;  %s392_s19 = sshll.u32 %s7669_s15, 4  ;;  %s393_s19 = int_to_ptr.vmem [resolvable:$true] %s392_s19 }
  0x1c   : > { %s7670_s26 = smov 256   ;;  %s7671_s27 = smov 16  }
  0x1d   : > { %p7818_p12 = pnand %p7152_p9, %p7123_p11  ;;  %s7672_s18 = smov [#allocation8]  }
  0x1e   : > { %s420_s20 = sshll.u32 %s7672_s18, 4  ;;  %s446_s24 = sshll.u32 %s14131_s7, 4  ;;  %s421_s20 = int_to_ptr.vmem [resolvable:$true] %s420_s20  ;;  %s447_s24 = int_to_ptr.hbm [resolvable:$true] %s446_s24 }
  0x1f   : > { %s390_s28 = sshll.u32 %s14548_s3, 4  ;;  %s373_s16 = sshll.u32 %s14125_s1, 4  ;;  %s391_s28 = int_to_ptr.hbm [resolvable:$true] %s390_s28  ;;  %s374_s16 = int_to_ptr.hbm [resolvable:$true] %s373_s16 }
  0x20   : > { %s418_s21 = sshll.u32 %s14549_s5, 4  ;;  %s7673_s23 = smov [#allocation11]   ;;  %s419_s21 = int_to_ptr.hbm [resolvable:$true] %s418_s21 }
  0x21   : > { %7129 = dma.hbm_to_vmem [thread:$0]  (!%p7818_p12), %s391_s28, 8192, %s393_s19, [#allocation6], %s7670_s26, %s7670_s26, %s7671_s27  }
  0x22   : > { %7135 = dma.hbm_to_vmem [thread:$0]  (!%p7818_p12), %s419_s21, 8192, %s421_s20, [#allocation9], %s7670_s26, %s7670_s26, %s7671_s27  }
  0x23   : > { %s448_s19 = sshll.u32 %s7673_s23, 4  ;;  %s7674_s3 = smov [#allocation2]   ;;  %s449_s19 = int_to_ptr.vmem [resolvable:$true] %s448_s19 }
  0x24   : > { %7141 = dma.hbm_to_vmem [thread:$0]  (!%p7818_p12), %s447_s24, 8192, %s449_s19, [#allocation12], %s7670_s26, %s7670_s26, %s7671_s27  }
  0x25   : > { %s375_s5 = sshll.u32 %s7674_s3, 4  ;;  %s404_s21 = sshll.u32 %s14128_s4, 4  ;;  %s376_s5 = int_to_ptr.vmem [resolvable:$true] %s375_s5  ;;  %s405_s21 = int_to_ptr.hbm [resolvable:$true] %s404_s21 }
  0x26   : > { %7126 = dma.hbm_to_vmem [thread:$0]  (!%p7818_p12), %s374_s16, 512, %s376_s5, [#allocation3], %s7670_s26, %s7670_s26, %s7671_s27  }
  0x27   : > { %s432_s20 = sshll.u32 %s14130_s6, 4  ;;  %s7675_s15 = smov [#allocation7]   ;;  %s433_s20 = int_to_ptr.hbm [resolvable:$true] %s432_s20 }
  0x28   : > { %s406_s24 = sshll.u32 %s7675_s15, 4  ;;  %s7676_s19 = smov [#allocation10]   ;;  %s407_s24 = int_to_ptr.vmem [resolvable:$true] %s406_s24 }
  0x29   : > { %7132 = dma.hbm_to_vmem [thread:$0]  (!%p7818_p12), %s405_s21, 8192, %s407_s24, [#allocation6], %s7670_s26, %s7670_s26, %s7671_s27  }
  0x2a   : > { %s434_s3 = sshll.u32 %s7676_s19, 4  ;;  %s466_s16 = sshll.u32 %s14134_s10, 4  ;;  %s435_s3 = int_to_ptr.vmem [resolvable:$true] %s434_s3  ;;  %s467_s16 = int_to_ptr.hbm [resolvable:$true] %s466_s16 }
  0x2b   : > { %7138 = dma.hbm_to_vmem [thread:$0]  (!%p7818_p12), %s433_s20, 8192, %s435_s3, [#allocation9], %s7670_s26, %s7670_s26, %s7671_s27  }
  0x2c   : > { %s486_s23 = sshll.u32 %s14137_s13, 4  ;;  %s7677_s15 = smov [#allocation13]   ;;  %s487_s23 = int_to_ptr.hbm [resolvable:$true] %s486_s23 }
  0x2d   : > { %s468_s21 = sshll.u32 %s7677_s15, 4  ;;  %s7678_s24 = smov [#allocation14]   ;;  %s469_s21 = int_to_ptr.vmem [resolvable:$true] %s468_s21 }
  0x2e   : > { %7144 = dma.hbm_to_vmem [thread:$0]  (!%p7818_p12), %s467_s16, 4096, %s469_s21, [#allocation12], %s7670_s26, %s7670_s26, %s7671_s27  }
  0x2f   : > { %s488_s19 = sshll.u32 %s7678_s24, 4  ;;  %513 = sbr.rel (%p7804_p10) target bundleno = 2762 (0xaca), region = 76  ;;  %s489_s19 = int_to_ptr.vmem [resolvable:$true] %s488_s19 }
  0x30   : > { %7147 = dma.hbm_to_vmem [thread:$0]  (!%p7818_p12), %s487_s23, 512, %s489_s19, [#allocation15], %s7670_s26, %s7670_s26, %s7671_s27  }
  0x34   : > { %7630 = dma.done.wait (%p7152_p9), [#allocation3], 512  }
  0x35   : > { %7632 = vsyncadd (%p7152_p9), [#allocation3], 4294966784 }
  0x36   : > { %7634 = dma.done.wait (%p7152_p9), [#allocation6], 16384  }
  0x37   : > { %7636 = vsyncadd (%p7152_p9), [#allocation6], 4294950912 }
  0x38   : > { %7638 = dma.done.wait (%p7152_p9), [#allocation9], 16384  }
  0x39   : > { %7640 = vsyncadd (%p7152_p9), [#allocation9], 4294950912 }
  0x3a   : > { %7642 = dma.done.wait (%p7152_p9), [#allocation12], 12288  }
  0x3b   : > { %7644 = vsyncadd (%p7152_p9), [#allocation12], 4294955008 }
  0x3c   : > { %7646 = dma.done.wait (%p7152_p9), [#allocation15], 512  }
  0x3d   : > { %7648 = vsyncadd (%p7152_p9), [#allocation15], 4294966784  ;;  %s6965_s22 = sshll.u32 %s7776_s17, 5  ;;  %v635_v0 = vld [vmem:[#allocation2 + $0x10] sm:$0xff]  ;;  %v633_v1 = vld [vmem:[#allocation2] sm:$0xff]  ;;  %vm643_vm0 = vcmask 130048  }
  0x3e   : > { %p596_p13 = scmp.lt.s32.totalorder %s6965_s22, 63  ;;  %754 = vmatpush.msra.mxu0 %v635_v0  ;;  %7067 = vmatpush.msra.mxu1 %v635_v0  ;;  %v636_v4 = vld [vmem:[#allocation2 + $0x18] sm:$0xff]  ;;  %v634_v5 = vld [vmem:[#allocation2 + $0x8] sm:$0xff]  ;;  %v1060_v29 = vld [vmem:[%s14126_s2 + $0xf0] sm:$0xff]  ;;  %vm5917_vm1 = vcmask 523264   ;;  %vm6697_vm10 = vcmask 130112  }
  0x3f   : > { %7068 = vmatpush.msra.mxu2 %v635_v0  ;;  %7069 = vmatpush.msra.mxu3 %v635_v0  ;;  %v1093_v17 = vld [vmem:[%s14126_s2 + $0x1f8] sm:$0xff]  ;;  %v1091_v24 = vld [vmem:[%s14126_s2 + $0x1e8] sm:$0xff]  ;;  %v1058_v31 = vld [vmem:[%s14126_s2 + $0xe0] sm:$0xff]  ;;  %s592_s19 = sand.u32 1, %s7659_s30   ;;  %s7605_s21 = scalar_lea.hbm %s14138_s14, 4 }
  0x40   : > { %s15391_s22 = smov (!%p596_p13, %s6965_s22), 63  ;;  %755 = vmatpush.msra.mxu0 %v633_v1  ;;  %7070 = vmatpush.msra.mxu1 %v633_v1  ;;  %v1061_v30 = vld [vmem:[%s14126_s2 + $0xf8] sm:$0xff]  ;;  %v1059_v32 = vld [vmem:[%s14126_s2 + $0xe8] sm:$0xff]  ;;  %v1056_v34 = vld [vmem:[%s14126_s2 + $0xd0] sm:$0xff]  ;;  %s6791_s16 = scalar_lea.sflag [#allocation4], %s592_s19 }
  0x41   : > { %s6966_s25 = sshll.u32 %s15391_s22, 3  ;;  %7071 = vmatpush.msra.mxu2 %v633_v1  ;;  %7072 = vmatpush.msra.mxu3 %v633_v1  ;;  %v1057_v33 = vld [vmem:[%s14126_s2 + $0xd8] sm:$0xff]  ;;  %v1054_v37 = vld [vmem:[%s14126_s2 + $0xc0] sm:$0xff]  ;;  %v1055_v38 = vld [vmem:[%s14126_s2 + $0xc8] sm:$0xff]  ;;  %s14048_s22 = sshll.u32 %s592_s19, 1 }
  0x42   : > { %s7906_s20 = scalar_lea.vmem %s14124_s0, %s6966_s25  ;;  %867 = vmatpush.msrb.mxu1 %v636_v4  ;;  %1327 = vmatpush.msrb.mxu0 %v1061_v30  ;;  %v1089_v36 = vld [vmem:[%s14126_s2 + $0x1d8] sm:$0xff]  ;;  %v1052_v40 = vld [vmem:[%s14126_s2 + $0xb0] sm:$0xff]  ;;  %v1050_v42 = vld [vmem:[%s14126_s2 + $0xa0] sm:$0xff]  ;;  %s7064_s25 = sshll.u32 %s7776_s17, 1 }
  0x43   : > { %v7909_v2 = vld [vmem:[%s7906_s20] sm:$0xff]  ;;  %v7912_v3 = vld [vmem:[%s7906_s20 + $0x50] sm:$0xff]  ;;  %v7919_v6 = vld [vmem:[%s7906_s20 + $0x8] sm:$0xff]  ;;  %1101 = vmatpush.msrb.mxu2 %v1060_v29  ;;  %s6801_s27 = scalar_lea.hbm %s14138_s14, %s7064_s25  ;;  %s594_s3 = scalar_lea.vmem [#allocation16], %s14048_s22 }
  0x44   : > { %6967 = vmatmul.msk.f32.vlgmr.msra.gmra.mxu0 %vm643_vm0, %v7909_v2  ;;  %6977 = vmatmul.msk.f32.vlgmr.msra.gmra.mxu1 %vm643_vm0, %v7912_v3  ;;  %v7922_v7 = vld [vmem:[%s7906_s20 + $0x58] sm:$0xff]  ;;  %v7929_v8 = vld [vmem:[%s7906_s20 + $0x10] sm:$0xff]  ;;  %v7932_v9 = vld [vmem:[%s7906_s20 + $0x60] sm:$0xff]  ;;  %s14087_s28 = sshll.u32 %s594_s3, 4  ;;  %s6805_s18 = sshll.u32 %s6801_s27, 4  ;;  %s6804_s28 = int_to_ptr.vmem [resolvable:$true] %s14087_s28  ;;  %s6806_s18 = int_to_ptr.hbm [resolvable:$true] %s6805_s18 }
  0x45   : > { %868 = vmatpush.msrb.mxu1 %v634_v5  ;;  %v7939_v10 = vld [vmem:[%s7906_s20 + $0x18] sm:$0xff]  ;;  %v7942_v11 = vld [vmem:[%s7906_s20 + $0x68] sm:$0xff]  ;;  %v7949_v12 = vld [vmem:[%s7906_s20 + $0x20] sm:$0xff]  ;;  %1328 = vmatpush.msrb.mxu0 %v1059_v32  ;;  %s7599_s5 = sshra.s32 %s6806_s18, 4  ;;  %s7600_s5 = int_to_ptr.hbm [resolvable:$true] %s7599_s5 }
  0x46   : > { %v7952_v13 = vld [vmem:[%s7906_s20 + $0x70] sm:$0xff]  ;;  %v7959_v14 = vld [vmem:[%s7906_s20 + $0x98] sm:$0xff]  ;;  %v7964_v15 = vld [vmem:[%s7906_s20 + $0x28] sm:$0xff]  ;;  %1102 = vmatpush.msrb.mxu2 %v1058_v31  ;;  %s7601_s29 = scalar_lea.hbm %s7600_s5, 2  ;;  %p7606_p3 = scmp.lt.s32.totalorder %s7600_s5, %s14138_s14 }
  0x47   : > { %6986 = vmatmul.msk.f32.vlgmr.msra.gmra.mxu2 %vm643_vm0, %v7959_v14  ;;  %v7967_v16 = vld [vmem:[%s7906_s20 + $0x78] sm:$0xff]  ;;  %v7977_v18 = vld [vmem:[%s7906_s20 + $0xa0] sm:$0xff]  ;;  %1440 = vmatpush.msra.mxu1 %v1093_v17  ;;  %v7982_v19 = vld [vmem:[%s7906_s20 + $0x30] sm:$0xff]  ;;  %p7602_p0 = scmp.ne.s32.totalorder %s7600_s5, %s7601_s29  ;;  %p7607_p4 = scmp.lt.s32.totalorder %s7605_s21, %s7601_s29 }
  0x48   : > { %v7985_v20 = vld [vmem:[%s7906_s20 + $0x80] sm:$0xff]  ;;  %v7992_v21 = vld [vmem:[%s7906_s20 + $0xa8] sm:$0xff]  ;;  %v7997_v22 = vld [vmem:[%s7906_s20 + $0x38] sm:$0xff]  ;;  %1329 = vmatpush.msrb.mxu0 %v1057_v33  ;;  %1103 = vmatpush.msrb.mxu2 %v1056_v34 }
  0x49   : > { %v8000_v23 = vld [vmem:[%s7906_s20 + $0x88] sm:$0xff]  ;;  %v8010_v25 = vld [vmem:[%s7906_s20 + $0xb0] sm:$0xff]  ;;  %1441 = vmatpush.msra.mxu1 %v1091_v24  ;;  %v8015_v26 = vld [vmem:[%s7906_s20 + $0x40] sm:$0xff]  ;;  %p7603_p1 = pnand %p7602_p0, %p7793_p5  ;;  %p7608_p7 = por %p7607_p4, %p7606_p3 }
  0x4a   : > { %v8018_v27 = vld [vmem:[%s7906_s20 + $0x90] sm:$0xff]  ;;  %v8025_v28 = vld [vmem:[%s7906_s20 + $0xb8] sm:$0xff]  ;;  %v8048_v35 = vld [vmem:[%s7906_s20 + $0x48] sm:$0xff]  ;;  %1104 = vmatpush.msrb.mxu2 %v1054_v37  ;;  %1330 = vmatpush.msrb.mxu0 %v1055_v38 }
  0x4b   : > { %1442 = vmatpush.msra.mxu1 %v1089_v36  ;;  %v8064_v39 = vld [vmem:[%s7906_s20 + $0xc0] sm:$0xff]  ;;  %v1053_v41 = vld [vmem:[%s14126_s2 + $0xb8] sm:$0xff]  ;;  %v1051_v43 = vld [vmem:[%s14126_s2 + $0xa8] sm:$0xff]  ;;  %p7604_p2 = pneg %p7603_p1 }
  0x4c   : > { %6968 = vmatmul.msk.f32.gmra.mxu0 %vm643_vm0, %v7919_v6  ;;  %6978 = vmatmul.msk.f32.gmra.mxu1 %vm643_vm0, %v7922_v7  ;;  %v1048_v44 = vld [vmem:[%s14126_s2 + $0x90] sm:$0xff]  ;;  %v1049_v45 = vld [vmem:[%s14126_s2 + $0x98] sm:$0xff]  ;;  %v1046_v46 = vld [vmem:[%s14126_s2 + $0x80] sm:$0xff] }
  0x4d   : > { %1105 = vmatpush.msrb.mxu2 %v1052_v40  ;;  %1331 = vmatpush.msrb.mxu0 %v1053_v41  ;;  %v1047_v47 = vld [vmem:[%s14126_s2 + $0x88] sm:$0xff]  ;;  %v1044_v49 = vld [vmem:[%s14126_s2 + $0x70] sm:$0xff]  ;;  %v1045_v50 = vld [vmem:[%s14126_s2 + $0x78] sm:$0xff]  ;;  %p7609_p8 = pnand %p7608_p7, %p7604_p2 }
  0x4e   : > { %v8095_v48 = vld [vmem:[%s7906_s20 + $0xc8] sm:$0xff]  ;;  %v1042_v51 = vld [vmem:[%s14126_s2 + $0x60] sm:$0xff]  ;;  %v1040_v53 = vld [vmem:[%s14126_s2 + $0x50] sm:$0xff] }
  0x4f   : > { %6987 = vmatmul.msk.f32.gmra.mxu2 %vm643_vm0, %v7977_v18  ;;  %1332 = vmatpush.msrb.mxu0 %v1051_v43  ;;  %v1043_v52 = vld [vmem:[%s14126_s2 + $0x68] sm:$0xff]  ;;  %v1041_v54 = vld [vmem:[%s14126_s2 + $0x58] sm:$0xff]  ;;  %v1038_v56 = vld [vmem:[%s14126_s2 + $0x40] sm:$0xff] }
  0x50   : > { %1106 = vmatpush.msrb.mxu2 %v1050_v42  ;;  %v1087_v55 = vld [vmem:[%s14126_s2 + $0x1c8] sm:$0xff]  ;;  %v8129_v58 = vld [vmem:[%s7906_s20 + $0xd0] sm:$0xff]  ;;  %v1037_v60 = vld [vmem:[%s14126_s2 + $0x38] sm:$0xff] }
  0x51   : > { %1333 = vmatpush.msrb.mxu0 %v1049_v45  ;;  %v1039_v57 = vld [vmem:[%s14126_s2 + $0x48] sm:$0xff]  ;;  %1443 = vmatpush.msra.mxu1 %v1087_v55  ;;  %v1036_v59 = vld [vmem:[%s14126_s2 + $0x30] sm:$0xff]  ;;  %v1034_v61 = vld [vmem:[%s14126_s2 + $0x20] sm:$0xff] }
  0x52   : > { %1107 = vmatpush.msrb.mxu2 %v1048_v44  ;;  %v1035_v62 = vld [vmem:[%s14126_s2 + $0x28] sm:$0xff]  ;;  %v1032_v63 = vld [vmem:[%s14126_s2 + $0x10] sm:$0xff]  ;;  %v1033_v0 = vld [vmem:[%s14126_s2 + $0x18] sm:$0xff] }
  0x53   : > { %1334 = vmatpush.msrb.mxu0 %v1047_v47  ;;  %v1030_v1 = vld [vmem:[%s14126_s2] sm:$0xff]  ;;  %v1085_v4 = vld [vmem:[%s14126_s2 + $0x1b8] sm:$0xff]  ;;  %v1088_v34 = vld [vmem:[%s14126_s2 + $0x1d0] sm:$0xff] }
  0x54   : > { %6969 = vmatmul.msk.f32.gmra.mxu0 %vm643_vm0, %v7929_v8  ;;  %6979 = vmatmul.msk.f32.gmra.mxu1 %vm643_vm0, %v7932_v9  ;;  %v8166_v5 = vld [vmem:[#allocation14] ss:$8 sm:$0x3]  ;;  %v1081_v33 = vld [vmem:[%s14126_s2 + $0x198] sm:$0xff]  ;;  %v1084_v42 = vld [vmem:[%s14126_s2 + $0x1b0] sm:$0xff] }
  0x55   : > { %1108 = vmatpush.msrb.mxu2 %v1046_v46  ;;  %1335 = vmatpush.msrb.mxu0 %v1045_v50  ;;  %v1090_v32 = vld [vmem:[%s14126_s2 + $0x1e0] sm:$0xff]  ;;  %v8233_v44 = vld [vmem:[%s7906_s20 + $0xe8] sm:$0xff] }
  0x56   : > { %1444 = vmatpush.msra.mxu1 %v1085_v4  ;;  %v8210_v36 = vld [vmem:[%s7906_s20 + $0xe0] sm:$0xff] }
  0x57   : > { %6988 = vmatmul.msk.f32.gmra.mxu2 %vm643_vm0, %v7992_v21  ;;  %1336 = vmatpush.msrb.mxu0 %v1043_v52  ;;  %v1082_v43 = vld [vmem:[%s14126_s2 + $0x1a0] sm:$0xff]  ;;  %v1079_v52 = vld [vmem:[%s14126_s2 + $0x188] sm:$0xff] }
  0x58   : > { %1109 = vmatpush.msrb.mxu2 %v1044_v49  ;;  %v1078_v50 = vld [vmem:[%s14126_s2 + $0x180] sm:$0xff] }
  0x59   : > { %1337 = vmatpush.msrb.mxu0 %v1041_v54 }
  0x5a   : > { %1110 = vmatpush.msrb.mxu2 %v1042_v51  ;;  %v1076_v51 = vld [vmem:[%s14126_s2 + $0x170] sm:$0xff] }
  0x5b   : > { %1338 = vmatpush.msrb.mxu0 %v1039_v57  ;;  %v1072_v57 = vld [vmem:[%s14126_s2 + $0x150] sm:$0xff] }
  0x5c   : > { %6970 = vmatmul.msk.f32.gmra.mxu0 %vm643_vm0, %v7939_v10  ;;  %6980 = vmatmul.msk.f32.gmra.mxu1 %vm643_vm0, %v7942_v11 }
  0x5d   : > { %1111 = vmatpush.msrb.mxu2 %v1040_v53  ;;  %1339 = vmatpush.msrb.mxu0 %v1037_v60  ;;  %v8259_v53 = vld [vmem:[%s7906_s20 + $0xf0] sm:$0xff]  ;;  %v1070_v60 = vld [vmem:[%s14126_s2 + $0x140] sm:$0xff] }
  0x5f   : > { %6989 = vmatmul.msk.f32.gmra.mxu2 %vm643_vm0, %v8010_v25  ;;  %1340 = vmatpush.msrb.mxu0 %v1035_v62  ;;  %v1068_v62 = vld [vmem:[%s14126_s2 + $0x130] sm:$0xff] }
  0x60   : > { %1112 = vmatpush.msrb.mxu2 %v1038_v56 }
  0x61   : > { %1341 = vmatpush.msrb.mxu0 %v1033_v0 }
  0x62   : > { %1113 = vmatpush.msrb.mxu2 %v1036_v59 }
  0x64   : > { %6971 = vmatmul.msk.f32.gmra.mxu0 %vm643_vm0, %v7949_v12  ;;  %6981 = vmatmul.msk.f32.gmra.mxu1 %vm643_vm0, %v7952_v13 }
  0x65   : > { %1114 = vmatpush.msrb.mxu2 %v1034_v61  ;;  %v8282_v61 = vld [vmem:[%s7906_s20 + $0xf8] sm:$0xff] }
  0x67   : > { %6990 = vmatmul.msk.f32.gmra.mxu2 %vm643_vm0, %v8025_v28 }
  0x68   : > { %1115 = vmatpush.msrb.mxu2 %v1032_v63 }
  0x6a   : > { %1116 = vmatpush.msrb.mxu2 %v1030_v1 }
  0x6c   : > { %6972 = vmatmul.msk.f32.gmra.mxu0 %vm643_vm0, %v7964_v15  ;;  %6982 = vmatmul.msk.f32.gmra.mxu1 %vm643_vm0, %v7967_v16 }
  0x6f   : > { %6991 = vmatmul.msk.f32.gmra.mxu2 %vm643_vm0, %v8064_v39 }
  0x74   : > { %6973 = vmatmul.msk.f32.gmra.mxu0 %vm643_vm0, %v7982_v19  ;;  %6983 = vmatmul.msk.f32.gmra.mxu1 %vm643_vm0, %v7985_v20 }
  0x77   : > { %6992 = vmatmul.msk.f32.gmra.mxu2 %vm643_vm0, %v8095_v48 }
  0x7c   : > { %6974 = vmatmul.msk.f32.gmra.mxu0 %vm643_vm0, %v7997_v22  ;;  %6984 = vmatmul.msk.f32.gmra.mxu1 %vm643_vm0, %v8000_v23 }
  0x7f   : > { %6993 = vmatmul.msk.f32.gmra.mxu2 %vm643_vm0, %v8129_v58 }
  0x84   : > { %6975 = vmatmul.msk.f32.gmra.mxu0 %vm643_vm0, %v8015_v26  ;;  %6985 = vmatmul.msk.f32.gmra.mxu1 %vm643_vm0, %v8018_v27 }
  0x8c   : > { %6976 = vmatmul.msk.f32.gmra.mxu0 %vm643_vm0, %v8048_v35  ;;  %6999 = vmatmul.msk.f32.vlgmr.msrb.gmra.mxu1 %vm643_vm0, %v7909_v2  ;;  %v1031_v2 = vld [vmem:[%s14126_s2 + $0x8] sm:$0xff] }
  0x8d   : > { %1342 = vmatpush.msrb.mxu0 %v1031_v2  ;;  %v1064_v2 = vld [vmem:[%s14126_s2 + $0x110] sm:$0xff] }
  0x94   : > { %7000 = vmatmul.msk.f32.gmra.mxu1 %vm643_vm0, %v7919_v6  ;;  %v1083_v6 = vld [vmem:[%s14126_s2 + $0x1a8] sm:$0xff] }
  0x95   : > { %1445 = vmatpush.msra.mxu1 %v1083_v6  ;;  %v1077_v6 = vld [vmem:[%s14126_s2 + $0x178] sm:$0xff] }
  0x97   : > { %1446 = vmatpush.msra.mxu1 %v1081_v33 }
  0x99   : > { %1447 = vmatpush.msra.mxu1 %v1079_v52 }
  0x9b   : > { %1448 = vmatpush.msra.mxu1 %v1077_v6 }
  0x9c   : > { %7001 = vmatmul.msk.f32.gmra.mxu1 %vm643_vm0, %v7929_v8  ;;  %v8174_v8 = vperm.slane %v8166_v5, 0 }
  0xa4   : > { %7002 = vmatmul.msk.f32.gmra.mxu1 %vm643_vm0, %v7939_v10 }
  0xac   : > { %7003 = vmatmul.msk.f32.gmra.mxu1 %vm643_vm0, %v7949_v12 }
  0xb4   : > { %7004 = vmatmul.msk.f32.gmra.mxu1 %vm643_vm0, %v7964_v15  ;;  %v8184_v15 = vld [vmem:[%s7906_s20 + $0xd8] sm:$0xff] }
  0xb5   : > { %6994 = vmatmul.msk.f32.vlgmr.msra.gmra.mxu3 %vm643_vm0, %v8184_v15 }
  0xbc   : > { %7005 = vmatmul.msk.f32.gmra.mxu1 %vm643_vm0, %v7982_v19  ;;  %v1092_v19 = vld [vmem:[%s14126_s2 + $0x1f0] sm:$0xff] }
  0xbd   : > { %1214 = vmatpush.msrb.mxu3 %v1092_v19  ;;  %v1679_v19 = vld [vmem:[#allocation5 + $0x1f0] sm:$0xff] }
  0xbe   : > { %6995 = vmatmul.msk.f32.gmra.mxu3 %vm643_vm0, %v8210_v36 }
  0xbf   : > { %1215 = vmatpush.msrb.mxu3 %v1090_v32 }
  0xc1   : > { %v757_v10 = vpop.f32.mrf.mxu0  ;;  %v8176_v12 = vpop.f32.mrf.mxu1  ;;  %1216 = vmatpush.msrb.mxu3 %v1088_v34 }
  0xc2   : > { %v758_v17 = vadd.f32 %v757_v10, %v8174_v8  ;;  %v1062_v10 = vld [vmem:[%s14126_s2 + $0x100] sm:$0xff] }
  0xc4   : > { %v8179_v24 = vmax.f32 %v758_v17, 0.0  ;;  %7006 = vmatmul.msk.f32.gmra.mxu1 %vm643_vm0, %v7997_v22  ;;  %v1647_v17 = vld [vmem:[#allocation5 + $0xf0] sm:$0xff] }
  0xc5   : > { %1688 = vmatpush.msra.mxu2 %v1647_v17 }
  0xc6   : > { %14551 = vst [vmem:[#allocation30_spill] sm:$0xff] %v8179_v24  ;;  %1117 = vmatmul.f32.vlgmr.msrb.gmra.mxu2 %v8179_v24  ;;  %1343 = vmatmul.f32.vlgmr.msrb.gmra.mxu0 %v8179_v24 }
  0xc7   : > { %6996 = vmatmul.msk.f32.gmra.mxu3 %vm643_vm0, %v8233_v44 }
  0xc9   : > { %v760_v29 = vpop.f32.mrf.mxu0  ;;  %v8193_v30 = vpop.f32.mrf.mxu1 }
  0xca   : > { %v761_v22 = vadd.f32 %v760_v29, %v8174_v8  ;;  %v8321_v33 = vpop.f32.mrf.mxu2 }
  0xcc   : > { %v8196_v31 = vmax.f32 %v761_v22, 0.0  ;;  %7007 = vmatmul.msk.f32.gmra.mxu1 %vm643_vm0, %v8015_v26  ;;  %v1086_v26 = vld [vmem:[%s14126_s2 + $0x1c0] sm:$0xff] }
  0xcd   : > { %1217 = vmatpush.msrb.mxu3 %v1086_v26 }
  0xce   : > { %14552 = vst [vmem:[#allocation31_spill] sm:$0xff] %v8196_v31  ;;  %1120 = vmatmul.f32.gmra.mxu2 %v8196_v31  ;;  %1346 = vmatmul.f32.gmra.mxu0 %v8196_v31 }
  0xcf   : > { %1218 = vmatpush.msrb.mxu3 %v1084_v42  ;;  %v1645_v42 = vld [vmem:[#allocation5 + $0xe0] sm:$0xff] }
  0xd0   : > { %6997 = vmatmul.msk.f32.gmra.mxu3 %vm643_vm0, %v8259_v53  ;;  %1689 = vmatpush.msra.mxu2 %v1645_v42 }
  0xd1   : > { %v763_v37 = vpop.f32.mrf.mxu0  ;;  %v8219_v38 = vpop.f32.mrf.mxu1  ;;  %1219 = vmatpush.msrb.mxu3 %v1082_v43  ;;  %v1677_v43 = vld [vmem:[#allocation5 + $0x1e0] sm:$0xff] }
  0xd2   : > { %v764_v40 = vadd.f32 %v763_v37, %v8174_v8 }
  0xd4   : > { %v8222_v41 = vmax.f32 %v764_v40, 0.0  ;;  %7008 = vmatmul.msk.f32.gmra.mxu1 %vm643_vm0, %v8048_v35  ;;  %v1080_v35 = vld [vmem:[%s14126_s2 + $0x190] sm:$0xff] }
  0xd5   : > { %1220 = vmatpush.msrb.mxu3 %v1080_v35 }
  0xd6   : > { %14553 = vst [vmem:[#allocation32_spill] sm:$0xff] %v8222_v41  ;;  %1123 = vmatmul.f32.gmra.mxu2 %v8222_v41  ;;  %1349 = vmatmul.f32.gmra.mxu0 %v8222_v41 }
  0xd7   : > { %1221 = vmatpush.msrb.mxu3 %v1078_v50  ;;  %v8338_v50 = vpop.f32.mrf.mxu2 }
  0xd8   : > { %6998 = vmatmul.msk.f32.gmra.mxu3 %vm643_vm0, %v8282_v61 }
  0xd9   : > { %v766_v45 = vpop.f32.mrf.mxu0  ;;  %v8242_v46 = vpop.f32.mrf.mxu1  ;;  %1222 = vmatpush.msrb.mxu3 %v1076_v51  ;;  %v8347_v51 = vperm.slane %v8166_v5, 1  ;;  %v1643_v5 = vld [vmem:[#allocation5 + $0xd0] sm:$0xff] }
  0xda   : > { %v767_v47 = vadd.f32 %v766_v45, %v8174_v8  ;;  %1690 = vmatpush.msra.mxu2 %v1643_v5 }
  0xdc   : > { %v8245_v49 = vmax.f32 %v767_v47, 0.0  ;;  %7009 = vmatmul.msk.f32.gmra.mxu1 %vm643_vm0, %v7912_v3  ;;  %v1074_v3 = vld [vmem:[%s14126_s2 + $0x160] sm:$0xff] }
  0xdd   : > { %1223 = vmatpush.msrb.mxu3 %v1074_v3 }
  0xde   : > { %14554 = vst [vmem:[#allocation33_spill] sm:$0xff] %v8245_v49  ;;  %1126 = vmatmul.f32.gmra.mxu2 %v8245_v49  ;;  %1352 = vmatmul.f32.gmra.mxu0 %v8245_v49 }
  0xdf   : > { %1224 = vmatpush.msrb.mxu3 %v1072_v57 }
  0xe1   : > { %v769_v54 = vpop.f32.mrf.mxu0  ;;  %v8268_v55 = vpop.f32.mrf.mxu1  ;;  %1225 = vmatpush.msrb.mxu3 %v1070_v60 }
  0xe2   : > { %v770_v56 = vadd.f32 %v769_v54, %v8174_v8  ;;  %v800_v5 = vadd.f32 %v8268_v55, %v8174_v8 }
  0xe3   : > { %1226 = vmatpush.msrb.mxu3 %v1068_v62  ;;  %v8360_v62 = vpop.f32.mrf.mxu2 }
  0xe4   : > { %v8274_v59 = vmax.f32 %v770_v56, 0.0  ;;  %7010 = vmatmul.msk.f32.gmra.mxu1 %vm643_vm0, %v7922_v7  ;;  %v1066_v7 = vld [vmem:[%s14126_s2 + $0x120] sm:$0xff] }
  0xe5   : > { %1227 = vmatpush.msrb.mxu3 %v1066_v7  ;;  %v1675_v7 = vld [vmem:[#allocation5 + $0x1d0] sm:$0xff] }
  0xe6   : > { %14555 = vst [vmem:[#allocation34_spill] sm:$0xff] %v8274_v59  ;;  %1129 = vmatmul.f32.gmra.mxu2 %v8274_v59  ;;  %1355 = vmatmul.f32.gmra.mxu0 %v8274_v59 }
  0xe7   : > { %1228 = vmatpush.msrb.mxu3 %v1064_v2 }
  0xe9   : > { %v772_v63 = vpop.f32.mrf.mxu0  ;;  %v8294_v0 = vpop.f32.mrf.mxu1  ;;  %1229 = vmatpush.msrb.mxu3 %v1062_v10 }
  0xea   : > { %v773_v1 = vadd.f32 %v772_v63, %v8174_v8  ;;  %v788_v63 = vadd.f32 %v8176_v12, %v8174_v8  ;;  %v791_v12 = vadd.f32 %v8193_v30, %v8174_v8  ;;  %v1641_v30 = vld [vmem:[#allocation5 + $0xc0] sm:$0xff]  ;;  %v803_v55 = vadd.f32 %v8294_v0, %v8174_v8 }
  0xeb   : > { %1801 = vmatpush.msra.mxu3 %v1679_v19  ;;  %v8377_v10 = vpop.f32.mrf.mxu2  ;;  %1691 = vmatpush.msra.mxu2 %v1641_v30  ;;  %v1637_v30 = vld [vmem:[#allocation5 + $0xa0] sm:$0xff] }
  0xec   : > { %v8300_v4 = vmax.f32 %v773_v1, 0.0  ;;  %7011 = vmatmul.msk.f32.gmra.mxu1 %vm643_vm0, %v7932_v9  ;;  %v8368_v2 = vmax.f32 %v788_v63, 0.0  ;;  %v8428_v63 = vmax.f32 %v800_v5, 0.0 }
  0xed   : > { %1802 = vmatpush.msra.mxu3 %v1677_v43 }
  0xee   : > { %14556 = vst [vmem:[#allocation35_spill] sm:$0xff] %v8300_v4  ;;  %1132 = vmatmul.f32.gmra.mxu2 %v8300_v4  ;;  %1358 = vmatmul.f32.gmra.mxu0 %v8300_v4 }
  0xef   : > { %1803 = vmatpush.msra.mxu3 %v1675_v7  ;;  %14562 = vst [vmem:[#allocation41_spill] sm:$0xff] %v8368_v2 }
  0xf0   : > { %14570 = vst [vmem:[#allocation49_spill] sm:$0xff] %v8428_v63 }
  0xf1   : > { %v775_v29 = vpop.f32.mrf.mxu0  ;;  %v8312_v9 = vpop.f32.mrf.mxu1 }
  0xf2   : > { %v776_v22 = vadd.f32 %v775_v29, %v8174_v8  ;;  %v8382_v29 = vmax.f32 %v791_v12, 0.0 }
  0xf4   : > { %v8315_v32 = vmax.f32 %v776_v22, 0.0  ;;  %7012 = vmatmul.msk.f32.gmra.mxu1 %vm643_vm0, %v7942_v11  ;;  %v1075_v11 = vld [vmem:[%s14126_s2 + $0x168] sm:$0xff]  ;;  %14564 = vst [vmem:[#allocation43_spill] sm:$0xff] %v8382_v29 }
  0xf5   : > { %1449 = vmatpush.msra.mxu1 %v1075_v11 }
  0xf6   : > { %14557 = vst [vmem:[#allocation36_spill] sm:$0xff] %v8315_v32  ;;  %1135 = vmatmul.f32.gmra.mxu2 %v8315_v32  ;;  %1361 = vmatmul.f32.gmra.mxu0 %v8315_v32  ;;  %v1626_v32 = vld [vmem:[#allocation5 + $0x48] sm:$0xff] }
  0xf9   : > { %v778_v34 = vpop.f32.mrf.mxu0  ;;  %v8323_v26 = vpop.f32.mrf.mxu1 }
  0xfa   : > { %v779_v37 = vadd.f32 %v778_v34, %v8174_v8  ;;  %v1673_v34 = vld [vmem:[#allocation5 + $0x1c0] sm:$0xff] }
  0xfb   : > { %1804 = vmatpush.msra.mxu3 %v1673_v34  ;;  %v1669_v34 = vld [vmem:[#allocation5 + $0x1a0] sm:$0xff] }
  0xfc   : > { %v8326_v40 = vmax.f32 %v779_v37, 0.0  ;;  %7013 = vmatmul.msk.f32.gmra.mxu1 %vm643_vm0, %v7952_v13  ;;  %v794_v37 = vadd.f32 %v8219_v38, %v8174_v8  ;;  %v797_v38 = vadd.f32 %v8242_v46, %v8174_v8  ;;  %v1639_v46 = vld [vmem:[#allocation5 + $0xb0] sm:$0xff] }
  0xfd   : > { %1692 = vmatpush.msra.mxu2 %v1639_v46 }
  0xfe   : > { %14558 = vst [vmem:[#allocation37_spill] sm:$0xff] %v8326_v40  ;;  %1138 = vmatmul.f32.gmra.mxu2 %v8326_v40  ;;  %1364 = vmatmul.f32.gmra.mxu0 %v8326_v40  ;;  %v8399_v43 = vmax.f32 %v794_v37, 0.0  ;;  %v806_v37 = vadd.f32 %v8312_v9, %v8174_v8  ;;  %v809_v9 = vadd.f32 %v8323_v26, %v8174_v8  ;;  %v1635_v26 = vld [vmem:[#allocation5 + $0x90] sm:$0xff] }
  0xff   : > { %1693 = vmatpush.msra.mxu2 %v1637_v30 }
 0x100   : > { %14566 = vst [vmem:[#allocation45_spill] sm:$0xff] %v8399_v43  ;;  %v8477_v5 = vmax.f32 %v809_v9, 0.0 }
 0x101   : > { %v781_v35 = vpop.f32.mrf.mxu0  ;;  %v8335_v45 = vpop.f32.mrf.mxu1  ;;  %1694 = vmatpush.msra.mxu2 %v1635_v26  ;;  %v818_v26 = vadd.f32 %v8338_v50, %v8174_v8  ;;  %v821_v50 = vadd.f32 %v8360_v62, %v8174_v8  ;;  %v1631_v62 = vld [vmem:[#allocation5 + $0x70] sm:$0xff] }
 0x102   : > { %v782_v47 = vadd.f32 %v781_v35, %v8174_v8  ;;  %14576 = vst [vmem:[#allocation55_spill] sm:$0xff] %v8477_v5 }
 0x104   : > { %v8340_v13 = vmax.f32 %v782_v47, 0.0  ;;  %7014 = vmatmul.msk.f32.gmra.mxu1 %vm643_vm0, %v7967_v16  ;;  %v1073_v16 = vld [vmem:[%s14126_s2 + $0x158] sm:$0xff] }
 0x105   : > { %1450 = vmatpush.msra.mxu1 %v1073_v16  ;;  %v1671_v16 = vld [vmem:[#allocation5 + $0x1b0] sm:$0xff] }
 0x106   : > { %14559 = vst [vmem:[#allocation38_spill] sm:$0xff] %v8340_v13  ;;  %1141 = vmatmul.f32.gmra.mxu2 %v8340_v13  ;;  %1367 = vmatmul.f32.gmra.mxu0 %v8340_v13 }
 0x107   : > { %1805 = vmatpush.msra.mxu3 %v1671_v16 }
 0x109   : > { %v784_v52 = vpop.f32.mrf.mxu0  ;;  %v870_v3 = vpop.f32.mrf.mxu1  ;;  %1806 = vmatpush.msra.mxu3 %v1669_v34 }
 0x10a   : > { %v785_v54 = vadd.f32 %v784_v52, %v8174_v8  ;;  %v871_v56 = vadd.f32 %v870_v3, %v8347_v51 }
 0x10c   : > { %v8351_v57 = vmax.f32 %v785_v54, 0.0  ;;  %v8353_v60 = vmax.f32 %v871_v56, 0.0  ;;  %7015 = vmatmul.msk.f32.gmra.mxu1 %vm643_vm0, %v7985_v20  ;;  %v8413_v54 = vmax.f32 %v797_v38, 0.0  ;;  %v8461_v38 = vmax.f32 %v806_v37, 0.0 }
 0x10e   : > { %14560 = vst [vmem:[#allocation39_spill] sm:$0xff] %v8351_v57  ;;  %1144 = vmatmul.f32.gmra.mxu2 %v8351_v57  ;;  %1230 = vmatmul.f32.vlgmr.msrb.gmra.mxu3 %v8353_v60 }
 0x10f   : > { %14561 = vst [vmem:[#allocation40_spill] sm:$0xff] %v8353_v60  ;;  %1370 = vmatmul.f32.gmra.mxu0 %v8351_v57 }
 0x110   : > { %14568 = vst [vmem:[#allocation47_spill] sm:$0xff] %v8413_v54 }
 0x111   : > { %v873_v20 = vpop.f32.mrf.mxu1  ;;  %14574 = vst [vmem:[#allocation53_spill] sm:$0xff] %v8461_v38 }
 0x112   : > { %v874_v1 = vadd.f32 %v873_v20, %v8347_v51 }
 0x114   : > { %v8370_v6 = vmax.f32 %v874_v1, 0.0  ;;  %7016 = vmatmul.msk.f32.gmra.mxu1 %vm643_vm0, %v8000_v23  ;;  %v1071_v23 = vld [vmem:[%s14126_s2 + $0x148] sm:$0xff] }
 0x115   : > { %1451 = vmatpush.msra.mxu1 %v1071_v23 }
 0x116   : > { %14563 = vst [vmem:[#allocation42_spill] sm:$0xff] %v8370_v6  ;;  %1147 = vmatmul.f32.gmra.mxu2 %v8368_v2  ;;  %1233 = vmatmul.f32.gmra.mxu3 %v8370_v6 }
 0x117   : > { %1373 = vmatmul.f32.gmra.mxu0 %v8368_v2 }
 0x119   : > { %v876_v17 = vpop.f32.mrf.mxu1 }
 0x11a   : > { %v877_v19 = vadd.f32 %v876_v17, %v8347_v51 }
 0x11c   : > { %v8384_v22 = vmax.f32 %v877_v19, 0.0  ;;  %7017 = vmatmul.msk.f32.gmra.mxu1 %vm643_vm0, %v8018_v27  ;;  %v8396_v27 = vpop.f32.mrf.mxu2  ;;  %v8442_v19 = vmax.f32 %v803_v55, 0.0  ;;  %v812_v55 = vadd.f32 %v8335_v45, %v8174_v8  ;;  %v815_v45 = vadd.f32 %v8321_v33, %v8174_v8  ;;  %v1633_v33 = vld [vmem:[#allocation5 + $0x80] sm:$0xff] }
 0x11d   : > { %1695 = vmatpush.msra.mxu2 %v1633_v33 }
 0x11e   : > { %14565 = vst [vmem:[#allocation44_spill] sm:$0xff] %v8384_v22  ;;  %1150 = vmatmul.f32.gmra.mxu2 %v8382_v29  ;;  %1236 = vmatmul.f32.gmra.mxu3 %v8384_v22  ;;  %v8496_v30 = vmax.f32 %v812_v55, 0.0 }
 0x11f   : > { %1376 = vmatmul.f32.gmra.mxu0 %v8382_v29  ;;  %14572 = vst [vmem:[#allocation51_spill] sm:$0xff] %v8442_v19  ;;  %1696 = vmatpush.msra.mxu2 %v1631_v62 }
 0x120   : > { %14578 = vst [vmem:[#allocation57_spill] sm:$0xff] %v8496_v30 }
 0x121   : > { %v879_v11 = vpop.f32.mrf.mxu1 }
 0x122   : > { %v880_v42 = vadd.f32 %v879_v11, %v8347_v51 }
 0x124   : > { %v8401_v35 = vmax.f32 %v880_v42, 0.0  ;;  %7018 = vmatmul.msk.f32.gmra.mxu1 %vm643_vm0, %v7959_v14  ;;  %v8411_v3 = vpop.f32.mrf.mxu2  ;;  %v1069_v14 = vld [vmem:[%s14126_s2 + $0x138] sm:$0xff] }
 0x125   : > { %1452 = vmatpush.msra.mxu1 %v1069_v14 }
 0x126   : > { %14567 = vst [vmem:[#allocation46_spill] sm:$0xff] %v8401_v35  ;;  %1153 = vmatmul.f32.gmra.mxu2 %v8399_v43  ;;  %1239 = vmatmul.f32.gmra.mxu3 %v8401_v35 }
 0x127   : > { %1379 = vmatmul.f32.gmra.mxu0 %v8399_v43 }
 0x129   : > { %v882_v47 = vpop.f32.mrf.mxu1 }
 0x12a   : > { %v883_v52 = vadd.f32 %v882_v47, %v8347_v51 }
 0x12c   : > { %v8415_v56 = vmax.f32 %v883_v52, 0.0  ;;  %7019 = vmatmul.msk.f32.gmra.mxu1 %vm643_vm0, %v7977_v18  ;;  %v8434_v1 = vpop.f32.mrf.mxu2 }
 0x12e   : > { %14569 = vst [vmem:[#allocation48_spill] sm:$0xff] %v8415_v56  ;;  %1156 = vmatmul.f32.gmra.mxu2 %v8413_v54  ;;  %1242 = vmatmul.f32.gmra.mxu3 %v8415_v56 }
 0x12f   : > { %1382 = vmatmul.f32.gmra.mxu0 %v8413_v54 }
 0x131   : > { %v885_v7 = vpop.f32.mrf.mxu1 }
 0x132   : > { %v886_v18 = vadd.f32 %v885_v7, %v8347_v51 }
 0x134   : > { %v8430_v20 = vmax.f32 %v886_v18, 0.0  ;;  %7020 = vmatmul.msk.f32.gmra.mxu1 %vm643_vm0, %v7992_v21  ;;  %v1067_v21 = vld [vmem:[%s14126_s2 + $0x128] sm:$0xff]  ;;  %v8454_v0 = vpop.f32.mrf.mxu2  ;;  %v1667_v18 = vld [vmem:[#allocation5 + $0x190] sm:$0xff] }
 0x135   : > { %1453 = vmatpush.msra.mxu1 %v1067_v21  ;;  %1807 = vmatpush.msra.mxu3 %v1667_v18 }
 0x136   : > { %14571 = vst [vmem:[#allocation50_spill] sm:$0xff] %v8430_v20  ;;  %1159 = vmatmul.f32.gmra.mxu2 %v8428_v63  ;;  %1245 = vmatmul.f32.gmra.mxu3 %v8430_v20 }
 0x137   : > { %1385 = vmatmul.f32.gmra.mxu0 %v8428_v63 }
 0x138   : > { %v8526_v18 = vpop.f32.mrf.mxu3 }
 0x139   : > { %v888_v12 = vpop.f32.mrf.mxu1 }
 0x13a   : > { %v889_v17 = vadd.f32 %v888_v12, %v8347_v51 }
 0x13c   : > { %v8444_v23 = vmax.f32 %v889_v17, 0.0  ;;  %7021 = vmatmul.msk.f32.gmra.mxu1 %vm643_vm0, %v8010_v25 }
 0x13e   : > { %14573 = vst [vmem:[#allocation52_spill] sm:$0xff] %v8444_v23  ;;  %1162 = vmatmul.f32.gmra.mxu2 %v8442_v19  ;;  %1248 = vmatmul.f32.gmra.mxu3 %v8444_v23 }
 0x13f   : > { %1388 = vmatmul.f32.gmra.mxu0 %v8442_v19 }
 0x141   : > { %v891_v25 = vpop.f32.mrf.mxu1 }
 0x142   : > { %v892_v11 = vadd.f32 %v891_v25, %v8347_v51 }
 0x143   : > { %v8459_v42 = vpop.f32.mrf.mxu0 }
 0x144   : > { %v8463_v47 = vmax.f32 %v892_v11, 0.0  ;;  %7022 = vmatmul.msk.f32.gmra.mxu1 %vm643_vm0, %v8025_v28  ;;  %v1065_v28 = vld [vmem:[%s14126_s2 + $0x118] sm:$0xff] }
 0x145   : > { %1454 = vmatpush.msra.mxu1 %v1065_v28  ;;  %v1665_v28 = vld [vmem:[#allocation5 + $0x180] sm:$0xff] }
 0x146   : > { %14575 = vst [vmem:[#allocation54_spill] sm:$0xff] %v8463_v47  ;;  %1165 = vmatmul.f32.gmra.mxu2 %v8461_v38  ;;  %1251 = vmatmul.f32.gmra.mxu3 %v8463_v47 }
 0x147   : > { %1391 = vmatmul.f32.gmra.mxu0 %v8461_v38  ;;  %1808 = vmatpush.msra.mxu3 %v1665_v28  ;;  %v8547_v28 = vpop.f32.mrf.mxu3  ;;  %v1678_v38 = vld [vmem:[#allocation5 + $0x1e8] sm:$0xff] }
 0x149   : > { %v894_v52 = vpop.f32.mrf.mxu1  ;;  %v8472_v14 = vpop.f32.mrf.mxu2 }
 0x14a   : > { %v895_v46 = vadd.f32 %v894_v52, %v8347_v51  ;;  %v8512_v52 = vmax.f32 %v815_v45, 0.0  ;;  %v8533_v45 = vmax.f32 %v818_v26, 0.0 }
 0x14b   : > { %v8475_v16 = vpop.f32.mrf.mxu0 }
 0x14c   : > { %v8479_v7 = vmax.f32 %v895_v46, 0.0  ;;  %7023 = vmatmul.msk.f32.gmra.mxu1 %vm643_vm0, %v8064_v39  ;;  %14580 = vst [vmem:[#allocation59_spill] sm:$0xff] %v8512_v52 }
 0x14d   : > { %14582 = vst [vmem:[#allocation61_spill] sm:$0xff] %v8533_v45 }
 0x14e   : > { %14577 = vst [vmem:[#allocation56_spill] sm:$0xff] %v8479_v7  ;;  %1168 = vmatmul.f32.gmra.mxu2 %v8477_v5  ;;  %1254 = vmatmul.f32.gmra.mxu3 %v8479_v7 }
 0x14f   : > { %1394 = vmatmul.f32.gmra.mxu0 %v8477_v5 }
 0x151   : > { %v897_v12 = vpop.f32.mrf.mxu1  ;;  %v8491_v39 = vpop.f32.mrf.mxu2 }
 0x152   : > { %v898_v17 = vadd.f32 %v897_v12, %v8347_v51 }
 0x153   : > { %v8494_v21 = vpop.f32.mrf.mxu0 }
 0x154   : > { %v8498_v34 = vmax.f32 %v898_v17, 0.0  ;;  %7024 = vmatmul.msk.f32.gmra.mxu1 %vm643_vm0, %v8095_v48  ;;  %v1063_v48 = vld [vmem:[%s14126_s2 + $0x108] sm:$0xff] }
 0x155   : > { %1455 = vmatpush.msra.mxu1 %v1063_v48 }
 0x156   : > { %14579 = vst [vmem:[#allocation58_spill] sm:$0xff] %v8498_v34  ;;  %1171 = vmatmul.f32.gmra.mxu2 %v8496_v30  ;;  %1257 = vmatmul.f32.gmra.mxu3 %v8498_v34 }
 0x157   : > { %1397 = vmatmul.f32.gmra.mxu0 %v8496_v30 }
 0x159   : > { %v900_v37 = vpop.f32.mrf.mxu1  ;;  %v8507_v25 = vpop.f32.mrf.mxu2 }
 0x15a   : > { %v901_v11 = vadd.f32 %v900_v37, %v8347_v51 }
 0x15b   : > { %v8510_v9 = vpop.f32.mrf.mxu0 }
 0x15c   : > { %v8514_v46 = vmax.f32 %v901_v11, 0.0  ;;  %7025 = vmatmul.msk.f32.gmra.mxu1 %vm643_vm0, %v8129_v58 }
 0x15e   : > { %14581 = vst [vmem:[#allocation60_spill] sm:$0xff] %v8514_v46  ;;  %1174 = vmatmul.f32.gmra.mxu2 %v8512_v52  ;;  %1260 = vmatmul.f32.gmra.mxu3 %v8514_v46 }
 0x15f   : > { %1400 = vmatmul.f32.gmra.mxu0 %v8512_v52 }
 0x161   : > { %v903_v58 = vpop.f32.mrf.mxu1  ;;  %v8528_v55 = vpop.f32.mrf.mxu2 }
 0x162   : > { %v904_v12 = vadd.f32 %v903_v58, %v8347_v51  ;;  %v8551_v58 = vmax.f32 %v821_v50, 0.0  ;;  %v824_v50 = vadd.f32 %v8377_v10, %v8174_v8  ;;  %v827_v10 = vadd.f32 %v8396_v27, %v8174_v8 }
 0x163   : > { %v8531_v17 = vpop.f32.mrf.mxu0 }
 0x164   : > { %v8535_v37 = vmax.f32 %v904_v12, 0.0  ;;  %7026 = vmatmul.msk.f32.gmra.mxu1 %vm643_vm0, %v8184_v15  ;;  %14584 = vst [vmem:[#allocation63_spill] sm:$0xff] %v8551_v58  ;;  %v1648_v12 = vld [vmem:[#allocation5 + $0xf8] sm:$0xff]  ;;  %v8567_v30 = vmax.f32 %v824_v50, 0.0 }
 0x165   : > { %1914 = vmatpush.msra.mxu0 %v1648_v12 }
 0x166   : > { %14583 = vst [vmem:[#allocation62_spill] sm:$0xff] %v8535_v37  ;;  %1177 = vmatmul.f32.gmra.mxu2 %v8533_v45  ;;  %1263 = vmatmul.f32.gmra.mxu3 %v8535_v37 }
 0x167   : > { %1403 = vmatmul.f32.gmra.mxu0 %v8533_v45  ;;  %v1680_v45 = vld [vmem:[#allocation5 + $0x1f8] sm:$0xff]  ;;  %14586 = vst [vmem:[#allocation65_spill] sm:$0xff] %v8567_v30 }
 0x168   : > { %2027 = vmatpush.msrb.mxu1 %v1680_v45  ;;  %v8573_v45 = vpop.f32.mrf.mxu3 }
 0x169   : > { %v906_v11 = vpop.f32.mrf.mxu1  ;;  %v8544_v48 = vpop.f32.mrf.mxu2 }
 0x16a   : > { %v907_v33 = vadd.f32 %v906_v11, %v8347_v51  ;;  %v1663_v11 = vld [vmem:[#allocation5 + $0x170] sm:$0xff]  ;;  %2028 = vmatpush.msrb.mxu1 %v1678_v38 }
 0x16b   : > { %v8549_v26 = vpop.f32.mrf.mxu0  ;;  %1809 = vmatpush.msra.mxu3 %v1663_v11 }
 0x16c   : > { %v8553_v15 = vmax.f32 %v907_v33, 0.0  ;;  %7027 = vmatmul.msk.f32.gmra.mxu1 %vm643_vm0, %v8210_v36 }
 0x16e   : > { %14585 = vst [vmem:[#allocation64_spill] sm:$0xff] %v8553_v15  ;;  %1180 = vmatmul.f32.gmra.mxu2 %v8551_v58  ;;  %1266 = vmatmul.f32.gmra.mxu3 %v8553_v15 }
 0x16f   : > { %1406 = vmatmul.f32.gmra.mxu0 %v8551_v58  ;;  %v1646_v58 = vld [vmem:[#allocation5 + $0xe8] sm:$0xff] }
 0x170   : > { %v8593_v27 = vpop.f32.mrf.mxu3  ;;  %1915 = vmatpush.msra.mxu0 %v1646_v58 }
 0x171   : > { %v909_v33 = vpop.f32.mrf.mxu1  ;;  %v8562_v52 = vpop.f32.mrf.mxu2 }
 0x172   : > { %v910_v36 = vadd.f32 %v909_v33, %v8347_v51 }
 0x173   : > { %v8565_v12 = vpop.f32.mrf.mxu0 }
 0x174   : > { %v8569_v5 = vmax.f32 %v910_v36, 0.0  ;;  %7028 = vmatmul.msk.f32.gmra.mxu1 %vm643_vm0, %v8233_v44  ;;  %v8585_v36 = vmax.f32 %v827_v10, 0.0  ;;  %v830_v10 = vadd.f32 %v8411_v3, %v8174_v8  ;;  %v833_v3 = vadd.f32 %v8434_v1, %v8174_v8  ;;  %v1627_v1 = vld [vmem:[#allocation5 + $0x50] sm:$0xff] }
 0x176   : > { %14587 = vst [vmem:[#allocation66_spill] sm:$0xff] %v8569_v5  ;;  %1183 = vmatmul.f32.gmra.mxu2 %v8567_v30  ;;  %1269 = vmatmul.f32.gmra.mxu3 %v8569_v5  ;;  %v8603_v54 = vmax.f32 %v830_v10, 0.0  ;;  %v8619_v10 = vmax.f32 %v833_v3, 0.0  ;;  %v1659_v3 = vld [vmem:[#allocation5 + $0x150] sm:$0xff] }
 0x177   : > { %1409 = vmatmul.f32.gmra.mxu0 %v8567_v30  ;;  %14588 = vst [vmem:[#allocation67_spill] sm:$0xff] %v8585_v36  ;;  %v1661_v30 = vld [vmem:[#allocation5 + $0x160] sm:$0xff] }
 0x178   : > { %1810 = vmatpush.msra.mxu3 %v1661_v30  ;;  %14590 = vst [vmem:[#allocation69_spill] sm:$0xff] %v8603_v54  ;;  %v8614_v38 = vpop.f32.mrf.mxu3 }
 0x179   : > { %v912_v62 = vpop.f32.mrf.mxu1  ;;  %v8580_v11 = vpop.f32.mrf.mxu2  ;;  %14592 = vst [vmem:[#allocation71_spill] sm:$0xff] %v8619_v10 }
 0x17a   : > { %v913_v50 = vadd.f32 %v912_v62, %v8347_v51  ;;  %v1629_v62 = vld [vmem:[#allocation5 + $0x60] sm:$0xff]  ;;  %1811 = vmatpush.msra.mxu3 %v1659_v3 }
 0x17b   : > { %v8583_v33 = vpop.f32.mrf.mxu0  ;;  %1697 = vmatpush.msra.mxu2 %v1629_v62  ;;  %v1644_v62 = vld [vmem:[#allocation5 + $0xd8] sm:$0xff] }
 0x17c   : > { %v8587_v44 = vmax.f32 %v913_v50, 0.0  ;;  %7029 = vmatmul.msk.f32.gmra.mxu1 %vm643_vm0, %v8259_v53  ;;  %1916 = vmatpush.msra.mxu0 %v1644_v62  ;;  %v1638_v62 = vld [vmem:[#allocation5 + $0xa8] sm:$0xff] }
 0x17d   : > { %1698 = vmatpush.msra.mxu2 %v1627_v1 }
 0x17e   : > { %14589 = vst [vmem:[#allocation68_spill] sm:$0xff] %v8587_v44  ;;  %1186 = vmatmul.f32.gmra.mxu2 %v8585_v36  ;;  %1272 = vmatmul.f32.gmra.mxu3 %v8587_v44 }
 0x17f   : > { %1412 = vmatmul.f32.gmra.mxu0 %v8585_v36  ;;  %v1642_v36 = vld [vmem:[#allocation5 + $0xc8] sm:$0xff] }
 0x180   : > { %1917 = vmatpush.msra.mxu0 %v1642_v36  ;;  %v839_v36 = vadd.f32 %v8526_v18, %v8174_v8  ;;  %v1630_v18 = vld [vmem:[#allocation5 + $0x68] sm:$0xff] }
 0x181   : > { %v915_v50 = vpop.f32.mrf.mxu1  ;;  %v8598_v53 = vpop.f32.mrf.mxu2 }
 0x182   : > { %v916_v19 = vadd.f32 %v915_v50, %v8347_v51 }
 0x183   : > { %v8601_v63 = vpop.f32.mrf.mxu0 }
 0x184   : > { %v8605_v43 = vmax.f32 %v916_v19, 0.0  ;;  %7030 = vmatmul.msk.f32.gmra.mxu1 %vm643_vm0, %v8282_v61 }
 0x186   : > { %14591 = vst [vmem:[#allocation70_spill] sm:$0xff] %v8605_v43  ;;  %1189 = vmatmul.f32.gmra.mxu2 %v8603_v54  ;;  %1275 = vmatmul.f32.gmra.mxu3 %v8605_v43 }
 0x187   : > { %1415 = vmatmul.f32.gmra.mxu0 %v8603_v54  ;;  %v1676_v54 = vld [vmem:[#allocation5 + $0x1d8] sm:$0xff] }
 0x188   : > { %2029 = vmatpush.msrb.mxu1 %v1676_v54 }
 0x189   : > { %v918_v30 = vpop.f32.mrf.mxu1  ;;  %v8616_v58 = vpop.f32.mrf.mxu2 }
 0x18a   : > { %v919_v19 = vadd.f32 %v918_v30, %v8347_v51  ;;  %v1640_v30 = vld [vmem:[#allocation5 + $0xb8] sm:$0xff] }
 0x18b   : > { %1918 = vmatpush.msra.mxu0 %v1640_v30  ;;  %v1632_v30 = vld [vmem:[#allocation5 + $0x78] sm:$0xff] }
 0x18c   : > { %v8621_v61 = vmax.f32 %v919_v19, 0.0  ;;  %v8623_v50 = vpop.f32.mrf.mxu0  ;;  %1456 = vmatmul.f32.vlgmr.msra.gmra.mxu1 %v8353_v60  ;;  %v836_v19 = vadd.f32 %v8454_v0, %v8174_v8  ;;  %v1636_v0 = vld [vmem:[#allocation5 + $0x98] sm:$0xff] }
 0x18d   : > { %1919 = vmatpush.msra.mxu0 %v1638_v62  ;;  %v8653_v62 = vmax.f32 %v839_v36, 0.0  ;;  %v1657_v36 = vld [vmem:[#allocation5 + $0x140] sm:$0xff] }
 0x18e   : > { %14593 = vst [vmem:[#allocation72_spill] sm:$0xff] %v8621_v61  ;;  %1192 = vmatmul.f32.gmra.mxu2 %v8619_v10  ;;  %1278 = vmatmul.f32.gmra.mxu3 %v8621_v61 }
 0x18f   : > { %1418 = vmatmul.f32.gmra.mxu0 %v8619_v10  ;;  %v8636_v10 = vmax.f32 %v836_v19, 0.0  ;;  %14596 = vst [vmem:[#allocation75_spill] sm:$0xff] %v8653_v62  ;;  %1812 = vmatpush.msra.mxu3 %v1657_v36 }
 0x190   : > { %1920 = vmatpush.msra.mxu0 %v1636_v0  ;;  %v1674_v0 = vld [vmem:[#allocation5 + $0x1c8] sm:$0xff] }
 0x191   : > { %v921_v29 = vpop.f32.mrf.mxu1  ;;  %v8631_v2 = vpop.f32.mrf.mxu2  ;;  %14594 = vst [vmem:[#allocation73_spill] sm:$0xff] %v8636_v10  ;;  %2030 = vmatpush.msrb.mxu1 %v1674_v0 }
 0x192   : > { %v922_v60 = vadd.f32 %v921_v29, %v8347_v51  ;;  %v8634_v57 = vpop.f32.mrf.mxu3  ;;  %v1634_v29 = vld [vmem:[#allocation5 + $0x88] sm:$0xff] }
 0x193   : > { %1921 = vmatpush.msra.mxu0 %v1634_v29  ;;  %v1623_v29 = vld [vmem:[#allocation5 + $0x30] sm:$0xff] }
 0x194   : > { %v8638_v54 = vmax.f32 %v922_v60, 0.0  ;;  %v8640_v13 = vpop.f32.mrf.mxu0  ;;  %1459 = vmatmul.f32.gmra.mxu1 %v8370_v6 }
 0x195   : > { %1922 = vmatpush.msra.mxu0 %v1632_v30 }
 0x196   : > { %14595 = vst [vmem:[#allocation74_spill] sm:$0xff] %v8638_v54  ;;  %1195 = vmatmul.f32.gmra.mxu2 %v8636_v10  ;;  %1281 = vmatmul.f32.gmra.mxu3 %v8638_v54 }
 0x197   : > { %1421 = vmatmul.f32.gmra.mxu0 %v8636_v10  ;;  %v1625_v10 = vld [vmem:[#allocation5 + $0x40] sm:$0xff] }
 0x198   : > { %1923 = vmatpush.msra.mxu0 %v1630_v18  ;;  %1699 = vmatpush.msra.mxu2 %v1625_v10  ;;  %v1624_v10 = vld [vmem:[#allocation5 + $0x38] sm:$0xff]  ;;  %v1622_v18 = vld [vmem:[#allocation5 + $0x28] sm:$0xff] }
 0x199   : > { %v924_v1 = vpop.f32.mrf.mxu1  ;;  %v8648_v60 = vpop.f32.mrf.mxu2 }
 0x19a   : > { %v925_v3 = vadd.f32 %v924_v1, %v8347_v51  ;;  %v8651_v19 = vpop.f32.mrf.mxu3  ;;  %v1628_v1 = vld [vmem:[#allocation5 + $0x58] sm:$0xff]  ;;  %1700 = vmatpush.msra.mxu2 %v1623_v29 }
 0x19b   : > { %1924 = vmatpush.msra.mxu0 %v1628_v1 }
 0x19c   : > { %v8655_v6 = vmax.f32 %v925_v3, 0.0  ;;  %v8657_v40 = vpop.f32.mrf.mxu0  ;;  %1462 = vmatmul.f32.gmra.mxu1 %v8384_v22  ;;  %v842_v3 = vadd.f32 %v8547_v28, %v8174_v8  ;;  %v1619_v28 = vld [vmem:[#allocation5 + $0x10] sm:$0xff] }
 0x19d   : > { %1925 = vmatpush.msra.mxu0 %v1626_v32  ;;  %v1620_v32 = vld [vmem:[#allocation5 + $0x18] sm:$0xff] }
 0x19e   : > { %14597 = vst [vmem:[#allocation76_spill] sm:$0xff] %v8655_v6  ;;  %1198 = vmatmul.f32.gmra.mxu2 %v8653_v62  ;;  %1284 = vmatmul.f32.gmra.mxu3 %v8655_v6  ;;  %v8670_v0 = vmax.f32 %v842_v3, 0.0 }
 0x19f   : > { %1424 = vmatmul.f32.gmra.mxu0 %v8653_v62  ;;  %v1621_v62 = vld [vmem:[#allocation5 + $0x20] sm:$0xff] }
 0x1a0   : > { %14598 = vst [vmem:[#allocation77_spill] sm:$0xff] %v8670_v0  ;;  %1701 = vmatpush.msra.mxu2 %v1621_v62  ;;  %1926 = vmatpush.msra.mxu0 %v1624_v10  ;;  %v1655_v10 = vld [vmem:[#allocation5 + $0x130] sm:$0xff] }
 0x1a1   : > { %v927_v22 = vpop.f32.mrf.mxu1  ;;  %v8665_v30 = vpop.f32.mrf.mxu2  ;;  %1813 = vmatpush.msra.mxu3 %v1655_v10 }
 0x1a2   : > { %v928_v4 = vadd.f32 %v927_v22, %v8347_v51  ;;  %v8668_v59 = vpop.f32.mrf.mxu3  ;;  %v1617_v22 = vld [vmem:[#allocation5] sm:$0xff]  ;;  %1702 = vmatpush.msra.mxu2 %v1619_v28  ;;  %1927 = vmatpush.msra.mxu0 %v1622_v18  ;;  %v1672_v28 = vld [vmem:[#allocation5 + $0x1b8] sm:$0xff] }
 0x1a3   : > { %2031 = vmatpush.msrb.mxu1 %v1672_v28  ;;  %v851_v28 = vadd.f32 %v8614_v38, %v8174_v8 }
 0x1a4   : > { %v8672_v49 = vmax.f32 %v928_v4, 0.0  ;;  %v8674_v41 = vpop.f32.mrf.mxu0  ;;  %1465 = vmatmul.f32.gmra.mxu1 %v8401_v35  ;;  %v845_v4 = vadd.f32 %v8573_v45, %v8174_v8  ;;  %1703 = vmatpush.msra.mxu2 %v1617_v22  ;;  %v1618_v45 = vld [vmem:[#allocation5 + $0x8] sm:$0xff]  ;;  %v848_v22 = vadd.f32 %v8593_v27, %v8174_v8  ;;  %v1653_v8 = vld [vmem:[#allocation5 + $0x120] sm:$0xff] }
 0x1a5   : > { %14600 = vst [vmem:[#allocation79_spill] sm:$0xff] %v8674_v41  ;;  %1928 = vmatpush.msra.mxu0 %v1620_v32  ;;  %v8713_v27 = vld [vmem:[#allocation14 + $0x1] ss:$8 sm:$0x3]  ;;  %1814 = vmatpush.msra.mxu3 %v1653_v8 }
 0x1a6   : > { %14599 = vst [vmem:[#allocation78_spill] sm:$0xff] %v8672_v49  ;;  %1201 = vmatmul.f32.gmra.mxu2 %v8670_v0  ;;  %1287 = vmatmul.f32.gmra.mxu3 %v8672_v49  ;;  %v8687_v3 = vmax.f32 %v845_v4, 0.0 }
 0x1a7   : > { %1427 = vmatmul.f32.gmra.mxu0 %v8670_v0 }
 0x1a8   : > { %14601 = vst [vmem:[#allocation80_spill] sm:$0xff] %v8687_v3  ;;  %1929 = vmatpush.msra.mxu0 %v1618_v45  ;;  %v8717_v45 = vperm.slane %v8713_v27, 0 }
 0x1a9   : > { %v930_v1 = vpop.f32.mrf.mxu1  ;;  %v8682_v29 = vpop.f32.mrf.mxu2 }
 0x1aa   : > { %v931_v62 = vadd.f32 %v930_v1, %v8347_v51  ;;  %v8685_v36 = vpop.f32.mrf.mxu3 }
 0x1ac   : > { %v8689_v35 = vmax.f32 %v931_v62, 0.0  ;;  %v8691_v0 = vpop.f32.mrf.mxu0  ;;  %1468 = vmatmul.f32.gmra.mxu1 %v8415_v56  ;;  %v8704_v62 = vmax.f32 %v848_v22, 0.0 }
 0x1ad   : > { %14603 = vst [vmem:[#allocation82_spill] sm:$0xff] %v8691_v0 }
 0x1ae   : > { %14602 = vst [vmem:[#allocation81_spill] sm:$0xff] %v8689_v35  ;;  %1204 = vmatmul.f32.gmra.mxu2 %v8687_v3  ;;  %1290 = vmatmul.f32.gmra.mxu3 %v8689_v35 }
 0x1af   : > { %1430 = vmatmul.f32.gmra.mxu0 %v8687_v3  ;;  %14604 = vst [vmem:[#allocation83_spill] sm:$0xff] %v8704_v62  ;;  %v1119_v3 = vadd.f32 %v8472_v14, %v8717_v45 }
 0x1b1   : > { %v933_v18 = vpop.f32.mrf.mxu1  ;;  %v8699_v4 = vpop.f32.mrf.mxu2  ;;  %v1232_v38 = vadd.f32 %v8634_v57, %v1119_v3 }
 0x1b2   : > { %v934_v1 = vadd.f32 %v933_v18, %v8347_v51  ;;  %v8702_v32 = vpop.f32.mrf.mxu3 }
 0x1b4   : > { %v8706_v56 = vmax.f32 %v934_v1, 0.0  ;;  %v8708_v31 = vpop.f32.mrf.mxu0  ;;  %1471 = vmatmul.f32.gmra.mxu1 %v8430_v20  ;;  %v8728_v20 = vmax.f32 %v851_v28, 0.0 }
 0x1b5   : > { %14606 = vst [vmem:[#allocation85_spill] sm:$0xff] %v8708_v31  ;;  %v1670_v31 = vld [vmem:[#allocation5 + $0x1a8] sm:$0xff] }
 0x1b6   : > { %14605 = vst [vmem:[#allocation84_spill] sm:$0xff] %v8706_v56  ;;  %1207 = vmatmul.f32.gmra.mxu2 %v8704_v62  ;;  %1293 = vmatmul.f32.gmra.mxu3 %v8706_v56 }
 0x1b7   : > { %1433 = vmatmul.f32.gmra.mxu0 %v8704_v62  ;;  %14607 = vst [vmem:[#allocation86_spill] sm:$0xff] %v8728_v20  ;;  %2032 = vmatpush.msrb.mxu1 %v1670_v31 }
 0x1b9   : > { %v936_v10 = vpop.f32.mrf.mxu1  ;;  %v8721_v22 = vpop.f32.mrf.mxu2 }
 0x1ba   : > { %v937_v18 = vadd.f32 %v936_v10, %v8347_v51  ;;  %v8724_v1 = vpop.f32.mrf.mxu3 }
 0x1bc   : > { %v8730_v24 = vmax.f32 %v937_v18, 0.0  ;;  %v8732_v62 = vpop.f32.mrf.mxu0  ;;  %1474 = vmatmul.f32.gmra.mxu1 %v8444_v23  ;;  %v1122_v23 = vadd.f32 %v8491_v39, %v8717_v45  ;;  %v1125_v39 = vadd.f32 %v8507_v25, %v8717_v45 }
 0x1bd   : > { %14609 = vst [vmem:[#allocation88_spill] sm:$0xff] %v8732_v62  ;;  %v1553_v62 = vmax.f32 %v1232_v38, 0.0 }
 0x1be   : > { %14608 = vst [vmem:[#allocation87_spill] sm:$0xff] %v8730_v24  ;;  %1210 = vmatmul.f32.gmra.mxu2 %v8728_v20  ;;  %1296 = vmatmul.f32.gmra.mxu3 %v8730_v24  ;;  %v1235_v31 = vadd.f32 %v8651_v19, %v1122_v23  ;;  %v1651_v23 = vld [vmem:[#allocation5 + $0x110] sm:$0xff]  ;;  %v1238_v19 = vadd.f32 %v8668_v59, %v1125_v39 }
 0x1bf   : > { %1436 = vmatmul.f32.gmra.mxu0 %v8728_v20  ;;  %1815 = vmatpush.msra.mxu3 %v1651_v23 }
 0x1c0   : > { %v1555_v38 = vmax.f32 %v1235_v31, 0.0 }
 0x1c1   : > { %v939_v14 = vpop.f32.mrf.mxu1  ;;  %v8739_v28 = vpop.f32.mrf.mxu2 }
 0x1c2   : > { %v940_v10 = vadd.f32 %v939_v14, %v8347_v51  ;;  %v8742_v18 = vpop.f32.mrf.mxu3 }
 0x1c4   : > { %v8746_v0 = vmax.f32 %v940_v10, 0.0  ;;  %v8748_v41 = vpop.f32.mrf.mxu0  ;;  %1477 = vmatmul.f32.gmra.mxu1 %v8463_v47 }
 0x1c5   : > { %14611 = vst [vmem:[#allocation90_spill] sm:$0xff] %v8748_v41 }
 0x1c6   : > { %14610 = vst [vmem:[#allocation89_spill] sm:$0xff] %v8746_v0  ;;  %1299 = vmatmul.f32.gmra.mxu3 %v8746_v0  ;;  %1704 = vmatmul.f32.vlgmr.msra.gmra.mxu2 %v1553_v62 }
 0x1c7   : > { %1930 = vmatmul.f32.vlgmr.msra.gmra.mxu0 %v1553_v62  ;;  %v1668_v62 = vld [vmem:[#allocation5 + $0x198] sm:$0xff] }
 0x1c8   : > { %2033 = vmatpush.msrb.mxu1 %v1668_v62 }
 0x1c9   : > { %v942_v57 = vpop.f32.mrf.mxu1  ;;  %v8753_v3 = vpop.f32.mrf.mxu2 }
 0x1ca   : > { %v943_v8 = vadd.f32 %v942_v57, %v8347_v51  ;;  %v8756_v14 = vpop.f32.mrf.mxu3 }
 0x1cc   : > { %v8760_v10 = vmax.f32 %v943_v8, 0.0  ;;  %v8762_v20 = vpop.f32.mrf.mxu0  ;;  %1480 = vmatmul.f32.gmra.mxu1 %v8479_v7  ;;  %v1128_v8 = vadd.f32 %v8528_v55, %v8717_v45  ;;  %v1557_v7 = vmax.f32 %v1238_v19, 0.0  ;;  %v1131_v55 = vadd.f32 %v8544_v48, %v8717_v45 }
 0x1cd   : > { %14613 = vst [vmem:[#allocation92_spill] sm:$0xff] %v8762_v20 }
 0x1ce   : > { %14612 = vst [vmem:[#allocation91_spill] sm:$0xff] %v8760_v10  ;;  %1302 = vmatmul.f32.gmra.mxu3 %v8760_v10  ;;  %1707 = vmatmul.f32.gmra.mxu2 %v1555_v38  ;;  %v1241_v59 = vadd.f32 %v8685_v36, %v1128_v8  ;;  %v1649_v36 = vld [vmem:[#allocation5 + $0x100] sm:$0xff]  ;;  %v1244_v8 = vadd.f32 %v8702_v32, %v1131_v55 }
 0x1cf   : > { %1933 = vmatmul.f32.gmra.mxu0 %v1555_v38  ;;  %1816 = vmatpush.msra.mxu3 %v1649_v36 }
 0x1d0   : > { %v1559_v19 = vmax.f32 %v1241_v59, 0.0 }
 0x1d1   : > { %v945_v57 = vpop.f32.mrf.mxu1  ;;  %v8767_v47 = vpop.f32.mrf.mxu2 }
 0x1d2   : > { %v946_v25 = vadd.f32 %v945_v57, %v8347_v51  ;;  %v8770_v31 = vpop.f32.mrf.mxu3 }
 0x1d4   : > { %v8774_v20 = vmax.f32 %v946_v25, 0.0  ;;  %v8776_v41 = vpop.f32.mrf.mxu0  ;;  %1483 = vmatmul.f32.gmra.mxu1 %v8498_v34 }
 0x1d5   : > { %14615 = vst [vmem:[#allocation94_spill] sm:$0xff] %v8776_v41 }
 0x1d6   : > { %14614 = vst [vmem:[#allocation93_spill] sm:$0xff] %v8774_v20  ;;  %1305 = vmatmul.f32.gmra.mxu3 %v8774_v20  ;;  %1710 = vmatmul.f32.gmra.mxu2 %v1557_v7 }
 0x1d7   : > { %1936 = vmatmul.f32.gmra.mxu0 %v1557_v7  ;;  %v1666_v7 = vld [vmem:[#allocation5 + $0x188] sm:$0xff] }
 0x1d8   : > { %2034 = vmatpush.msrb.mxu1 %v1666_v7 }
 0x1d9   : > { %v948_v39 = vpop.f32.mrf.mxu1  ;;  %v8781_v38 = vpop.f32.mrf.mxu2 }
 0x1da   : > { %v949_v62 = vadd.f32 %v948_v39, %v8347_v51  ;;  %v8784_v23 = vpop.f32.mrf.mxu3 }
 0x1dc   : > { %v8788_v57 = vmax.f32 %v949_v62, 0.0  ;;  %v8790_v25 = vpop.f32.mrf.mxu0  ;;  %1486 = vmatmul.f32.gmra.mxu1 %v8514_v46  ;;  %v1134_v62 = vadd.f32 %v8562_v52, %v8717_v45  ;;  %v1561_v46 = vmax.f32 %v1244_v8, 0.0  ;;  %v1137_v52 = vadd.f32 %v8580_v11, %v8717_v45 }
 0x1dd   : > { %14617 = vst [vmem:[#allocation96_spill] sm:$0xff] %v8790_v25 }
 0x1de   : > { %14616 = vst [vmem:[#allocation95_spill] sm:$0xff] %v8788_v57  ;;  %1308 = vmatmul.f32.gmra.mxu3 %v8788_v57  ;;  %1713 = vmatmul.f32.gmra.mxu2 %v1559_v19  ;;  %v1247_v32 = vadd.f32 %v8724_v1, %v1134_v62  ;;  %v2298_v1 = vld [vmem:[#allocation7 + $0xf0] sm:$0xff] }
 0x1df   : > { %1939 = vmatmul.f32.gmra.mxu0 %v1559_v19  ;;  %v2330_v62 = vld [vmem:[#allocation7 + $0x1f0] sm:$0xff]  ;;  %2339 = vmatpush.msrb.mxu2 %v2298_v1 }
 0x1e0   : > { %v1563_v8 = vmax.f32 %v1247_v32, 0.0  ;;  %2452 = vmatpush.msrb.mxu3 %v2330_v62 }
 0x1e1   : > { %v951_v39 = vpop.f32.mrf.mxu1  ;;  %v8795_v34 = vpop.f32.mrf.mxu2 }
 0x1e2   : > { %v952_v48 = vadd.f32 %v951_v39, %v8347_v51  ;;  %v8798_v59 = vpop.f32.mrf.mxu3 }
 0x1e4   : > { %v8802_v25 = vmax.f32 %v952_v48, 0.0  ;;  %v8804_v41 = vpop.f32.mrf.mxu0  ;;  %1489 = vmatmul.f32.gmra.mxu1 %v8535_v37 }
 0x1e5   : > { %14619 = vst [vmem:[#allocation98_spill] sm:$0xff] %v8804_v41 }
 0x1e6   : > { %14618 = vst [vmem:[#allocation97_spill] sm:$0xff] %v8802_v25  ;;  %1311 = vmatmul.f32.gmra.mxu3 %v8802_v25  ;;  %1716 = vmatmul.f32.gmra.mxu2 %v1561_v46 }
 0x1e7   : > { %1942 = vmatmul.f32.gmra.mxu0 %v1561_v46  ;;  %v1664_v46 = vld [vmem:[#allocation5 + $0x178] sm:$0xff] }
 0x1e8   : > { %2035 = vmatpush.msrb.mxu1 %v1664_v46 }
 0x1e9   : > { %v954_v55 = vpop.f32.mrf.mxu1  ;;  %v8809_v19 = vpop.f32.mrf.mxu2 }
 0x1ea   : > { %v955_v7 = vadd.f32 %v954_v55, %v8347_v51  ;;  %v8812_v36 = vpop.f32.mrf.mxu3  ;;  %v1250_v55 = vadd.f32 %v8742_v18, %v1137_v52 }
 0x1ec   : > { %v8816_v39 = vmax.f32 %v955_v7, 0.0  ;;  %v8818_v48 = vpop.f32.mrf.mxu0  ;;  %1492 = vmatmul.f32.gmra.mxu1 %v8553_v15  ;;  %v1140_v15 = vadd.f32 %v8598_v53, %v8717_v45  ;;  %v1143_v53 = vadd.f32 %v8616_v58, %v8717_v45 }
 0x1ed   : > { %14621 = vst [vmem:[#allocation100_spill] sm:$0xff] %v8818_v48  ;;  %v1565_v48 = vmax.f32 %v1250_v55, 0.0 }
 0x1ee   : > { %14620 = vst [vmem:[#allocation99_spill] sm:$0xff] %v8816_v39  ;;  %1314 = vmatmul.f32.gmra.mxu3 %v8816_v39  ;;  %1719 = vmatmul.f32.gmra.mxu2 %v1563_v8  ;;  %v1253_v18 = vadd.f32 %v8756_v14, %v1140_v15  ;;  %v2296_v15 = vld [vmem:[#allocation7 + $0xe0] sm:$0xff] }
 0x1ef   : > { %1945 = vmatmul.f32.gmra.mxu0 %v1563_v8  ;;  %v2328_v14 = vld [vmem:[#allocation7 + $0x1e0] sm:$0xff]  ;;  %2340 = vmatpush.msrb.mxu2 %v2296_v15 }
 0x1f0   : > { %v1567_v55 = vmax.f32 %v1253_v18, 0.0  ;;  %2453 = vmatpush.msrb.mxu3 %v2328_v14 }
 0x1f1   : > { %v957_v11 = vpop.f32.mrf.mxu1  ;;  %v8823_v32 = vpop.f32.mrf.mxu2 }
 0x1f2   : > { %v958_v7 = vadd.f32 %v957_v11, %v8347_v51  ;;  %v8826_v37 = vpop.f32.mrf.mxu3 }
 0x1f4   : > { %v8830_v41 = vmax.f32 %v958_v7, 0.0  ;;  %v8832_v8 = vpop.f32.mrf.mxu0  ;;  %1495 = vmatmul.f32.gmra.mxu1 %v8569_v5 }
 0x1f5   : > { %14623 = vst [vmem:[#allocation102_spill] sm:$0xff] %v8832_v8 }
 0x1f6   : > { %14622 = vst [vmem:[#allocation101_spill] sm:$0xff] %v8830_v41  ;;  %1317 = vmatmul.f32.gmra.mxu3 %v8830_v41  ;;  %1722 = vmatmul.f32.gmra.mxu2 %v1565_v48 }
 0x1f7   : > { %1948 = vmatmul.f32.gmra.mxu0 %v1565_v48  ;;  %v1662_v48 = vld [vmem:[#allocation5 + $0x168] sm:$0xff] }
 0x1f8   : > { %2036 = vmatpush.msrb.mxu1 %v1662_v48 }
 0x1f9   : > { %v960_v52 = vpop.f32.mrf.mxu1  ;;  %v8837_v46 = vpop.f32.mrf.mxu2 }
 0x1fa   : > { %v961_v1 = vadd.f32 %v960_v52, %v8347_v51  ;;  %v8840_v62 = vpop.f32.mrf.mxu3  ;;  %v1256_v52 = vadd.f32 %v8770_v31, %v1143_v53 }
 0x1fc   : > { %v8844_v11 = vmax.f32 %v961_v1, 0.0  ;;  %v8846_v7 = vpop.f32.mrf.mxu0  ;;  %1498 = vmatmul.f32.gmra.mxu1 %v8587_v44  ;;  %v8857_v44 = vperm.slane %v8713_v27, 1  ;;  %v1569_v48 = vmax.f32 %v1256_v52, 0.0 }
 0x1fd   : > { %14625 = vst [vmem:[#allocation104_spill] sm:$0xff] %v8846_v7 }
 0x1fe   : > { %14624 = vst [vmem:[#allocation103_spill] sm:$0xff] %v8844_v11  ;;  %1320 = vmatmul.f32.gmra.mxu3 %v8844_v11  ;;  %1725 = vmatmul.f32.gmra.mxu2 %v1567_v55 }
 0x1ff   : > { %1951 = vmatmul.f32.gmra.mxu0 %v1567_v55  ;;  %v1146_v55 = vadd.f32 %v8631_v2, %v8717_v45 }
 0x201   : > { %v963_v58 = vpop.f32.mrf.mxu1  ;;  %v8851_v18 = vpop.f32.mrf.mxu2  ;;  %v1259_v27 = vadd.f32 %v8784_v23, %v1146_v55  ;;  %v2294_v23 = vld [vmem:[#allocation7 + $0xd0] sm:$0xff] }
 0x202   : > { %v964_v1 = vadd.f32 %v963_v58, %v8347_v51  ;;  %v8854_v5 = vpop.f32.mrf.mxu3  ;;  %v1345_v51 = vadd.f32 %v8459_v42, %v8857_v44  ;;  %v1149_v42 = vadd.f32 %v8648_v60, %v8717_v45  ;;  %v2326_v55 = vld [vmem:[#allocation7 + $0x1d0] sm:$0xff]  ;;  %2341 = vmatpush.msrb.mxu2 %v2294_v23 }
 0x203   : > { %v1571_v14 = vmax.f32 %v1259_v27, 0.0  ;;  %2454 = vmatpush.msrb.mxu3 %v2326_v55 }
 0x204   : > { %v8861_v7 = vmax.f32 %v964_v1, 0.0  ;;  %v8863_v8 = vpop.f32.mrf.mxu0  ;;  %1501 = vmatmul.f32.gmra.mxu1 %v8605_v43  ;;  %v1660_v1 = vld [vmem:[#allocation5 + $0x158] sm:$0xff] }
 0x205   : > { %2037 = vmatpush.msrb.mxu1 %v1660_v1 }
 0x206   : > { %14626 = vst [vmem:[#allocation105_spill] sm:$0xff] %v8861_v7  ;;  %1323 = vmatmul.f32.gmra.mxu3 %v8861_v7  ;;  %1728 = vmatmul.f32.gmra.mxu2 %v1569_v48 }
 0x207   : > { %1954 = vmatmul.f32.gmra.mxu0 %v1569_v48  ;;  %v1348_v48 = vadd.f32 %v8475_v16, %v8857_v44  ;;  %v1152_v16 = vadd.f32 %v8665_v30, %v8717_v45 }
 0x209   : > { %v8870_v31 = vpop.f32.mrf.mxu2  ;;  %v1457_v53 = vpop.f32.mrf.mxu1 }
 0x20a   : > { %v8872_v2 = vpop.f32.mrf.mxu3  ;;  %v8874_v15 = vadd.f32 %v1457_v53, %v1345_v51  ;;  %v1262_v51 = vadd.f32 %v8798_v59, %v1149_v42  ;;  %v1351_v59 = vadd.f32 %v8494_v21, %v8857_v44  ;;  %v1265_v42 = vadd.f32 %v8812_v36, %v1152_v16  ;;  %v2292_v36 = vld [vmem:[#allocation7 + $0xc0] sm:$0xff] }
 0x20b   : > { %v1155_v21 = vadd.f32 %v8682_v29, %v8717_v45  ;;  %v2324_v16 = vld [vmem:[#allocation7 + $0x1c0] sm:$0xff]  ;;  %2342 = vmatpush.msrb.mxu2 %v2292_v36 }
 0x20c   : > { %v14196_v52 = vmax.f32 %v8874_v15, 0.0  ;;  %v8877_v58 = vpop.f32.mrf.mxu0  ;;  %1504 = vmatmul.f32.gmra.mxu1 %v8621_v61  ;;  %v1573_v43 = vmax.f32 %v1262_v51, 0.0  ;;  %2455 = vmatpush.msrb.mxu3 %v2324_v16 }
 0x20e   : > { %1731 = vmatmul.f32.gmra.mxu2 %v1571_v14  ;;  %1817 = vmatmul.f32.vlgmr.msra.gmra.mxu3 %v14196_v52 }
 0x20f   : > { %1957 = vmatmul.f32.gmra.mxu0 %v1571_v14 }
 0x211   : > { %v8887_v27 = vpop.f32.mrf.mxu2  ;;  %v1460_v53 = vpop.f32.mrf.mxu1 }
 0x212   : > { %v8889_v61 = vpop.f32.mrf.mxu3  ;;  %v8891_v60 = vadd.f32 %v1460_v53, %v1348_v48  ;;  %v1575_v53 = vmax.f32 %v1265_v42, 0.0  ;;  %v1268_v42 = vadd.f32 %v8826_v37, %v1155_v21  ;;  %v1357_v37 = vadd.f32 %v8531_v17, %v8857_v44 }
 0x213   : > { %v1161_v17 = vadd.f32 %v8721_v22, %v8717_v45 }
 0x214   : > { %v14197_v14 = vmax.f32 %v8891_v60, 0.0  ;;  %v8894_v1 = vpop.f32.mrf.mxu0  ;;  %1507 = vmatmul.f32.gmra.mxu1 %v8638_v54  ;;  %v1577_v54 = vmax.f32 %v1268_v42, 0.0 }
 0x216   : > { %1734 = vmatmul.f32.gmra.mxu2 %v1573_v43  ;;  %1820 = vmatmul.f32.gmra.mxu3 %v14197_v14 }
 0x217   : > { %1960 = vmatmul.f32.gmra.mxu0 %v1573_v43  ;;  %v1658_v43 = vld [vmem:[#allocation5 + $0x148] sm:$0xff] }
 0x218   : > { %2038 = vmatpush.msrb.mxu1 %v1658_v43 }
 0x219   : > { %v8904_v23 = vpop.f32.mrf.mxu2  ;;  %v1463_v55 = vpop.f32.mrf.mxu1 }
 0x21a   : > { %v8906_v48 = vpop.f32.mrf.mxu3  ;;  %v8908_v51 = vadd.f32 %v1463_v55, %v1351_v59  ;;  %v1354_v59 = vadd.f32 %v8510_v9, %v8857_v44  ;;  %v1158_v9 = vadd.f32 %v8699_v4, %v8717_v45 }
 0x21c   : > { %v14200_v30 = vmax.f32 %v8908_v51, 0.0  ;;  %v8911_v52 = vpop.f32.mrf.mxu0  ;;  %1510 = vmatmul.f32.gmra.mxu1 %v8655_v6 }
 0x21e   : > { %1737 = vmatmul.f32.gmra.mxu2 %v1575_v53  ;;  %1823 = vmatmul.f32.gmra.mxu3 %v14200_v30 }
 0x21f   : > { %1963 = vmatmul.f32.gmra.mxu0 %v1575_v53 }
 0x221   : > { %v8921_v55 = vpop.f32.mrf.mxu2  ;;  %v1466_v14 = vpop.f32.mrf.mxu1 }
 0x222   : > { %v8923_v6 = vpop.f32.mrf.mxu3  ;;  %v8925_v29 = vadd.f32 %v1466_v14, %v1354_v59  ;;  %v1271_v14 = vadd.f32 %v8840_v62, %v1158_v9  ;;  %v2290_v62 = vld [vmem:[#allocation7 + $0xb0] sm:$0xff] }
 0x223   : > { %v2322_v9 = vld [vmem:[#allocation7 + $0x1b0] sm:$0xff]  ;;  %2343 = vmatpush.msrb.mxu2 %v2290_v62 }
 0x224   : > { %v14201_v53 = vmax.f32 %v8925_v29, 0.0  ;;  %v8928_v43 = vpop.f32.mrf.mxu0  ;;  %1513 = vmatmul.f32.gmra.mxu1 %v8672_v49  ;;  %v1579_v42 = vmax.f32 %v1271_v14, 0.0  ;;  %v1274_v14 = vadd.f32 %v8854_v5, %v1161_v17  ;;  %2456 = vmatpush.msrb.mxu3 %v2322_v9  ;;  %v1363_v5 = vadd.f32 %v8565_v12, %v8857_v44 }
 0x225   : > { %v1167_v12 = vadd.f32 %v8753_v3, %v8717_v45 }
 0x226   : > { %1740 = vmatmul.f32.gmra.mxu2 %v1577_v54  ;;  %1826 = vmatmul.f32.gmra.mxu3 %v14201_v53  ;;  %v1581_v49 = vmax.f32 %v1274_v14, 0.0 }
 0x227   : > { %1966 = vmatmul.f32.gmra.mxu0 %v1577_v54  ;;  %v1656_v54 = vld [vmem:[#allocation5 + $0x138] sm:$0xff] }
 0x228   : > { %2039 = vmatpush.msrb.mxu1 %v1656_v54 }
 0x229   : > { %v8938_v21 = vpop.f32.mrf.mxu2  ;;  %v1469_v36 = vpop.f32.mrf.mxu1 }
 0x22a   : > { %v8940_v16 = vpop.f32.mrf.mxu3  ;;  %v8942_v59 = vadd.f32 %v1469_v36, %v1357_v37  ;;  %v1360_v37 = vadd.f32 %v8549_v26, %v8857_v44  ;;  %v1164_v26 = vadd.f32 %v8739_v28, %v8717_v45 }
 0x22c   : > { %v14204_v4 = vmax.f32 %v8942_v59, 0.0  ;;  %v8945_v30 = vpop.f32.mrf.mxu0  ;;  %1516 = vmatmul.f32.gmra.mxu1 %v8689_v35 }
 0x22e   : > { %1743 = vmatmul.f32.gmra.mxu2 %v1579_v42  ;;  %1829 = vmatmul.f32.gmra.mxu3 %v14204_v4 }
 0x22f   : > { %1969 = vmatmul.f32.gmra.mxu0 %v1579_v42 }
 0x231   : > { %v8955_v36 = vpop.f32.mrf.mxu2  ;;  %v1472_v53 = vpop.f32.mrf.mxu1 }
 0x232   : > { %v8957_v35 = vpop.f32.mrf.mxu3  ;;  %v8959_v22 = vadd.f32 %v1472_v53, %v1360_v37  ;;  %v1277_v53 = vadd.f32 %v8872_v2, %v1164_v26  ;;  %v2288_v2 = vld [vmem:[#allocation7 + $0xa0] sm:$0xff] }
 0x233   : > { %v2320_v26 = vld [vmem:[#allocation7 + $0x1a0] sm:$0xff]  ;;  %2344 = vmatpush.msrb.mxu2 %v2288_v2 }
 0x234   : > { %v14205_v42 = vmax.f32 %v8959_v22, 0.0  ;;  %v8962_v54 = vpop.f32.mrf.mxu0  ;;  %1519 = vmatmul.f32.gmra.mxu1 %v8706_v56  ;;  %v1583_v14 = vmax.f32 %v1277_v53, 0.0  ;;  %v1280_v53 = vadd.f32 %v8889_v61, %v1167_v12  ;;  %2457 = vmatpush.msrb.mxu3 %v2320_v26  ;;  %v1369_v61 = vadd.f32 %v8601_v63, %v8857_v44 }
 0x235   : > { %v1173_v63 = vadd.f32 %v8781_v38, %v8717_v45 }
 0x236   : > { %1746 = vmatmul.f32.gmra.mxu2 %v1581_v49  ;;  %1832 = vmatmul.f32.gmra.mxu3 %v14205_v42  ;;  %v1585_v56 = vmax.f32 %v1280_v53, 0.0 }
 0x237   : > { %1972 = vmatmul.f32.gmra.mxu0 %v1581_v49  ;;  %v1654_v49 = vld [vmem:[#allocation5 + $0x128] sm:$0xff] }
 0x238   : > { %2040 = vmatpush.msrb.mxu1 %v1654_v49 }
 0x239   : > { %v8972_v17 = vpop.f32.mrf.mxu2  ;;  %v1475_v62 = vpop.f32.mrf.mxu1 }
 0x23a   : > { %v8974_v9 = vpop.f32.mrf.mxu3  ;;  %v8976_v37 = vadd.f32 %v1475_v62, %v1363_v5  ;;  %v1366_v5 = vadd.f32 %v8583_v33, %v8857_v44  ;;  %v1170_v33 = vadd.f32 %v8767_v47, %v8717_v45 }
 0x23c   : > { %v14208_v28 = vmax.f32 %v8976_v37, 0.0  ;;  %v8979_v4 = vpop.f32.mrf.mxu0  ;;  %1522 = vmatmul.f32.gmra.mxu1 %v8730_v24 }
 0x23e   : > { %1749 = vmatmul.f32.gmra.mxu2 %v1583_v14  ;;  %1835 = vmatmul.f32.gmra.mxu3 %v14208_v28 }
 0x23f   : > { %1975 = vmatmul.f32.gmra.mxu0 %v1583_v14 }
 0x241   : > { %v8989_v62 = vpop.f32.mrf.mxu2  ;;  %v1478_v42 = vpop.f32.mrf.mxu1 }
 0x242   : > { %v8991_v24 = vpop.f32.mrf.mxu3  ;;  %v8993_v3 = vadd.f32 %v1478_v42, %v1366_v5  ;;  %v1283_v42 = vadd.f32 %v8906_v48, %v1170_v33  ;;  %v2286_v48 = vld [vmem:[#allocation7 + $0x90] sm:$0xff] }
 0x243   : > { %v2318_v33 = vld [vmem:[#allocation7 + $0x190] sm:$0xff]  ;;  %2345 = vmatpush.msrb.mxu2 %v2286_v48 }
 0x244   : > { %v14209_v14 = vmax.f32 %v8993_v3, 0.0  ;;  %v8996_v49 = vpop.f32.mrf.mxu0  ;;  %1525 = vmatmul.f32.gmra.mxu1 %v8746_v0  ;;  %v1587_v53 = vmax.f32 %v1283_v42, 0.0  ;;  %v1286_v42 = vadd.f32 %v8923_v6, %v1173_v63  ;;  %2458 = vmatpush.msrb.mxu3 %v2318_v33  ;;  %v1375_v6 = vadd.f32 %v8640_v13, %v8857_v44 }
 0x245   : > { %v1179_v13 = vadd.f32 %v8809_v19, %v8717_v45 }
 0x246   : > { %1752 = vmatmul.f32.gmra.mxu2 %v1585_v56  ;;  %1838 = vmatmul.f32.gmra.mxu3 %v14209_v14  ;;  %v1589_v0 = vmax.f32 %v1286_v42, 0.0 }
 0x247   : > { %1978 = vmatmul.f32.gmra.mxu0 %v1585_v56  ;;  %v1652_v56 = vld [vmem:[#allocation5 + $0x118] sm:$0xff] }
 0x248   : > { %2041 = vmatpush.msrb.mxu1 %v1652_v56 }
 0x249   : > { %v1481_v12 = vpop.f32.mrf.mxu1  ;;  %v9006_v2 = vpop.f32.mrf.mxu2 }
 0x24a   : > { %v9008_v26 = vpop.f32.mrf.mxu3  ;;  %v9010_v5 = vadd.f32 %v1481_v12, %v1369_v61  ;;  %v1372_v61 = vadd.f32 %v8623_v50, %v8857_v44  ;;  %v1176_v50 = vadd.f32 %v8795_v34, %v8717_v45 }
 0x24c   : > { %v14212_v47 = vmax.f32 %v9010_v5, 0.0  ;;  %v9013_v28 = vpop.f32.mrf.mxu0  ;;  %1528 = vmatmul.f32.gmra.mxu1 %v8760_v10  ;;  %v1289_v63 = vadd.f32 %v8940_v16, %v1176_v50  ;;  %v2284_v16 = vld [vmem:[#allocation7 + $0x80] sm:$0xff] }
 0x24d   : > { %v2316_v50 = vld [vmem:[#allocation7 + $0x180] sm:$0xff]  ;;  %2346 = vmatpush.msrb.mxu2 %v2284_v16 }
 0x24e   : > { %1755 = vmatmul.f32.gmra.mxu2 %v1587_v53  ;;  %1841 = vmatmul.f32.gmra.mxu3 %v14212_v47 }
 0x24f   : > { %1981 = vmatmul.f32.gmra.mxu0 %v1587_v53  ;;  %2459 = vmatpush.msrb.mxu3 %v2316_v50 }
 0x251   : > { %v1484_v12 = vpop.f32.mrf.mxu1  ;;  %v9023_v14 = vpop.f32.mrf.mxu2 }
 0x252   : > { %v9025_v10 = vpop.f32.mrf.mxu3  ;;  %v9027_v38 = vadd.f32 %v1484_v12, %v1372_v61  ;;  %v1591_v12 = vmax.f32 %v1289_v63, 0.0  ;;  %v1292_v63 = vadd.f32 %v8957_v35, %v1179_v13  ;;  %v14630_v35 = vld [vmem:[#allocation79_spill] sm:$0xff] }
 0x253   : > { %v1381_v13 = vadd.f32 %v14630_v35, %v8857_v44  ;;  %v1185_v35 = vadd.f32 %v8837_v46, %v8717_v45 }
 0x254   : > { %v14213_v53 = vmax.f32 %v9027_v38, 0.0  ;;  %v9030_v56 = vpop.f32.mrf.mxu0  ;;  %1531 = vmatmul.f32.gmra.mxu1 %v8774_v20  ;;  %v1593_v20 = vmax.f32 %v1292_v63, 0.0 }
 0x255   : > { %14627 = vst [vmem:[#allocation106_spill] sm:$0xff] %v9030_v56 }
 0x256   : > { %1758 = vmatmul.f32.gmra.mxu2 %v1589_v0  ;;  %1844 = vmatmul.f32.gmra.mxu3 %v14213_v53 }
 0x257   : > { %1984 = vmatmul.f32.gmra.mxu0 %v1589_v0  ;;  %v1650_v0 = vld [vmem:[#allocation5 + $0x108] sm:$0xff] }
 0x258   : > { %2042 = vmatpush.msrb.mxu1 %v1650_v0 }
 0x259   : > { %v1487_v48 = vpop.f32.mrf.mxu1  ;;  %v9040_v33 = vpop.f32.mrf.mxu2 }
 0x25a   : > { %v9042_v61 = vpop.f32.mrf.mxu3  ;;  %v9044_v42 = vadd.f32 %v1487_v48, %v1375_v6  ;;  %v1378_v6 = vadd.f32 %v8657_v40, %v8857_v44  ;;  %v1182_v40 = vadd.f32 %v8823_v32, %v8717_v45 }
 0x25c   : > { %v14216_v34 = vmax.f32 %v9044_v42, 0.0  ;;  %v9047_v47 = vpop.f32.mrf.mxu0  ;;  %1534 = vmatmul.f32.gmra.mxu1 %v8788_v57  ;;  %v1295_v16 = vadd.f32 %v8974_v9, %v1182_v40  ;;  %v2282_v9 = vld [vmem:[#allocation7 + $0x70] sm:$0xff] }
 0x25d   : > { %14628 = vst [vmem:[#allocation107_spill] sm:$0xff] %v9047_v47  ;;  %v2314_v40 = vld [vmem:[#allocation7 + $0x170] sm:$0xff]  ;;  %2347 = vmatpush.msrb.mxu2 %v2282_v9 }
 0x25e   : > { %1761 = vmatmul.f32.gmra.mxu2 %v1591_v12  ;;  %1847 = vmatmul.f32.gmra.mxu3 %v14216_v34  ;;  %v1595_v34 = vmax.f32 %v1295_v16, 0.0 }
 0x25f   : > { %1987 = vmatmul.f32.gmra.mxu0 %v1591_v12  ;;  %2460 = vmatpush.msrb.mxu3 %v2314_v40 }
 0x261   : > { %v1490_v48 = vpop.f32.mrf.mxu1  ;;  %v9057_v53 = vpop.f32.mrf.mxu2 }
 0x262   : > { %v9059_v57 = vpop.f32.mrf.mxu3  ;;  %v9061_v19 = vadd.f32 %v1490_v48, %v1378_v6 }
 0x264   : > { %v14218_v12 = vmax.f32 %v9061_v19, 0.0  ;;  %v9064_v0 = vpop.f32.mrf.mxu0  ;;  %1537 = vmatmul.f32.gmra.mxu1 %v8802_v25 }
 0x265   : > { %14629 = vst [vmem:[#allocation108_spill] sm:$0xff] %v9064_v0 }
 0x266   : > { %1764 = vmatmul.f32.gmra.mxu2 %v1593_v20  ;;  %1850 = vmatmul.f32.gmra.mxu3 %v14218_v12  ;;  %v2331_v12 = vld [vmem:[#allocation7 + $0x1f8] sm:$0xff] }
 0x267   : > { %1990 = vmatmul.f32.gmra.mxu0 %v1593_v20  ;;  %v2299_v20 = vld [vmem:[#allocation7 + $0xf8] sm:$0xff]  ;;  %2678 = vmatpush.msra.mxu1 %v2331_v12 }
 0x268   : > { %2565 = vmatpush.msrb.mxu0 %v2299_v20  ;;  %v14634_v20 = vld [vmem:[#allocation85_spill] sm:$0xff] }
 0x269   : > { %v1493_v50 = vpop.f32.mrf.mxu1  ;;  %v9074_v6 = vpop.f32.mrf.mxu2 }
 0x26a   : > { %v9076_v63 = vpop.f32.mrf.mxu3  ;;  %v9078_v48 = vadd.f32 %v1493_v50, %v1381_v13  ;;  %v14632_v13 = vld [vmem:[#allocation82_spill] sm:$0xff]  ;;  %v1298_v50 = vadd.f32 %v8991_v24, %v1185_v35  ;;  %v1188_v24 = vadd.f32 %v8851_v18, %v8717_v45  ;;  %v1387_v35 = vadd.f32 %v14634_v20, %v8857_v44 }
 0x26b   : > { %v1384_v16 = vadd.f32 %v14632_v13, %v8857_v44  ;;  %v1191_v20 = vadd.f32 %v8870_v31, %v8717_v45 }
 0x26c   : > { %v14220_v32 = vmax.f32 %v9078_v48, 0.0  ;;  %v9081_v25 = vpop.f32.mrf.mxu0  ;;  %1540 = vmatmul.f32.gmra.mxu1 %v8816_v39 }
 0x26d   : > { %14631 = vst [vmem:[#allocation79_spill] sm:$0xff] %v9081_v25 }
 0x26e   : > { %1767 = vmatmul.f32.gmra.mxu2 %v1595_v34  ;;  %1853 = vmatmul.f32.gmra.mxu3 %v14220_v32  ;;  %v1597_v32 = vmax.f32 %v1298_v50, 0.0 }
 0x26f   : > { %1993 = vmatmul.f32.gmra.mxu0 %v1595_v34 }
 0x271   : > { %v1496_v39 = vpop.f32.mrf.mxu1  ;;  %v9091_v25 = vpop.f32.mrf.mxu2 }
 0x272   : > { %v9093_v46 = vpop.f32.mrf.mxu3  ;;  %v9095_v0 = vadd.f32 %v1496_v39, %v1384_v16  ;;  %v1301_v39 = vadd.f32 %v9008_v26, %v1188_v24  ;;  %v2280_v26 = vld [vmem:[#allocation7 + $0x60] sm:$0xff] }
 0x273   : > { %v2312_v24 = vld [vmem:[#allocation7 + $0x160] sm:$0xff]  ;;  %2348 = vmatpush.msrb.mxu2 %v2280_v26 }
 0x274   : > { %v14222_v34 = vmax.f32 %v9095_v0, 0.0  ;;  %v9098_v12 = vpop.f32.mrf.mxu0  ;;  %1543 = vmatmul.f32.gmra.mxu1 %v8830_v41  ;;  %v1599_v50 = vmax.f32 %v1301_v39, 0.0  ;;  %2461 = vmatpush.msrb.mxu3 %v2312_v24 }
 0x275   : > { %14633 = vst [vmem:[#allocation82_spill] sm:$0xff] %v9098_v12 }
 0x276   : > { %1770 = vmatmul.f32.gmra.mxu2 %v1597_v32  ;;  %1856 = vmatmul.f32.gmra.mxu3 %v14222_v34  ;;  %v2329_v34 = vld [vmem:[#allocation7 + $0x1e8] sm:$0xff] }
 0x277   : > { %1996 = vmatmul.f32.gmra.mxu0 %v1597_v32  ;;  %v2297_v32 = vld [vmem:[#allocation7 + $0xe8] sm:$0xff]  ;;  %2679 = vmatpush.msra.mxu1 %v2329_v34 }
 0x278   : > { %2566 = vmatpush.msrb.mxu0 %v2297_v32  ;;  %v14638_v32 = vld [vmem:[#allocation90_spill] sm:$0xff] }
 0x279   : > { %v1499_v9 = vpop.f32.mrf.mxu1  ;;  %v9108_v40 = vpop.f32.mrf.mxu2 }
 0x27a   : > { %v9110_v13 = vpop.f32.mrf.mxu3  ;;  %v9112_v16 = vadd.f32 %v1499_v9, %v1387_v35  ;;  %v14636_v35 = vld [vmem:[#allocation88_spill] sm:$0xff]  ;;  %v1304_v9 = vadd.f32 %v9025_v10, %v1191_v20  ;;  %v1194_v10 = vadd.f32 %v8887_v27, %v8717_v45  ;;  %v1393_v20 = vadd.f32 %v14638_v32, %v8857_v44 }
 0x27b   : > { %v1390_v39 = vadd.f32 %v14636_v35, %v8857_v44  ;;  %v2327_v32 = vld [vmem:[#allocation7 + $0x1d8] sm:$0xff] }
 0x27c   : > { %v14224_v18 = vmax.f32 %v9112_v16, 0.0  ;;  %v9115_v41 = vpop.f32.mrf.mxu0  ;;  %1546 = vmatmul.f32.gmra.mxu1 %v8844_v11 }
 0x27d   : > { %14635 = vst [vmem:[#allocation85_spill] sm:$0xff] %v9115_v41  ;;  %2680 = vmatpush.msra.mxu1 %v2327_v32 }
 0x27e   : > { %1773 = vmatmul.f32.gmra.mxu2 %v1599_v50  ;;  %1859 = vmatmul.f32.gmra.mxu3 %v14224_v18  ;;  %v1601_v18 = vmax.f32 %v1304_v9, 0.0  ;;  %v2295_v9 = vld [vmem:[#allocation7 + $0xd8] sm:$0xff] }
 0x27f   : > { %1999 = vmatmul.f32.gmra.mxu0 %v1599_v50 }
 0x280   : > { %2567 = vmatpush.msrb.mxu0 %v2295_v9 }
 0x281   : > { %v1502_v11 = vpop.f32.mrf.mxu1  ;;  %v9125_v41 = vpop.f32.mrf.mxu2 }
 0x282   : > { %v9127_v31 = vpop.f32.mrf.mxu3  ;;  %v9129_v12 = vadd.f32 %v1502_v11, %v1390_v39  ;;  %v1307_v11 = vadd.f32 %v9042_v61, %v1194_v10  ;;  %v1197_v61 = vadd.f32 %v8904_v23, %v8717_v45  ;;  %v2278_v10 = vld [vmem:[#allocation7 + $0x50] sm:$0xff]  ;;  %v2289_v23 = vld [vmem:[#allocation7 + $0xa8] sm:$0xff] }
 0x283   : > { %2349 = vmatpush.msrb.mxu2 %v2278_v10 }
 0x284   : > { %v14226_v34 = vmax.f32 %v9129_v12, 0.0  ;;  %v9132_v50 = vpop.f32.mrf.mxu0  ;;  %1549 = vmatmul.f32.gmra.mxu1 %v8861_v7  ;;  %v1603_v7 = vmax.f32 %v1307_v11, 0.0  ;;  %v2310_v11 = vld [vmem:[#allocation7 + $0x150] sm:$0xff] }
 0x285   : > { %14637 = vst [vmem:[#allocation88_spill] sm:$0xff] %v9132_v50  ;;  %2462 = vmatpush.msrb.mxu3 %v2310_v11 }
 0x286   : > { %1776 = vmatmul.f32.gmra.mxu2 %v1601_v18  ;;  %1862 = vmatmul.f32.gmra.mxu3 %v14226_v34  ;;  %v2293_v34 = vld [vmem:[#allocation7 + $0xc8] sm:$0xff] }
 0x287   : > { %2002 = vmatmul.f32.gmra.mxu0 %v1601_v18  ;;  %v14640_v18 = vmax.f32 %v8874_v15, 0.0  ;;  %v1310_v15 = vadd.f32 %v9059_v57, %v1197_v61  ;;  %v2287_v57 = vld [vmem:[#allocation7 + $0x98] sm:$0xff]  ;;  %v14644_v61 = vld [vmem:[#allocation94_spill] sm:$0xff] }
 0x288   : > { %2568 = vmatpush.msrb.mxu0 %v2293_v34  ;;  %v1200_v34 = vadd.f32 %v8921_v55, %v8717_v45  ;;  %v1399_v10 = vadd.f32 %v14644_v61, %v8857_v44  ;;  %v1203_v61 = vadd.f32 %v8938_v21, %v8717_v45  ;;  %v2277_v21 = vld [vmem:[#allocation7 + $0x48] sm:$0xff] }
 0x289   : > { %v1505_v26 = vpop.f32.mrf.mxu1  ;;  %v9142_v24 = vpop.f32.mrf.mxu2 }
 0x28a   : > { %v9144_v35 = vpop.f32.mrf.mxu3  ;;  %v9146_v39 = vadd.f32 %v1505_v26, %v1393_v20  ;;  %v2291_v20 = vld [vmem:[#allocation7 + $0xb8] sm:$0xff] }
 0x28b   : > { %v14641_v26 = vld [vmem:[#allocation92_spill] sm:$0xff]  ;;  %2569 = vmatpush.msrb.mxu0 %v2291_v20  ;;  %v1313_v20 = vadd.f32 %v9076_v63, %v1200_v34  ;;  %v2281_v63 = vld [vmem:[#allocation7 + $0x68] sm:$0xff]  ;;  %v2276_v34 = vld [vmem:[#allocation7 + $0x40] sm:$0xff] }
 0x28c   : > { %v14227_v27 = vmax.f32 %v9146_v39, 0.0  ;;  %v9149_v50 = vpop.f32.mrf.mxu0  ;;  %2043 = vmatmul.f32.vlgmr.msrb.gmra.mxu1 %v14640_v18  ;;  %2350 = vmatpush.msrb.mxu2 %v2276_v34  ;;  %v2275_v34 = vld [vmem:[#allocation7 + $0x38] sm:$0xff] }
 0x28d   : > { %14639 = vst [vmem:[#allocation90_spill] sm:$0xff] %v9149_v50  ;;  %v1396_v50 = vadd.f32 %v14641_v26, %v8857_v44  ;;  %v14643_v26 = vmax.f32 %v8891_v60, 0.0  ;;  %2570 = vmatpush.msrb.mxu0 %v2289_v23  ;;  %v1607_v55 = vmax.f32 %v1313_v20, 0.0  ;;  %v2308_v20 = vld [vmem:[#allocation7 + $0x140] sm:$0xff] }
 0x28e   : > { %1779 = vmatmul.f32.gmra.mxu2 %v1603_v7  ;;  %1865 = vmatmul.f32.gmra.mxu3 %v14227_v27 }
 0x28f   : > { %2005 = vmatmul.f32.gmra.mxu0 %v1603_v7  ;;  %v1605_v7 = vmax.f32 %v1310_v15, 0.0  ;;  %v2283_v15 = vld [vmem:[#allocation7 + $0x78] sm:$0xff]  ;;  %2463 = vmatpush.msrb.mxu3 %v2308_v20  ;;  %v14650_v20 = vld [vmem:[#allocation98_spill] sm:$0xff] }
 0x290   : > { %2571 = vmatpush.msrb.mxu0 %v2287_v57  ;;  %v2325_v57 = vld [vmem:[#allocation7 + $0x1c8] sm:$0xff] }
 0x291   : > { %v1508_v9 = vpop.f32.mrf.mxu1  ;;  %v9160_v18 = vpop.f32.mrf.mxu2  ;;  %2681 = vmatpush.msra.mxu1 %v2325_v57 }
 0x292   : > { %v9162_v47 = vadd.f32 %v1508_v9, %v1396_v50  ;;  %v9164_v27 = vpop.f32.mrf.mxu3  ;;  %v2285_v50 = vld [vmem:[#allocation7 + $0x88] sm:$0xff] }
 0x293   : > { %2572 = vmatpush.msrb.mxu0 %v2285_v50  ;;  %v2279_v50 = vld [vmem:[#allocation7 + $0x58] sm:$0xff] }
 0x294   : > { %v14228_v32 = vmax.f32 %v9162_v47, 0.0  ;;  %v9167_v56 = vpop.f32.mrf.mxu0  ;;  %2046 = vmatmul.f32.gmra.mxu1 %v14643_v26 }
 0x295   : > { %14642 = vst [vmem:[#allocation92_spill] sm:$0xff] %v9167_v56  ;;  %2573 = vmatpush.msrb.mxu0 %v2283_v15 }
 0x296   : > { %1782 = vmatmul.f32.gmra.mxu2 %v1605_v7  ;;  %1868 = vmatmul.f32.gmra.mxu3 %v14228_v32  ;;  %v14647_v32 = vmax.f32 %v8908_v51, 0.0 }
 0x297   : > { %2008 = vmatmul.f32.gmra.mxu0 %v1605_v7 }
 0x298   : > { %2574 = vmatpush.msrb.mxu0 %v2281_v63  ;;  %v2270_v63 = vld [vmem:[#allocation7 + $0x10] sm:$0xff] }
 0x299   : > { %v1511_v11 = vpop.f32.mrf.mxu1  ;;  %v9178_v60 = vpop.f32.mrf.mxu2 }
 0x29a   : > { %v9180_v9 = vadd.f32 %v1511_v11, %v1399_v10  ;;  %v9182_v23 = vpop.f32.mrf.mxu3  ;;  %v2274_v10 = vld [vmem:[#allocation7 + $0x30] sm:$0xff]  ;;  %2575 = vmatpush.msrb.mxu0 %v2279_v50  ;;  %v2268_v50 = vld [vmem:[#allocation7] sm:$0xff] }
 0x29b   : > { %v14648_v11 = vld [vmem:[#allocation96_spill] sm:$0xff]  ;;  %2351 = vmatpush.msrb.mxu2 %v2274_v10  ;;  %v2273_v10 = vld [vmem:[#allocation7 + $0x28] sm:$0xff] }
 0x29c   : > { %14645 = vst [vmem:[#allocation94_spill] sm:$0xff] %v9180_v9  ;;  %v14229_v26 = vmax.f32 %v9180_v9, 0.0  ;;  %v9185_v7 = vpop.f32.mrf.mxu0  ;;  %2049 = vmatmul.f32.gmra.mxu1 %v14647_v32  ;;  %v1402_v51 = vadd.f32 %v14648_v11, %v8857_v44  ;;  %v1316_v32 = vadd.f32 %v9093_v46, %v1203_v61  ;;  %v14649_v46 = vmax.f32 %v8925_v29, 0.0  ;;  %2576 = vmatpush.msrb.mxu0 %v2277_v21  ;;  %v2271_v21 = vld [vmem:[#allocation7 + $0x18] sm:$0xff] }
 0x29d   : > { %14646 = vst [vmem:[#allocation109_spill] sm:$0xff] %v9185_v7  ;;  %v1206_v61 = vadd.f32 %v8955_v36, %v8717_v45 }
 0x29e   : > { %1785 = vmatmul.f32.gmra.mxu2 %v1607_v55  ;;  %1871 = vmatmul.f32.gmra.mxu3 %v14229_v26  ;;  %v1609_v57 = vmax.f32 %v1316_v32, 0.0 }
 0x29f   : > { %2011 = vmatmul.f32.gmra.mxu0 %v1607_v55  ;;  %v2272_v55 = vld [vmem:[#allocation7 + $0x20] sm:$0xff]  ;;  %v1319_v29 = vadd.f32 %v9110_v13, %v1206_v61  ;;  %v2269_v13 = vld [vmem:[#allocation7 + $0x8] sm:$0xff]  ;;  %v1209_v61 = vadd.f32 %v8972_v17, %v8717_v45 }
 0x2a0   : > { %2352 = vmatpush.msrb.mxu2 %v2272_v55  ;;  %2577 = vmatpush.msrb.mxu0 %v2275_v34  ;;  %v2323_v34 = vld [vmem:[#allocation7 + $0x1b8] sm:$0xff] }
 0x2a1   : > { %v1514_v15 = vpop.f32.mrf.mxu1  ;;  %v9196_v7 = vpop.f32.mrf.mxu2  ;;  %2682 = vmatpush.msra.mxu1 %v2323_v34  ;;  %v14653_v34 = vmax.f32 %v8959_v22, 0.0 }
 0x2a2   : > { %v9198_v56 = vadd.f32 %v1514_v15, %v1402_v51  ;;  %v9200_v26 = vpop.f32.mrf.mxu3  ;;  %2353 = vmatpush.msrb.mxu2 %v2270_v63  ;;  %v1405_v51 = vadd.f32 %v14650_v20, %v8857_v44  ;;  %2578 = vmatpush.msrb.mxu0 %v2273_v10  ;;  %v14651_v20 = vmax.f32 %v8942_v59, 0.0  ;;  %v14652_v10 = vld [vmem:[#allocation100_spill] sm:$0xff] }
 0x2a4   : > { %v14232_v9 = vmax.f32 %v9198_v56, 0.0  ;;  %v9203_v11 = vpop.f32.mrf.mxu0  ;;  %2052 = vmatmul.f32.gmra.mxu1 %v14649_v46  ;;  %2354 = vmatpush.msrb.mxu2 %v2268_v50  ;;  %v1611_v46 = vmax.f32 %v1319_v29, 0.0  ;;  %v2306_v50 = vld [vmem:[#allocation7 + $0x130] sm:$0xff]  ;;  %v1322_v29 = vadd.f32 %v9127_v31, %v1209_v61  ;;  %v1212_v31 = vadd.f32 %v8989_v62, %v8717_v45  ;;  %v14654_v61 = vld [vmem:[#allocation102_spill] sm:$0xff] }
 0x2a5   : > { %2579 = vmatpush.msrb.mxu0 %v2271_v21  ;;  %2464 = vmatpush.msrb.mxu3 %v2306_v50  ;;  %v1411_v50 = vadd.f32 %v14654_v61, %v8857_v44  ;;  %v14656_v61 = vmax.f32 %v8976_v37, 0.0 }
 0x2a6   : > { %1788 = vmatmul.f32.gmra.mxu2 %v1609_v57  ;;  %1874 = vmatmul.f32.gmra.mxu3 %v14232_v9 }
 0x2a7   : > { %2014 = vmatmul.f32.gmra.mxu0 %v1609_v57 }
 0x2a8   : > { %2580 = vmatpush.msrb.mxu0 %v2269_v13 }
 0x2a9   : > { %v1517_v32 = vpop.f32.mrf.mxu1  ;;  %v9214_v15 = vpop.f32.mrf.mxu2 }
 0x2aa   : > { %v9216_v36 = vadd.f32 %v1517_v32, %v1405_v51  ;;  %v9218_v55 = vpop.f32.mrf.mxu3  ;;  %v1408_v51 = vadd.f32 %v14652_v10, %v8857_v44  ;;  %v9243_v10 = vld [vmem:[#allocation14 + $0x2] ss:$8 sm:$0x3] }
 0x2ab   : > { %v9248_v13 = vperm.slane %v9243_v10, 0 }
 0x2ac   : > { %v14231_v57 = vmax.f32 %v9216_v36, 0.0  ;;  %v9221_v63 = vpop.f32.mrf.mxu0  ;;  %2055 = vmatmul.f32.gmra.mxu1 %v14651_v20  ;;  %v1613_v20 = vmax.f32 %v1322_v29, 0.0 }
 0x2ad   : > { %v1709_v37 = vadd.f32 %v9023_v14, %v9248_v13  ;;  %v1417_v14 = vadd.f32 %v8863_v8, %v8857_v44  ;;  %v14662_v8 = vmax.f32 %v9010_v5, 0.0 }
 0x2ae   : > { %1791 = vmatmul.f32.gmra.mxu2 %v1611_v46  ;;  %1877 = vmatmul.f32.gmra.mxu3 %v14231_v57 }
 0x2af   : > { %2017 = vmatmul.f32.gmra.mxu0 %v1611_v46 }
 0x2b1   : > { %v1520_v59 = vpop.f32.mrf.mxu1  ;;  %v9232_v32 = vpop.f32.mrf.mxu2 }
 0x2b2   : > { %v9234_v21 = vadd.f32 %v1520_v59, %v1408_v51  ;;  %v9236_v17 = vpop.f32.mrf.mxu3  ;;  %v1325_v51 = vadd.f32 %v9144_v35, %v1212_v31  ;;  %v1706_v59 = vadd.f32 %v9006_v2, %v9248_v13  ;;  %v2321_v35 = vld [vmem:[#allocation7 + $0x1a8] sm:$0xff]  ;;  %v2304_v2 = vld [vmem:[#allocation7 + $0x120] sm:$0xff]  ;;  %v14657_v31 = vld [vmem:[#allocation104_spill] sm:$0xff] }
 0x2b3   : > { %2683 = vmatpush.msra.mxu1 %v2321_v35  ;;  %2465 = vmatpush.msrb.mxu3 %v2304_v2  ;;  %v14661_v2 = vld [vmem:[#allocation31_spill] sm:$0xff] }
 0x2b4   : > { %v14233_v57 = vmax.f32 %v9234_v21, 0.0  ;;  %v9239_v46 = vpop.f32.mrf.mxu0  ;;  %2058 = vmatmul.f32.gmra.mxu1 %v14653_v34  ;;  %v1615_v34 = vmax.f32 %v1325_v51, 0.0  ;;  %v1819_v9 = vadd.f32 %v9164_v27, %v1706_v59  ;;  %v14658_v51 = vld [vmem:[#allocation30_spill] sm:$0xff] }
 0x2b6   : > { %1794 = vmatmul.f32.gmra.mxu2 %v1613_v20  ;;  %1880 = vmatmul.f32.gmra.mxu3 %v14233_v57  ;;  %v2140_v27 = vadd.f32 %v1819_v9, %v14658_v51  ;;  %v14660_v9 = vmax.f32 %v8993_v3, 0.0 }
 0x2b7   : > { %2020 = vmatmul.f32.gmra.mxu0 %v1613_v20 }
 0x2b9   : > { %v1523_v22 = vpop.f32.mrf.mxu1  ;;  %v9255_v29 = vpop.f32.mrf.mxu2 }
 0x2ba   : > { %v9259_v45 = vadd.f32 %v1523_v22, %v1411_v50  ;;  %v9261_v62 = vpop.f32.mrf.mxu3  ;;  %v1414_v50 = vadd.f32 %v14657_v31, %v8857_v44 }
 0x2bc   : > { %v14234_v20 = vmax.f32 %v9259_v45, 0.0  ;;  %v9265_v57 = vpop.f32.mrf.mxu0  ;;  %2061 = vmatmul.f32.gmra.mxu1 %v14656_v61 }
 0x2bd   : > { %14655 = vst [vmem:[#allocation96_spill] sm:$0xff] %v9265_v57 }
 0x2be   : > { %1797 = vmatmul.f32.gmra.mxu2 %v1615_v34  ;;  %1883 = vmatmul.f32.gmra.mxu3 %v14234_v20  ;;  %v9282_v20 = vmax.f32 %v2140_v27, 0.0  ;;  %v1712_v27 = vadd.f32 %v9040_v33, %v9248_v13  ;;  %v2302_v33 = vld [vmem:[#allocation7 + $0x110] sm:$0xff] }
 0x2bf   : > { %2023 = vmatmul.f32.gmra.mxu0 %v1615_v34  ;;  %v1822_v34 = vadd.f32 %v9182_v23, %v1709_v37  ;;  %2466 = vmatpush.msrb.mxu3 %v2302_v33 }
 0x2c0   : > { %14659 = vst [vmem:[#allocation98_spill] sm:$0xff] %v9282_v20  ;;  %v1825_v37 = vadd.f32 %v9200_v26, %v1712_v27  ;;  %v1420_v26 = vadd.f32 %v8877_v58, %v8857_v44  ;;  %v14665_v58 = vmax.f32 %v9027_v38, 0.0  ;;  %v1718_v38 = vadd.f32 %v9074_v6, %v9248_v13  ;;  %v2300_v6 = vld [vmem:[#allocation7 + $0x100] sm:$0xff] }
 0x2c1   : > { %v1526_v22 = vpop.f32.mrf.mxu1  ;;  %v9274_v59 = vpop.f32.mrf.mxu2  ;;  %2467 = vmatpush.msrb.mxu3 %v2300_v6 }
 0x2c2   : > { %v9278_v61 = vadd.f32 %v1526_v22, %v1414_v50  ;;  %v9280_v57 = vpop.f32.mrf.mxu3  ;;  %v2142_v50 = vadd.f32 %v1822_v34, %v14661_v2  ;;  %v2319_v2 = vld [vmem:[#allocation7 + $0x198] sm:$0xff] }
 0x2c3   : > { %2684 = vmatpush.msra.mxu1 %v2319_v2 }
 0x2c4   : > { %v14235_v35 = vmax.f32 %v9278_v61, 0.0  ;;  %v9286_v31 = vpop.f32.mrf.mxu0  ;;  %2064 = vmatmul.f32.gmra.mxu1 %v14660_v9  ;;  %v9311_v34 = vmax.f32 %v2142_v50, 0.0  ;;  %v1715_v50 = vadd.f32 %v9057_v53, %v9248_v13  ;;  %v1423_v53 = vadd.f32 %v8894_v1, %v8857_v44 }
 0x2c5   : > { %v14668_v1 = vmax.f32 %v9044_v42, 0.0 }
 0x2c6   : > { %1886 = vmatmul.f32.gmra.mxu3 %v14235_v35  ;;  %2355 = vmatmul.f32.vlgmr.msrb.gmra.mxu2 %v9282_v20  ;;  %14663 = vst [vmem:[#allocation100_spill] sm:$0xff] %v9311_v34 }
 0x2c7   : > { %2581 = vmatmul.f32.vlgmr.msrb.gmra.mxu0 %v9282_v20 }
 0x2c9   : > { %v1529_v23 = vpop.f32.mrf.mxu1  ;;  %v9297_v51 = vpop.f32.mrf.mxu2 }
 0x2ca   : > { %v9301_v3 = vadd.f32 %v1529_v23, %v1417_v14  ;;  %v9303_v22 = vpop.f32.mrf.mxu3  ;;  %v14664_v14 = vld [vmem:[#allocation32_spill] sm:$0xff] }
 0x2cb   : > { %v2144_v23 = vadd.f32 %v1825_v37, %v14664_v14 }
 0x2cc   : > { %v14236_v9 = vmax.f32 %v9301_v3, 0.0  ;;  %v9307_v35 = vpop.f32.mrf.mxu0  ;;  %2067 = vmatmul.f32.gmra.mxu1 %v14662_v8 }
 0x2cd   : > { %v9334_v37 = vmax.f32 %v2144_v23, 0.0 }
 0x2ce   : > { %1889 = vmatmul.f32.gmra.mxu3 %v14236_v9  ;;  %2358 = vmatmul.f32.gmra.mxu2 %v9311_v34 }
 0x2cf   : > { %2584 = vmatmul.f32.gmra.mxu0 %v9311_v34  ;;  %v1828_v34 = vadd.f32 %v9218_v55, %v1715_v50  ;;  %14666 = vst [vmem:[#allocation102_spill] sm:$0xff] %v9334_v37  ;;  %v14667_v55 = vld [vmem:[#allocation33_spill] sm:$0xff]  ;;  %v1831_v50 = vadd.f32 %v9236_v17, %v1718_v38  ;;  %v1426_v17 = vadd.f32 %v8911_v52, %v8857_v44  ;;  %v14671_v52 = vmax.f32 %v9061_v19, 0.0 }
 0x2d0   : > { %v1724_v19 = vadd.f32 %v9108_v40, %v9248_v13  ;;  %v2315_v40 = vld [vmem:[#allocation7 + $0x178] sm:$0xff] }
 0x2d1   : > { %v1532_v5 = vpop.f32.mrf.mxu1  ;;  %v9320_v27 = vpop.f32.mrf.mxu2  ;;  %v2146_v33 = vadd.f32 %v1828_v34, %v14667_v55  ;;  %v2317_v55 = vld [vmem:[#allocation7 + $0x188] sm:$0xff] }
 0x2d2   : > { %v9324_v8 = vadd.f32 %v1532_v5, %v1420_v26  ;;  %v9326_v9 = vpop.f32.mrf.mxu3  ;;  %2685 = vmatpush.msra.mxu1 %v2317_v55 }
 0x2d3   : > { %v9357_v34 = vmax.f32 %v2146_v33, 0.0  ;;  %v1721_v33 = vadd.f32 %v9091_v25, %v9248_v13  ;;  %v1429_v25 = vadd.f32 %v8928_v43, %v8857_v44  ;;  %v14674_v43 = vmax.f32 %v9078_v48, 0.0  ;;  %v2917_v48 = vld [vmem:[#allocation8 + $0x1f0] sm:$0xff] }
 0x2d4   : > { %v14239_v2 = vmax.f32 %v9324_v8, 0.0  ;;  %v9330_v20 = vpop.f32.mrf.mxu0  ;;  %2070 = vmatmul.f32.gmra.mxu1 %v14665_v58  ;;  %3039 = vmatpush.msra.mxu3 %v2917_v48 }
 0x2d5   : > { %14669 = vst [vmem:[#allocation104_spill] sm:$0xff] %v9357_v34  ;;  %2686 = vmatpush.msra.mxu1 %v2315_v40 }
 0x2d6   : > { %1892 = vmatmul.f32.gmra.mxu3 %v14239_v2  ;;  %2361 = vmatmul.f32.gmra.mxu2 %v9334_v37 }
 0x2d7   : > { %2587 = vmatmul.f32.gmra.mxu0 %v9334_v37 }
 0x2d9   : > { %v1535_v26 = vpop.f32.mrf.mxu1  ;;  %v9343_v14 = vpop.f32.mrf.mxu2 }
 0x2da   : > { %v9347_v23 = vadd.f32 %v1535_v26, %v1423_v53  ;;  %v9349_v5 = vpop.f32.mrf.mxu3  ;;  %v14670_v53 = vld [vmem:[#allocation34_spill] sm:$0xff] }
 0x2db   : > { %v2148_v26 = vadd.f32 %v1831_v50, %v14670_v53 }
 0x2dc   : > { %v14240_v58 = vmax.f32 %v9347_v23, 0.0  ;;  %v9353_v2 = vpop.f32.mrf.mxu0  ;;  %2073 = vmatmul.f32.gmra.mxu1 %v14668_v1 }
 0x2dd   : > { %v9380_v50 = vmax.f32 %v2148_v26, 0.0 }
 0x2de   : > { %1895 = vmatmul.f32.gmra.mxu3 %v14240_v58  ;;  %2364 = vmatmul.f32.gmra.mxu2 %v9357_v34 }
 0x2df   : > { %2590 = vmatmul.f32.gmra.mxu0 %v9357_v34  ;;  %v1834_v34 = vadd.f32 %v9261_v62, %v1721_v33  ;;  %14672 = vst [vmem:[#allocation30_spill] sm:$0xff] %v9380_v50  ;;  %v14673_v62 = vld [vmem:[#allocation35_spill] sm:$0xff]  ;;  %v1837_v33 = vadd.f32 %v9280_v57, %v1724_v19  ;;  %v1432_v57 = vadd.f32 %v8945_v30, %v8857_v44 }
 0x2e1   : > { %v1538_v42 = vpop.f32.mrf.mxu1  ;;  %v9366_v38 = vpop.f32.mrf.mxu2  ;;  %v2150_v6 = vadd.f32 %v1834_v34, %v14673_v62  ;;  %v14676_v62 = vld [vmem:[#allocation36_spill] sm:$0xff] }
 0x2e2   : > { %v9370_v1 = vadd.f32 %v1538_v42, %v1426_v17  ;;  %v9372_v58 = vpop.f32.mrf.mxu3 }
 0x2e3   : > { %v9403_v34 = vmax.f32 %v2150_v6, 0.0 }
 0x2e4   : > { %v14243_v55 = vmax.f32 %v9370_v1, 0.0  ;;  %v9376_v37 = vpop.f32.mrf.mxu0  ;;  %2076 = vmatmul.f32.gmra.mxu1 %v14671_v52 }
 0x2e5   : > { %14675 = vst [vmem:[#allocation31_spill] sm:$0xff] %v9403_v34 }
 0x2e6   : > { %1898 = vmatmul.f32.gmra.mxu3 %v14243_v55  ;;  %2367 = vmatmul.f32.gmra.mxu2 %v9380_v50 }
 0x2e7   : > { %2593 = vmatmul.f32.gmra.mxu0 %v9380_v50 }
 0x2e9   : > { %v1541_v17 = vpop.f32.mrf.mxu1  ;;  %v9389_v53 = vpop.f32.mrf.mxu2 }
 0x2ea   : > { %v9393_v26 = vadd.f32 %v1541_v17, %v1429_v25  ;;  %v9395_v42 = vpop.f32.mrf.mxu3  ;;  %v2885_v25 = vld [vmem:[#allocation8 + $0xf0] sm:$0xff]  ;;  %v2152_v17 = vadd.f32 %v1837_v33, %v14676_v62  ;;  %v14677_v33 = vmax.f32 %v9095_v0, 0.0  ;;  %v1730_v0 = vadd.f32 %v9142_v24, %v9248_v13  ;;  %v2883_v24 = vld [vmem:[#allocation8 + $0xe0] sm:$0xff] }
 0x2eb   : > { %2926 = vmatpush.msra.mxu2 %v2885_v25 }
 0x2ec   : > { %v14244_v52 = vmax.f32 %v9393_v26, 0.0  ;;  %v9399_v55 = vpop.f32.mrf.mxu0  ;;  %2079 = vmatmul.f32.gmra.mxu1 %v14674_v43  ;;  %v1727_v43 = vadd.f32 %v9125_v41, %v9248_v13  ;;  %v9426_v25 = vmax.f32 %v2152_v17, 0.0  ;;  %v1435_v41 = vadd.f32 %v8962_v54, %v8857_v44 }
 0x2ed   : > { %v14680_v54 = vmax.f32 %v9112_v16, 0.0  ;;  %2927 = vmatpush.msra.mxu2 %v2883_v24  ;;  %v2915_v16 = vld [vmem:[#allocation8 + $0x1e0] sm:$0xff]  ;;  %v14683_v24 = vmax.f32 %v9129_v12, 0.0  ;;  %v1736_v12 = vadd.f32 %v9178_v60, %v9248_v13  ;;  %v2881_v60 = vld [vmem:[#allocation8 + $0xd0] sm:$0xff] }
 0x2ee   : > { %1901 = vmatmul.f32.gmra.mxu3 %v14244_v52  ;;  %2370 = vmatmul.f32.gmra.mxu2 %v9403_v34  ;;  %v1840_v40 = vadd.f32 %v9303_v22, %v1727_v43  ;;  %14678 = vst [vmem:[#allocation32_spill] sm:$0xff] %v9426_v25  ;;  %v14679_v22 = vld [vmem:[#allocation37_spill] sm:$0xff]  ;;  %v1843_v43 = vadd.f32 %v9326_v9, %v1730_v0 }
 0x2ef   : > { %2596 = vmatmul.f32.gmra.mxu0 %v9403_v34  ;;  %v1438_v9 = vadd.f32 %v8979_v4, %v8857_v44  ;;  %3040 = vmatpush.msra.mxu3 %v2915_v16 }
 0x2f0   : > { %2928 = vmatpush.msra.mxu2 %v2881_v60 }
 0x2f1   : > { %v1544_v19 = vpop.f32.mrf.mxu1  ;;  %v9412_v6 = vpop.f32.mrf.mxu2 }
 0x2f2   : > { %v9416_v52 = vadd.f32 %v1544_v19, %v1432_v57  ;;  %v9418_v50 = vpop.f32.mrf.mxu3  ;;  %v2154_v57 = vadd.f32 %v1840_v40, %v14679_v22  ;;  %v2313_v22 = vld [vmem:[#allocation7 + $0x168] sm:$0xff] }
 0x2f3   : > { %2687 = vmatpush.msra.mxu1 %v2313_v22  ;;  %v9467_v22 = vperm.slane %v9243_v10, 1  ;;  %v14685_v10 = vld [vmem:[#allocation39_spill] sm:$0xff] }
 0x2f4   : > { %v14247_v34 = vmax.f32 %v9416_v52, 0.0  ;;  %v9422_v30 = vpop.f32.mrf.mxu0  ;;  %2082 = vmatmul.f32.gmra.mxu1 %v14677_v33  ;;  %v9449_v40 = vmax.f32 %v2154_v57, 0.0 }
 0x2f6   : > { %1904 = vmatmul.f32.gmra.mxu3 %v14247_v34  ;;  %2373 = vmatmul.f32.gmra.mxu2 %v9426_v25  ;;  %14681 = vst [vmem:[#allocation33_spill] sm:$0xff] %v9449_v40 }
 0x2f7   : > { %2599 = vmatmul.f32.gmra.mxu0 %v9426_v25 }
 0x2f9   : > { %v1547_v62 = vpop.f32.mrf.mxu1  ;;  %v9435_v48 = vpop.f32.mrf.mxu2 }
 0x2fa   : > { %v9439_v17 = vadd.f32 %v1547_v62, %v1435_v41  ;;  %v9441_v19 = vpop.f32.mrf.mxu3  ;;  %v14682_v41 = vld [vmem:[#allocation38_spill] sm:$0xff] }
 0x2fb   : > { %v2156_v62 = vadd.f32 %v1843_v43, %v14682_v41 }
 0x2fc   : > { %v14248_v33 = vmax.f32 %v9439_v17, 0.0  ;;  %v9445_v34 = vpop.f32.mrf.mxu0  ;;  %2085 = vmatmul.f32.gmra.mxu1 %v14680_v54  ;;  %v1733_v54 = vadd.f32 %v9160_v18, %v9248_v13  ;;  %v1932_v18 = vadd.f32 %v8996_v49, %v9467_v22 }
 0x2fd   : > { %v9475_v41 = vmax.f32 %v2156_v62, 0.0 }
 0x2fe   : > { %1907 = vmatmul.f32.gmra.mxu3 %v14248_v33  ;;  %2376 = vmatmul.f32.gmra.mxu2 %v9449_v40  ;;  %v1846_v44 = vadd.f32 %v9349_v5, %v1733_v54  ;;  %v1849_v54 = vadd.f32 %v9372_v58, %v1736_v12  ;;  %v1935_v58 = vadd.f32 %v9013_v28, %v9467_v22 }
 0x2ff   : > { %2602 = vmatmul.f32.gmra.mxu0 %v9449_v40  ;;  %14684 = vst [vmem:[#allocation34_spill] sm:$0xff] %v9475_v41 }
 0x300   : > { %v2158_v5 = vadd.f32 %v1846_v44, %v14685_v10  ;;  %v2311_v44 = vld [vmem:[#allocation7 + $0x158] sm:$0xff] }
 0x301   : > { %v1550_v0 = vpop.f32.mrf.mxu1  ;;  %v9458_v57 = vpop.f32.mrf.mxu2  ;;  %2688 = vmatpush.msra.mxu1 %v2311_v44  ;;  %v14692_v44 = vld [vmem:[#allocation42_spill] sm:$0xff] }
 0x302   : > { %v9462_v33 = vadd.f32 %v1550_v0, %v1438_v9  ;;  %v9464_v25 = vpop.f32.mrf.mxu3  ;;  %v9496_v49 = vmax.f32 %v2158_v5, 0.0 }
 0x304   : > { %v14250_v4 = vmax.f32 %v9462_v33, 0.0  ;;  %v9471_v43 = vpop.f32.mrf.mxu0  ;;  %2088 = vmatmul.f32.gmra.mxu1 %v14683_v24  ;;  %v14686_v24 = vld [vmem:[#allocation40_spill] sm:$0xff]  ;;  %14689 = vst [vmem:[#allocation36_spill] sm:$0xff] %v9496_v49 }
 0x306   : > { %1910 = vmatmul.f32.gmra.mxu3 %v14250_v4  ;;  %2379 = vmatmul.f32.gmra.mxu2 %v9475_v41 }
 0x307   : > { %2605 = vmatmul.f32.gmra.mxu0 %v9475_v41  ;;  %v14688_v41 = vmax.f32 %v9146_v39, 0.0  ;;  %v2913_v39 = vld [vmem:[#allocation8 + $0x1d0] sm:$0xff] }
 0x308   : > { %3041 = vmatpush.msra.mxu3 %v2913_v39  ;;  %v14698_v39 = vld [vmem:[#allocation43_spill] sm:$0xff] }
 0x309   : > { %v9484_v9 = vpop.f32.mrf.mxu2  ;;  %v2044_v16 = vpop.f32.mrf.mxu1 }
 0x30a   : > { %v9488_v62 = vpop.f32.mrf.mxu3  ;;  %v2045_v0 = vadd.f32 %v2044_v16, %v1932_v18  ;;  %v14691_v18 = vld [vmem:[#allocation41_spill] sm:$0xff] }
 0x30b   : > { %v2160_v16 = vadd.f32 %v1849_v54, %v14691_v18  ;;  %v14694_v54 = vmax.f32 %v9162_v47, 0.0  ;;  %v1742_v47 = vadd.f32 %v9214_v15, %v9248_v13  ;;  %v2879_v15 = vld [vmem:[#allocation8 + $0xc0] sm:$0xff] }
 0x30c   : > { %v2141_v4 = vadd.f32 %v2045_v0, %v14686_v24  ;;  %v9492_v40 = vpop.f32.mrf.mxu0  ;;  %2091 = vmatmul.f32.gmra.mxu1 %v14688_v41  ;;  %2929 = vmatpush.msra.mxu2 %v2879_v15 }
 0x30d   : > { %14687 = vst [vmem:[#allocation35_spill] sm:$0xff] %v9492_v40  ;;  %v9518_v60 = vmax.f32 %v2160_v16, 0.0 }
 0x30e   : > { %v9498_v10 = vmax.f32 %v2141_v4, 0.0  ;;  %2382 = vmatmul.f32.gmra.mxu2 %v9496_v49  ;;  %v1739_v4 = vadd.f32 %v9196_v7, %v9248_v13  ;;  %v14697_v7 = vld [vmem:[#allocation106_spill] sm:$0xff] }
 0x30f   : > { %2608 = vmatmul.f32.gmra.mxu0 %v9496_v49  ;;  %14695 = vst [vmem:[#allocation39_spill] sm:$0xff] %v9518_v60 }
 0x310   : > { %14690 = vst [vmem:[#allocation37_spill] sm:$0xff] %v9498_v10  ;;  %2468 = vmatmul.f32.vlgmr.msrb.gmra.mxu3 %v9498_v10  ;;  %v1852_v24 = vadd.f32 %v9395_v42, %v1739_v4 }
 0x311   : > { %v9506_v41 = vpop.f32.mrf.mxu2  ;;  %v2047_v5 = vpop.f32.mrf.mxu1 }
 0x312   : > { %v9510_v12 = vpop.f32.mrf.mxu3  ;;  %v2048_v0 = vadd.f32 %v2047_v5, %v1935_v58  ;;  %v1938_v58 = vadd.f32 %v14697_v7, %v9467_v22  ;;  %v2162_v42 = vadd.f32 %v1852_v24, %v14698_v39  ;;  %v14701_v7 = vld [vmem:[#allocation94_spill] sm:$0xff] }
 0x313   : > { %v2309_v39 = vld [vmem:[#allocation7 + $0x148] sm:$0xff] }
 0x314   : > { %v2143_v28 = vadd.f32 %v2048_v0, %v14692_v44  ;;  %v9514_v49 = vpop.f32.mrf.mxu0  ;;  %2094 = vmatmul.f32.gmra.mxu1 %v14694_v54  ;;  %v1855_v44 = vadd.f32 %v9418_v50, %v1742_v47  ;;  %v9540_v24 = vmax.f32 %v2162_v42, 0.0  ;;  %v14705_v50 = vld [vmem:[#allocation107_spill] sm:$0xff] }
 0x315   : > { %14693 = vst [vmem:[#allocation38_spill] sm:$0xff] %v9514_v49  ;;  %v14702_v49 = vmax.f32 %v14701_v7, 0.0  ;;  %2689 = vmatpush.msra.mxu1 %v2309_v39 }
 0x316   : > { %2385 = vmatmul.f32.gmra.mxu2 %v9518_v60  ;;  %v9521_v18 = vmax.f32 %v2143_v28, 0.0  ;;  %v14699_v28 = vld [vmem:[#allocation44_spill] sm:$0xff]  ;;  %14703 = vst [vmem:[#allocation42_spill] sm:$0xff] %v9540_v24 }
 0x317   : > { %2611 = vmatmul.f32.gmra.mxu0 %v9518_v60 }
 0x318   : > { %14696 = vst [vmem:[#allocation40_spill] sm:$0xff] %v9521_v18  ;;  %2471 = vmatmul.f32.gmra.mxu3 %v9521_v18 }
 0x319   : > { %v9528_v5 = vpop.f32.mrf.mxu2  ;;  %v2050_v4 = vpop.f32.mrf.mxu1 }
 0x31a   : > { %v9532_v16 = vpop.f32.mrf.mxu3  ;;  %v2051_v0 = vadd.f32 %v2050_v4, %v1938_v58  ;;  %v1941_v58 = vadd.f32 %v14705_v50, %v9467_v22  ;;  %v14706_v4 = vld [vmem:[#allocation45_spill] sm:$0xff] }
 0x31b   : > { %v2164_v47 = vadd.f32 %v1855_v44, %v14706_v4  ;;  %v14709_v44 = vmax.f32 %v9198_v56, 0.0  ;;  %v1748_v56 = vadd.f32 %v9255_v29, %v9248_v13  ;;  %v2877_v29 = vld [vmem:[#allocation8 + $0xb0] sm:$0xff] }
 0x31c   : > { %v2145_v54 = vadd.f32 %v2051_v0, %v14699_v28  ;;  %v9536_v60 = vpop.f32.mrf.mxu0  ;;  %2097 = vmatmul.f32.gmra.mxu1 %v14702_v49  ;;  %v2911_v49 = vld [vmem:[#allocation8 + $0x1c0] sm:$0xff]  ;;  %v1745_v28 = vadd.f32 %v9232_v32, %v9248_v13  ;;  %v14712_v32 = vld [vmem:[#allocation108_spill] sm:$0xff]  ;;  %2930 = vmatpush.msra.mxu2 %v2877_v29 }
 0x31d   : > { %14700 = vst [vmem:[#allocation41_spill] sm:$0xff] %v9536_v60  ;;  %3042 = vmatpush.msra.mxu3 %v2911_v49  ;;  %v9562_v15 = vmax.f32 %v2164_v47, 0.0  ;;  %v14713_v49 = vld [vmem:[#allocation47_spill] sm:$0xff] }
 0x31e   : > { %2388 = vmatmul.f32.gmra.mxu2 %v9540_v24  ;;  %v9543_v40 = vmax.f32 %v2145_v54, 0.0  ;;  %v1858_v39 = vadd.f32 %v9441_v19, %v1745_v28 }
 0x31f   : > { %2614 = vmatmul.f32.gmra.mxu0 %v9540_v24  ;;  %v14707_v24 = vld [vmem:[#allocation46_spill] sm:$0xff]  ;;  %14710 = vst [vmem:[#allocation44_spill] sm:$0xff] %v9562_v15 }
 0x320   : > { %14704 = vst [vmem:[#allocation106_spill] sm:$0xff] %v9543_v40  ;;  %2474 = vmatmul.f32.gmra.mxu3 %v9543_v40  ;;  %v2166_v19 = vadd.f32 %v1858_v39, %v14713_v49  ;;  %v2307_v49 = vld [vmem:[#allocation7 + $0x138] sm:$0xff] }
 0x321   : > { %v9550_v42 = vpop.f32.mrf.mxu2  ;;  %v2053_v0 = vpop.f32.mrf.mxu1  ;;  %2690 = vmatpush.msra.mxu1 %v2307_v49 }
 0x322   : > { %v9554_v54 = vpop.f32.mrf.mxu3  ;;  %v2054_v7 = vadd.f32 %v2053_v0, %v1941_v58  ;;  %v1944_v58 = vadd.f32 %v14712_v32, %v9467_v22  ;;  %v14716_v32 = vmax.f32 %v9216_v36, 0.0  ;;  %v9584_v39 = vmax.f32 %v2166_v19, 0.0  ;;  %v2909_v36 = vld [vmem:[#allocation8 + $0x1b0] sm:$0xff] }
 0x323   : > { %3043 = vmatpush.msra.mxu3 %v2909_v36  ;;  %v14727_v36 = vld [vmem:[#allocation51_spill] sm:$0xff] }
 0x324   : > { %v2147_v50 = vadd.f32 %v2054_v7, %v14707_v24  ;;  %v9558_v60 = vpop.f32.mrf.mxu0  ;;  %2100 = vmatmul.f32.gmra.mxu1 %v14709_v44  ;;  %v1861_v7 = vadd.f32 %v9464_v25, %v1748_v56  ;;  %14717 = vst [vmem:[#allocation45_spill] sm:$0xff] %v9584_v39  ;;  %v14719_v25 = vld [vmem:[#allocation79_spill] sm:$0xff] }
 0x325   : > { %14708 = vst [vmem:[#allocation43_spill] sm:$0xff] %v9558_v60 }
 0x326   : > { %2391 = vmatmul.f32.gmra.mxu2 %v9562_v15  ;;  %v9565_v4 = vmax.f32 %v2147_v50, 0.0  ;;  %v14714_v50 = vld [vmem:[#allocation48_spill] sm:$0xff] }
 0x327   : > { %2617 = vmatmul.f32.gmra.mxu0 %v9562_v15 }
 0x328   : > { %14711 = vst [vmem:[#allocation94_spill] sm:$0xff] %v9565_v4  ;;  %2477 = vmatmul.f32.gmra.mxu3 %v9565_v4 }
 0x329   : > { %v9572_v24 = vpop.f32.mrf.mxu2  ;;  %v2056_v0 = vpop.f32.mrf.mxu1 }
 0x32a   : > { %v9576_v47 = vpop.f32.mrf.mxu3  ;;  %v2057_v28 = vadd.f32 %v2056_v0, %v1944_v58  ;;  %v1947_v58 = vadd.f32 %v14719_v25, %v9467_v22  ;;  %v14720_v0 = vld [vmem:[#allocation49_spill] sm:$0xff] }
 0x32b   : > { %v2168_v56 = vadd.f32 %v1861_v7, %v14720_v0  ;;  %v14723_v7 = vmax.f32 %v9234_v21, 0.0  ;;  %v1754_v21 = vadd.f32 %v9297_v51, %v9248_v13  ;;  %v2875_v51 = vld [vmem:[#allocation8 + $0xa0] sm:$0xff] }
 0x32c   : > { %v2149_v44 = vadd.f32 %v2057_v28, %v14714_v50  ;;  %v9580_v15 = vpop.f32.mrf.mxu0  ;;  %2103 = vmatmul.f32.gmra.mxu1 %v14716_v32  ;;  %v1751_v50 = vadd.f32 %v9274_v59, %v9248_v13  ;;  %v14726_v59 = vld [vmem:[#allocation82_spill] sm:$0xff]  ;;  %2931 = vmatpush.msra.mxu2 %v2875_v51 }
 0x32d   : > { %14715 = vst [vmem:[#allocation107_spill] sm:$0xff] %v9580_v15  ;;  %v9606_v29 = vmax.f32 %v2168_v56, 0.0 }
 0x32e   : > { %2394 = vmatmul.f32.gmra.mxu2 %v9584_v39  ;;  %v9587_v60 = vmax.f32 %v2149_v44, 0.0  ;;  %v1864_v49 = vadd.f32 %v9488_v62, %v1751_v50 }
 0x32f   : > { %2620 = vmatmul.f32.gmra.mxu0 %v9584_v39  ;;  %v14721_v39 = vld [vmem:[#allocation50_spill] sm:$0xff]  ;;  %14724 = vst [vmem:[#allocation47_spill] sm:$0xff] %v9606_v29 }
 0x330   : > { %14718 = vst [vmem:[#allocation46_spill] sm:$0xff] %v9587_v60  ;;  %2480 = vmatmul.f32.gmra.mxu3 %v9587_v60  ;;  %v2170_v62 = vadd.f32 %v1864_v49, %v14727_v36  ;;  %v2305_v36 = vld [vmem:[#allocation7 + $0x128] sm:$0xff] }
 0x331   : > { %v9594_v19 = vpop.f32.mrf.mxu2  ;;  %v2059_v28 = vpop.f32.mrf.mxu1  ;;  %2691 = vmatpush.msra.mxu1 %v2305_v36 }
 0x332   : > { %v9598_v44 = vpop.f32.mrf.mxu3  ;;  %v2060_v32 = vadd.f32 %v2059_v28, %v1947_v58  ;;  %v1950_v58 = vadd.f32 %v14726_v59, %v9467_v22  ;;  %v14730_v59 = vmax.f32 %v9259_v45, 0.0  ;;  %v9628_v49 = vmax.f32 %v2170_v62, 0.0  ;;  %v2907_v45 = vld [vmem:[#allocation8 + $0x1a0] sm:$0xff] }
 0x333   : > { %3044 = vmatpush.msra.mxu3 %v2907_v45  ;;  %v14741_v45 = vld [vmem:[#allocation55_spill] sm:$0xff] }
 0x334   : > { %v2151_v25 = vadd.f32 %v2060_v32, %v14721_v39  ;;  %v9602_v15 = vpop.f32.mrf.mxu0  ;;  %2106 = vmatmul.f32.gmra.mxu1 %v14723_v7  ;;  %v1867_v32 = vadd.f32 %v9510_v12, %v1754_v21  ;;  %14731 = vst [vmem:[#allocation49_spill] sm:$0xff] %v9628_v49  ;;  %v14733_v12 = vld [vmem:[#allocation85_spill] sm:$0xff] }
 0x335   : > { %14722 = vst [vmem:[#allocation108_spill] sm:$0xff] %v9602_v15 }
 0x336   : > { %2397 = vmatmul.f32.gmra.mxu2 %v9606_v29  ;;  %v9609_v0 = vmax.f32 %v2151_v25, 0.0  ;;  %v14728_v25 = vld [vmem:[#allocation52_spill] sm:$0xff] }
 0x337   : > { %2623 = vmatmul.f32.gmra.mxu0 %v9606_v29 }
 0x338   : > { %14725 = vst [vmem:[#allocation48_spill] sm:$0xff] %v9609_v0  ;;  %2483 = vmatmul.f32.gmra.mxu3 %v9609_v0 }
 0x339   : > { %v9616_v39 = vpop.f32.mrf.mxu2  ;;  %v2062_v28 = vpop.f32.mrf.mxu1 }
 0x33a   : > { %v9620_v56 = vpop.f32.mrf.mxu3  ;;  %v2063_v50 = vadd.f32 %v2062_v28, %v1950_v58  ;;  %v1953_v58 = vadd.f32 %v14733_v12, %v9467_v22  ;;  %v14734_v28 = vld [vmem:[#allocation53_spill] sm:$0xff] }
 0x33b   : > { %v2172_v21 = vadd.f32 %v1867_v32, %v14734_v28  ;;  %v14737_v32 = vmax.f32 %v9278_v61, 0.0  ;;  %v1760_v61 = vadd.f32 %v9343_v14, %v9248_v13  ;;  %v2873_v14 = vld [vmem:[#allocation8 + $0x90] sm:$0xff] }
 0x33c   : > { %v2153_v7 = vadd.f32 %v2063_v50, %v14728_v25  ;;  %v9624_v29 = vpop.f32.mrf.mxu0  ;;  %2109 = vmatmul.f32.gmra.mxu1 %v14730_v59  ;;  %v1757_v25 = vadd.f32 %v9320_v27, %v9248_v13  ;;  %v14740_v27 = vld [vmem:[#allocation88_spill] sm:$0xff]  ;;  %2932 = vmatpush.msra.mxu2 %v2873_v14 }
 0x33d   : > { %14729 = vst [vmem:[#allocation79_spill] sm:$0xff] %v9624_v29  ;;  %v9650_v51 = vmax.f32 %v2172_v21, 0.0 }
 0x33e   : > { %2400 = vmatmul.f32.gmra.mxu2 %v9628_v49  ;;  %v9631_v15 = vmax.f32 %v2153_v7, 0.0  ;;  %v1870_v36 = vadd.f32 %v9532_v16, %v1757_v25 }
 0x33f   : > { %2626 = vmatmul.f32.gmra.mxu0 %v9628_v49  ;;  %v14735_v49 = vld [vmem:[#allocation54_spill] sm:$0xff]  ;;  %14738 = vst [vmem:[#allocation51_spill] sm:$0xff] %v9650_v51 }
 0x340   : > { %14732 = vst [vmem:[#allocation50_spill] sm:$0xff] %v9631_v15  ;;  %2486 = vmatmul.f32.gmra.mxu3 %v9631_v15  ;;  %v2174_v16 = vadd.f32 %v1870_v36, %v14741_v45  ;;  %v2303_v45 = vld [vmem:[#allocation7 + $0x118] sm:$0xff] }
 0x341   : > { %v9638_v62 = vpop.f32.mrf.mxu2  ;;  %v2065_v50 = vpop.f32.mrf.mxu1  ;;  %2692 = vmatpush.msra.mxu1 %v2303_v45 }
 0x342   : > { %v9642_v7 = vpop.f32.mrf.mxu3  ;;  %v2066_v59 = vadd.f32 %v2065_v50, %v1953_v58  ;;  %v1956_v58 = vadd.f32 %v14740_v27, %v9467_v22  ;;  %v14744_v27 = vmax.f32 %v9301_v3, 0.0  ;;  %v9672_v36 = vmax.f32 %v2174_v16, 0.0  ;;  %v2905_v3 = vld [vmem:[#allocation8 + $0x190] sm:$0xff] }
 0x343   : > { %3045 = vmatpush.msra.mxu3 %v2905_v3  ;;  %v14755_v3 = vld [vmem:[#allocation59_spill] sm:$0xff] }
 0x344   : > { %v2155_v12 = vadd.f32 %v2066_v59, %v14735_v49  ;;  %v9646_v29 = vpop.f32.mrf.mxu0  ;;  %2112 = vmatmul.f32.gmra.mxu1 %v14737_v32  ;;  %v1873_v59 = vadd.f32 %v9554_v54, %v1760_v61  ;;  %14745 = vst [vmem:[#allocation53_spill] sm:$0xff] %v9672_v36  ;;  %v14747_v54 = vld [vmem:[#allocation90_spill] sm:$0xff] }
 0x345   : > { %14736 = vst [vmem:[#allocation82_spill] sm:$0xff] %v9646_v29 }
 0x346   : > { %2403 = vmatmul.f32.gmra.mxu2 %v9650_v51  ;;  %v9653_v28 = vmax.f32 %v2155_v12, 0.0  ;;  %v14742_v12 = vld [vmem:[#allocation56_spill] sm:$0xff] }
 0x347   : > { %2629 = vmatmul.f32.gmra.mxu0 %v9650_v51 }
 0x348   : > { %14739 = vst [vmem:[#allocation52_spill] sm:$0xff] %v9653_v28  ;;  %2489 = vmatmul.f32.gmra.mxu3 %v9653_v28 }
 0x349   : > { %v2068_v49 = vpop.f32.mrf.mxu1  ;;  %v9660_v50 = vpop.f32.mrf.mxu2 }
 0x34a   : > { %v9664_v21 = vpop.f32.mrf.mxu3  ;;  %v2069_v25 = vadd.f32 %v2068_v49, %v1956_v58  ;;  %v1959_v58 = vadd.f32 %v14747_v54, %v9467_v22  ;;  %v14748_v49 = vld [vmem:[#allocation57_spill] sm:$0xff] }
 0x34b   : > { %v2176_v61 = vadd.f32 %v1873_v59, %v14748_v49  ;;  %v14751_v59 = vmax.f32 %v9324_v8, 0.0  ;;  %v1766_v8 = vadd.f32 %v9389_v53, %v9248_v13  ;;  %v2871_v53 = vld [vmem:[#allocation8 + $0x80] sm:$0xff] }
 0x34c   : > { %v2157_v32 = vadd.f32 %v2069_v25, %v14742_v12  ;;  %v9668_v51 = vpop.f32.mrf.mxu0  ;;  %2115 = vmatmul.f32.gmra.mxu1 %v14744_v27  ;;  %v1763_v12 = vadd.f32 %v9366_v38, %v9248_v13  ;;  %v14754_v38 = vld [vmem:[#allocation92_spill] sm:$0xff]  ;;  %2933 = vmatpush.msra.mxu2 %v2871_v53 }
 0x34d   : > { %14743 = vst [vmem:[#allocation85_spill] sm:$0xff] %v9668_v51  ;;  %v9694_v14 = vmax.f32 %v2176_v61, 0.0 }
 0x34e   : > { %2406 = vmatmul.f32.gmra.mxu2 %v9672_v36  ;;  %v9675_v29 = vmax.f32 %v2157_v32, 0.0  ;;  %v1876_v45 = vadd.f32 %v9576_v47, %v1763_v12 }
 0x34f   : > { %2632 = vmatmul.f32.gmra.mxu0 %v9672_v36  ;;  %v14749_v36 = vld [vmem:[#allocation58_spill] sm:$0xff]  ;;  %14752 = vst [vmem:[#allocation55_spill] sm:$0xff] %v9694_v14 }
 0x350   : > { %14746 = vst [vmem:[#allocation54_spill] sm:$0xff] %v9675_v29  ;;  %2492 = vmatmul.f32.gmra.mxu3 %v9675_v29  ;;  %v2178_v47 = vadd.f32 %v1876_v45, %v14755_v3  ;;  %v2301_v3 = vld [vmem:[#allocation7 + $0x108] sm:$0xff] }
 0x351   : > { %v2071_v16 = vpop.f32.mrf.mxu1  ;;  %v9682_v25 = vpop.f32.mrf.mxu2  ;;  %2693 = vmatpush.msra.mxu1 %v2301_v3 }
 0x352   : > { %v9686_v32 = vpop.f32.mrf.mxu3  ;;  %v2072_v27 = vadd.f32 %v2071_v16, %v1959_v58  ;;  %v1962_v58 = vadd.f32 %v14754_v38, %v9467_v22  ;;  %v14758_v38 = vmax.f32 %v9347_v23, 0.0  ;;  %v9716_v45 = vmax.f32 %v2178_v47, 0.0  ;;  %v2903_v23 = vld [vmem:[#allocation8 + $0x180] sm:$0xff] }
 0x353   : > { %3046 = vmatpush.msra.mxu3 %v2903_v23 }
 0x354   : > { %v2159_v54 = vadd.f32 %v2072_v27, %v14749_v36  ;;  %v9690_v51 = vpop.f32.mrf.mxu0  ;;  %2118 = vmatmul.f32.gmra.mxu1 %v14751_v59  ;;  %v1879_v27 = vadd.f32 %v9598_v44, %v1766_v8  ;;  %14759 = vst [vmem:[#allocation57_spill] sm:$0xff] %v9716_v45  ;;  %v14761_v44 = vld [vmem:[#allocation109_spill] sm:$0xff] }
 0x355   : > { %14750 = vst [vmem:[#allocation88_spill] sm:$0xff] %v9690_v51 }
 0x356   : > { %2409 = vmatmul.f32.gmra.mxu2 %v9694_v14  ;;  %v9697_v49 = vmax.f32 %v2159_v54, 0.0  ;;  %v14756_v54 = vld [vmem:[#allocation60_spill] sm:$0xff] }
 0x357   : > { %2635 = vmatmul.f32.gmra.mxu0 %v9694_v14 }
 0x358   : > { %14753 = vst [vmem:[#allocation56_spill] sm:$0xff] %v9697_v49  ;;  %2495 = vmatmul.f32.gmra.mxu3 %v9697_v49 }
 0x359   : > { %v2074_v36 = vpop.f32.mrf.mxu1  ;;  %v9704_v16 = vpop.f32.mrf.mxu2 }
 0x35a   : > { %v9708_v61 = vpop.f32.mrf.mxu3  ;;  %v2075_v12 = vadd.f32 %v2074_v36, %v1962_v58  ;;  %v1965_v58 = vadd.f32 %v14761_v44, %v9467_v22  ;;  %v14762_v36 = vld [vmem:[#allocation61_spill] sm:$0xff] }
 0x35b   : > { %v2180_v8 = vadd.f32 %v1879_v27, %v14762_v36  ;;  %v14765_v27 = vmax.f32 %v9370_v1, 0.0  ;;  %v1772_v1 = vadd.f32 %v9435_v48, %v9248_v13  ;;  %v2869_v48 = vld [vmem:[#allocation8 + $0x70] sm:$0xff] }
 0x35c   : > { %v2161_v59 = vadd.f32 %v2075_v12, %v14756_v54  ;;  %v9712_v14 = vpop.f32.mrf.mxu0  ;;  %2121 = vmatmul.f32.gmra.mxu1 %v14758_v38  ;;  %v1769_v54 = vadd.f32 %v9412_v6, %v9248_v13  ;;  %v1968_v6 = vadd.f32 %v9203_v11, %v9467_v22  ;;  %v14770_v11 = vmax.f32 %v9393_v26, 0.0  ;;  %2934 = vmatpush.msra.mxu2 %v2869_v48  ;;  %v2901_v26 = vld [vmem:[#allocation8 + $0x170] sm:$0xff] }
 0x35d   : > { %14757 = vst [vmem:[#allocation90_spill] sm:$0xff] %v9712_v14  ;;  %v9738_v53 = vmax.f32 %v2180_v8, 0.0  ;;  %3047 = vmatpush.msra.mxu3 %v2901_v26 }
 0x35e   : > { %2412 = vmatmul.f32.gmra.mxu2 %v9716_v45  ;;  %v9719_v51 = vmax.f32 %v2161_v59, 0.0  ;;  %v1882_v3 = vadd.f32 %v9620_v56, %v1769_v54  ;;  %v1885_v54 = vadd.f32 %v9642_v7, %v1772_v1  ;;  %v1971_v7 = vadd.f32 %v9221_v63, %v9467_v22 }
 0x35f   : > { %2638 = vmatmul.f32.gmra.mxu0 %v9716_v45  ;;  %v14763_v45 = vld [vmem:[#allocation62_spill] sm:$0xff]  ;;  %14766 = vst [vmem:[#allocation59_spill] sm:$0xff] %v9738_v53 }
 0x360   : > { %14760 = vst [vmem:[#allocation58_spill] sm:$0xff] %v9719_v51  ;;  %2498 = vmatmul.f32.gmra.mxu3 %v9719_v51 }
 0x361   : > { %v2077_v47 = vpop.f32.mrf.mxu1  ;;  %v9726_v12 = vpop.f32.mrf.mxu2 }
 0x362   : > { %v9730_v59 = vpop.f32.mrf.mxu3  ;;  %v2078_v38 = vadd.f32 %v2077_v47, %v1965_v58  ;;  %v14768_v58 = vld [vmem:[#allocation63_spill] sm:$0xff] }
 0x363   : > { %v2182_v56 = vadd.f32 %v1882_v3, %v14768_v58  ;;  %v2886_v58 = vld [vmem:[#allocation8 + $0xf8] sm:$0xff] }
 0x364   : > { %v2163_v44 = vadd.f32 %v2078_v38, %v14763_v45  ;;  %v9734_v14 = vpop.f32.mrf.mxu0  ;;  %2124 = vmatmul.f32.gmra.mxu1 %v14765_v27  ;;  %v14769_v38 = vld [vmem:[#allocation64_spill] sm:$0xff]  ;;  %3152 = vmatpush.msra.mxu0 %v2886_v58 }
 0x365   : > { %14764 = vst [vmem:[#allocation92_spill] sm:$0xff] %v9734_v14  ;;  %v9760_v3 = vmax.f32 %v2182_v56, 0.0 }
 0x366   : > { %2415 = vmatmul.f32.gmra.mxu2 %v9738_v53  ;;  %v9741_v36 = vmax.f32 %v2163_v44, 0.0 }
 0x367   : > { %2641 = vmatmul.f32.gmra.mxu0 %v9738_v53  ;;  %14771 = vst [vmem:[#allocation109_spill] sm:$0xff] %v9760_v3  ;;  %v2918_v53 = vld [vmem:[#allocation8 + $0x1f8] sm:$0xff] }
 0x368   : > { %14767 = vst [vmem:[#allocation60_spill] sm:$0xff] %v9741_v36  ;;  %2501 = vmatmul.f32.gmra.mxu3 %v9741_v36  ;;  %3265 = vmatpush.msrb.mxu1 %v2918_v53 }
 0x369   : > { %v2080_v45 = vpop.f32.mrf.mxu1  ;;  %v9748_v23 = vpop.f32.mrf.mxu2 }
 0x36a   : > { %v9752_v8 = vpop.f32.mrf.mxu3  ;;  %v2081_v47 = vadd.f32 %v2080_v45, %v1968_v6  ;;  %v14773_v6 = vld [vmem:[#allocation65_spill] sm:$0xff] }
 0x36b   : > { %v2184_v45 = vadd.f32 %v1885_v54, %v14773_v6  ;;  %v14775_v54 = vmax.f32 %v9416_v52, 0.0  ;;  %v1778_v52 = vadd.f32 %v9484_v9, %v9248_v13  ;;  %v2916_v9 = vld [vmem:[#allocation8 + $0x1e8] sm:$0xff] }
 0x36c   : > { %v2165_v44 = vadd.f32 %v2081_v47, %v14769_v38  ;;  %v9756_v27 = vpop.f32.mrf.mxu0  ;;  %2127 = vmatmul.f32.gmra.mxu1 %v14770_v11  ;;  %v1775_v47 = vadd.f32 %v9458_v57, %v9248_v13  ;;  %v14774_v11 = vld [vmem:[#allocation66_spill] sm:$0xff]  ;;  %v1974_v57 = vadd.f32 %v9239_v46, %v9467_v22  ;;  %v14780_v46 = vmax.f32 %v9439_v17, 0.0 }
 0x36d   : > { %v9782_v48 = vmax.f32 %v2184_v45, 0.0  ;;  %3266 = vmatpush.msrb.mxu1 %v2916_v9  ;;  %v2899_v17 = vld [vmem:[#allocation8 + $0x160] sm:$0xff] }
 0x36e   : > { %2418 = vmatmul.f32.gmra.mxu2 %v9760_v3  ;;  %v9763_v14 = vmax.f32 %v2165_v44, 0.0  ;;  %v1888_v44 = vadd.f32 %v9664_v21, %v1775_v47  ;;  %3048 = vmatpush.msra.mxu3 %v2899_v17 }
 0x36f   : > { %2644 = vmatmul.f32.gmra.mxu0 %v9760_v3  ;;  %14776 = vst [vmem:[#allocation62_spill] sm:$0xff] %v9782_v48 }
 0x370   : > { %14772 = vst [vmem:[#allocation61_spill] sm:$0xff] %v9763_v14  ;;  %2504 = vmatmul.f32.gmra.mxu3 %v9763_v14 }
 0x371   : > { %v2083_v56 = vpop.f32.mrf.mxu1  ;;  %v9770_v1 = vpop.f32.mrf.mxu2 }
 0x372   : > { %v9774_v38 = vpop.f32.mrf.mxu3  ;;  %v2084_v53 = vadd.f32 %v2083_v56, %v1971_v7  ;;  %v14778_v7 = vld [vmem:[#allocation67_spill] sm:$0xff] }
 0x373   : > { %v2186_v21 = vadd.f32 %v1888_v44, %v14778_v7  ;;  %v2884_v7 = vld [vmem:[#allocation8 + $0xe8] sm:$0xff] }
 0x374   : > { %v2167_v63 = vadd.f32 %v2084_v53, %v14774_v11  ;;  %v9778_v58 = vpop.f32.mrf.mxu0  ;;  %2130 = vmatmul.f32.gmra.mxu1 %v14775_v54  ;;  %v1891_v53 = vadd.f32 %v9686_v32, %v1778_v52  ;;  %v14779_v11 = vld [vmem:[#allocation68_spill] sm:$0xff]  ;;  %3153 = vmatpush.msra.mxu0 %v2884_v7  ;;  %v2867_v32 = vld [vmem:[#allocation8 + $0x60] sm:$0xff] }
 0x375   : > { %v9804_v44 = vmax.f32 %v2186_v21, 0.0  ;;  %v14784_v52 = vld [vmem:[#allocation69_spill] sm:$0xff]  ;;  %2935 = vmatpush.msra.mxu2 %v2867_v32 }
 0x376   : > { %2421 = vmatmul.f32.gmra.mxu2 %v9782_v48  ;;  %v9785_v6 = vmax.f32 %v2167_v63, 0.0 }
 0x377   : > { %2647 = vmatmul.f32.gmra.mxu0 %v9782_v48  ;;  %14781 = vst [vmem:[#allocation64_spill] sm:$0xff] %v9804_v44 }
 0x378   : > { %14777 = vst [vmem:[#allocation63_spill] sm:$0xff] %v9785_v6  ;;  %2507 = vmatmul.f32.gmra.mxu3 %v9785_v6 }
 0x379   : > { %v2086_v26 = vpop.f32.mrf.mxu1  ;;  %v9792_v56 = vpop.f32.mrf.mxu2 }
 0x37a   : > { %v9796_v45 = vpop.f32.mrf.mxu3  ;;  %v2087_v47 = vadd.f32 %v2086_v26, %v1974_v57  ;;  %v14783_v57 = vld [vmem:[#allocation96_spill] sm:$0xff] }
 0x37b   : > { %v1977_v26 = vadd.f32 %v14783_v57, %v9467_v22 }
 0x37c   : > { %v2169_v63 = vadd.f32 %v2087_v47, %v14779_v11  ;;  %v9800_v54 = vpop.f32.mrf.mxu0  ;;  %2133 = vmatmul.f32.gmra.mxu1 %v14780_v46  ;;  %v2188_v47 = vadd.f32 %v1891_v53, %v14784_v52  ;;  %v14786_v53 = vmax.f32 %v9462_v33, 0.0  ;;  %v1784_v33 = vadd.f32 %v9528_v5, %v9248_v13  ;;  %v2914_v5 = vld [vmem:[#allocation8 + $0x1d8] sm:$0xff] }
 0x37d   : > { %3267 = vmatpush.msrb.mxu1 %v2914_v5 }
 0x37e   : > { %2424 = vmatmul.f32.gmra.mxu2 %v9804_v44  ;;  %v9807_v48 = vmax.f32 %v2169_v63, 0.0  ;;  %v1781_v63 = vadd.f32 %v9506_v41, %v9248_v13  ;;  %v9826_v32 = vmax.f32 %v2188_v47, 0.0  ;;  %v1980_v41 = vadd.f32 %v9286_v31, %v9467_v22 }
 0x37f   : > { %2650 = vmatmul.f32.gmra.mxu0 %v9804_v44  ;;  %v14785_v44 = vld [vmem:[#allocation70_spill] sm:$0xff] }
 0x380   : > { %14782 = vst [vmem:[#allocation65_spill] sm:$0xff] %v9807_v48  ;;  %2510 = vmatmul.f32.gmra.mxu3 %v9807_v48  ;;  %v1894_v9 = vadd.f32 %v9708_v61, %v1781_v63  ;;  %v2882_v63 = vld [vmem:[#allocation8 + $0xd8] sm:$0xff] }
 0x381   : > { %v2089_v21 = vpop.f32.mrf.mxu1  ;;  %v9814_v11 = vpop.f32.mrf.mxu2  ;;  %14787 = vst [vmem:[#allocation66_spill] sm:$0xff] %v9826_v32  ;;  %3154 = vmatpush.msra.mxu0 %v2882_v63 }
 0x382   : > { %v9818_v46 = vpop.f32.mrf.mxu3  ;;  %v2090_v7 = vadd.f32 %v2089_v21, %v1977_v26  ;;  %v14789_v26 = vld [vmem:[#allocation71_spill] sm:$0xff] }
 0x383   : > { %v2190_v61 = vadd.f32 %v1894_v9, %v14789_v26  ;;  %v2880_v9 = vld [vmem:[#allocation8 + $0xc8] sm:$0xff] }
 0x384   : > { %v2171_v57 = vadd.f32 %v2090_v7, %v14785_v44  ;;  %v9822_v3 = vpop.f32.mrf.mxu0  ;;  %2136 = vmatmul.f32.gmra.mxu1 %v14786_v53  ;;  %v1897_v7 = vadd.f32 %v9730_v59, %v1784_v33  ;;  %3155 = vmatpush.msra.mxu0 %v2880_v9  ;;  %v2865_v59 = vld [vmem:[#allocation8 + $0x50] sm:$0xff]  ;;  %v14794_v33 = vld [vmem:[#allocation73_spill] sm:$0xff]  ;;  %v1787_v9 = vadd.f32 %v9550_v42, %v9248_v13 }
 0x385   : > { %v9847_v31 = vmax.f32 %v2190_v61, 0.0  ;;  %2936 = vmatpush.msra.mxu2 %v2865_v59  ;;  %v2897_v61 = vld [vmem:[#allocation8 + $0x150] sm:$0xff] }
 0x386   : > { %2427 = vmatmul.f32.gmra.mxu2 %v9826_v32  ;;  %v9829_v52 = vmax.f32 %v2171_v57, 0.0  ;;  %v14790_v57 = vld [vmem:[#allocation72_spill] sm:$0xff]  ;;  %3049 = vmatpush.msra.mxu3 %v2897_v61  ;;  %v14798_v61 = vld [vmem:[#allocation75_spill] sm:$0xff] }
 0x387   : > { %2653 = vmatmul.f32.gmra.mxu0 %v9826_v32  ;;  %14792 = vst [vmem:[#allocation96_spill] sm:$0xff] %v9847_v31 }
 0x388   : > { %14788 = vst [vmem:[#allocation67_spill] sm:$0xff] %v9829_v52  ;;  %2513 = vmatmul.f32.gmra.mxu3 %v9829_v52 }
 0x389   : > { %v2092_v44 = vpop.f32.mrf.mxu1  ;;  %v9836_v17 = vpop.f32.mrf.mxu2 }
 0x38a   : > { %v2093_v47 = vadd.f32 %v2092_v44, %v1980_v41  ;;  %v9840_v21 = vpop.f32.mrf.mxu3  ;;  %v2878_v41 = vld [vmem:[#allocation8 + $0xb8] sm:$0xff]  ;;  %v1983_v44 = vadd.f32 %v9307_v35, %v9467_v22 }
 0x38b   : > { %3156 = vmatpush.msra.mxu0 %v2878_v41  ;;  %v2874_v35 = vld [vmem:[#allocation8 + $0x98] sm:$0xff]  ;;  %v2872_v41 = vld [vmem:[#allocation8 + $0x88] sm:$0xff] }
 0x38c   : > { %v2173_v53 = vadd.f32 %v2093_v47, %v14790_v57  ;;  %v9844_v32 = vpop.f32.mrf.mxu0  ;;  %2694 = vmatmul.f32.vlgmr.msra.gmra.mxu1 %v9498_v10  ;;  %v2192_v47 = vadd.f32 %v1897_v7, %v14794_v33  ;;  %v1900_v7 = vadd.f32 %v9752_v8, %v1787_v9  ;;  %v14795_v33 = vld [vmem:[#allocation74_spill] sm:$0xff]  ;;  %v1986_v8 = vadd.f32 %v9330_v20, %v9467_v22  ;;  %v14799_v20 = vld [vmem:[#allocation76_spill] sm:$0xff] }
 0x38d   : > { %14791 = vst [vmem:[#allocation68_spill] sm:$0xff] %v9844_v32  ;;  %v2868_v9 = vld [vmem:[#allocation8 + $0x68] sm:$0xff] }
 0x38e   : > { %2430 = vmatmul.f32.gmra.mxu2 %v9847_v31  ;;  %v9850_v26 = vmax.f32 %v2173_v53, 0.0  ;;  %v2876_v53 = vld [vmem:[#allocation8 + $0xa8] sm:$0xff]  ;;  %v9868_v32 = vmax.f32 %v2192_v47, 0.0 }
 0x38f   : > { %2656 = vmatmul.f32.gmra.mxu0 %v9847_v31 }
 0x390   : > { %14793 = vst [vmem:[#allocation69_spill] sm:$0xff] %v9850_v26  ;;  %2516 = vmatmul.f32.gmra.mxu3 %v9850_v26  ;;  %3157 = vmatpush.msra.mxu0 %v2876_v53 }
 0x391   : > { %v2095_v63 = vpop.f32.mrf.mxu1  ;;  %v9857_v57 = vpop.f32.mrf.mxu2  ;;  %14796 = vst [vmem:[#allocation70_spill] sm:$0xff] %v9868_v32 }
 0x392   : > { %v2096_v5 = vadd.f32 %v2095_v63, %v1983_v44  ;;  %3158 = vmatpush.msra.mxu0 %v2874_v35  ;;  %v2870_v44 = vld [vmem:[#allocation8 + $0x78] sm:$0xff]  ;;  %v2194_v63 = vadd.f32 %v1900_v7, %v14798_v61  ;;  %v2863_v61 = vld [vmem:[#allocation8 + $0x40] sm:$0xff] }
 0x393   : > { %v9861_v31 = vpop.f32.mrf.mxu3  ;;  %2937 = vmatpush.msra.mxu2 %v2863_v61  ;;  %v14804_v61 = vld [vmem:[#allocation78_spill] sm:$0xff] }
 0x394   : > { %v2175_v10 = vadd.f32 %v2096_v5, %v14795_v33  ;;  %v9865_v59 = vpop.f32.mrf.mxu0  ;;  %2697 = vmatmul.f32.gmra.mxu1 %v9521_v18  ;;  %3159 = vmatpush.msra.mxu0 %v2872_v41  ;;  %v1790_v5 = vadd.f32 %v9572_v24, %v9248_v13  ;;  %v2866_v33 = vld [vmem:[#allocation8 + $0x58] sm:$0xff]  ;;  %v9889_v41 = vmax.f32 %v2194_v63, 0.0 }
 0x395   : > { %v2862_v63 = vld [vmem:[#allocation8 + $0x38] sm:$0xff] }
 0x396   : > { %2433 = vmatmul.f32.gmra.mxu2 %v9868_v32  ;;  %v9871_v42 = vmax.f32 %v2175_v10, 0.0  ;;  %3160 = vmatpush.msra.mxu0 %v2870_v44  ;;  %14801 = vst [vmem:[#allocation73_spill] sm:$0xff] %v9889_v41  ;;  %v2912_v44 = vld [vmem:[#allocation8 + $0x1c8] sm:$0xff] }
 0x397   : > { %2659 = vmatmul.f32.gmra.mxu0 %v9868_v32  ;;  %v1903_v32 = vadd.f32 %v9774_v38, %v1790_v5  ;;  %3268 = vmatpush.msrb.mxu1 %v2912_v44  ;;  %v2861_v38 = vld [vmem:[#allocation8 + $0x30] sm:$0xff]  ;;  %v14803_v5 = vld [vmem:[#allocation77_spill] sm:$0xff]  ;;  %v1793_v44 = vadd.f32 %v9594_v19, %v9248_v13 }
 0x398   : > { %14797 = vst [vmem:[#allocation71_spill] sm:$0xff] %v9871_v42  ;;  %2519 = vmatmul.f32.gmra.mxu3 %v9871_v42  ;;  %3161 = vmatpush.msra.mxu0 %v2868_v9  ;;  %v2895_v9 = vld [vmem:[#allocation8 + $0x140] sm:$0xff]  ;;  %v2858_v19 = vld [vmem:[#allocation8 + $0x18] sm:$0xff] }
 0x399   : > { %v2098_v53 = vpop.f32.mrf.mxu1  ;;  %v9878_v47 = vpop.f32.mrf.mxu2  ;;  %3050 = vmatpush.msra.mxu3 %v2895_v9  ;;  %2938 = vmatpush.msra.mxu2 %v2861_v38  ;;  %v2857_v9 = vld [vmem:[#allocation8 + $0x10] sm:$0xff] }
 0x39a   : > { %v2099_v10 = vadd.f32 %v2098_v53, %v1986_v8  ;;  %3162 = vmatpush.msra.mxu0 %v2866_v33  ;;  %v2864_v8 = vld [vmem:[#allocation8 + $0x48] sm:$0xff]  ;;  %v1989_v53 = vadd.f32 %v9353_v2, %v9467_v22  ;;  %v2859_v33 = vld [vmem:[#allocation8 + $0x20] sm:$0xff] }
 0x39b   : > { %v9882_v35 = vpop.f32.mrf.mxu3  ;;  %2939 = vmatpush.msra.mxu2 %v2859_v33  ;;  %v1796_v33 = vadd.f32 %v9616_v39, %v9248_v13  ;;  %v1995_v39 = vadd.f32 %v9399_v55, %v9467_v22 }
 0x39c   : > { %v2177_v18 = vadd.f32 %v2099_v10, %v14799_v20  ;;  %v9886_v7 = vpop.f32.mrf.mxu0  ;;  %2700 = vmatmul.f32.gmra.mxu1 %v9543_v40  ;;  %v2196_v10 = vadd.f32 %v1903_v32, %v14803_v5  ;;  %3163 = vmatpush.msra.mxu0 %v2864_v8  ;;  %v2860_v40 = vld [vmem:[#allocation8 + $0x28] sm:$0xff]  ;;  %v1906_v32 = vadd.f32 %v9796_v45, %v1793_v44 }
 0x39d   : > { %14800 = vst [vmem:[#allocation72_spill] sm:$0xff] %v9886_v7  ;;  %2940 = vmatpush.msra.mxu2 %v2857_v9  ;;  %v2856_v45 = vld [vmem:[#allocation8 + $0x8] sm:$0xff]  ;;  %v14808_v9 = vld [vmem:[#allocation81_spill] sm:$0xff] }
 0x39e   : > { %2436 = vmatmul.f32.gmra.mxu2 %v9889_v41  ;;  %v9892_v24 = vmax.f32 %v2177_v18, 0.0  ;;  %3164 = vmatpush.msra.mxu0 %v2862_v63  ;;  %v9910_v8 = vmax.f32 %v2196_v10, 0.0  ;;  %v14807_v63 = vld [vmem:[#allocation80_spill] sm:$0xff] }
 0x39f   : > { %2662 = vmatmul.f32.gmra.mxu0 %v9889_v41 }
 0x3a0   : > { %14802 = vst [vmem:[#allocation74_spill] sm:$0xff] %v9892_v24  ;;  %2522 = vmatmul.f32.gmra.mxu3 %v9892_v24  ;;  %3165 = vmatpush.msra.mxu0 %v2860_v40 }
 0x3a1   : > { %v2101_v20 = vpop.f32.mrf.mxu1  ;;  %v9899_v18 = vpop.f32.mrf.mxu2  ;;  %14805 = vst [vmem:[#allocation75_spill] sm:$0xff] %v9910_v8 }
 0x3a2   : > { %v2102_v41 = vadd.f32 %v2101_v20, %v1989_v53  ;;  %v2855_v53 = vld [vmem:[#allocation8] sm:$0xff]  ;;  %v2198_v20 = vadd.f32 %v1906_v32, %v14807_v63  ;;  %3166 = vmatpush.msra.mxu0 %v2858_v19 }
 0x3a3   : > { %v9903_v2 = vpop.f32.mrf.mxu3  ;;  %2941 = vmatpush.msra.mxu2 %v2855_v53  ;;  %v2910_v53 = vld [vmem:[#allocation8 + $0x1b8] sm:$0xff] }
 0x3a4   : > { %v2179_v5 = vadd.f32 %v2102_v41, %v14804_v61  ;;  %v9907_v7 = vpop.f32.mrf.mxu0  ;;  %2703 = vmatmul.f32.gmra.mxu1 %v9565_v4  ;;  %v1992_v41 = vadd.f32 %v9376_v37, %v9467_v22  ;;  %3167 = vmatpush.msra.mxu0 %v2856_v45  ;;  %v9931_v32 = vmax.f32 %v2198_v20, 0.0  ;;  %v1799_v20 = vadd.f32 %v9638_v62, %v9248_v13  ;;  %v14815_v62 = vld [vmem:[#allocation86_spill] sm:$0xff] }
 0x3a5   : > { %3269 = vmatpush.msrb.mxu1 %v2910_v53  ;;  %v1998_v13 = vadd.f32 %v9422_v30, %v9467_v22 }
 0x3a6   : > { %2439 = vmatmul.f32.gmra.mxu2 %v9910_v8  ;;  %v9913_v38 = vmax.f32 %v2179_v5, 0.0  ;;  %v1909_v5 = vadd.f32 %v9818_v46, %v1796_v33  ;;  %14809 = vst [vmem:[#allocation77_spill] sm:$0xff] %v9931_v32  ;;  %v14811_v46 = vld [vmem:[#allocation83_spill] sm:$0xff] }
 0x3a7   : > { %2665 = vmatmul.f32.gmra.mxu0 %v9910_v8 }
 0x3a8   : > { %14806 = vst [vmem:[#allocation76_spill] sm:$0xff] %v9913_v38  ;;  %2525 = vmatmul.f32.gmra.mxu3 %v9913_v38  ;;  %v2200_v45 = vadd.f32 %v1909_v5, %v14811_v46 }
 0x3a9   : > { %v2104_v10 = vpop.f32.mrf.mxu1  ;;  %v9920_v40 = vpop.f32.mrf.mxu2 }
 0x3aa   : > { %v2105_v44 = vadd.f32 %v2104_v10, %v1992_v41  ;;  %v2893_v41 = vld [vmem:[#allocation8 + $0x130] sm:$0xff]  ;;  %v9952_v5 = vmax.f32 %v2200_v45, 0.0 }
 0x3ab   : > { %v9924_v61 = vpop.f32.mrf.mxu3  ;;  %3051 = vmatpush.msra.mxu3 %v2893_v41 }
 0x3ac   : > { %v2181_v37 = vadd.f32 %v2105_v44, %v14808_v9  ;;  %v9928_v8 = vpop.f32.mrf.mxu0  ;;  %2706 = vmatmul.f32.gmra.mxu1 %v9587_v60  ;;  %v1912_v9 = vadd.f32 %v9840_v21, %v1799_v20  ;;  %14813 = vst [vmem:[#allocation80_spill] sm:$0xff] %v9952_v5  ;;  %v9962_v21 = vld [vmem:[#allocation14 + $0x3] ss:$8 sm:$0x3] }
 0x3ad   : > { %v9967_v45 = vperm.slane %v9962_v21, 0 }
 0x3ae   : > { %2442 = vmatmul.f32.gmra.mxu2 %v9931_v32  ;;  %v9934_v19 = vmax.f32 %v2181_v37, 0.0  ;;  %v14812_v37 = vld [vmem:[#allocation84_spill] sm:$0xff] }
 0x3af   : > { %2668 = vmatmul.f32.gmra.mxu0 %v9931_v32  ;;  %v2908_v32 = vld [vmem:[#allocation8 + $0x1a8] sm:$0xff] }
 0x3b0   : > { %14810 = vst [vmem:[#allocation78_spill] sm:$0xff] %v9934_v19  ;;  %2528 = vmatmul.f32.gmra.mxu3 %v9934_v19  ;;  %3270 = vmatpush.msrb.mxu1 %v2908_v32  ;;  %v2004_v32 = vadd.f32 %v9471_v43, %v9467_v22  ;;  %v2363_v43 = vadd.f32 %v9704_v16, %v9967_v45 }
 0x3b1   : > { %v2107_v63 = vpop.f32.mrf.mxu1  ;;  %v9941_v10 = vpop.f32.mrf.mxu2 }
 0x3b2   : > { %v2108_v33 = vadd.f32 %v2107_v63, %v1995_v39  ;;  %v2202_v39 = vadd.f32 %v1912_v9, %v14815_v62  ;;  %v2357_v9 = vadd.f32 %v9660_v50, %v9967_v45 }
 0x3b3   : > { %v9945_v44 = vpop.f32.mrf.mxu3 }
 0x3b4   : > { %v2183_v53 = vadd.f32 %v2108_v33, %v14812_v37  ;;  %v9949_v55 = vpop.f32.mrf.mxu0  ;;  %2709 = vmatmul.f32.gmra.mxu1 %v9609_v0  ;;  %v14816_v37 = vld [vmem:[#allocation87_spill] sm:$0xff]  ;;  %v9975_v30 = vmax.f32 %v2202_v39, 0.0  ;;  %v2891_v39 = vld [vmem:[#allocation8 + $0x120] sm:$0xff] }
 0x3b5   : > { %3052 = vmatpush.msra.mxu3 %v2891_v39  ;;  %v14819_v0 = vld [vmem:[#allocation89_spill] sm:$0xff] }
 0x3b6   : > { %2445 = vmatmul.f32.gmra.mxu2 %v9952_v5  ;;  %v9955_v46 = vmax.f32 %v2183_v53, 0.0  ;;  %14817 = vst [vmem:[#allocation83_spill] sm:$0xff] %v9975_v30 }
 0x3b7   : > { %2671 = vmatmul.f32.gmra.mxu0 %v9952_v5 }
 0x3b8   : > { %14814 = vst [vmem:[#allocation81_spill] sm:$0xff] %v9955_v46  ;;  %2531 = vmatmul.f32.gmra.mxu3 %v9955_v46 }
 0x3b9   : > { %v2110_v41 = vpop.f32.mrf.mxu1  ;;  %v9964_v63 = vpop.f32.mrf.mxu2 }
 0x3ba   : > { %v2111_v20 = vadd.f32 %v2110_v41, %v1998_v13  ;;  %v2001_v13 = vadd.f32 %v9445_v34, %v9467_v22  ;;  %v2470_v41 = vadd.f32 %v9861_v31, %v2357_v9  ;;  %v2360_v34 = vadd.f32 %v9682_v25, %v9967_v45 }
 0x3bb   : > { %v9969_v33 = vpop.f32.mrf.mxu3 }
 0x3bc   : > { %v2185_v53 = vadd.f32 %v2111_v20, %v14816_v37  ;;  %v9972_v5 = vpop.f32.mrf.mxu0  ;;  %2712 = vmatmul.f32.gmra.mxu1 %v9631_v15  ;;  %v2473_v9 = vadd.f32 %v9882_v35, %v2360_v34  ;;  %v2906_v35 = vld [vmem:[#allocation8 + $0x198] sm:$0xff] }
 0x3bd   : > { %3271 = vmatpush.msrb.mxu1 %v2906_v35  ;;  %v14827_v35 = vld [vmem:[#allocation38_spill] sm:$0xff] }
 0x3be   : > { %2448 = vmatmul.f32.gmra.mxu2 %v9975_v30  ;;  %v9980_v62 = vmax.f32 %v2185_v53, 0.0  ;;  %v2791_v53 = vmax.f32 %v2470_v41, 0.0 }
 0x3bf   : > { %2674 = vmatmul.f32.gmra.mxu0 %v9975_v30 }
 0x3c0   : > { %14818 = vst [vmem:[#allocation84_spill] sm:$0xff] %v9980_v62  ;;  %2534 = vmatmul.f32.gmra.mxu3 %v9980_v62 }
 0x3c1   : > { %v2113_v20 = vpop.f32.mrf.mxu1  ;;  %v9987_v37 = vpop.f32.mrf.mxu2 }
 0x3c2   : > { %v2114_v50 = vadd.f32 %v2113_v20, %v2001_v13  ;;  %v2793_v20 = vmax.f32 %v2473_v9, 0.0  ;;  %v2889_v9 = vld [vmem:[#allocation8 + $0x110] sm:$0xff] }
 0x3c3   : > { %v9989_v15 = vpop.f32.mrf.mxu3  ;;  %3053 = vmatpush.msra.mxu3 %v2889_v9 }
 0x3c4   : > { %v2187_v60 = vadd.f32 %v2114_v50, %v14819_v0  ;;  %v9992_v30 = vpop.f32.mrf.mxu0  ;;  %2715 = vmatmul.f32.gmra.mxu1 %v9653_v28  ;;  %v14821_v50 = vld [vmem:[#allocation91_spill] sm:$0xff] }
 0x3c6   : > { %2942 = vmatmul.f32.vlgmr.msra.gmra.mxu2 %v2791_v53  ;;  %v9997_v31 = vmax.f32 %v2187_v60, 0.0 }
 0x3c7   : > { %3168 = vmatmul.f32.vlgmr.msra.gmra.mxu0 %v2791_v53  ;;  %v14823_v53 = vld [vmem:[#allocation35_spill] sm:$0xff] }
 0x3c8   : > { %14820 = vst [vmem:[#allocation86_spill] sm:$0xff] %v9997_v31  ;;  %2537 = vmatmul.f32.gmra.mxu3 %v9997_v31  ;;  %v2007_v34 = vadd.f32 %v14823_v53, %v9467_v22  ;;  %v2010_v53 = vadd.f32 %v14827_v35, %v9467_v22 }
 0x3c9   : > { %v2116_v13 = vpop.f32.mrf.mxu1  ;;  %v10003_v0 = vpop.f32.mrf.mxu2 }
 0x3ca   : > { %v2117_v41 = vadd.f32 %v2116_v13, %v2004_v32  ;;  %v2476_v32 = vadd.f32 %v9903_v2, %v2363_v43  ;;  %v2366_v2 = vadd.f32 %v9726_v12, %v9967_v45 }
 0x3cb   : > { %v10005_v39 = vpop.f32.mrf.mxu3 }
 0x3cc   : > { %v2189_v25 = vadd.f32 %v2117_v41, %v14821_v50  ;;  %v10008_v28 = vpop.f32.mrf.mxu0  ;;  %2718 = vmatmul.f32.gmra.mxu1 %v9675_v29  ;;  %v14824_v29 = vld [vmem:[#allocation93_spill] sm:$0xff] }
 0x3ce   : > { %2945 = vmatmul.f32.gmra.mxu2 %v2793_v20  ;;  %v10013_v60 = vmax.f32 %v2189_v25, 0.0  ;;  %v2795_v25 = vmax.f32 %v2476_v32, 0.0 }
 0x3cf   : > { %3171 = vmatmul.f32.gmra.mxu0 %v2793_v20 }
 0x3d0   : > { %14822 = vst [vmem:[#allocation87_spill] sm:$0xff] %v10013_v60  ;;  %2540 = vmatmul.f32.gmra.mxu3 %v10013_v60 }
 0x3d1   : > { %v2119_v13 = vpop.f32.mrf.mxu1  ;;  %v10019_v41 = vpop.f32.mrf.mxu2 }
 0x3d2   : > { %v2120_v50 = vadd.f32 %v2119_v13, %v2007_v34  ;;  %v2479_v34 = vadd.f32 %v9924_v61, %v2366_v2  ;;  %v14831_v2 = vld [vmem:[#allocation41_spill] sm:$0xff] }
 0x3d3   : > { %v10021_v16 = vpop.f32.mrf.mxu3  ;;  %v2013_v35 = vadd.f32 %v14831_v2, %v9467_v22 }
 0x3d4   : > { %v2191_v4 = vadd.f32 %v2120_v50, %v14824_v29  ;;  %v10024_v20 = vpop.f32.mrf.mxu0  ;;  %2721 = vmatmul.f32.gmra.mxu1 %v9697_v49  ;;  %v2797_v50 = vmax.f32 %v2479_v34, 0.0  ;;  %v14828_v49 = vld [vmem:[#allocation95_spill] sm:$0xff] }
 0x3d5   : > { %14825 = vst [vmem:[#allocation89_spill] sm:$0xff] %v10024_v20 }
 0x3d6   : > { %2948 = vmatmul.f32.gmra.mxu2 %v2795_v25  ;;  %v10029_v43 = vmax.f32 %v2191_v4, 0.0  ;;  %v2369_v4 = vadd.f32 %v9748_v23, %v9967_v45 }
 0x3d7   : > { %3174 = vmatmul.f32.gmra.mxu0 %v2795_v25  ;;  %v2904_v25 = vld [vmem:[#allocation8 + $0x188] sm:$0xff] }
 0x3d8   : > { %14826 = vst [vmem:[#allocation91_spill] sm:$0xff] %v10029_v43  ;;  %2543 = vmatmul.f32.gmra.mxu3 %v10029_v43  ;;  %3272 = vmatpush.msrb.mxu1 %v2904_v25  ;;  %v14835_v25 = vld [vmem:[#allocation43_spill] sm:$0xff] }
 0x3d9   : > { %v2122_v32 = vpop.f32.mrf.mxu1  ;;  %v10035_v29 = vpop.f32.mrf.mxu2  ;;  %v2016_v2 = vadd.f32 %v14835_v25, %v9467_v22  ;;  %v14839_v25 = vld [vmem:[#allocation107_spill] sm:$0xff] }
 0x3da   : > { %v2123_v9 = vadd.f32 %v2122_v32, %v2010_v53  ;;  %v2482_v53 = vadd.f32 %v9945_v44, %v2369_v4  ;;  %v2372_v44 = vadd.f32 %v9770_v1, %v9967_v45 }
 0x3db   : > { %v10037_v13 = vpop.f32.mrf.mxu3 }
 0x3dc   : > { %v2193_v12 = vadd.f32 %v2123_v9, %v14828_v49  ;;  %v10040_v20 = vpop.f32.mrf.mxu0  ;;  %2724 = vmatmul.f32.gmra.mxu1 %v9719_v51  ;;  %v2887_v49 = vld [vmem:[#allocation8 + $0x100] sm:$0xff] }
 0x3dd   : > { %14829 = vst [vmem:[#allocation35_spill] sm:$0xff] %v10040_v20  ;;  %3054 = vmatpush.msra.mxu3 %v2887_v49  ;;  %v14832_v51 = vld [vmem:[#allocation97_spill] sm:$0xff] }
 0x3de   : > { %2951 = vmatmul.f32.gmra.mxu2 %v2797_v50  ;;  %v10045_v61 = vmax.f32 %v2193_v12, 0.0  ;;  %v2799_v12 = vmax.f32 %v2482_v53, 0.0 }
 0x3df   : > { %3177 = vmatmul.f32.gmra.mxu0 %v2797_v50 }
 0x3e0   : > { %14830 = vst [vmem:[#allocation93_spill] sm:$0xff] %v10045_v61  ;;  %2546 = vmatmul.f32.gmra.mxu3 %v10045_v61 }
 0x3e1   : > { %v2125_v34 = vpop.f32.mrf.mxu1  ;;  %v10051_v32 = vpop.f32.mrf.mxu2 }
 0x3e2   : > { %v2126_v9 = vadd.f32 %v2125_v34, %v2013_v35  ;;  %v2485_v35 = vadd.f32 %v9969_v33, %v2372_v44  ;;  %v3536_v44 = vld [vmem:[#allocation10 + $0xf0] sm:$0xff] }
 0x3e3   : > { %v10053_v23 = vpop.f32.mrf.mxu3  ;;  %3577 = vmatpush.msrb.mxu2 %v3536_v44  ;;  %v14843_v44 = vld [vmem:[#allocation108_spill] sm:$0xff] }
 0x3e4   : > { %v2195_v20 = vadd.f32 %v2126_v9, %v14832_v51  ;;  %v10056_v50 = vpop.f32.mrf.mxu0  ;;  %2727 = vmatmul.f32.gmra.mxu1 %v9741_v36  ;;  %v2801_v9 = vmax.f32 %v2485_v35, 0.0  ;;  %v14836_v36 = vld [vmem:[#allocation99_spill] sm:$0xff] }
 0x3e5   : > { %14833 = vst [vmem:[#allocation38_spill] sm:$0xff] %v10056_v50 }
 0x3e6   : > { %2954 = vmatmul.f32.gmra.mxu2 %v2799_v12  ;;  %v10061_v4 = vmax.f32 %v2195_v20, 0.0  ;;  %v2375_v20 = vadd.f32 %v9792_v56, %v9967_v45 }
 0x3e7   : > { %3180 = vmatmul.f32.gmra.mxu0 %v2799_v12  ;;  %v2902_v12 = vld [vmem:[#allocation8 + $0x178] sm:$0xff] }
 0x3e8   : > { %14834 = vst [vmem:[#allocation95_spill] sm:$0xff] %v10061_v4  ;;  %2549 = vmatmul.f32.gmra.mxu3 %v10061_v4  ;;  %3273 = vmatpush.msrb.mxu1 %v2902_v12  ;;  %v2488_v35 = vadd.f32 %v9989_v15, %v2375_v20  ;;  %v2378_v15 = vadd.f32 %v9814_v11, %v9967_v45 }
 0x3e9   : > { %v2128_v53 = vpop.f32.mrf.mxu1  ;;  %v10067_v51 = vpop.f32.mrf.mxu2 }
 0x3ea   : > { %v2129_v49 = vadd.f32 %v2128_v53, %v2016_v2  ;;  %v2019_v2 = vadd.f32 %v14839_v25, %v9467_v22  ;;  %v2022_v25 = vadd.f32 %v14843_v44, %v9467_v22  ;;  %v14847_v44 = vld [vmem:[#allocation79_spill] sm:$0xff] }
 0x3eb   : > { %v10069_v34 = vpop.f32.mrf.mxu3 }
 0x3ec   : > { %v2197_v1 = vadd.f32 %v2129_v49, %v14836_v36  ;;  %v10072_v50 = vpop.f32.mrf.mxu0  ;;  %2730 = vmatmul.f32.gmra.mxu1 %v9763_v14  ;;  %v3568_v36 = vld [vmem:[#allocation10 + $0x1f0] sm:$0xff]  ;;  %v2803_v14 = vmax.f32 %v2488_v35, 0.0 }
 0x3ed   : > { %14837 = vst [vmem:[#allocation41_spill] sm:$0xff] %v10072_v50  ;;  %3690 = vmatpush.msrb.mxu3 %v3568_v36 }
 0x3ee   : > { %2957 = vmatmul.f32.gmra.mxu2 %v2801_v9  ;;  %v10077_v33 = vmax.f32 %v2197_v1, 0.0 }
 0x3ef   : > { %3183 = vmatmul.f32.gmra.mxu0 %v2801_v9  ;;  %v14840_v9 = vld [vmem:[#allocation101_spill] sm:$0xff] }
 0x3f0   : > { %14838 = vst [vmem:[#allocation97_spill] sm:$0xff] %v10077_v33  ;;  %2552 = vmatmul.f32.gmra.mxu3 %v10077_v33 }
 0x3f1   : > { %v2131_v53 = vpop.f32.mrf.mxu1  ;;  %v10083_v49 = vpop.f32.mrf.mxu2 }
 0x3f2   : > { %v2132_v56 = vadd.f32 %v2131_v53, %v2019_v2  ;;  %v2491_v2 = vadd.f32 %v10005_v39, %v2378_v15  ;;  %v3534_v15 = vld [vmem:[#allocation10 + $0xe0] sm:$0xff] }
 0x3f3   : > { %v10085_v1 = vpop.f32.mrf.mxu3  ;;  %3578 = vmatpush.msrb.mxu2 %v3534_v15  ;;  %v14850_v15 = vld [vmem:[#allocation82_spill] sm:$0xff] }
 0x3f4   : > { %v2199_v12 = vadd.f32 %v2132_v56, %v14840_v9  ;;  %v10088_v50 = vpop.f32.mrf.mxu0  ;;  %2733 = vmatmul.f32.gmra.mxu1 %v9785_v6  ;;  %v2805_v9 = vmax.f32 %v2491_v2, 0.0  ;;  %v14844_v6 = vld [vmem:[#allocation103_spill] sm:$0xff] }
 0x3f5   : > { %14841 = vst [vmem:[#allocation43_spill] sm:$0xff] %v10088_v50 }
 0x3f6   : > { %2960 = vmatmul.f32.gmra.mxu2 %v2803_v14  ;;  %v10093_v20 = vmax.f32 %v2199_v12, 0.0  ;;  %v2900_v12 = vld [vmem:[#allocation8 + $0x168] sm:$0xff] }
 0x3f7   : > { %3186 = vmatmul.f32.gmra.mxu0 %v2803_v14  ;;  %v2381_v14 = vadd.f32 %v9836_v17, %v9967_v45  ;;  %3274 = vmatpush.msrb.mxu1 %v2900_v12 }
 0x3f8   : > { %14842 = vst [vmem:[#allocation99_spill] sm:$0xff] %v10093_v20  ;;  %2555 = vmatmul.f32.gmra.mxu3 %v10093_v20 }
 0x3f9   : > { %v2134_v35 = vpop.f32.mrf.mxu1  ;;  %v10099_v36 = vpop.f32.mrf.mxu2  ;;  %v2494_v2 = vadd.f32 %v10021_v16, %v2381_v14  ;;  %v2384_v16 = vadd.f32 %v9857_v57, %v9967_v45 }
 0x3fa   : > { %v2135_v53 = vadd.f32 %v2134_v35, %v2022_v25  ;;  %v2025_v25 = vadd.f32 %v14847_v44, %v9467_v22 }
 0x3fb   : > { %v10101_v56 = vpop.f32.mrf.mxu3  ;;  %v2807_v12 = vmax.f32 %v2494_v2, 0.0 }
 0x3fc   : > { %v2201_v11 = vadd.f32 %v2135_v53, %v14844_v6  ;;  %v10104_v50 = vpop.f32.mrf.mxu0  ;;  %2736 = vmatmul.f32.gmra.mxu1 %v9807_v48  ;;  %v3566_v6 = vld [vmem:[#allocation10 + $0x1e0] sm:$0xff] }
 0x3fd   : > { %14845 = vst [vmem:[#allocation107_spill] sm:$0xff] %v10104_v50  ;;  %3691 = vmatpush.msrb.mxu3 %v3566_v6  ;;  %v14848_v48 = vld [vmem:[#allocation105_spill] sm:$0xff] }
 0x3fe   : > { %2963 = vmatmul.f32.gmra.mxu2 %v2805_v9  ;;  %v10109_v39 = vmax.f32 %v2201_v11, 0.0 }
 0x3ff   : > { %3189 = vmatmul.f32.gmra.mxu0 %v2805_v9  ;;  %v10120_v9 = vperm.slane %v9962_v21, 1  ;;  %v2497_v21 = vadd.f32 %v10037_v13, %v2384_v16  ;;  %v2898_v13 = vld [vmem:[#allocation8 + $0x158] sm:$0xff] }
 0x400   : > { %14846 = vst [vmem:[#allocation101_spill] sm:$0xff] %v10109_v39  ;;  %2558 = vmatmul.f32.gmra.mxu3 %v10109_v39  ;;  %3275 = vmatpush.msrb.mxu1 %v2898_v13  ;;  %v14851_v16 = vld [vmem:[#allocation85_spill] sm:$0xff] }
 0x401   : > { %v2137_v35 = vpop.f32.mrf.mxu1  ;;  %v10115_v53 = vpop.f32.mrf.mxu2  ;;  %v2583_v44 = vadd.f32 %v14850_v15, %v10120_v9  ;;  %v2586_v15 = vadd.f32 %v14851_v16, %v10120_v9 }
 0x402   : > { %v2138_v17 = vadd.f32 %v2137_v35, %v2025_v25  ;;  %v2809_v35 = vmax.f32 %v2497_v21, 0.0  ;;  %v3564_v21 = vld [vmem:[#allocation10 + $0x1d0] sm:$0xff] }
 0x403   : > { %v10117_v11 = vpop.f32.mrf.mxu3  ;;  %3692 = vmatpush.msrb.mxu3 %v3564_v21 }
 0x404   : > { %v2203_v50 = vadd.f32 %v2138_v17, %v14848_v48  ;;  %v10123_v22 = vpop.f32.mrf.mxu0  ;;  %2739 = vmatmul.f32.gmra.mxu1 %v9829_v52 }
 0x406   : > { %2966 = vmatmul.f32.gmra.mxu2 %v2807_v12  ;;  %v10128_v14 = vmax.f32 %v2203_v50, 0.0  ;;  %v2387_v50 = vadd.f32 %v9878_v47, %v9967_v45 }
 0x407   : > { %3192 = vmatmul.f32.gmra.mxu0 %v2807_v12  ;;  %v3532_v12 = vld [vmem:[#allocation10 + $0xd0] sm:$0xff] }
 0x408   : > { %14849 = vst [vmem:[#allocation108_spill] sm:$0xff] %v10128_v14  ;;  %2561 = vmatmul.f32.gmra.mxu3 %v10128_v14  ;;  %3579 = vmatpush.msrb.mxu2 %v3532_v12  ;;  %v14853_v12 = vld [vmem:[#allocation88_spill] sm:$0xff] }
 0x409   : > { %v10134_v25 = vpop.f32.mrf.mxu2  ;;  %v2695_v48 = vpop.f32.mrf.mxu1  ;;  %v2589_v16 = vadd.f32 %v14853_v12, %v10120_v9  ;;  %v3530_v12 = vld [vmem:[#allocation10 + $0xc0] sm:$0xff] }
 0x40a   : > { %v10136_v2 = vadd.f32 %v2695_v48, %v2583_v44  ;;  %v2500_v44 = vadd.f32 %v10053_v23, %v2387_v50  ;;  %v2390_v23 = vadd.f32 %v9899_v18, %v9967_v45  ;;  %3580 = vmatpush.msrb.mxu2 %v3530_v12  ;;  %v14856_v12 = vld [vmem:[#allocation92_spill] sm:$0xff] }
 0x40b   : > { %v10138_v6 = vpop.f32.mrf.mxu3 }
 0x40c   : > { %v10140_v57 = vpop.f32.mrf.mxu0  ;;  %2742 = vmatmul.f32.gmra.mxu1 %v9850_v26  ;;  %v14293_v17 = vmax.f32 %v10136_v2, 0.0 }
 0x40e   : > { %2969 = vmatmul.f32.gmra.mxu2 %v2809_v35 }
 0x40f   : > { %3195 = vmatmul.f32.gmra.mxu0 %v2809_v35  ;;  %v2811_v35 = vmax.f32 %v2500_v44, 0.0 }
 0x410   : > { %3055 = vmatmul.f32.vlgmr.msra.gmra.mxu3 %v14293_v17 }
 0x411   : > { %v10151_v48 = vpop.f32.mrf.mxu2  ;;  %v2698_v47 = vpop.f32.mrf.mxu1 }
 0x412   : > { %v10153_v26 = vadd.f32 %v2698_v47, %v2586_v15  ;;  %v2503_v15 = vadd.f32 %v10069_v34, %v2390_v23  ;;  %v2896_v23 = vld [vmem:[#allocation8 + $0x148] sm:$0xff] }
 0x413   : > { %v10155_v52 = vpop.f32.mrf.mxu3  ;;  %3276 = vmatpush.msrb.mxu1 %v2896_v23 }
 0x414   : > { %v10157_v13 = vpop.f32.mrf.mxu0  ;;  %2745 = vmatmul.f32.gmra.mxu1 %v9871_v42  ;;  %v14295_v50 = vmax.f32 %v10153_v26, 0.0  ;;  %v2813_v18 = vmax.f32 %v2503_v15, 0.0  ;;  %v3562_v15 = vld [vmem:[#allocation10 + $0x1c0] sm:$0xff] }
 0x415   : > { %14852 = vst [vmem:[#allocation103_spill] sm:$0xff] %v10157_v13  ;;  %3693 = vmatpush.msrb.mxu3 %v3562_v15 }
 0x416   : > { %2972 = vmatmul.f32.gmra.mxu2 %v2811_v35 }
 0x417   : > { %3198 = vmatmul.f32.gmra.mxu0 %v2811_v35  ;;  %v2393_v35 = vadd.f32 %v9920_v40, %v9967_v45 }
 0x418   : > { %3058 = vmatmul.f32.gmra.mxu3 %v14295_v50 }
 0x419   : > { %v10168_v44 = vpop.f32.mrf.mxu2  ;;  %v2701_v21 = vpop.f32.mrf.mxu1  ;;  %v2506_v50 = vadd.f32 %v10085_v1, %v2393_v35  ;;  %v2396_v1 = vadd.f32 %v9941_v10, %v9967_v45 }
 0x41a   : > { %v10170_v47 = vadd.f32 %v2701_v21, %v2589_v16  ;;  %v14855_v16 = vld [vmem:[#allocation90_spill] sm:$0xff] }
 0x41b   : > { %v10172_v17 = vpop.f32.mrf.mxu3  ;;  %v2592_v21 = vadd.f32 %v14855_v16, %v10120_v9  ;;  %v2595_v16 = vadd.f32 %v14856_v12, %v10120_v9  ;;  %v3528_v12 = vld [vmem:[#allocation10 + $0xb0] sm:$0xff] }
 0x41c   : > { %v10174_v42 = vpop.f32.mrf.mxu0  ;;  %2748 = vmatmul.f32.gmra.mxu1 %v9892_v24  ;;  %v14297_v34 = vmax.f32 %v10170_v47, 0.0  ;;  %3581 = vmatpush.msrb.mxu2 %v3528_v12 }
 0x41d   : > { %14854 = vst [vmem:[#allocation79_spill] sm:$0xff] %v10174_v42 }
 0x41e   : > { %2975 = vmatmul.f32.gmra.mxu2 %v2813_v18 }
 0x41f   : > { %3201 = vmatmul.f32.gmra.mxu0 %v2813_v18  ;;  %v2815_v18 = vmax.f32 %v2506_v50, 0.0 }
 0x420   : > { %3061 = vmatmul.f32.gmra.mxu3 %v14297_v34 }
 0x421   : > { %v10185_v24 = vpop.f32.mrf.mxu2  ;;  %v2704_v40 = vpop.f32.mrf.mxu1 }
 0x422   : > { %v10187_v42 = vadd.f32 %v2704_v40, %v2592_v21  ;;  %v2509_v21 = vadd.f32 %v10101_v56, %v2396_v1  ;;  %v2894_v1 = vld [vmem:[#allocation8 + $0x138] sm:$0xff] }
 0x423   : > { %v10189_v13 = vpop.f32.mrf.mxu3  ;;  %3277 = vmatpush.msrb.mxu1 %v2894_v1 }
 0x424   : > { %v10191_v23 = vpop.f32.mrf.mxu0  ;;  %2751 = vmatmul.f32.gmra.mxu1 %v9913_v38  ;;  %v14299_v35 = vmax.f32 %v10187_v42, 0.0  ;;  %v2817_v10 = vmax.f32 %v2509_v21, 0.0  ;;  %v3560_v21 = vld [vmem:[#allocation10 + $0x1b0] sm:$0xff] }
 0x425   : > { %3694 = vmatpush.msrb.mxu3 %v3560_v21 }
 0x426   : > { %2978 = vmatmul.f32.gmra.mxu2 %v2815_v18 }
 0x427   : > { %3204 = vmatmul.f32.gmra.mxu0 %v2815_v18  ;;  %v2399_v18 = vadd.f32 %v9964_v63, %v9967_v45 }
 0x428   : > { %3064 = vmatmul.f32.gmra.mxu3 %v14299_v35 }
 0x429   : > { %v10202_v50 = vpop.f32.mrf.mxu2  ;;  %v2707_v15 = vpop.f32.mrf.mxu1 }
 0x42a   : > { %v10204_v40 = vadd.f32 %v2707_v15, %v2595_v16  ;;  %v2598_v16 = vadd.f32 %v9756_v27, %v10120_v9  ;;  %v2512_v15 = vadd.f32 %v10117_v11, %v2399_v18  ;;  %v2402_v27 = vadd.f32 %v9987_v37, %v9967_v45 }
 0x42b   : > { %v10206_v34 = vpop.f32.mrf.mxu3  ;;  %v2601_v18 = vadd.f32 %v9778_v58, %v10120_v9  ;;  %v2405_v58 = vadd.f32 %v10003_v0, %v9967_v45 }
 0x42c   : > { %v10208_v38 = vpop.f32.mrf.mxu0  ;;  %2754 = vmatmul.f32.gmra.mxu1 %v9934_v19  ;;  %v14301_v56 = vmax.f32 %v10204_v40, 0.0  ;;  %v2515_v12 = vadd.f32 %v10138_v6, %v2402_v27  ;;  %v3526_v27 = vld [vmem:[#allocation10 + $0xa0] sm:$0xff] }
 0x42d   : > { %14857 = vst [vmem:[#allocation105_spill] sm:$0xff] %v10208_v38  ;;  %3582 = vmatpush.msrb.mxu2 %v3526_v27 }
 0x42e   : > { %2981 = vmatmul.f32.gmra.mxu2 %v2817_v10  ;;  %v2821_v37 = vmax.f32 %v2515_v12, 0.0  ;;  %v3558_v12 = vld [vmem:[#allocation10 + $0x1a0] sm:$0xff] }
 0x42f   : > { %3207 = vmatmul.f32.gmra.mxu0 %v2817_v10  ;;  %v2819_v10 = vmax.f32 %v2512_v15, 0.0  ;;  %3695 = vmatpush.msrb.mxu3 %v3558_v12 }
 0x430   : > { %3067 = vmatmul.f32.gmra.mxu3 %v14301_v56 }
 0x431   : > { %v10219_v35 = vpop.f32.mrf.mxu2  ;;  %v2710_v63 = vpop.f32.mrf.mxu1 }
 0x432   : > { %v10221_v19 = vadd.f32 %v2710_v63, %v2598_v16 }
 0x433   : > { %v10223_v38 = vpop.f32.mrf.mxu3 }
 0x434   : > { %v10225_v1 = vpop.f32.mrf.mxu0  ;;  %2757 = vmatmul.f32.gmra.mxu1 %v9955_v46  ;;  %v14302_v11 = vmax.f32 %v10221_v19, 0.0 }
 0x436   : > { %2984 = vmatmul.f32.gmra.mxu2 %v2819_v10 }
 0x437   : > { %3210 = vmatmul.f32.gmra.mxu0 %v2819_v10  ;;  %v2892_v10 = vld [vmem:[#allocation8 + $0x128] sm:$0xff] }
 0x438   : > { %3070 = vmatmul.f32.gmra.mxu3 %v14302_v11  ;;  %3278 = vmatpush.msrb.mxu1 %v2892_v10 }
 0x439   : > { %v10236_v16 = vpop.f32.mrf.mxu2  ;;  %v2713_v15 = vpop.f32.mrf.mxu1 }
 0x43a   : > { %v10238_v21 = vadd.f32 %v2713_v15, %v2601_v18  ;;  %v2604_v18 = vadd.f32 %v9800_v54, %v10120_v9  ;;  %v2518_v15 = vadd.f32 %v10155_v52, %v2405_v58  ;;  %v2408_v54 = vadd.f32 %v10019_v41, %v9967_v45 }
 0x43b   : > { %v10240_v63 = vpop.f32.mrf.mxu3  ;;  %v2607_v58 = vadd.f32 %v9822_v3, %v10120_v9  ;;  %v2411_v3 = vadd.f32 %v10035_v29, %v9967_v45 }
 0x43c   : > { %v10242_v56 = vpop.f32.mrf.mxu0  ;;  %2760 = vmatmul.f32.gmra.mxu1 %v9980_v62  ;;  %v14305_v6 = vmax.f32 %v10238_v21, 0.0  ;;  %v2521_v27 = vadd.f32 %v10172_v17, %v2408_v54  ;;  %v3524_v54 = vld [vmem:[#allocation10 + $0x90] sm:$0xff] }
 0x43d   : > { %3583 = vmatpush.msrb.mxu2 %v3524_v54  ;;  %v2613_v54 = vadd.f32 %v9865_v59, %v10120_v9  ;;  %v2417_v59 = vadd.f32 %v10067_v51, %v9967_v45 }
 0x43e   : > { %2987 = vmatmul.f32.gmra.mxu2 %v2821_v37  ;;  %v2825_v41 = vmax.f32 %v2521_v27, 0.0  ;;  %v3556_v27 = vld [vmem:[#allocation10 + $0x190] sm:$0xff] }
 0x43f   : > { %3213 = vmatmul.f32.gmra.mxu0 %v2821_v37  ;;  %v2823_v37 = vmax.f32 %v2518_v15, 0.0  ;;  %3696 = vmatpush.msrb.mxu3 %v3556_v27 }
 0x440   : > { %3073 = vmatmul.f32.gmra.mxu3 %v14305_v6 }
 0x441   : > { %v10253_v11 = vpop.f32.mrf.mxu2  ;;  %v2716_v0 = vpop.f32.mrf.mxu1 }
 0x442   : > { %v10255_v62 = vadd.f32 %v2716_v0, %v2604_v18 }
 0x443   : > { %v10257_v46 = vpop.f32.mrf.mxu3 }
 0x444   : > { %v10259_v10 = vpop.f32.mrf.mxu0  ;;  %2763 = vmatmul.f32.gmra.mxu1 %v9997_v31  ;;  %v14306_v52 = vmax.f32 %v10255_v62, 0.0 }
 0x446   : > { %2990 = vmatmul.f32.gmra.mxu2 %v2823_v37 }
 0x447   : > { %3216 = vmatmul.f32.gmra.mxu0 %v2823_v37  ;;  %v2890_v37 = vld [vmem:[#allocation8 + $0x118] sm:$0xff] }
 0x448   : > { %3076 = vmatmul.f32.gmra.mxu3 %v14306_v52  ;;  %3279 = vmatpush.msrb.mxu1 %v2890_v37  ;;  %v2524_v52 = vadd.f32 %v10189_v13, %v2411_v3  ;;  %v2414_v13 = vadd.f32 %v10051_v32, %v9967_v45 }
 0x449   : > { %v2719_v18 = vpop.f32.mrf.mxu1  ;;  %v10270_v15 = vpop.f32.mrf.mxu2 }
 0x44a   : > { %v10272_v12 = vadd.f32 %v2719_v18, %v2607_v58  ;;  %v14859_v58 = vld [vmem:[#allocation68_spill] sm:$0xff] }
 0x44b   : > { %v10274_v0 = vpop.f32.mrf.mxu3  ;;  %v2610_v18 = vadd.f32 %v14859_v58, %v10120_v9 }
 0x44c   : > { %v10276_v6 = vpop.f32.mrf.mxu0  ;;  %2766 = vmatmul.f32.gmra.mxu1 %v10013_v60  ;;  %v14309_v17 = vmax.f32 %v10272_v12, 0.0 }
 0x44d   : > { %14858 = vst [vmem:[#allocation82_spill] sm:$0xff] %v10276_v6 }
 0x44e   : > { %2993 = vmatmul.f32.gmra.mxu2 %v2825_v41 }
 0x44f   : > { %3219 = vmatmul.f32.gmra.mxu0 %v2825_v41  ;;  %v2827_v41 = vmax.f32 %v2524_v52, 0.0 }
 0x450   : > { %3079 = vmatmul.f32.gmra.mxu3 %v14309_v17 }
 0x451   : > { %v2722_v60 = vpop.f32.mrf.mxu1  ;;  %v10287_v31 = vpop.f32.mrf.mxu2 }
 0x452   : > { %v10289_v29 = vadd.f32 %v2722_v60, %v2610_v18  ;;  %v2527_v60 = vadd.f32 %v10206_v34, %v2414_v13  ;;  %v3522_v13 = vld [vmem:[#allocation10 + $0x80] sm:$0xff] }
 0x453   : > { %v10291_v6 = vpop.f32.mrf.mxu3  ;;  %3584 = vmatpush.msrb.mxu2 %v3522_v13  ;;  %v2619_v13 = vadd.f32 %v9907_v7, %v10120_v9  ;;  %v2423_v7 = vadd.f32 %v10099_v36, %v9967_v45 }
 0x454   : > { %v10293_v37 = vpop.f32.mrf.mxu0  ;;  %2769 = vmatmul.f32.gmra.mxu1 %v10029_v43  ;;  %v14310_v3 = vmax.f32 %v10289_v29, 0.0  ;;  %v2829_v32 = vmax.f32 %v2527_v60, 0.0  ;;  %v3554_v60 = vld [vmem:[#allocation10 + $0x180] sm:$0xff] }
 0x455   : > { %3697 = vmatpush.msrb.mxu3 %v3554_v60 }
 0x456   : > { %2996 = vmatmul.f32.gmra.mxu2 %v2827_v41 }
 0x457   : > { %3222 = vmatmul.f32.gmra.mxu0 %v2827_v41  ;;  %v2888_v41 = vld [vmem:[#allocation8 + $0x108] sm:$0xff] }
 0x458   : > { %3082 = vmatmul.f32.gmra.mxu3 %v14310_v3  ;;  %3280 = vmatpush.msrb.mxu1 %v2888_v41  ;;  %v2530_v3 = vadd.f32 %v10223_v38, %v2417_v59  ;;  %v2420_v38 = vadd.f32 %v10083_v49, %v9967_v45 }
 0x459   : > { %v2725_v52 = vpop.f32.mrf.mxu1  ;;  %v10304_v58 = vpop.f32.mrf.mxu2 }
 0x45a   : > { %v10306_v18 = vadd.f32 %v2725_v52, %v2613_v54  ;;  %v14861_v54 = vld [vmem:[#allocation72_spill] sm:$0xff] }
 0x45b   : > { %v10308_v27 = vpop.f32.mrf.mxu3  ;;  %v2616_v52 = vadd.f32 %v14861_v54, %v10120_v9 }
 0x45c   : > { %v10310_v17 = vpop.f32.mrf.mxu0  ;;  %2772 = vmatmul.f32.gmra.mxu1 %v10045_v61  ;;  %v14313_v34 = vmax.f32 %v10306_v18, 0.0 }
 0x45d   : > { %14860 = vst [vmem:[#allocation85_spill] sm:$0xff] %v10310_v17 }
 0x45e   : > { %2999 = vmatmul.f32.gmra.mxu2 %v2829_v32 }
 0x45f   : > { %3225 = vmatmul.f32.gmra.mxu0 %v2829_v32  ;;  %v2831_v32 = vmax.f32 %v2530_v3, 0.0 }
 0x460   : > { %3085 = vmatmul.f32.gmra.mxu3 %v14313_v34 }
 0x461   : > { %v2728_v61 = vpop.f32.mrf.mxu1  ;;  %v10321_v43 = vpop.f32.mrf.mxu2 }
 0x462   : > { %v10323_v51 = vadd.f32 %v2728_v61, %v2616_v52  ;;  %v2533_v61 = vadd.f32 %v10240_v63, %v2420_v38  ;;  %v3569_v38 = vld [vmem:[#allocation10 + $0x1f8] sm:$0xff] }
 0x463   : > { %v10325_v17 = vpop.f32.mrf.mxu3  ;;  %3916 = vmatpush.msra.mxu1 %v3569_v38 }
 0x464   : > { %v10327_v41 = vpop.f32.mrf.mxu0  ;;  %2775 = vmatmul.f32.gmra.mxu1 %v10061_v4  ;;  %v14314_v59 = vmax.f32 %v10323_v51, 0.0  ;;  %v2833_v49 = vmax.f32 %v2533_v61, 0.0  ;;  %v2536_v61 = vadd.f32 %v10257_v46, %v2423_v7  ;;  %v2625_v7 = vadd.f32 %v9949_v55, %v10120_v9 }
 0x465   : > { %v2429_v55 = vadd.f32 %v10134_v25, %v9967_v45 }
 0x466   : > { %3002 = vmatmul.f32.gmra.mxu2 %v2831_v32 }
 0x467   : > { %3228 = vmatmul.f32.gmra.mxu0 %v2831_v32  ;;  %v3537_v32 = vld [vmem:[#allocation10 + $0xf8] sm:$0xff] }
 0x468   : > { %3088 = vmatmul.f32.gmra.mxu3 %v14314_v59  ;;  %3803 = vmatpush.msrb.mxu0 %v3537_v32  ;;  %v3552_v32 = vld [vmem:[#allocation10 + $0x170] sm:$0xff] }
 0x469   : > { %v2731_v3 = vpop.f32.mrf.mxu1  ;;  %v10338_v54 = vpop.f32.mrf.mxu2  ;;  %3698 = vmatpush.msrb.mxu3 %v3552_v32 }
 0x46a   : > { %v10340_v52 = vadd.f32 %v2731_v3, %v2619_v13  ;;  %v3520_v13 = vld [vmem:[#allocation10 + $0x70] sm:$0xff]  ;;  %v2622_v3 = vadd.f32 %v9928_v8, %v10120_v9  ;;  %v2426_v8 = vadd.f32 %v10115_v53, %v9967_v45 }
 0x46b   : > { %v10342_v60 = vpop.f32.mrf.mxu3  ;;  %3585 = vmatpush.msrb.mxu2 %v3520_v13 }
 0x46c   : > { %v10344_v34 = vpop.f32.mrf.mxu0  ;;  %2778 = vmatmul.f32.gmra.mxu1 %v10077_v33  ;;  %v14317_v63 = vmax.f32 %v10340_v52, 0.0 }
 0x46e   : > { %3005 = vmatmul.f32.gmra.mxu2 %v2833_v49 }
 0x46f   : > { %3231 = vmatmul.f32.gmra.mxu0 %v2833_v49  ;;  %v2835_v49 = vmax.f32 %v2536_v61, 0.0 }
 0x470   : > { %3091 = vmatmul.f32.gmra.mxu3 %v14317_v63 }
 0x471   : > { %v2734_v59 = vpop.f32.mrf.mxu1  ;;  %v10355_v33 = vpop.f32.mrf.mxu2 }
 0x472   : > { %v10357_v36 = vadd.f32 %v2734_v59, %v2622_v3  ;;  %v2539_v59 = vadd.f32 %v10274_v0, %v2426_v8  ;;  %v3567_v8 = vld [vmem:[#allocation10 + $0x1e8] sm:$0xff] }
 0x473   : > { %v10359_v4 = vpop.f32.mrf.mxu3  ;;  %3917 = vmatpush.msra.mxu1 %v3567_v8 }
 0x474   : > { %v10361_v38 = vpop.f32.mrf.mxu0  ;;  %2781 = vmatmul.f32.gmra.mxu1 %v10093_v20  ;;  %v14318_v46 = vmax.f32 %v10357_v36, 0.0  ;;  %v2837_v53 = vmax.f32 %v2539_v59, 0.0  ;;  %v2542_v59 = vadd.f32 %v10291_v6, %v2429_v55  ;;  %v2631_v55 = vadd.f32 %v9992_v30, %v10120_v9  ;;  %v3531_v30 = vld [vmem:[#allocation10 + $0xc8] sm:$0xff] }
 0x476   : > { %3008 = vmatmul.f32.gmra.mxu2 %v2835_v49 }
 0x477   : > { %3234 = vmatmul.f32.gmra.mxu0 %v2835_v49  ;;  %v3535_v49 = vld [vmem:[#allocation10 + $0xe8] sm:$0xff] }
 0x478   : > { %3094 = vmatmul.f32.gmra.mxu3 %v14318_v46  ;;  %3804 = vmatpush.msrb.mxu0 %v3535_v49  ;;  %v3550_v49 = vld [vmem:[#allocation10 + $0x160] sm:$0xff] }
 0x479   : > { %v2737_v13 = vpop.f32.mrf.mxu1  ;;  %v10372_v3 = vpop.f32.mrf.mxu2  ;;  %3699 = vmatpush.msrb.mxu3 %v3550_v49 }
 0x47a   : > { %v10374_v61 = vadd.f32 %v2737_v13, %v2625_v7  ;;  %v3518_v7 = vld [vmem:[#allocation10 + $0x60] sm:$0xff]  ;;  %v2628_v13 = vadd.f32 %v9972_v5, %v10120_v9  ;;  %v2432_v5 = vadd.f32 %v10151_v48, %v9967_v45  ;;  %v3533_v48 = vld [vmem:[#allocation10 + $0xd8] sm:$0xff] }
 0x47b   : > { %v10376_v32 = vpop.f32.mrf.mxu3  ;;  %3586 = vmatpush.msrb.mxu2 %v3518_v7  ;;  %3805 = vmatpush.msrb.mxu0 %v3533_v48  ;;  %v3548_v48 = vld [vmem:[#allocation10 + $0x150] sm:$0xff] }
 0x47c   : > { %v10378_v63 = vpop.f32.mrf.mxu0  ;;  %2784 = vmatmul.f32.gmra.mxu1 %v10109_v39  ;;  %v14321_v0 = vmax.f32 %v10374_v61, 0.0  ;;  %3700 = vmatpush.msrb.mxu3 %v3548_v48  ;;  %v14868_v48 = vld [vmem:[#allocation89_spill] sm:$0xff] }
 0x47d   : > { %14862 = vst [vmem:[#allocation88_spill] sm:$0xff] %v10378_v63  ;;  %3806 = vmatpush.msrb.mxu0 %v3531_v30  ;;  %v3527_v30 = vld [vmem:[#allocation10 + $0xa8] sm:$0xff] }
 0x47e   : > { %3011 = vmatmul.f32.gmra.mxu2 %v2837_v53 }
 0x47f   : > { %3237 = vmatmul.f32.gmra.mxu0 %v2837_v53  ;;  %v2839_v53 = vmax.f32 %v2542_v59, 0.0 }
 0x480   : > { %3097 = vmatmul.f32.gmra.mxu3 %v14321_v0 }
 0x481   : > { %v2740_v46 = vpop.f32.mrf.mxu1  ;;  %v10389_v39 = vpop.f32.mrf.mxu2 }
 0x482   : > { %v10391_v25 = vadd.f32 %v2740_v46, %v2628_v13  ;;  %v2545_v46 = vadd.f32 %v10308_v27, %v2432_v5  ;;  %v2435_v27 = vadd.f32 %v10168_v44, %v9967_v45 }
 0x483   : > { %v10393_v20 = vpop.f32.mrf.mxu3 }
 0x484   : > { %v10395_v8 = vpop.f32.mrf.mxu0  ;;  %2787 = vmatmul.f32.gmra.mxu1 %v10128_v14  ;;  %v14323_v6 = vmax.f32 %v10391_v25, 0.0  ;;  %v2841_v0 = vmax.f32 %v2545_v46, 0.0  ;;  %v2634_v46 = vadd.f32 %v10008_v28, %v10120_v9 }
 0x485   : > { %14863 = vst [vmem:[#allocation90_spill] sm:$0xff] %v10395_v8 }
 0x486   : > { %3014 = vmatmul.f32.gmra.mxu2 %v2839_v53 }
 0x487   : > { %3240 = vmatmul.f32.gmra.mxu0 %v2839_v53  ;;  %v14865_v53 = vmax.f32 %v10136_v2, 0.0  ;;  %v2548_v2 = vadd.f32 %v10325_v17, %v2435_v27  ;;  %v14867_v17 = vmax.f32 %v10153_v26, 0.0  ;;  %v3523_v27 = vld [vmem:[#allocation10 + $0x88] sm:$0xff] }
 0x488   : > { %3100 = vmatmul.f32.gmra.mxu3 %v14323_v6  ;;  %v3565_v6 = vld [vmem:[#allocation10 + $0x1d8] sm:$0xff] }
 0x489   : > { %v2743_v7 = vpop.f32.mrf.mxu1  ;;  %v10406_v13 = vpop.f32.mrf.mxu2  ;;  %3918 = vmatpush.msra.mxu1 %v3565_v6  ;;  %v2843_v28 = vmax.f32 %v2548_v2, 0.0 }
 0x48a   : > { %v10408_v59 = vadd.f32 %v2743_v7, %v2631_v55  ;;  %v3516_v55 = vld [vmem:[#allocation10 + $0x50] sm:$0xff]  ;;  %v3529_v7 = vld [vmem:[#allocation10 + $0xb8] sm:$0xff] }
 0x48b   : > { %v10410_v49 = vpop.f32.mrf.mxu3  ;;  %3587 = vmatpush.msrb.mxu2 %v3516_v55  ;;  %3807 = vmatpush.msrb.mxu0 %v3529_v7  ;;  %v2438_v55 = vadd.f32 %v10185_v24, %v9967_v45 }
 0x48c   : > { %v10412_v14 = vpop.f32.mrf.mxu0  ;;  %3281 = vmatmul.f32.vlgmr.msrb.gmra.mxu1 %v14865_v53  ;;  %v14324_v5 = vmax.f32 %v10408_v59, 0.0 }
 0x48d   : > { %14864 = vst [vmem:[#allocation92_spill] sm:$0xff] %v10412_v14  ;;  %3808 = vmatpush.msrb.mxu0 %v3527_v30  ;;  %v3525_v14 = vld [vmem:[#allocation10 + $0x98] sm:$0xff]  ;;  %v2551_v2 = vadd.f32 %v10342_v60, %v2438_v55  ;;  %v3519_v30 = vld [vmem:[#allocation10 + $0x68] sm:$0xff]  ;;  %v3514_v60 = vld [vmem:[#allocation10 + $0x40] sm:$0xff] }
 0x48e   : > { %3017 = vmatmul.f32.gmra.mxu2 %v2841_v0 }
 0x48f   : > { %3243 = vmatmul.f32.gmra.mxu0 %v2841_v0  ;;  %3588 = vmatpush.msrb.mxu2 %v3514_v60  ;;  %v14872_v60 = vmax.f32 %v10187_v42, 0.0 }
 0x490   : > { %3103 = vmatmul.f32.gmra.mxu3 %v14324_v5  ;;  %3809 = vmatpush.msrb.mxu0 %v3525_v14  ;;  %v2845_v5 = vmax.f32 %v2551_v2, 0.0  ;;  %v14871_v2 = vld [vmem:[#allocation35_spill] sm:$0xff] }
 0x491   : > { %v2746_v44 = vpop.f32.mrf.mxu1  ;;  %v10424_v53 = vpop.f32.mrf.mxu2 }
 0x492   : > { %v10426_v0 = vadd.f32 %v2746_v44, %v2634_v46  ;;  %v3521_v46 = vld [vmem:[#allocation10 + $0x78] sm:$0xff]  ;;  %v2637_v44 = vadd.f32 %v14868_v48, %v10120_v9  ;;  %3810 = vmatpush.msrb.mxu0 %v3523_v27  ;;  %v14870_v48 = vmax.f32 %v10170_v47, 0.0  ;;  %v2441_v27 = vadd.f32 %v10202_v50, %v9967_v45  ;;  %v3546_v50 = vld [vmem:[#allocation10 + $0x140] sm:$0xff] }
 0x493   : > { %v10428_v6 = vpop.f32.mrf.mxu3  ;;  %3701 = vmatpush.msrb.mxu3 %v3546_v50 }
 0x494   : > { %v10430_v8 = vpop.f32.mrf.mxu0  ;;  %3284 = vmatmul.f32.gmra.mxu1 %v14867_v17  ;;  %v14325_v7 = vmax.f32 %v10426_v0, 0.0  ;;  %3811 = vmatpush.msrb.mxu0 %v3521_v46  ;;  %v3515_v46 = vld [vmem:[#allocation10 + $0x48] sm:$0xff]  ;;  %v2554_v47 = vadd.f32 %v10359_v4, %v2441_v27 }
 0x495   : > { %14866 = vst [vmem:[#allocation68_spill] sm:$0xff] %v10430_v8 }
 0x496   : > { %3020 = vmatmul.f32.gmra.mxu2 %v2843_v28  ;;  %3812 = vmatpush.msrb.mxu0 %v3519_v30  ;;  %v3513_v30 = vld [vmem:[#allocation10 + $0x38] sm:$0xff]  ;;  %v2847_v4 = vmax.f32 %v2554_v47, 0.0  ;;  %v14873_v47 = vld [vmem:[#allocation38_spill] sm:$0xff] }
 0x497   : > { %3246 = vmatmul.f32.gmra.mxu0 %v2843_v28  ;;  %v3517_v28 = vld [vmem:[#allocation10 + $0x58] sm:$0xff]  ;;  %v2643_v50 = vadd.f32 %v14873_v47, %v10120_v9 }
 0x498   : > { %3106 = vmatmul.f32.gmra.mxu3 %v14325_v7  ;;  %3813 = vmatpush.msrb.mxu0 %v3517_v28  ;;  %v2640_v7 = vadd.f32 %v14871_v2, %v10120_v9  ;;  %v3510_v28 = vld [vmem:[#allocation10 + $0x20] sm:$0xff]  ;;  %v3508_v2 = vld [vmem:[#allocation10 + $0x10] sm:$0xff] }
 0x499   : > { %v2749_v26 = vpop.f32.mrf.mxu1  ;;  %v10442_v14 = vpop.f32.mrf.mxu2 }
 0x49a   : > { %v10444_v17 = vadd.f32 %v2749_v26, %v2637_v44  ;;  %v3563_v44 = vld [vmem:[#allocation10 + $0x1c8] sm:$0xff]  ;;  %v3512_v26 = vld [vmem:[#allocation10 + $0x30] sm:$0xff]  ;;  %3814 = vmatpush.msrb.mxu0 %v3515_v46  ;;  %v2444_v46 = vadd.f32 %v10219_v35, %v9967_v45 }
 0x49b   : > { %v10446_v24 = vpop.f32.mrf.mxu3  ;;  %3919 = vmatpush.msra.mxu1 %v3563_v44  ;;  %3589 = vmatpush.msrb.mxu2 %v3512_v26  ;;  %v3511_v44 = vld [vmem:[#allocation10 + $0x28] sm:$0xff]  ;;  %v3506_v26 = vld [vmem:[#allocation10] sm:$0xff] }
 0x49c   : > { %v10448_v8 = vpop.f32.mrf.mxu0  ;;  %3287 = vmatmul.f32.gmra.mxu1 %v14870_v48  ;;  %v14326_v55 = vmax.f32 %v10444_v17, 0.0  ;;  %3815 = vmatpush.msrb.mxu0 %v3513_v30  ;;  %v3507_v30 = vld [vmem:[#allocation10 + $0x8] sm:$0xff]  ;;  %v2557_v42 = vadd.f32 %v10376_v32, %v2444_v46  ;;  %v2447_v32 = vadd.f32 %v10236_v16, %v9967_v45  ;;  %v3561_v46 = vld [vmem:[#allocation10 + $0x1b8] sm:$0xff] }
 0x49d   : > { %14869 = vst [vmem:[#allocation72_spill] sm:$0xff] %v10448_v8  ;;  %3590 = vmatpush.msrb.mxu2 %v3510_v28  ;;  %3920 = vmatpush.msra.mxu1 %v3561_v46  ;;  %v14877_v46 = vmax.f32 %v10221_v19, 0.0 }
 0x49e   : > { %3023 = vmatmul.f32.gmra.mxu2 %v2845_v5  ;;  %3816 = vmatpush.msrb.mxu0 %v3511_v44  ;;  %v2560_v47 = vadd.f32 %v10393_v20, %v2447_v32  ;;  %v2450_v20 = vadd.f32 %v10253_v11, %v9967_v45 }
 0x49f   : > { %3249 = vmatmul.f32.gmra.mxu0 %v2845_v5  ;;  %3591 = vmatpush.msrb.mxu2 %v3508_v2  ;;  %v14874_v2 = vmax.f32 %v10204_v40, 0.0 }
 0x4a0   : > { %3109 = vmatmul.f32.gmra.mxu3 %v14326_v55  ;;  %v3509_v55 = vld [vmem:[#allocation10 + $0x18] sm:$0xff] }
 0x4a1   : > { %v2752_v48 = vpop.f32.mrf.mxu1  ;;  %v10460_v8 = vpop.f32.mrf.mxu2  ;;  %3817 = vmatpush.msrb.mxu0 %v3509_v55  ;;  %3592 = vmatpush.msrb.mxu2 %v3506_v26  ;;  %v14875_v26 = vld [vmem:[#allocation41_spill] sm:$0xff] }
 0x4a2   : > { %v10462_v5 = vadd.f32 %v2752_v48, %v2640_v7 }
 0x4a3   : > { %v10464_v63 = vpop.f32.mrf.mxu3  ;;  %3818 = vmatpush.msrb.mxu0 %v3507_v30  ;;  %v2646_v30 = vadd.f32 %v14875_v26, %v10120_v9  ;;  %v10506_v26 = vld [vmem:[#allocation14 + $0x4] ss:$8 sm:$0x3] }
 0x4a4   : > { %v10466_v27 = vpop.f32.mrf.mxu0  ;;  %3290 = vmatmul.f32.gmra.mxu1 %v14872_v60  ;;  %v14328_v7 = vmax.f32 %v10462_v5, 0.0  ;;  %v10511_v32 = vperm.slane %v10506_v26, 0 }
 0x4a6   : > { %3026 = vmatmul.f32.gmra.mxu2 %v2847_v4  ;;  %v2944_v45 = vadd.f32 %v10270_v15, %v10511_v32  ;;  %v14880_v15 = vld [vmem:[#allocation107_spill] sm:$0xff] }
 0x4a7   : > { %3252 = vmatmul.f32.gmra.mxu0 %v2847_v4  ;;  %v2849_v4 = vmax.f32 %v2557_v42, 0.0 }
 0x4a8   : > { %3112 = vmatmul.f32.gmra.mxu3 %v14328_v7 }
 0x4a9   : > { %v2755_v48 = vpop.f32.mrf.mxu1  ;;  %v10478_v28 = vpop.f32.mrf.mxu2 }
 0x4aa   : > { %v10480_v35 = vadd.f32 %v2755_v48, %v2643_v50  ;;  %v3544_v50 = vld [vmem:[#allocation10 + $0x130] sm:$0xff] }
 0x4ab   : > { %v10482_v44 = vpop.f32.mrf.mxu3  ;;  %3702 = vmatpush.msrb.mxu3 %v3544_v50 }
 0x4ac   : > { %v10484_v60 = vpop.f32.mrf.mxu0  ;;  %3293 = vmatmul.f32.gmra.mxu1 %v14874_v2  ;;  %v14327_v55 = vmax.f32 %v10480_v35, 0.0  ;;  %v2851_v2 = vmax.f32 %v2560_v47, 0.0 }
 0x4ae   : > { %3029 = vmatmul.f32.gmra.mxu2 %v2849_v4 }
 0x4af   : > { %3255 = vmatmul.f32.gmra.mxu0 %v2849_v4 }
 0x4b0   : > { %3115 = vmatmul.f32.gmra.mxu3 %v14327_v55 }
 0x4b1   : > { %v2758_v40 = vpop.f32.mrf.mxu1  ;;  %v10496_v42 = vpop.f32.mrf.mxu2 }
 0x4b2   : > { %v10498_v16 = vadd.f32 %v2758_v40, %v2646_v30  ;;  %v14878_v30 = vld [vmem:[#allocation43_spill] sm:$0xff]  ;;  %v2563_v40 = vadd.f32 %v10410_v49, %v2450_v20  ;;  %v14879_v49 = vmax.f32 %v10238_v21, 0.0  ;;  %v2947_v21 = vadd.f32 %v10287_v31, %v10511_v32 }
 0x4b3   : > { %v10500_v48 = vpop.f32.mrf.mxu3  ;;  %v2649_v47 = vadd.f32 %v14878_v30, %v10120_v9  ;;  %v3559_v30 = vld [vmem:[#allocation10 + $0x1a8] sm:$0xff]  ;;  %v2655_v31 = vadd.f32 %v10123_v22, %v10120_v9  ;;  %v14885_v22 = vmax.f32 %v10272_v12, 0.0  ;;  %v3540_v12 = vld [vmem:[#allocation10 + $0x110] sm:$0xff] }
 0x4b4   : > { %v10502_v4 = vpop.f32.mrf.mxu0  ;;  %3296 = vmatmul.f32.gmra.mxu1 %v14877_v46  ;;  %v14329_v50 = vmax.f32 %v10498_v16, 0.0  ;;  %v2853_v7 = vmax.f32 %v2563_v40, 0.0 }
 0x4b5   : > { %14876 = vst [vmem:[#allocation89_spill] sm:$0xff] %v10502_v4  ;;  %3921 = vmatpush.msra.mxu1 %v3559_v30 }
 0x4b6   : > { %3032 = vmatmul.f32.gmra.mxu2 %v2851_v2 }
 0x4b7   : > { %3258 = vmatmul.f32.gmra.mxu0 %v2851_v2  ;;  %v3057_v2 = vadd.f32 %v10428_v6, %v2944_v45  ;;  %v3542_v6 = vld [vmem:[#allocation10 + $0x120] sm:$0xff] }
 0x4b8   : > { %3118 = vmatmul.f32.gmra.mxu3 %v14329_v50 }
 0x4b9   : > { %v2761_v19 = vpop.f32.mrf.mxu1  ;;  %v10519_v46 = vpop.f32.mrf.mxu2  ;;  %3703 = vmatpush.msrb.mxu3 %v3542_v6 }
 0x4ba   : > { %v10523_v11 = vadd.f32 %v2761_v19, %v2649_v47  ;;  %v2652_v47 = vadd.f32 %v14880_v15, %v10120_v9  ;;  %v14881_v19 = vld [vmem:[#allocation98_spill] sm:$0xff]  ;;  %v3060_v15 = vadd.f32 %v10446_v24, %v2947_v21 }
 0x4bb   : > { %v10525_v55 = vpop.f32.mrf.mxu3  ;;  %v3378_v50 = vadd.f32 %v3057_v2, %v14881_v19  ;;  %v14883_v19 = vmax.f32 %v10255_v62, 0.0  ;;  %v2950_v62 = vadd.f32 %v10304_v58, %v10511_v32  ;;  %v2658_v58 = vadd.f32 %v10140_v57, %v10120_v9  ;;  %3704 = vmatpush.msrb.mxu3 %v3540_v12  ;;  %v14892_v12 = vld [vmem:[#allocation104_spill] sm:$0xff] }
 0x4bc   : > { %v10528_v4 = vpop.f32.mrf.mxu0  ;;  %3299 = vmatmul.f32.gmra.mxu1 %v14879_v49  ;;  %v14330_v20 = vmax.f32 %v10523_v11, 0.0 }
 0x4bd   : > { %v10546_v30 = vmax.f32 %v3378_v50, 0.0 }
 0x4be   : > { %3035 = vmatmul.f32.gmra.mxu2 %v2853_v7 }
 0x4bf   : > { %3261 = vmatmul.f32.gmra.mxu0 %v2853_v7  ;;  %14882 = vst [vmem:[#allocation35_spill] sm:$0xff] %v10546_v30 }
 0x4c0   : > { %3121 = vmatmul.f32.gmra.mxu3 %v14330_v20 }
 0x4c1   : > { %v2764_v40 = vpop.f32.mrf.mxu1  ;;  %v10538_v45 = vpop.f32.mrf.mxu2 }
 0x4c2   : > { %v10542_v49 = vadd.f32 %v2764_v40, %v2652_v47  ;;  %v14884_v47 = vld [vmem:[#allocation100_spill] sm:$0xff] }
 0x4c3   : > { %v10544_v7 = vpop.f32.mrf.mxu3  ;;  %v3380_v6 = vadd.f32 %v3060_v15, %v14884_v47 }
 0x4c4   : > { %v10549_v2 = vpop.f32.mrf.mxu0  ;;  %3302 = vmatmul.f32.gmra.mxu1 %v14883_v19  ;;  %v14332_v20 = vmax.f32 %v10542_v49, 0.0  ;;  %v3063_v19 = vadd.f32 %v10464_v63, %v2950_v62  ;;  %v2953_v62 = vadd.f32 %v10321_v43, %v10511_v32  ;;  %v14891_v43 = vld [vmem:[#allocation103_spill] sm:$0xff] }
 0x4c5   : > { %v10574_v15 = vmax.f32 %v3380_v6, 0.0 }
 0x4c6   : > { %3593 = vmatmul.f32.vlgmr.msrb.gmra.mxu2 %v10546_v30 }
 0x4c7   : > { %3819 = vmatmul.f32.vlgmr.msrb.gmra.mxu0 %v10546_v30  ;;  %14886 = vst [vmem:[#allocation38_spill] sm:$0xff] %v10574_v15 }
 0x4c8   : > { %3124 = vmatmul.f32.gmra.mxu3 %v14332_v20  ;;  %v3557_v20 = vld [vmem:[#allocation10 + $0x198] sm:$0xff] }
 0x4c9   : > { %v2767_v24 = vpop.f32.mrf.mxu1  ;;  %v10561_v50 = vpop.f32.mrf.mxu2  ;;  %3922 = vmatpush.msra.mxu1 %v3557_v20  ;;  %v3066_v20 = vadd.f32 %v10482_v44, %v2953_v62 }
 0x4ca   : > { %v10565_v40 = vadd.f32 %v2767_v24, %v2655_v31  ;;  %v14887_v31 = vld [vmem:[#allocation102_spill] sm:$0xff] }
 0x4cb   : > { %v10567_v21 = vpop.f32.mrf.mxu3  ;;  %v3382_v63 = vadd.f32 %v3063_v19, %v14887_v31  ;;  %v14889_v19 = vmax.f32 %v10289_v29, 0.0  ;;  %v2956_v29 = vadd.f32 %v10338_v54, %v10511_v32  ;;  %v14896_v54 = vld [vmem:[#allocation79_spill] sm:$0xff] }
 0x4cc   : > { %v10570_v30 = vpop.f32.mrf.mxu0  ;;  %3305 = vmatmul.f32.gmra.mxu1 %v14885_v22  ;;  %v14334_v47 = vmax.f32 %v10565_v40, 0.0 }
 0x4cd   : > { %v10597_v31 = vmax.f32 %v3382_v63, 0.0 }
 0x4ce   : > { %3596 = vmatmul.f32.gmra.mxu2 %v10574_v15 }
 0x4cf   : > { %3822 = vmatmul.f32.gmra.mxu0 %v10574_v15  ;;  %14890 = vst [vmem:[#allocation43_spill] sm:$0xff] %v10597_v31 }
 0x4d0   : > { %3127 = vmatmul.f32.gmra.mxu3 %v14334_v47 }
 0x4d1   : > { %v2770_v24 = vpop.f32.mrf.mxu1  ;;  %v10584_v6 = vpop.f32.mrf.mxu2 }
 0x4d2   : > { %v10588_v22 = vadd.f32 %v2770_v24, %v2658_v58  ;;  %v2661_v58 = vadd.f32 %v14891_v43, %v10120_v9  ;;  %v3384_v24 = vadd.f32 %v3066_v20, %v14892_v12  ;;  %v14894_v43 = vmax.f32 %v10306_v18, 0.0  ;;  %v3538_v18 = vld [vmem:[#allocation10 + $0x100] sm:$0xff] }
 0x4d3   : > { %v10590_v15 = vpop.f32.mrf.mxu3  ;;  %3705 = vmatpush.msrb.mxu3 %v3538_v18 }
 0x4d4   : > { %v10593_v57 = vpop.f32.mrf.mxu0  ;;  %3308 = vmatmul.f32.gmra.mxu1 %v14889_v19  ;;  %v14336_v47 = vmax.f32 %v10588_v22, 0.0  ;;  %v10620_v20 = vmax.f32 %v3384_v24, 0.0 }
 0x4d5   : > { %14888 = vst [vmem:[#allocation41_spill] sm:$0xff] %v10593_v57 }
 0x4d6   : > { %3599 = vmatmul.f32.gmra.mxu2 %v10597_v31  ;;  %14895 = vst [vmem:[#allocation98_spill] sm:$0xff] %v10620_v20 }
 0x4d7   : > { %3825 = vmatmul.f32.gmra.mxu0 %v10597_v31  ;;  %v3069_v31 = vadd.f32 %v10500_v48, %v2956_v29 }
 0x4d8   : > { %3130 = vmatmul.f32.gmra.mxu3 %v14336_v47  ;;  %v3555_v47 = vld [vmem:[#allocation10 + $0x188] sm:$0xff] }
 0x4d9   : > { %v2773_v44 = vpop.f32.mrf.mxu1  ;;  %v10607_v62 = vpop.f32.mrf.mxu2  ;;  %3923 = vmatpush.msra.mxu1 %v3555_v47 }
 0x4da   : > { %v10611_v63 = vadd.f32 %v2773_v44, %v2661_v58  ;;  %v2664_v58 = vadd.f32 %v14896_v54, %v10120_v9  ;;  %v14897_v44 = vld [vmem:[#allocation30_spill] sm:$0xff] }
 0x4db   : > { %v10613_v19 = vpop.f32.mrf.mxu3  ;;  %v3386_v48 = vadd.f32 %v3069_v31, %v14897_v44  ;;  %v14899_v31 = vmax.f32 %v10323_v51, 0.0  ;;  %v2962_v51 = vadd.f32 %v10372_v3, %v10511_v32  ;;  %v4123_v3 = vld [vmem:[#allocation11 + $0xf0] sm:$0xff] }
 0x4dc   : > { %v10616_v57 = vpop.f32.mrf.mxu0  ;;  %3311 = vmatmul.f32.gmra.mxu1 %v14894_v43  ;;  %v14338_v12 = vmax.f32 %v10611_v63, 0.0  ;;  %v2959_v43 = vadd.f32 %v10355_v33, %v10511_v32  ;;  %v2667_v33 = vadd.f32 %v10191_v23, %v10120_v9  ;;  %v14903_v23 = vmax.f32 %v10340_v52, 0.0  ;;  %4164 = vmatpush.msra.mxu2 %v4123_v3  ;;  %v4155_v52 = vld [vmem:[#allocation11 + $0x1f0] sm:$0xff] }
 0x4dd   : > { %14893 = vst [vmem:[#allocation107_spill] sm:$0xff] %v10616_v57  ;;  %v10643_v44 = vmax.f32 %v3386_v48, 0.0  ;;  %4277 = vmatpush.msra.mxu3 %v4155_v52 }
 0x4de   : > { %3602 = vmatmul.f32.gmra.mxu2 %v10620_v20  ;;  %v3072_v47 = vadd.f32 %v10525_v55, %v2959_v43 }
 0x4df   : > { %3828 = vmatmul.f32.gmra.mxu0 %v10620_v20  ;;  %14900 = vst [vmem:[#allocation102_spill] sm:$0xff] %v10643_v44 }
 0x4e0   : > { %3133 = vmatmul.f32.gmra.mxu3 %v14338_v12 }
 0x4e1   : > { %v2776_v29 = vpop.f32.mrf.mxu1  ;;  %v10630_v24 = vpop.f32.mrf.mxu2 }
 0x4e2   : > { %v10634_v57 = vadd.f32 %v2776_v29, %v2664_v58  ;;  %v14901_v58 = vld [vmem:[#allocation31_spill] sm:$0xff] }
 0x4e3   : > { %v10636_v20 = vpop.f32.mrf.mxu3  ;;  %v3388_v18 = vadd.f32 %v3072_v47, %v14901_v58 }
 0x4e4   : > { %v10639_v54 = vpop.f32.mrf.mxu0  ;;  %3314 = vmatmul.f32.gmra.mxu1 %v14899_v31  ;;  %v14340_v12 = vmax.f32 %v10634_v57, 0.0  ;;  %v3075_v31 = vadd.f32 %v10544_v7, %v2962_v51  ;;  %v14906_v7 = vld [vmem:[#allocation32_spill] sm:$0xff] }
 0x4e5   : > { %14898 = vst [vmem:[#allocation100_spill] sm:$0xff] %v10639_v54  ;;  %v10666_v47 = vmax.f32 %v3388_v18, 0.0 }
 0x4e6   : > { %3605 = vmatmul.f32.gmra.mxu2 %v10643_v44  ;;  %v3390_v51 = vadd.f32 %v3075_v31, %v14906_v7  ;;  %v14907_v31 = vmax.f32 %v10357_v36, 0.0  ;;  %v2968_v36 = vadd.f32 %v10406_v13, %v10511_v32  ;;  %v4121_v13 = vld [vmem:[#allocation11 + $0xe0] sm:$0xff] }
 0x4e7   : > { %3831 = vmatmul.f32.gmra.mxu0 %v10643_v44  ;;  %14904 = vst [vmem:[#allocation104_spill] sm:$0xff] %v10666_v47  ;;  %4165 = vmatpush.msra.mxu2 %v4121_v13  ;;  %v14913_v13 = vmax.f32 %v10391_v25, 0.0 }
 0x4e8   : > { %3136 = vmatmul.f32.gmra.mxu3 %v14340_v12  ;;  %v3553_v12 = vld [vmem:[#allocation10 + $0x178] sm:$0xff]  ;;  %v10689_v3 = vmax.f32 %v3390_v51, 0.0 }
 0x4e9   : > { %v2779_v55 = vpop.f32.mrf.mxu1  ;;  %v10653_v29 = vpop.f32.mrf.mxu2  ;;  %3924 = vmatpush.msra.mxu1 %v3553_v12 }
 0x4ea   : > { %v10657_v48 = vadd.f32 %v2779_v55, %v2667_v33  ;;  %v14905_v33 = vld [vmem:[#allocation105_spill] sm:$0xff]  ;;  %14908 = vst [vmem:[#allocation79_spill] sm:$0xff] %v10689_v3 }
 0x4eb   : > { %v10659_v43 = vpop.f32.mrf.mxu3  ;;  %v2670_v55 = vadd.f32 %v14905_v33, %v10120_v9 }
 0x4ec   : > { %v10662_v44 = vpop.f32.mrf.mxu0  ;;  %3317 = vmatmul.f32.gmra.mxu1 %v14903_v23  ;;  %v14342_v58 = vmax.f32 %v10657_v48, 0.0 }
 0x4ed   : > { %14902 = vst [vmem:[#allocation103_spill] sm:$0xff] %v10662_v44  ;;  %v2965_v44 = vadd.f32 %v10389_v39, %v10511_v32  ;;  %v2673_v39 = vadd.f32 %v10225_v1, %v10120_v9  ;;  %v14910_v1 = vmax.f32 %v10374_v61, 0.0  ;;  %v4153_v61 = vld [vmem:[#allocation11 + $0x1e0] sm:$0xff] }
 0x4ee   : > { %3608 = vmatmul.f32.gmra.mxu2 %v10666_v47  ;;  %4278 = vmatpush.msra.mxu3 %v4153_v61 }
 0x4ef   : > { %3834 = vmatmul.f32.gmra.mxu0 %v10666_v47  ;;  %v3078_v33 = vadd.f32 %v10567_v21, %v2965_v44 }
 0x4f0   : > { %3139 = vmatmul.f32.gmra.mxu3 %v14342_v58 }
 0x4f1   : > { %v2782_v18 = vpop.f32.mrf.mxu1  ;;  %v10676_v23 = vpop.f32.mrf.mxu2 }
 0x4f2   : > { %v10680_v47 = vadd.f32 %v2782_v18, %v2670_v55  ;;  %v14909_v55 = vld [vmem:[#allocation33_spill] sm:$0xff] }
 0x4f3   : > { %v10682_v12 = vpop.f32.mrf.mxu3  ;;  %v3392_v52 = vadd.f32 %v3078_v33, %v14909_v55 }
 0x4f4   : > { %v10685_v54 = vpop.f32.mrf.mxu0  ;;  %3320 = vmatmul.f32.gmra.mxu1 %v14907_v31  ;;  %v14343_v7 = vmax.f32 %v10680_v47, 0.0  ;;  %v3081_v31 = vadd.f32 %v10590_v15, %v2968_v36  ;;  %v14912_v15 = vld [vmem:[#allocation34_spill] sm:$0xff] }
 0x4f5   : > { %v10712_v33 = vmax.f32 %v3392_v52, 0.0 }
 0x4f6   : > { %3611 = vmatmul.f32.gmra.mxu2 %v10689_v3 }
 0x4f7   : > { %3837 = vmatmul.f32.gmra.mxu0 %v10689_v3  ;;  %14911 = vst [vmem:[#allocation30_spill] sm:$0xff] %v10712_v33 }
 0x4f8   : > { %3142 = vmatmul.f32.gmra.mxu3 %v14343_v7  ;;  %v3551_v7 = vld [vmem:[#allocation10 + $0x168] sm:$0xff] }
 0x4f9   : > { %v2785_v21 = vpop.f32.mrf.mxu1  ;;  %v10699_v44 = vpop.f32.mrf.mxu2  ;;  %3925 = vmatpush.msra.mxu1 %v3551_v7 }
 0x4fa   : > { %v10703_v51 = vadd.f32 %v2785_v21, %v2673_v39  ;;  %v2676_v39 = vadd.f32 %v10242_v56, %v10120_v9  ;;  %v3394_v21 = vadd.f32 %v3081_v31, %v14912_v15  ;;  %v10731_v9 = vperm.slane %v10506_v26, 1  ;;  %v14915_v26 = vld [vmem:[#allocation36_spill] sm:$0xff] }
 0x4fb   : > { %v10705_v18 = vpop.f32.mrf.mxu3 }
 0x4fc   : > { %v10708_v58 = vpop.f32.mrf.mxu0  ;;  %3323 = vmatmul.f32.gmra.mxu1 %v14910_v1  ;;  %v14345_v55 = vmax.f32 %v10703_v51, 0.0  ;;  %v2971_v1 = vadd.f32 %v10424_v53, %v10511_v32  ;;  %v10738_v15 = vmax.f32 %v3394_v21, 0.0  ;;  %v3170_v53 = vadd.f32 %v10259_v10, %v10731_v9 }
 0x4fd   : > { %v2974_v21 = vadd.f32 %v10442_v14, %v10511_v32  ;;  %v14918_v10 = vmax.f32 %v10408_v59, 0.0  ;;  %v4119_v14 = vld [vmem:[#allocation11 + $0xd0] sm:$0xff] }
 0x4fe   : > { %3614 = vmatmul.f32.gmra.mxu2 %v10712_v33  ;;  %v3084_v56 = vadd.f32 %v10613_v19, %v2971_v1  ;;  %14914 = vst [vmem:[#allocation31_spill] sm:$0xff] %v10738_v15  ;;  %v4151_v59 = vld [vmem:[#allocation11 + $0x1d0] sm:$0xff] }
 0x4ff   : > { %3840 = vmatmul.f32.gmra.mxu0 %v10712_v33  ;;  %4166 = vmatpush.msra.mxu2 %v4119_v14 }
 0x500   : > { %3145 = vmatmul.f32.gmra.mxu3 %v14345_v55  ;;  %v14916_v55 = vld [vmem:[#allocation37_spill] sm:$0xff] }
 0x501   : > { %v2788_v52 = vpop.f32.mrf.mxu1  ;;  %v10722_v36 = vpop.f32.mrf.mxu2  ;;  %4279 = vmatpush.msra.mxu3 %v4151_v59 }
 0x502   : > { %v10726_v33 = vadd.f32 %v2788_v52, %v2676_v39  ;;  %v3396_v39 = vadd.f32 %v3084_v56, %v14915_v26 }
 0x503   : > { %v10728_v7 = vpop.f32.mrf.mxu3 }
 0x504   : > { %v10734_v31 = vpop.f32.mrf.mxu0  ;;  %3326 = vmatmul.f32.gmra.mxu1 %v14913_v13  ;;  %v14348_v61 = vmax.f32 %v10726_v33, 0.0  ;;  %v3087_v13 = vadd.f32 %v10636_v20, %v2974_v21  ;;  %v10760_v56 = vmax.f32 %v3396_v39, 0.0  ;;  %v14921_v20 = vld [vmem:[#allocation82_spill] sm:$0xff]  ;;  %v2977_v21 = vadd.f32 %v10460_v8, %v10511_v32 }
 0x505   : > { %v3176_v8 = vadd.f32 %v10293_v37, %v10731_v9  ;;  %v14930_v37 = vmax.f32 %v10444_v17, 0.0  ;;  %v4149_v17 = vld [vmem:[#allocation11 + $0x1c0] sm:$0xff] }
 0x506   : > { %3617 = vmatmul.f32.gmra.mxu2 %v10738_v15  ;;  %14919 = vst [vmem:[#allocation32_spill] sm:$0xff] %v10760_v56  ;;  %4280 = vmatpush.msra.mxu3 %v4149_v17 }
 0x507   : > { %3843 = vmatmul.f32.gmra.mxu0 %v10738_v15 }
 0x508   : > { %3148 = vmatmul.f32.gmra.mxu3 %v14348_v61  ;;  %v3549_v61 = vld [vmem:[#allocation10 + $0x158] sm:$0xff] }
 0x509   : > { %v10748_v19 = vpop.f32.mrf.mxu2  ;;  %v3282_v25 = vpop.f32.mrf.mxu1  ;;  %3926 = vmatpush.msra.mxu1 %v3549_v61  ;;  %v3090_v61 = vadd.f32 %v10659_v43, %v2977_v21 }
 0x50a   : > { %v3283_v52 = vadd.f32 %v3282_v25, %v3170_v53  ;;  %v3173_v53 = vadd.f32 %v14921_v20, %v10731_v9 }
 0x50b   : > { %v10752_v1 = vpop.f32.mrf.mxu3 }
 0x50c   : > { %v3379_v15 = vadd.f32 %v3283_v52, %v14916_v55  ;;  %v10756_v3 = vpop.f32.mrf.mxu0  ;;  %3329 = vmatmul.f32.gmra.mxu1 %v14918_v10  ;;  %v14922_v55 = vld [vmem:[#allocation39_spill] sm:$0xff] }
 0x50d   : > { %14917 = vst [vmem:[#allocation105_spill] sm:$0xff] %v10756_v3  ;;  %v3398_v25 = vadd.f32 %v3087_v13, %v14922_v55  ;;  %v14924_v13 = vmax.f32 %v10426_v0, 0.0  ;;  %v2980_v0 = vadd.f32 %v10478_v28, %v10511_v32  ;;  %v4117_v28 = vld [vmem:[#allocation11 + $0xc0] sm:$0xff] }
 0x50e   : > { %v10762_v26 = vmax.f32 %v3379_v15, 0.0  ;;  %3620 = vmatmul.f32.gmra.mxu2 %v10760_v56 }
 0x50f   : > { %3846 = vmatmul.f32.gmra.mxu0 %v10760_v56  ;;  %v14923_v56 = vld [vmem:[#allocation40_spill] sm:$0xff]  ;;  %v10782_v14 = vmax.f32 %v3398_v25, 0.0  ;;  %v3093_v21 = vadd.f32 %v10682_v12, %v2980_v0  ;;  %v14933_v12 = vld [vmem:[#allocation85_spill] sm:$0xff]  ;;  %4167 = vmatpush.msra.mxu2 %v4117_v28 }
 0x510   : > { %14920 = vst [vmem:[#allocation33_spill] sm:$0xff] %v10762_v26  ;;  %3706 = vmatmul.f32.vlgmr.msrb.gmra.mxu3 %v10762_v26 }
 0x511   : > { %v10770_v39 = vpop.f32.mrf.mxu2  ;;  %v3285_v15 = vpop.f32.mrf.mxu1  ;;  %14925 = vst [vmem:[#allocation34_spill] sm:$0xff] %v10782_v14 }
 0x512   : > { %v3286_v52 = vadd.f32 %v3285_v15, %v3173_v53  ;;  %v14927_v53 = vld [vmem:[#allocation42_spill] sm:$0xff] }
 0x513   : > { %v10774_v10 = vpop.f32.mrf.mxu3  ;;  %v3400_v43 = vadd.f32 %v3090_v61, %v14927_v53 }
 0x514   : > { %v3381_v20 = vadd.f32 %v3286_v52, %v14923_v56  ;;  %v10778_v3 = vpop.f32.mrf.mxu0  ;;  %3332 = vmatmul.f32.gmra.mxu1 %v14924_v13  ;;  %v14928_v52 = vld [vmem:[#allocation106_spill] sm:$0xff] }
 0x515   : > { %v10804_v61 = vmax.f32 %v3400_v43, 0.0 }
 0x516   : > { %3623 = vmatmul.f32.gmra.mxu2 %v10782_v14  ;;  %v10785_v55 = vmax.f32 %v3381_v20, 0.0 }
 0x517   : > { %3849 = vmatmul.f32.gmra.mxu0 %v10782_v14  ;;  %14931 = vst [vmem:[#allocation82_spill] sm:$0xff] %v10804_v61  ;;  %v3547_v14 = vld [vmem:[#allocation10 + $0x148] sm:$0xff] }
 0x518   : > { %14926 = vst [vmem:[#allocation36_spill] sm:$0xff] %v10785_v55  ;;  %3709 = vmatmul.f32.gmra.mxu3 %v10785_v55  ;;  %3927 = vmatpush.msra.mxu1 %v3547_v14 }
 0x519   : > { %v10792_v56 = vpop.f32.mrf.mxu2  ;;  %v3288_v59 = vpop.f32.mrf.mxu1 }
 0x51a   : > { %v3289_v25 = vadd.f32 %v3288_v59, %v3176_v8  ;;  %v3179_v8 = vadd.f32 %v14933_v12, %v10731_v9  ;;  %v14934_v59 = vld [vmem:[#allocation44_spill] sm:$0xff] }
 0x51b   : > { %v10796_v15 = vpop.f32.mrf.mxu3  ;;  %v3402_v0 = vadd.f32 %v3093_v21, %v14934_v59  ;;  %v14936_v21 = vmax.f32 %v10462_v5, 0.0  ;;  %v2986_v5 = vadd.f32 %v10519_v46, %v10511_v32  ;;  %v4115_v46 = vld [vmem:[#allocation11 + $0xb0] sm:$0xff] }
 0x51c   : > { %v3383_v20 = vadd.f32 %v3289_v25, %v14928_v52  ;;  %v10800_v13 = vpop.f32.mrf.mxu0  ;;  %3335 = vmatmul.f32.gmra.mxu1 %v14930_v37  ;;  %v2983_v52 = vadd.f32 %v10496_v42, %v10511_v32  ;;  %v3182_v42 = vadd.f32 %v10327_v41, %v10731_v9  ;;  %v14941_v41 = vmax.f32 %v10480_v35, 0.0  ;;  %4168 = vmatpush.msra.mxu2 %v4115_v46  ;;  %v4147_v35 = vld [vmem:[#allocation11 + $0x1b0] sm:$0xff] }
 0x51d   : > { %14929 = vst [vmem:[#allocation37_spill] sm:$0xff] %v10800_v13  ;;  %v10826_v28 = vmax.f32 %v3402_v0, 0.0  ;;  %4281 = vmatpush.msra.mxu3 %v4147_v35 }
 0x51e   : > { %3626 = vmatmul.f32.gmra.mxu2 %v10804_v61  ;;  %v10807_v53 = vmax.f32 %v3383_v20, 0.0  ;;  %v3096_v14 = vadd.f32 %v10705_v18, %v2983_v52  ;;  %v3099_v52 = vadd.f32 %v10728_v7, %v2986_v5  ;;  %v3185_v7 = vadd.f32 %v10344_v34, %v10731_v9 }
 0x51f   : > { %3852 = vmatmul.f32.gmra.mxu0 %v10804_v61  ;;  %v14935_v61 = vld [vmem:[#allocation94_spill] sm:$0xff]  ;;  %14937 = vst [vmem:[#allocation40_spill] sm:$0xff] %v10826_v28 }
 0x520   : > { %14932 = vst [vmem:[#allocation39_spill] sm:$0xff] %v10807_v53  ;;  %3712 = vmatmul.f32.gmra.mxu3 %v10807_v53 }
 0x521   : > { %v10814_v43 = vpop.f32.mrf.mxu2  ;;  %v3291_v25 = vpop.f32.mrf.mxu1 }
 0x522   : > { %v3292_v20 = vadd.f32 %v3291_v25, %v3179_v8  ;;  %v14939_v8 = vld [vmem:[#allocation45_spill] sm:$0xff] }
 0x523   : > { %v10818_v37 = vpop.f32.mrf.mxu3  ;;  %v3404_v18 = vadd.f32 %v3096_v14, %v14939_v8 }
 0x524   : > { %v3385_v12 = vadd.f32 %v3292_v20, %v14935_v61  ;;  %v10822_v13 = vpop.f32.mrf.mxu0  ;;  %3338 = vmatmul.f32.gmra.mxu1 %v14936_v21  ;;  %v14940_v20 = vld [vmem:[#allocation46_spill] sm:$0xff] }
 0x525   : > { %v10848_v14 = vmax.f32 %v3404_v18, 0.0 }
 0x526   : > { %3629 = vmatmul.f32.gmra.mxu2 %v10826_v28  ;;  %v10829_v59 = vmax.f32 %v3385_v12, 0.0 }
 0x527   : > { %3855 = vmatmul.f32.gmra.mxu0 %v10826_v28  ;;  %14942 = vst [vmem:[#allocation106_spill] sm:$0xff] %v10848_v14  ;;  %v3545_v28 = vld [vmem:[#allocation10 + $0x138] sm:$0xff] }
 0x528   : > { %14938 = vst [vmem:[#allocation42_spill] sm:$0xff] %v10829_v59  ;;  %3715 = vmatmul.f32.gmra.mxu3 %v10829_v59  ;;  %3928 = vmatpush.msra.mxu1 %v3545_v28 }
 0x529   : > { %v10836_v61 = vpop.f32.mrf.mxu2  ;;  %v3294_v17 = vpop.f32.mrf.mxu1 }
 0x52a   : > { %v3295_v0 = vadd.f32 %v3294_v17, %v3182_v42  ;;  %v14944_v42 = vld [vmem:[#allocation47_spill] sm:$0xff] }
 0x52b   : > { %v10840_v25 = vpop.f32.mrf.mxu3  ;;  %v3406_v17 = vadd.f32 %v3099_v52, %v14944_v42  ;;  %v14946_v52 = vmax.f32 %v10498_v16, 0.0  ;;  %v2992_v16 = vadd.f32 %v10561_v50, %v10511_v32  ;;  %v4113_v50 = vld [vmem:[#allocation11 + $0xa0] sm:$0xff] }
 0x52c   : > { %v3387_v12 = vadd.f32 %v3295_v0, %v14940_v20  ;;  %v10844_v21 = vpop.f32.mrf.mxu0  ;;  %3341 = vmatmul.f32.gmra.mxu1 %v14941_v41  ;;  %v2989_v0 = vadd.f32 %v10538_v45, %v10511_v32  ;;  %v14945_v41 = vld [vmem:[#allocation48_spill] sm:$0xff]  ;;  %v3188_v45 = vadd.f32 %v10361_v38, %v10731_v9  ;;  %v14952_v38 = vmax.f32 %v10523_v11, 0.0  ;;  %4169 = vmatpush.msra.mxu2 %v4113_v50  ;;  %v4145_v11 = vld [vmem:[#allocation11 + $0x1a0] sm:$0xff] }
 0x52d   : > { %v10870_v46 = vmax.f32 %v3406_v17, 0.0  ;;  %4282 = vmatpush.msra.mxu3 %v4145_v11  ;;  %v14963_v11 = vld [vmem:[#allocation53_spill] sm:$0xff] }
 0x52e   : > { %3632 = vmatmul.f32.gmra.mxu2 %v10848_v14  ;;  %v10851_v8 = vmax.f32 %v3387_v12, 0.0  ;;  %v3102_v28 = vadd.f32 %v10752_v1, %v2989_v0 }
 0x52f   : > { %3858 = vmatmul.f32.gmra.mxu0 %v10848_v14  ;;  %14947 = vst [vmem:[#allocation44_spill] sm:$0xff] %v10870_v46 }
 0x530   : > { %14943 = vst [vmem:[#allocation85_spill] sm:$0xff] %v10851_v8  ;;  %3718 = vmatmul.f32.gmra.mxu3 %v10851_v8 }
 0x531   : > { %v10858_v18 = vpop.f32.mrf.mxu2  ;;  %v3297_v5 = vpop.f32.mrf.mxu1 }
 0x532   : > { %v3298_v20 = vadd.f32 %v3297_v5, %v3185_v7  ;;  %v14949_v7 = vld [vmem:[#allocation49_spill] sm:$0xff] }
 0x533   : > { %v10862_v12 = vpop.f32.mrf.mxu3  ;;  %v3408_v1 = vadd.f32 %v3102_v28, %v14949_v7 }
 0x534   : > { %v3389_v34 = vadd.f32 %v3298_v20, %v14945_v41  ;;  %v10866_v14 = vpop.f32.mrf.mxu0  ;;  %3344 = vmatmul.f32.gmra.mxu1 %v14946_v52  ;;  %v3105_v20 = vadd.f32 %v10774_v10, %v2992_v16  ;;  %v14950_v41 = vld [vmem:[#allocation50_spill] sm:$0xff]  ;;  %v14955_v10 = vld [vmem:[#allocation88_spill] sm:$0xff] }
 0x535   : > { %v10892_v28 = vmax.f32 %v3408_v1, 0.0 }
 0x536   : > { %3635 = vmatmul.f32.gmra.mxu2 %v10870_v46  ;;  %v10873_v42 = vmax.f32 %v3389_v34, 0.0 }
 0x537   : > { %3861 = vmatmul.f32.gmra.mxu0 %v10870_v46  ;;  %14953 = vst [vmem:[#allocation46_spill] sm:$0xff] %v10892_v28  ;;  %v3543_v46 = vld [vmem:[#allocation10 + $0x128] sm:$0xff] }
 0x538   : > { %14948 = vst [vmem:[#allocation94_spill] sm:$0xff] %v10873_v42  ;;  %3721 = vmatmul.f32.gmra.mxu3 %v10873_v42  ;;  %3929 = vmatpush.msra.mxu1 %v3543_v46 }
 0x539   : > { %v10880_v35 = vpop.f32.mrf.mxu2  ;;  %v3300_v5 = vpop.f32.mrf.mxu1 }
 0x53a   : > { %v3301_v17 = vadd.f32 %v3300_v5, %v3188_v45  ;;  %v3191_v45 = vadd.f32 %v14955_v10, %v10731_v9  ;;  %v14956_v5 = vld [vmem:[#allocation51_spill] sm:$0xff] }
 0x53b   : > { %v10884_v0 = vpop.f32.mrf.mxu3  ;;  %v3410_v16 = vadd.f32 %v3105_v20, %v14956_v5  ;;  %v14959_v20 = vmax.f32 %v10542_v49, 0.0  ;;  %v2998_v49 = vadd.f32 %v10607_v62, %v10511_v32  ;;  %v4111_v62 = vld [vmem:[#allocation11 + $0x90] sm:$0xff] }
 0x53c   : > { %v3391_v34 = vadd.f32 %v3301_v17, %v14950_v41  ;;  %v10888_v52 = vpop.f32.mrf.mxu0  ;;  %3347 = vmatmul.f32.gmra.mxu1 %v14952_v38  ;;  %v2995_v41 = vadd.f32 %v10584_v6, %v10511_v32  ;;  %v14962_v6 = vld [vmem:[#allocation90_spill] sm:$0xff]  ;;  %4170 = vmatpush.msra.mxu2 %v4111_v62 }
 0x53d   : > { %14951 = vst [vmem:[#allocation45_spill] sm:$0xff] %v10888_v52  ;;  %v10914_v50 = vmax.f32 %v3410_v16, 0.0 }
 0x53e   : > { %3638 = vmatmul.f32.gmra.mxu2 %v10892_v28  ;;  %v10895_v7 = vmax.f32 %v3391_v34, 0.0  ;;  %v3108_v46 = vadd.f32 %v10796_v15, %v2995_v41 }
 0x53f   : > { %3864 = vmatmul.f32.gmra.mxu0 %v10892_v28  ;;  %v14957_v28 = vld [vmem:[#allocation52_spill] sm:$0xff]  ;;  %14960 = vst [vmem:[#allocation49_spill] sm:$0xff] %v10914_v50 }
 0x540   : > { %14954 = vst [vmem:[#allocation47_spill] sm:$0xff] %v10895_v7  ;;  %3724 = vmatmul.f32.gmra.mxu3 %v10895_v7  ;;  %v3412_v15 = vadd.f32 %v3108_v46, %v14963_v11 }
 0x541   : > { %v10902_v1 = vpop.f32.mrf.mxu2  ;;  %v3303_v17 = vpop.f32.mrf.mxu1 }
 0x542   : > { %v3304_v34 = vadd.f32 %v3303_v17, %v3191_v45  ;;  %v3194_v45 = vadd.f32 %v14962_v6, %v10731_v9  ;;  %v14966_v6 = vmax.f32 %v10565_v40, 0.0  ;;  %v10936_v46 = vmax.f32 %v3412_v15, 0.0  ;;  %v4143_v40 = vld [vmem:[#allocation11 + $0x190] sm:$0xff] }
 0x543   : > { %v10906_v38 = vpop.f32.mrf.mxu3  ;;  %4283 = vmatpush.msra.mxu3 %v4143_v40  ;;  %v14977_v40 = vld [vmem:[#allocation57_spill] sm:$0xff] }
 0x544   : > { %v3393_v10 = vadd.f32 %v3304_v34, %v14957_v28  ;;  %v10910_v52 = vpop.f32.mrf.mxu0  ;;  %3350 = vmatmul.f32.gmra.mxu1 %v14959_v20  ;;  %v3111_v34 = vadd.f32 %v10818_v37, %v2998_v49  ;;  %14967 = vst [vmem:[#allocation51_spill] sm:$0xff] %v10936_v46  ;;  %v14969_v37 = vld [vmem:[#allocation92_spill] sm:$0xff] }
 0x545   : > { %14958 = vst [vmem:[#allocation48_spill] sm:$0xff] %v10910_v52  ;;  %v3541_v52 = vld [vmem:[#allocation10 + $0x118] sm:$0xff] }
 0x546   : > { %3641 = vmatmul.f32.gmra.mxu2 %v10914_v50  ;;  %v10917_v5 = vmax.f32 %v3393_v10, 0.0  ;;  %v14964_v10 = vld [vmem:[#allocation54_spill] sm:$0xff]  ;;  %3930 = vmatpush.msra.mxu1 %v3541_v52 }
 0x547   : > { %3867 = vmatmul.f32.gmra.mxu0 %v10914_v50 }
 0x548   : > { %14961 = vst [vmem:[#allocation50_spill] sm:$0xff] %v10917_v5  ;;  %3727 = vmatmul.f32.gmra.mxu3 %v10917_v5 }
 0x549   : > { %v3306_v28 = vpop.f32.mrf.mxu1  ;;  %v10924_v17 = vpop.f32.mrf.mxu2 }
 0x54a   : > { %v3307_v16 = vadd.f32 %v3306_v28, %v3194_v45  ;;  %v3197_v45 = vadd.f32 %v14969_v37, %v10731_v9  ;;  %v14970_v28 = vld [vmem:[#allocation55_spill] sm:$0xff] }
 0x54b   : > { %v10928_v41 = vpop.f32.mrf.mxu3  ;;  %v3414_v49 = vadd.f32 %v3111_v34, %v14970_v28  ;;  %v14973_v34 = vmax.f32 %v10588_v22, 0.0  ;;  %v3004_v22 = vadd.f32 %v10653_v29, %v10511_v32  ;;  %v4109_v29 = vld [vmem:[#allocation11 + $0x80] sm:$0xff] }
 0x54c   : > { %v3395_v20 = vadd.f32 %v3307_v16, %v14964_v10  ;;  %v10932_v50 = vpop.f32.mrf.mxu0  ;;  %3353 = vmatmul.f32.gmra.mxu1 %v14966_v6  ;;  %v3001_v10 = vadd.f32 %v10630_v24, %v10511_v32  ;;  %v14976_v24 = vld [vmem:[#allocation68_spill] sm:$0xff]  ;;  %4171 = vmatpush.msra.mxu2 %v4109_v29 }
 0x54d   : > { %14965 = vst [vmem:[#allocation88_spill] sm:$0xff] %v10932_v50  ;;  %v10958_v62 = vmax.f32 %v3414_v49, 0.0 }
 0x54e   : > { %3644 = vmatmul.f32.gmra.mxu2 %v10936_v46  ;;  %v10939_v11 = vmax.f32 %v3395_v20, 0.0  ;;  %v3114_v52 = vadd.f32 %v10840_v25, %v3001_v10 }
 0x54f   : > { %3870 = vmatmul.f32.gmra.mxu0 %v10936_v46  ;;  %v14971_v46 = vld [vmem:[#allocation56_spill] sm:$0xff]  ;;  %14974 = vst [vmem:[#allocation53_spill] sm:$0xff] %v10958_v62 }
 0x550   : > { %14968 = vst [vmem:[#allocation52_spill] sm:$0xff] %v10939_v11  ;;  %3730 = vmatmul.f32.gmra.mxu3 %v10939_v11  ;;  %v3416_v25 = vadd.f32 %v3114_v52, %v14977_v40 }
 0x551   : > { %v3309_v15 = vpop.f32.mrf.mxu1  ;;  %v10946_v16 = vpop.f32.mrf.mxu2 }
 0x552   : > { %v3310_v20 = vadd.f32 %v3309_v15, %v3197_v45  ;;  %v3200_v45 = vadd.f32 %v14976_v24, %v10731_v9  ;;  %v14980_v24 = vmax.f32 %v10611_v63, 0.0  ;;  %v10980_v52 = vmax.f32 %v3416_v25, 0.0  ;;  %v4141_v63 = vld [vmem:[#allocation11 + $0x180] sm:$0xff] }
 0x553   : > { %v10950_v6 = vpop.f32.mrf.mxu3  ;;  %4284 = vmatpush.msra.mxu3 %v4141_v63 }
 0x554   : > { %v3397_v37 = vadd.f32 %v3310_v20, %v14971_v46  ;;  %v10954_v50 = vpop.f32.mrf.mxu0  ;;  %3356 = vmatmul.f32.gmra.mxu1 %v14973_v34  ;;  %v3117_v20 = vadd.f32 %v10862_v12, %v3004_v22  ;;  %14981 = vst [vmem:[#allocation55_spill] sm:$0xff] %v10980_v52  ;;  %v14983_v12 = vld [vmem:[#allocation72_spill] sm:$0xff] }
 0x555   : > { %14972 = vst [vmem:[#allocation90_spill] sm:$0xff] %v10954_v50  ;;  %v3539_v50 = vld [vmem:[#allocation10 + $0x108] sm:$0xff] }
 0x556   : > { %3647 = vmatmul.f32.gmra.mxu2 %v10958_v62  ;;  %v10961_v28 = vmax.f32 %v3397_v37, 0.0  ;;  %v14978_v37 = vld [vmem:[#allocation58_spill] sm:$0xff]  ;;  %3931 = vmatpush.msra.mxu1 %v3539_v50 }
 0x557   : > { %3873 = vmatmul.f32.gmra.mxu0 %v10958_v62 }
 0x558   : > { %14975 = vst [vmem:[#allocation54_spill] sm:$0xff] %v10961_v28  ;;  %3733 = vmatmul.f32.gmra.mxu3 %v10961_v28 }
 0x559   : > { %v3312_v46 = vpop.f32.mrf.mxu1  ;;  %v10968_v15 = vpop.f32.mrf.mxu2 }
 0x55a   : > { %v3313_v49 = vadd.f32 %v3312_v46, %v3200_v45  ;;  %v3203_v45 = vadd.f32 %v14983_v12, %v10731_v9  ;;  %v14984_v46 = vld [vmem:[#allocation59_spill] sm:$0xff] }
 0x55b   : > { %v10972_v10 = vpop.f32.mrf.mxu3  ;;  %v3418_v22 = vadd.f32 %v3117_v20, %v14984_v46  ;;  %v14986_v20 = vmax.f32 %v10634_v57, 0.0  ;;  %v3010_v57 = vadd.f32 %v10699_v44, %v10511_v32  ;;  %v4156_v44 = vld [vmem:[#allocation11 + $0x1f8] sm:$0xff] }
 0x55c   : > { %v3399_v34 = vadd.f32 %v3313_v49, %v14978_v37  ;;  %v10976_v62 = vpop.f32.mrf.mxu0  ;;  %3359 = vmatmul.f32.gmra.mxu1 %v14980_v24  ;;  %v3007_v37 = vadd.f32 %v10676_v23, %v10511_v32  ;;  %v3206_v23 = vadd.f32 %v10466_v27, %v10731_v9  ;;  %v14991_v27 = vmax.f32 %v10657_v48, 0.0  ;;  %v4139_v48 = vld [vmem:[#allocation11 + $0x170] sm:$0xff] }
 0x55d   : > { %14979 = vst [vmem:[#allocation92_spill] sm:$0xff] %v10976_v62  ;;  %v11002_v29 = vmax.f32 %v3418_v22, 0.0  ;;  %4503 = vmatpush.msrb.mxu1 %v4156_v44  ;;  %4285 = vmatpush.msra.mxu3 %v4139_v48  ;;  %v14995_v44 = vld [vmem:[#allocation63_spill] sm:$0xff]  ;;  %v15001_v48 = vld [vmem:[#allocation64_spill] sm:$0xff] }
 0x55e   : > { %3650 = vmatmul.f32.gmra.mxu2 %v10980_v52  ;;  %v10983_v40 = vmax.f32 %v3399_v34, 0.0  ;;  %v3120_v50 = vadd.f32 %v10884_v0, %v3007_v37  ;;  %v3123_v37 = vadd.f32 %v10906_v38, %v3010_v57  ;;  %v4107_v38 = vld [vmem:[#allocation11 + $0x70] sm:$0xff] }
 0x55f   : > { %3876 = vmatmul.f32.gmra.mxu0 %v10980_v52  ;;  %v14985_v52 = vld [vmem:[#allocation60_spill] sm:$0xff]  ;;  %14987 = vst [vmem:[#allocation68_spill] sm:$0xff] %v11002_v29  ;;  %4172 = vmatpush.msra.mxu2 %v4107_v38 }
 0x560   : > { %14982 = vst [vmem:[#allocation56_spill] sm:$0xff] %v10983_v40  ;;  %3736 = vmatmul.f32.gmra.mxu3 %v10983_v40 }
 0x561   : > { %v3315_v25 = vpop.f32.mrf.mxu1  ;;  %v10990_v49 = vpop.f32.mrf.mxu2 }
 0x562   : > { %v3316_v34 = vadd.f32 %v3315_v25, %v3203_v45  ;;  %v14989_v45 = vld [vmem:[#allocation109_spill] sm:$0xff] }
 0x563   : > { %v10994_v24 = vpop.f32.mrf.mxu3  ;;  %v3420_v0 = vadd.f32 %v3120_v50, %v14989_v45  ;;  %v4124_v45 = vld [vmem:[#allocation11 + $0xf8] sm:$0xff] }
 0x564   : > { %v3401_v12 = vadd.f32 %v3316_v34, %v14985_v52  ;;  %v10998_v62 = vpop.f32.mrf.mxu0  ;;  %3362 = vmatmul.f32.gmra.mxu1 %v14986_v20  ;;  %v14990_v34 = vld [vmem:[#allocation61_spill] sm:$0xff]  ;;  %4390 = vmatpush.msra.mxu0 %v4124_v45 }
 0x565   : > { %v11024_v50 = vmax.f32 %v3420_v0, 0.0 }
 0x566   : > { %3653 = vmatmul.f32.gmra.mxu2 %v11002_v29  ;;  %v11005_v46 = vmax.f32 %v3401_v12, 0.0 }
 0x567   : > { %3879 = vmatmul.f32.gmra.mxu0 %v11002_v29  ;;  %14992 = vst [vmem:[#allocation58_spill] sm:$0xff] %v11024_v50 }
 0x568   : > { %14988 = vst [vmem:[#allocation57_spill] sm:$0xff] %v11005_v46  ;;  %3739 = vmatmul.f32.gmra.mxu3 %v11005_v46 }
 0x569   : > { %v3318_v52 = vpop.f32.mrf.mxu1  ;;  %v11012_v63 = vpop.f32.mrf.mxu2 }
 0x56a   : > { %v3319_v22 = vadd.f32 %v3318_v52, %v3206_v23  ;;  %v3209_v23 = vadd.f32 %v10484_v60, %v10731_v9  ;;  %v14994_v52 = vld [vmem:[#allocation62_spill] sm:$0xff] }
 0x56b   : > { %v11016_v25 = vpop.f32.mrf.mxu3  ;;  %v3422_v57 = vadd.f32 %v3123_v37, %v14994_v52  ;;  %v14997_v37 = vmax.f32 %v10680_v47, 0.0  ;;  %v3016_v47 = vadd.f32 %v10748_v19, %v10511_v32  ;;  %v4154_v19 = vld [vmem:[#allocation11 + $0x1e8] sm:$0xff] }
 0x56c   : > { %v3403_v12 = vadd.f32 %v3319_v22, %v14990_v34  ;;  %v11020_v20 = vpop.f32.mrf.mxu0  ;;  %3365 = vmatmul.f32.gmra.mxu1 %v14991_v27  ;;  %v3013_v34 = vadd.f32 %v10722_v36, %v10511_v32  ;;  %v15000_v36 = vld [vmem:[#allocation89_spill] sm:$0xff] }
 0x56d   : > { %v11046_v38 = vmax.f32 %v3422_v57, 0.0  ;;  %4504 = vmatpush.msrb.mxu1 %v4154_v19  ;;  %v15008_v19 = vld [vmem:[#allocation67_spill] sm:$0xff] }
 0x56e   : > { %3656 = vmatmul.f32.gmra.mxu2 %v11024_v50  ;;  %v11027_v29 = vmax.f32 %v3403_v12, 0.0  ;;  %v3126_v45 = vadd.f32 %v10928_v41, %v3013_v34 }
 0x56f   : > { %3882 = vmatmul.f32.gmra.mxu0 %v11024_v50  ;;  %14998 = vst [vmem:[#allocation60_spill] sm:$0xff] %v11046_v38 }
 0x570   : > { %14993 = vst [vmem:[#allocation72_spill] sm:$0xff] %v11027_v29  ;;  %3742 = vmatmul.f32.gmra.mxu3 %v11027_v29  ;;  %v3424_v41 = vadd.f32 %v3126_v45, %v15001_v48  ;;  %v4122_v45 = vld [vmem:[#allocation11 + $0xe8] sm:$0xff] }
 0x571   : > { %v3321_v0 = vpop.f32.mrf.mxu1  ;;  %v11034_v22 = vpop.f32.mrf.mxu2  ;;  %4391 = vmatpush.msra.mxu0 %v4122_v45 }
 0x572   : > { %v3322_v12 = vadd.f32 %v3321_v0, %v3209_v23  ;;  %v3212_v23 = vadd.f32 %v15000_v36, %v10731_v9  ;;  %v11066_v36 = vmax.f32 %v3424_v41, 0.0  ;;  %v4137_v41 = vld [vmem:[#allocation11 + $0x160] sm:$0xff] }
 0x573   : > { %v11038_v27 = vpop.f32.mrf.mxu3  ;;  %4286 = vmatpush.msra.mxu3 %v4137_v41 }
 0x574   : > { %v3405_v60 = vadd.f32 %v3322_v12, %v14995_v44  ;;  %v11042_v50 = vpop.f32.mrf.mxu0  ;;  %3368 = vmatmul.f32.gmra.mxu1 %v14997_v37  ;;  %v3129_v44 = vadd.f32 %v10950_v6, %v3016_v47  ;;  %15004 = vst [vmem:[#allocation61_spill] sm:$0xff] %v11066_v36  ;;  %v4105_v6 = vld [vmem:[#allocation11 + $0x60] sm:$0xff] }
 0x575   : > { %14996 = vst [vmem:[#allocation59_spill] sm:$0xff] %v11042_v50  ;;  %4173 = vmatpush.msra.mxu2 %v4105_v6 }
 0x576   : > { %3659 = vmatmul.f32.gmra.mxu2 %v11046_v38  ;;  %v11049_v52 = vmax.f32 %v3405_v60, 0.0  ;;  %v15002_v60 = vld [vmem:[#allocation65_spill] sm:$0xff] }
 0x577   : > { %3885 = vmatmul.f32.gmra.mxu0 %v11046_v38  ;;  %v15003_v38 = vmax.f32 %v10703_v51, 0.0  ;;  %v15007_v51 = vld [vmem:[#allocation66_spill] sm:$0xff] }
 0x578   : > { %14999 = vst [vmem:[#allocation109_spill] sm:$0xff] %v11049_v52  ;;  %3745 = vmatmul.f32.gmra.mxu3 %v11049_v52 }
 0x579   : > { %v3324_v0 = vpop.f32.mrf.mxu1  ;;  %v11056_v34 = vpop.f32.mrf.mxu2 }
 0x57a   : > { %v3325_v57 = vadd.f32 %v3324_v0, %v3212_v23  ;;  %v3215_v23 = vadd.f32 %v10528_v4, %v10731_v9 }
 0x57b   : > { %v11060_v12 = vpop.f32.mrf.mxu3 }
 0x57c   : > { %v3407_v37 = vadd.f32 %v3325_v57, %v15002_v60  ;;  %3371 = vmatmul.f32.gmra.mxu1 %v15003_v38  ;;  %v11068_v48 = vpop.f32.mrf.mxu0  ;;  %v3426_v38 = vadd.f32 %v3129_v44, %v15007_v51  ;;  %v3019_v57 = vadd.f32 %v10770_v39, %v10511_v32  ;;  %v15009_v44 = vmax.f32 %v10726_v33, 0.0 }
 0x57d   : > { %15005 = vst [vmem:[#allocation62_spill] sm:$0xff] %v11068_v48  ;;  %v3218_v39 = vadd.f32 %v10549_v2, %v10731_v9 }
 0x57e   : > { %3662 = vmatmul.f32.gmra.mxu2 %v11066_v36  ;;  %v11071_v50 = vmax.f32 %v3407_v37, 0.0  ;;  %v3132_v45 = vadd.f32 %v10972_v10, %v3019_v57  ;;  %v11088_v51 = vmax.f32 %v3426_v38, 0.0  ;;  %v3022_v38 = vadd.f32 %v10792_v56, %v10511_v32  ;;  %v4103_v56 = vld [vmem:[#allocation11 + $0x50] sm:$0xff] }
 0x57f   : > { %3888 = vmatmul.f32.gmra.mxu0 %v11066_v36  ;;  %v4152_v36 = vld [vmem:[#allocation11 + $0x1d8] sm:$0xff]  ;;  %4174 = vmatpush.msra.mxu2 %v4103_v56  ;;  %v15019_v56 = vld [vmem:[#allocation71_spill] sm:$0xff] }
 0x580   : > { %15006 = vst [vmem:[#allocation63_spill] sm:$0xff] %v11071_v50  ;;  %3748 = vmatmul.f32.gmra.mxu3 %v11071_v50  ;;  %4505 = vmatpush.msrb.mxu1 %v4152_v36  ;;  %v3025_v36 = vadd.f32 %v10814_v43, %v10511_v32 }
 0x581   : > { %v3327_v0 = vpop.f32.mrf.mxu1  ;;  %v11078_v47 = vpop.f32.mrf.mxu2  ;;  %15010 = vst [vmem:[#allocation89_spill] sm:$0xff] %v11088_v51 }
 0x582   : > { %v3328_v60 = vadd.f32 %v3327_v0, %v3215_v23  ;;  %v15012_v23 = vld [vmem:[#allocation96_spill] sm:$0xff] }
 0x583   : > { %v11082_v37 = vpop.f32.mrf.mxu3  ;;  %v3428_v41 = vadd.f32 %v3132_v45, %v15012_v23  ;;  %v4118_v23 = vld [vmem:[#allocation11 + $0xc8] sm:$0xff] }
 0x584   : > { %v3409_v4 = vadd.f32 %v3328_v60, %v15008_v19  ;;  %3374 = vmatmul.f32.gmra.mxu1 %v15009_v44  ;;  %v11097_v0 = vpop.f32.mrf.mxu0  ;;  %v4120_v19 = vld [vmem:[#allocation11 + $0xd8] sm:$0xff] }
 0x585   : > { %15013 = vst [vmem:[#allocation65_spill] sm:$0xff] %v11097_v0  ;;  %v15014_v44 = vld [vmem:[#allocation69_spill] sm:$0xff]  ;;  %v11109_v45 = vmax.f32 %v3428_v41, 0.0  ;;  %4392 = vmatpush.msra.mxu0 %v4120_v19  ;;  %v4135_v41 = vld [vmem:[#allocation11 + $0x150] sm:$0xff] }
 0x586   : > { %3665 = vmatmul.f32.gmra.mxu2 %v11088_v51  ;;  %v11091_v6 = vmax.f32 %v3409_v4, 0.0  ;;  %v3135_v4 = vadd.f32 %v10994_v24, %v3022_v38  ;;  %v3221_v24 = vadd.f32 %v10570_v30, %v10731_v9  ;;  %4287 = vmatpush.msra.mxu3 %v4135_v41  ;;  %v4112_v30 = vld [vmem:[#allocation11 + $0x98] sm:$0xff] }
 0x587   : > { %3891 = vmatmul.f32.gmra.mxu0 %v11088_v51  ;;  %15015 = vst [vmem:[#allocation66_spill] sm:$0xff] %v11109_v45  ;;  %v15022_v41 = vld [vmem:[#allocation41_spill] sm:$0xff] }
 0x588   : > { %15011 = vst [vmem:[#allocation64_spill] sm:$0xff] %v11091_v6  ;;  %3751 = vmatmul.f32.gmra.mxu3 %v11091_v6  ;;  %4393 = vmatpush.msra.mxu0 %v4118_v23 }
 0x589   : > { %v3330_v10 = vpop.f32.mrf.mxu1  ;;  %v11100_v33 = vpop.f32.mrf.mxu2 }
 0x58a   : > { %v3331_v57 = vadd.f32 %v3330_v10, %v3218_v39  ;;  %v4116_v39 = vld [vmem:[#allocation11 + $0xb8] sm:$0xff]  ;;  %v15017_v10 = vld [vmem:[#allocation70_spill] sm:$0xff] }
 0x58b   : > { %v11104_v60 = vpop.f32.mrf.mxu3  ;;  %v3430_v38 = vadd.f32 %v3135_v4, %v15017_v10  ;;  %4394 = vmatpush.msra.mxu0 %v4116_v39  ;;  %v3138_v4 = vadd.f32 %v11016_v25, %v3025_v36  ;;  %v4110_v39 = vld [vmem:[#allocation11 + $0x88] sm:$0xff] }
 0x58c   : > { %v3411_v2 = vadd.f32 %v3331_v57, %v15014_v44  ;;  %3932 = vmatmul.f32.vlgmr.msra.gmra.mxu1 %v10762_v26  ;;  %v4114_v44 = vld [vmem:[#allocation11 + $0xa8] sm:$0xff] }
 0x58d   : > { %4395 = vmatpush.msra.mxu0 %v4114_v44  ;;  %v11130_v26 = vmax.f32 %v3430_v38, 0.0  ;;  %v15023_v44 = vld [vmem:[#allocation73_spill] sm:$0xff] }
 0x58e   : > { %3668 = vmatmul.f32.gmra.mxu2 %v11109_v45  ;;  %v11112_v51 = vmax.f32 %v3411_v2, 0.0  ;;  %v11123_v2 = vpop.f32.mrf.mxu0  ;;  %v3432_v25 = vadd.f32 %v3138_v4, %v15023_v44  ;;  %v15025_v4 = vld [vmem:[#allocation74_spill] sm:$0xff] }
 0x58f   : > { %3894 = vmatmul.f32.gmra.mxu0 %v11109_v45  ;;  %15018 = vst [vmem:[#allocation96_spill] sm:$0xff] %v11123_v2  ;;  %v4101_v2 = vld [vmem:[#allocation11 + $0x40] sm:$0xff] }
 0x590   : > { %15016 = vst [vmem:[#allocation67_spill] sm:$0xff] %v11112_v51  ;;  %3754 = vmatmul.f32.gmra.mxu3 %v11112_v51  ;;  %4396 = vmatpush.msra.mxu0 %v4112_v30  ;;  %v3028_v30 = vadd.f32 %v10836_v61, %v10511_v32 }
 0x591   : > { %v3333_v57 = vpop.f32.mrf.mxu1  ;;  %v11119_v19 = vpop.f32.mrf.mxu2  ;;  %15020 = vst [vmem:[#allocation69_spill] sm:$0xff] %v11130_v26  ;;  %4175 = vmatpush.msra.mxu2 %v4101_v2  ;;  %v15030_v2 = vld [vmem:[#allocation76_spill] sm:$0xff] }
 0x592   : > { %v3334_v23 = vadd.f32 %v3333_v57, %v3221_v24  ;;  %v4108_v24 = vld [vmem:[#allocation11 + $0x78] sm:$0xff]  ;;  %v3224_v57 = vadd.f32 %v15022_v41, %v10731_v9  ;;  %4397 = vmatpush.msra.mxu0 %v4110_v39  ;;  %v11151_v39 = vmax.f32 %v3432_v25, 0.0 }
 0x593   : > { %v11125_v45 = vpop.f32.mrf.mxu3  ;;  %v4100_v25 = vld [vmem:[#allocation11 + $0x38] sm:$0xff] }
 0x594   : > { %v3413_v10 = vadd.f32 %v3334_v23, %v15019_v56  ;;  %3935 = vmatmul.f32.gmra.mxu1 %v10785_v55  ;;  %v4106_v23 = vld [vmem:[#allocation11 + $0x68] sm:$0xff]  ;;  %4398 = vmatpush.msra.mxu0 %v4108_v24  ;;  %v3141_v55 = vadd.f32 %v11038_v27, %v3028_v30  ;;  %15026 = vst [vmem:[#allocation41_spill] sm:$0xff] %v11151_v39  ;;  %v4099_v27 = vld [vmem:[#allocation11 + $0x30] sm:$0xff] }
 0x595   : > { %v4150_v24 = vld [vmem:[#allocation11 + $0x1c8] sm:$0xff]  ;;  %4176 = vmatpush.msra.mxu2 %v4099_v27 }
 0x596   : > { %3671 = vmatmul.f32.gmra.mxu2 %v11130_v26  ;;  %v11133_v43 = vmax.f32 %v3413_v10, 0.0  ;;  %v11147_v41 = vpop.f32.mrf.mxu0  ;;  %4399 = vmatpush.msra.mxu0 %v4106_v23  ;;  %v4133_v23 = vld [vmem:[#allocation11 + $0x140] sm:$0xff] }
 0x597   : > { %3897 = vmatmul.f32.gmra.mxu0 %v11130_v26  ;;  %v4104_v26 = vld [vmem:[#allocation11 + $0x58] sm:$0xff]  ;;  %15024 = vst [vmem:[#allocation71_spill] sm:$0xff] %v11147_v41  ;;  %4506 = vmatpush.msrb.mxu1 %v4150_v24  ;;  %v3031_v24 = vadd.f32 %v10858_v18, %v10511_v32  ;;  %v4098_v41 = vld [vmem:[#allocation11 + $0x28] sm:$0xff]  ;;  %v4093_v18 = vld [vmem:[#allocation11] sm:$0xff] }
 0x598   : > { %15021 = vst [vmem:[#allocation70_spill] sm:$0xff] %v11133_v43  ;;  %3757 = vmatmul.f32.gmra.mxu3 %v11133_v43  ;;  %4400 = vmatpush.msra.mxu0 %v4104_v26  ;;  %v4097_v26 = vld [vmem:[#allocation11 + $0x20] sm:$0xff] }
 0x599   : > { %v3336_v36 = vpop.f32.mrf.mxu1  ;;  %v11140_v38 = vpop.f32.mrf.mxu2  ;;  %4288 = vmatpush.msra.mxu3 %v4133_v23  ;;  %4177 = vmatpush.msra.mxu2 %v4097_v26  ;;  %v4096_v23 = vld [vmem:[#allocation11 + $0x18] sm:$0xff]  ;;  %v3034_v26 = vadd.f32 %v10880_v35, %v10511_v32  ;;  %v15038_v35 = vld [vmem:[#allocation103_spill] sm:$0xff] }
 0x59a   : > { %v3337_v56 = vadd.f32 %v3336_v36, %v3224_v57  ;;  %v4102_v57 = vld [vmem:[#allocation11 + $0x48] sm:$0xff] }
 0x59b   : > { %v11144_v10 = vpop.f32.mrf.mxu3  ;;  %v15028_v36 = vld [vmem:[#allocation107_spill] sm:$0xff]  ;;  %4401 = vmatpush.msra.mxu0 %v4102_v57 }
 0x59c   : > { %v3415_v44 = vadd.f32 %v3337_v56, %v15025_v4  ;;  %3938 = vmatmul.f32.gmra.mxu1 %v10807_v53  ;;  %v3227_v30 = vadd.f32 %v15028_v36, %v10731_v9  ;;  %v15029_v56 = vld [vmem:[#allocation75_spill] sm:$0xff] }
 0x59d   : > { %v3434_v4 = vadd.f32 %v3141_v55, %v15029_v56  ;;  %4402 = vmatpush.msra.mxu0 %v4100_v25  ;;  %v3144_v55 = vadd.f32 %v11060_v12, %v3031_v24  ;;  %v4095_v57 = vld [vmem:[#allocation11 + $0x10] sm:$0xff]  ;;  %v4094_v12 = vld [vmem:[#allocation11 + $0x8] sm:$0xff] }
 0x59e   : > { %3674 = vmatmul.f32.gmra.mxu2 %v11151_v39  ;;  %v11154_v61 = vmax.f32 %v3415_v44, 0.0  ;;  %v11172_v48 = vpop.f32.mrf.mxu0 }
 0x59f   : > { %3900 = vmatmul.f32.gmra.mxu0 %v11151_v39  ;;  %v11170_v0 = vmax.f32 %v3434_v4, 0.0  ;;  %4178 = vmatpush.msra.mxu2 %v4095_v57  ;;  %v15035_v57 = vld [vmem:[#allocation78_spill] sm:$0xff] }
 0x5a0   : > { %15027 = vst [vmem:[#allocation73_spill] sm:$0xff] %v11154_v61  ;;  %3760 = vmatmul.f32.gmra.mxu3 %v11154_v61  ;;  %4403 = vmatpush.msra.mxu0 %v4098_v41 }
 0x5a1   : > { %v3339_v53 = vpop.f32.mrf.mxu1  ;;  %v11161_v44 = vpop.f32.mrf.mxu2  ;;  %15031 = vst [vmem:[#allocation74_spill] sm:$0xff] %v11170_v0  ;;  %4179 = vmatpush.msra.mxu2 %v4093_v18  ;;  %v4148_v18 = vld [vmem:[#allocation11 + $0x1b8] sm:$0xff] }
 0x5a2   : > { %v3340_v39 = vadd.f32 %v3339_v53, %v3227_v30  ;;  %v15034_v30 = vld [vmem:[#allocation77_spill] sm:$0xff]  ;;  %4404 = vmatpush.msra.mxu0 %v4096_v23  ;;  %4507 = vmatpush.msrb.mxu1 %v4148_v18 }
 0x5a3   : > { %v11165_v36 = vpop.f32.mrf.mxu3  ;;  %v3436_v4 = vadd.f32 %v3144_v55, %v15034_v30 }
 0x5a4   : > { %v3417_v56 = vadd.f32 %v3340_v39, %v15030_v2  ;;  %3941 = vmatmul.f32.gmra.mxu1 %v10829_v59  ;;  %v15033_v39 = vld [vmem:[#allocation100_spill] sm:$0xff]  ;;  %4405 = vmatpush.msra.mxu0 %v4094_v12  ;;  %v3233_v12 = vadd.f32 %v15038_v35, %v10731_v9  ;;  %v15040_v35 = vld [vmem:[#allocation81_spill] sm:$0xff] }
 0x5a5   : > { %v3230_v27 = vadd.f32 %v15033_v39, %v10731_v9  ;;  %v11191_v55 = vmax.f32 %v3436_v4, 0.0 }
 0x5a6   : > { %3677 = vmatmul.f32.gmra.mxu2 %v11170_v0  ;;  %v11175_v53 = vmax.f32 %v3417_v56, 0.0  ;;  %v3147_v56 = vadd.f32 %v11082_v37, %v3034_v26  ;;  %v11200_v37 = vpop.f32.mrf.mxu0 }
 0x5a7   : > { %3903 = vmatmul.f32.gmra.mxu0 %v11170_v0  ;;  %15036 = vst [vmem:[#allocation75_spill] sm:$0xff] %v11191_v55  ;;  %v4146_v0 = vld [vmem:[#allocation11 + $0x1a8] sm:$0xff] }
 0x5a8   : > { %15032 = vst [vmem:[#allocation107_spill] sm:$0xff] %v11175_v53  ;;  %3763 = vmatmul.f32.gmra.mxu3 %v11175_v53  ;;  %4508 = vmatpush.msrb.mxu1 %v4146_v0 }
 0x5a9   : > { %v3342_v41 = vpop.f32.mrf.mxu1  ;;  %v11182_v25 = vpop.f32.mrf.mxu2 }
 0x5aa   : > { %v3343_v24 = vadd.f32 %v3342_v41, %v3230_v27  ;;  %v15039_v27 = vld [vmem:[#allocation80_spill] sm:$0xff] }
 0x5ab   : > { %v11186_v2 = vpop.f32.mrf.mxu3  ;;  %v3438_v30 = vadd.f32 %v3147_v56, %v15039_v27  ;;  %v4131_v41 = vld [vmem:[#allocation11 + $0x130] sm:$0xff] }
 0x5ac   : > { %v3419_v39 = vadd.f32 %v3343_v24, %v15035_v57  ;;  %3944 = vmatmul.f32.gmra.mxu1 %v10851_v8  ;;  %4289 = vmatpush.msra.mxu3 %v4131_v41  ;;  %v3037_v24 = vadd.f32 %v10902_v1, %v10511_v32  ;;  %v3236_v32 = vadd.f32 %v10685_v54, %v10731_v9  ;;  %v15043_v1 = vld [vmem:[#allocation83_spill] sm:$0xff] }
 0x5ad   : > { %v11212_v56 = vmax.f32 %v3438_v30, 0.0  ;;  %v15052_v8 = vld [vmem:[#allocation91_spill] sm:$0xff] }
 0x5ae   : > { %3680 = vmatmul.f32.gmra.mxu2 %v11191_v55  ;;  %v11194_v23 = vmax.f32 %v3419_v39, 0.0  ;;  %v3150_v18 = vadd.f32 %v11104_v60, %v3037_v24  ;;  %v11222_v60 = vld [vmem:[#allocation14 + $0x5] ss:$8 sm:$0x3]  ;;  %v11229_v24 = vpop.f32.mrf.mxu0 }
 0x5af   : > { %3906 = vmatmul.f32.gmra.mxu0 %v11191_v55  ;;  %15041 = vst [vmem:[#allocation100_spill] sm:$0xff] %v11212_v56  ;;  %v11227_v30 = vperm.slane %v11222_v60, 0 }
 0x5b0   : > { %15037 = vst [vmem:[#allocation76_spill] sm:$0xff] %v11194_v23  ;;  %3766 = vmatmul.f32.gmra.mxu3 %v11194_v23 }
 0x5b1   : > { %v3345_v4 = vpop.f32.mrf.mxu1  ;;  %v11203_v26 = vpop.f32.mrf.mxu2 }
 0x5b2   : > { %v3346_v57 = vadd.f32 %v3345_v4, %v3233_v12  ;;  %v3440_v12 = vadd.f32 %v3150_v18, %v15043_v1  ;;  %v3595_v18 = vadd.f32 %v10924_v17, %v11227_v30 }
 0x5b3   : > { %v11207_v39 = vpop.f32.mrf.mxu3 }
 0x5b4   : > { %v3421_v55 = vadd.f32 %v3346_v57, %v15040_v35  ;;  %3947 = vmatmul.f32.gmra.mxu1 %v10873_v42  ;;  %v15044_v35 = vld [vmem:[#allocation84_spill] sm:$0xff]  ;;  %v11235_v54 = vmax.f32 %v3440_v12, 0.0  ;;  %v4129_v12 = vld [vmem:[#allocation11 + $0x120] sm:$0xff] }
 0x5b5   : > { %4290 = vmatpush.msra.mxu3 %v4129_v12 }
 0x5b6   : > { %3683 = vmatmul.f32.gmra.mxu2 %v11212_v56  ;;  %v11215_v27 = vmax.f32 %v3421_v55, 0.0  ;;  %15045 = vst [vmem:[#allocation78_spill] sm:$0xff] %v11235_v54  ;;  %v11251_v42 = vpop.f32.mrf.mxu0 }
 0x5b7   : > { %3909 = vmatmul.f32.gmra.mxu0 %v11212_v56 }
 0x5b8   : > { %15042 = vst [vmem:[#allocation77_spill] sm:$0xff] %v11215_v27  ;;  %3769 = vmatmul.f32.gmra.mxu3 %v11215_v27 }
 0x5b9   : > { %v3348_v41 = vpop.f32.mrf.mxu1  ;;  %v11224_v4 = vpop.f32.mrf.mxu2 }
 0x5ba   : > { %v3349_v55 = vadd.f32 %v3348_v41, %v3236_v32  ;;  %v3239_v32 = vadd.f32 %v10708_v58, %v10731_v9  ;;  %v3708_v41 = vadd.f32 %v11125_v45, %v3595_v18  ;;  %v3598_v58 = vadd.f32 %v10946_v16, %v11227_v30 }
 0x5bb   : > { %v11231_v57 = vpop.f32.mrf.mxu3  ;;  %v3242_v18 = vadd.f32 %v10734_v31, %v10731_v9 }
 0x5bc   : > { %v3423_v56 = vadd.f32 %v3349_v55, %v15044_v35  ;;  %3950 = vmatmul.f32.gmra.mxu1 %v10895_v7 }
 0x5be   : > { %3686 = vmatmul.f32.gmra.mxu2 %v11235_v54  ;;  %v11240_v1 = vmax.f32 %v3423_v56, 0.0  ;;  %v4029_v56 = vmax.f32 %v3708_v41, 0.0 }
 0x5bf   : > { %3912 = vmatmul.f32.gmra.mxu0 %v11235_v54  ;;  %v15047_v54 = vld [vmem:[#allocation86_spill] sm:$0xff] }
 0x5c0   : > { %15046 = vst [vmem:[#allocation103_spill] sm:$0xff] %v11240_v1  ;;  %3772 = vmatmul.f32.gmra.mxu3 %v11240_v1 }
 0x5c1   : > { %v3351_v55 = vpop.f32.mrf.mxu1  ;;  %v11247_v35 = vpop.f32.mrf.mxu2 }
 0x5c2   : > { %v3352_v17 = vadd.f32 %v3351_v55, %v3239_v32  ;;  %v3711_v32 = vadd.f32 %v11144_v10, %v3598_v58  ;;  %v4144_v10 = vld [vmem:[#allocation11 + $0x198] sm:$0xff] }
 0x5c3   : > { %v11249_v7 = vpop.f32.mrf.mxu3  ;;  %4509 = vmatpush.msrb.mxu1 %v4144_v10  ;;  %v15051_v58 = vld [vmem:[#allocation105_spill] sm:$0xff] }
 0x5c4   : > { %v3425_v0 = vadd.f32 %v3352_v17, %v15047_v54  ;;  %3953 = vmatmul.f32.gmra.mxu1 %v10917_v5  ;;  %v4031_v17 = vmax.f32 %v3711_v32, 0.0  ;;  %v15049_v5 = vld [vmem:[#allocation87_spill] sm:$0xff] }
 0x5c6   : > { %4180 = vmatmul.f32.vlgmr.msra.gmra.mxu2 %v4029_v56  ;;  %v11257_v45 = vmax.f32 %v3425_v0, 0.0  ;;  %v11271_v0 = vpop.f32.mrf.mxu0 }
 0x5c7   : > { %4406 = vmatmul.f32.vlgmr.msra.gmra.mxu0 %v4029_v56  ;;  %v3601_v56 = vadd.f32 %v10968_v15, %v11227_v30 }
 0x5c8   : > { %15048 = vst [vmem:[#allocation80_spill] sm:$0xff] %v11257_v45  ;;  %3775 = vmatmul.f32.gmra.mxu3 %v11257_v45 }
 0x5c9   : > { %v3354_v41 = vpop.f32.mrf.mxu1  ;;  %v11263_v12 = vpop.f32.mrf.mxu2  ;;  %v3714_v32 = vadd.f32 %v11165_v36, %v3601_v56  ;;  %v3248_v56 = vadd.f32 %v10778_v3, %v10731_v9  ;;  %v3607_v3 = vadd.f32 %v11012_v63, %v11227_v30 }
 0x5ca   : > { %v3355_v54 = vadd.f32 %v3354_v41, %v3242_v18  ;;  %v3245_v18 = vadd.f32 %v15051_v58, %v10731_v9 }
 0x5cb   : > { %v11265_v55 = vpop.f32.mrf.mxu3 }
 0x5cc   : > { %v3427_v16 = vadd.f32 %v3355_v54, %v15049_v5  ;;  %3956 = vmatmul.f32.gmra.mxu1 %v10939_v11  ;;  %v4127_v5 = vld [vmem:[#allocation11 + $0x110] sm:$0xff] }
 0x5cd   : > { %4291 = vmatpush.msra.mxu3 %v4127_v5 }
 0x5ce   : > { %4183 = vmatmul.f32.gmra.mxu2 %v4031_v17  ;;  %v11273_v31 = vmax.f32 %v3427_v16, 0.0  ;;  %v4033_v16 = vmax.f32 %v3714_v32, 0.0  ;;  %v11292_v58 = vpop.f32.mrf.mxu0 }
 0x5cf   : > { %4409 = vmatmul.f32.gmra.mxu0 %v4031_v17  ;;  %v3604_v17 = vadd.f32 %v10990_v49, %v11227_v30 }
 0x5d0   : > { %15050 = vst [vmem:[#allocation81_spill] sm:$0xff] %v11273_v31  ;;  %3778 = vmatmul.f32.gmra.mxu3 %v11273_v31 }
 0x5d1   : > { %v3357_v41 = vpop.f32.mrf.mxu1  ;;  %v11279_v54 = vpop.f32.mrf.mxu2  ;;  %v3717_v10 = vadd.f32 %v11186_v2, %v3604_v17 }
 0x5d2   : > { %v3358_v15 = vadd.f32 %v3357_v41, %v3245_v18  ;;  %v15054_v41 = vld [vmem:[#allocation93_spill] sm:$0xff] }
 0x5d3   : > { %v11281_v11 = vpop.f32.mrf.mxu3  ;;  %v4035_v49 = vmax.f32 %v3717_v10, 0.0  ;;  %v4125_v10 = vld [vmem:[#allocation11 + $0x100] sm:$0xff] }
 0x5d4   : > { %v3429_v59 = vadd.f32 %v3358_v15, %v15052_v8  ;;  %3959 = vmatmul.f32.gmra.mxu1 %v10961_v28  ;;  %v4142_v15 = vld [vmem:[#allocation11 + $0x188] sm:$0xff]  ;;  %4292 = vmatpush.msra.mxu3 %v4125_v10 }
 0x5d5   : > { %4510 = vmatpush.msrb.mxu1 %v4142_v15 }
 0x5d6   : > { %4186 = vmatmul.f32.gmra.mxu2 %v4033_v16  ;;  %v11287_v36 = vmax.f32 %v3429_v59, 0.0 }
 0x5d7   : > { %4412 = vmatmul.f32.gmra.mxu0 %v4033_v16  ;;  %v15056_v16 = vld [vmem:[#allocation37_spill] sm:$0xff] }
 0x5d8   : > { %15053 = vst [vmem:[#allocation83_spill] sm:$0xff] %v11287_v36  ;;  %3781 = vmatmul.f32.gmra.mxu3 %v11287_v36  ;;  %v3251_v17 = vadd.f32 %v15056_v16, %v10731_v9  ;;  %v3254_v16 = vadd.f32 %v10822_v13, %v10731_v9  ;;  %v3613_v13 = vadd.f32 %v11056_v34, %v11227_v30  ;;  %v4775_v34 = vld [vmem:[%s14132_s8 + $0xf8] sm:$0xff] }
 0x5d9   : > { %v3360_v18 = vpop.f32.mrf.mxu1  ;;  %v11295_v8 = vpop.f32.mrf.mxu2  ;;  %4890 = vmatpush.msrb.mxu3 %v4775_v34 }
 0x5da   : > { %v3361_v32 = vadd.f32 %v3360_v18, %v3248_v56  ;;  %v3720_v56 = vadd.f32 %v11207_v39, %v3607_v3  ;;  %v3610_v39 = vadd.f32 %v11034_v22, %v11227_v30  ;;  %v15059_v22 = vld [vmem:[#allocation97_spill] sm:$0xff] }
 0x5db   : > { %v11297_v5 = vpop.f32.mrf.mxu3 }
 0x5dc   : > { %v3431_v59 = vadd.f32 %v3361_v32, %v15054_v41  ;;  %3962 = vmatmul.f32.gmra.mxu1 %v10983_v40  ;;  %v11311_v41 = vpop.f32.mrf.mxu0  ;;  %v4037_v40 = vmax.f32 %v3720_v56, 0.0  ;;  %v3723_v10 = vadd.f32 %v11231_v57, %v3610_v39  ;;  %v4140_v57 = vld [vmem:[#allocation11 + $0x178] sm:$0xff] }
 0x5dd   : > { %4511 = vmatpush.msrb.mxu1 %v4140_v57  ;;  %v4759_v39 = vld [vmem:[%s14132_s8 + $0x78] sm:$0xff]  ;;  %v15061_v57 = vld [vmem:[#allocation99_spill] sm:$0xff] }
 0x5de   : > { %4189 = vmatmul.f32.gmra.mxu2 %v4035_v49  ;;  %v11303_v2 = vmax.f32 %v3431_v59, 0.0 }
 0x5df   : > { %4415 = vmatmul.f32.gmra.mxu0 %v4035_v49  ;;  %v15057_v49 = vld [vmem:[#allocation95_spill] sm:$0xff]  ;;  %4777 = vmatpush.msrb.mxu2 %v4759_v39  ;;  %v3260_v39 = vadd.f32 %v10866_v14, %v10731_v9 }
 0x5e0   : > { %15055 = vst [vmem:[#allocation84_spill] sm:$0xff] %v11303_v2  ;;  %3784 = vmatmul.f32.gmra.mxu3 %v11303_v2 }
 0x5e1   : > { %v3363_v18 = vpop.f32.mrf.mxu1  ;;  %v11309_v32 = vpop.f32.mrf.mxu2 }
 0x5e2   : > { %v3364_v63 = vadd.f32 %v3363_v18, %v3251_v17 }
 0x5e3   : > { %v11313_v59 = vpop.f32.mrf.mxu3 }
 0x5e4   : > { %v3433_v15 = vadd.f32 %v3364_v63, %v15057_v49  ;;  %3965 = vmatmul.f32.gmra.mxu1 %v11005_v46  ;;  %v4039_v49 = vmax.f32 %v3723_v10, 0.0  ;;  %v11329_v46 = vpop.f32.mrf.mxu0  ;;  %v3726_v10 = vadd.f32 %v11249_v7, %v3613_v13 }
 0x5e6   : > { %4192 = vmatmul.f32.gmra.mxu2 %v4037_v40  ;;  %v11319_v3 = vmax.f32 %v3433_v15, 0.0 }
 0x5e7   : > { %4418 = vmatmul.f32.gmra.mxu0 %v4037_v40 }
 0x5e8   : > { %15058 = vst [vmem:[#allocation86_spill] sm:$0xff] %v11319_v3  ;;  %3787 = vmatmul.f32.gmra.mxu3 %v11319_v3 }
 0x5e9   : > { %v3366_v17 = vpop.f32.mrf.mxu1  ;;  %v11325_v56 = vpop.f32.mrf.mxu2 }
 0x5ea   : > { %v3367_v18 = vadd.f32 %v3366_v17, %v3254_v16  ;;  %v3257_v16 = vadd.f32 %v10844_v21, %v10731_v9  ;;  %v3616_v21 = vadd.f32 %v11078_v47, %v11227_v30 }
 0x5eb   : > { %v11327_v63 = vpop.f32.mrf.mxu3 }
 0x5ec   : > { %v3435_v15 = vadd.f32 %v3367_v18, %v15059_v22  ;;  %3968 = vmatmul.f32.gmra.mxu1 %v11027_v29  ;;  %v11355_v7 = vpop.f32.mrf.mxu0 }
 0x5ee   : > { %4195 = vmatmul.f32.gmra.mxu2 %v4039_v49  ;;  %v11335_v40 = vmax.f32 %v3435_v15, 0.0  ;;  %v4041_v15 = vmax.f32 %v3726_v10, 0.0 }
 0x5ef   : > { %4421 = vmatmul.f32.gmra.mxu0 %v4039_v49 }
 0x5f0   : > { %15060 = vst [vmem:[#allocation87_spill] sm:$0xff] %v11335_v40  ;;  %3790 = vmatmul.f32.gmra.mxu3 %v11335_v40 }
 0x5f1   : > { %v3369_v17 = vpop.f32.mrf.mxu1  ;;  %v11347_v18 = vpop.f32.mrf.mxu2 }
 0x5f2   : > { %v3370_v49 = vadd.f32 %v3369_v17, %v3257_v16  ;;  %v3729_v16 = vadd.f32 %v11265_v55, %v3616_v21  ;;  %v4138_v55 = vld [vmem:[#allocation11 + $0x168] sm:$0xff]  ;;  %v15065_v21 = vld [vmem:[#allocation45_spill] sm:$0xff] }
 0x5f3   : > { %v11349_v22 = vpop.f32.mrf.mxu3  ;;  %4512 = vmatpush.msrb.mxu1 %v4138_v55 }
 0x5f4   : > { %v3437_v29 = vadd.f32 %v3370_v49, %v15061_v57  ;;  %3971 = vmatmul.f32.gmra.mxu1 %v11049_v52  ;;  %v4043_v47 = vmax.f32 %v3729_v16, 0.0  ;;  %v15063_v57 = vld [vmem:[#allocation101_spill] sm:$0xff] }
 0x5f6   : > { %4198 = vmatmul.f32.gmra.mxu2 %v4041_v15  ;;  %v11357_v13 = vmax.f32 %v3437_v29, 0.0  ;;  %v3619_v29 = vadd.f32 %v11100_v33, %v11227_v30 }
 0x5f7   : > { %4424 = vmatmul.f32.gmra.mxu0 %v4041_v15  ;;  %v4758_v15 = vld [vmem:[%s14132_s8 + $0x70] sm:$0xff] }
 0x5f8   : > { %15062 = vst [vmem:[#allocation105_spill] sm:$0xff] %v11357_v13  ;;  %3793 = vmatmul.f32.gmra.mxu3 %v11357_v13  ;;  %v3732_v16 = vadd.f32 %v11281_v11, %v3619_v29  ;;  %4778 = vmatpush.msrb.mxu2 %v4758_v15  ;;  %v15066_v29 = vld [vmem:[#allocation108_spill] sm:$0xff]  ;;  %v3622_v15 = vadd.f32 %v11119_v19, %v11227_v30 }
 0x5f9   : > { %v3372_v10 = vpop.f32.mrf.mxu1  ;;  %v11363_v34 = vpop.f32.mrf.mxu2 }
 0x5fa   : > { %v3373_v17 = vadd.f32 %v3372_v10, %v3260_v39  ;;  %v3263_v39 = vadd.f32 %v15065_v21, %v10731_v9  ;;  %v11379_v10 = vpop.f32.mrf.mxu0  ;;  %v11390_v9 = vperm.slane %v11222_v60, 1  ;;  %v4045_v11 = vmax.f32 %v3732_v16, 0.0 }
 0x5fb   : > { %v11365_v49 = vpop.f32.mrf.mxu3 }
 0x5fc   : > { %v3439_v52 = vadd.f32 %v3373_v17, %v15063_v57  ;;  %3974 = vmatmul.f32.gmra.mxu1 %v11071_v50 }
 0x5fe   : > { %4201 = vmatmul.f32.gmra.mxu2 %v4043_v47  ;;  %v11371_v14 = vmax.f32 %v3439_v52, 0.0  ;;  %v4774_v52 = vld [vmem:[%s14132_s8 + $0xf0] sm:$0xff] }
 0x5ff   : > { %4427 = vmatmul.f32.gmra.mxu0 %v4043_v47  ;;  %4891 = vmatpush.msrb.mxu3 %v4774_v52  ;;  %v15068_v52 = vld [vmem:[#allocation48_spill] sm:$0xff] }
 0x600   : > { %15064 = vst [vmem:[#allocation91_spill] sm:$0xff] %v11371_v14  ;;  %3796 = vmatmul.f32.gmra.mxu3 %v11371_v14 }
 0x601   : > { %v3375_v33 = vpop.f32.mrf.mxu1  ;;  %v11385_v17 = vpop.f32.mrf.mxu2 }
 0x602   : > { %v3376_v47 = vadd.f32 %v3375_v33, %v3263_v39  ;;  %v3821_v39 = vadd.f32 %v15068_v52, %v11390_v9  ;;  %v3735_v33 = vadd.f32 %v11297_v5, %v3622_v15  ;;  %v4136_v5 = vld [vmem:[#allocation11 + $0x158] sm:$0xff]  ;;  %v4757_v15 = vld [vmem:[%s14132_s8 + $0x68] sm:$0xff] }
 0x603   : > { %v11387_v57 = vpop.f32.mrf.mxu3  ;;  %4513 = vmatpush.msrb.mxu1 %v4136_v5  ;;  %v15069_v52 = vld [vmem:[#allocation88_spill] sm:$0xff]  ;;  %4779 = vmatpush.msrb.mxu2 %v4757_v15  ;;  %v15070_v15 = vld [vmem:[#allocation90_spill] sm:$0xff] }
 0x604   : > { %v3441_v55 = vadd.f32 %v3376_v47, %v15066_v29  ;;  %3977 = vmatmul.f32.gmra.mxu1 %v11091_v6  ;;  %v11404_v47 = vpop.f32.mrf.mxu0  ;;  %v4047_v19 = vmax.f32 %v3735_v33, 0.0 }
 0x606   : > { %4204 = vmatmul.f32.gmra.mxu2 %v4045_v11  ;;  %v11396_v21 = vmax.f32 %v3441_v55, 0.0 }
 0x607   : > { %4430 = vmatmul.f32.gmra.mxu0 %v4045_v11  ;;  %v3625_v11 = vadd.f32 %v11140_v38, %v11227_v30  ;;  %v4773_v38 = vld [vmem:[%s14132_s8 + $0xe8] sm:$0xff] }
 0x608   : > { %15067 = vst [vmem:[#allocation93_spill] sm:$0xff] %v11396_v21  ;;  %3799 = vmatmul.f32.gmra.mxu3 %v11396_v21 }
 0x609   : > { %v11402_v60 = vpop.f32.mrf.mxu2  ;;  %v3933_v16 = vpop.f32.mrf.mxu1  ;;  %v3738_v33 = vadd.f32 %v11313_v59, %v3625_v11  ;;  %4892 = vmatpush.msrb.mxu3 %v4773_v38  ;;  %v3628_v59 = vadd.f32 %v11161_v44, %v11227_v30 }
 0x60a   : > { %v11406_v29 = vadd.f32 %v3933_v16, %v3821_v39  ;;  %v3824_v39 = vadd.f32 %v15069_v52, %v11390_v9 }
 0x60b   : > { %v11408_v6 = vpop.f32.mrf.mxu3  ;;  %v4049_v50 = vmax.f32 %v3738_v33, 0.0 }
 0x60c   : > { %3980 = vmatmul.f32.gmra.mxu1 %v11112_v51  ;;  %v14388_v55 = vmax.f32 %v11406_v29, 0.0  ;;  %v11431_v52 = vpop.f32.mrf.mxu0 }
 0x60e   : > { %4207 = vmatmul.f32.gmra.mxu2 %v4047_v19 }
 0x60f   : > { %4433 = vmatmul.f32.gmra.mxu0 %v4047_v19 }
 0x610   : > { %4293 = vmatmul.f32.vlgmr.msra.gmra.mxu3 %v14388_v55  ;;  %v3827_v55 = vadd.f32 %v15070_v15, %v11390_v9  ;;  %v15072_v15 = vld [vmem:[#allocation92_spill] sm:$0xff] }
 0x611   : > { %v11425_v16 = vpop.f32.mrf.mxu2  ;;  %v3936_v19 = vpop.f32.mrf.mxu1 }
 0x612   : > { %v11427_v5 = vadd.f32 %v3936_v19, %v3824_v39  ;;  %v3741_v39 = vadd.f32 %v11327_v63, %v3628_v59  ;;  %v4134_v59 = vld [vmem:[#allocation11 + $0x148] sm:$0xff] }
 0x613   : > { %v11429_v51 = vpop.f32.mrf.mxu3  ;;  %4514 = vmatpush.msrb.mxu1 %v4134_v59 }
 0x614   : > { %3983 = vmatmul.f32.gmra.mxu1 %v11133_v43  ;;  %v14391_v11 = vmax.f32 %v11427_v5, 0.0  ;;  %v4051_v44 = vmax.f32 %v3741_v39, 0.0  ;;  %v11451_v28 = vpop.f32.mrf.mxu0  ;;  %v3830_v39 = vadd.f32 %v15072_v15, %v11390_v9 }
 0x615   : > { %15071 = vst [vmem:[#allocation37_spill] sm:$0xff] %v11451_v28 }
 0x616   : > { %4210 = vmatmul.f32.gmra.mxu2 %v4049_v50 }
 0x617   : > { %4436 = vmatmul.f32.gmra.mxu0 %v4049_v50  ;;  %v3631_v50 = vadd.f32 %v11182_v25, %v11227_v30  ;;  %v4772_v25 = vld [vmem:[%s14132_s8 + $0xe0] sm:$0xff] }
 0x618   : > { %4296 = vmatmul.f32.gmra.mxu3 %v14391_v11 }
 0x619   : > { %v11442_v33 = vpop.f32.mrf.mxu2  ;;  %v3939_v38 = vpop.f32.mrf.mxu1  ;;  %4893 = vmatpush.msrb.mxu3 %v4772_v25 }
 0x61a   : > { %v11444_v19 = vadd.f32 %v3939_v38, %v3827_v55  ;;  %v4756_v55 = vld [vmem:[%s14132_s8 + $0x60] sm:$0xff]  ;;  %v3744_v38 = vadd.f32 %v11349_v22, %v3631_v50  ;;  %v3634_v22 = vadd.f32 %v11203_v26, %v11227_v30 }
 0x61b   : > { %v11446_v43 = vpop.f32.mrf.mxu3  ;;  %4780 = vmatpush.msrb.mxu2 %v4756_v55  ;;  %v3833_v55 = vadd.f32 %v10998_v62, %v11390_v9  ;;  %v3637_v62 = vadd.f32 %v11224_v4, %v11227_v30  ;;  %v4771_v4 = vld [vmem:[%s14132_s8 + $0xd8] sm:$0xff] }
 0x61c   : > { %3986 = vmatmul.f32.gmra.mxu1 %v11154_v61  ;;  %v14393_v63 = vmax.f32 %v11444_v19, 0.0  ;;  %v4053_v28 = vmax.f32 %v3744_v38, 0.0  ;;  %v3747_v15 = vadd.f32 %v11365_v49, %v3634_v22  ;;  %v11478_v25 = vpop.f32.mrf.mxu0  ;;  %v4132_v49 = vld [vmem:[#allocation11 + $0x138] sm:$0xff]  ;;  %4894 = vmatpush.msrb.mxu3 %v4771_v4 }
 0x61d   : > { %4515 = vmatpush.msrb.mxu1 %v4132_v49  ;;  %v4755_v22 = vld [vmem:[%s14132_s8 + $0x58] sm:$0xff] }
 0x61e   : > { %4213 = vmatmul.f32.gmra.mxu2 %v4051_v44 }
 0x61f   : > { %4439 = vmatmul.f32.gmra.mxu0 %v4051_v44  ;;  %4781 = vmatpush.msrb.mxu2 %v4755_v22  ;;  %v15073_v22 = vld [vmem:[#allocation59_spill] sm:$0xff] }
 0x620   : > { %4299 = vmatmul.f32.gmra.mxu3 %v14393_v63  ;;  %v4055_v63 = vmax.f32 %v3747_v15, 0.0  ;;  %v3750_v15 = vadd.f32 %v11387_v57, %v3637_v62  ;;  %v3640_v57 = vadd.f32 %v11247_v35, %v11227_v30 }
 0x621   : > { %v11465_v11 = vpop.f32.mrf.mxu2  ;;  %v3942_v44 = vpop.f32.mrf.mxu1 }
 0x622   : > { %v11467_v59 = vadd.f32 %v3942_v44, %v3830_v39  ;;  %v3753_v4 = vadd.f32 %v11408_v6, %v3640_v57  ;;  %v4130_v57 = vld [vmem:[#allocation11 + $0x128] sm:$0xff] }
 0x623   : > { %v11469_v61 = vpop.f32.mrf.mxu3  ;;  %4516 = vmatpush.msrb.mxu1 %v4130_v57 }
 0x624   : > { %3989 = vmatmul.f32.gmra.mxu1 %v11175_v53  ;;  %v14394_v50 = vmax.f32 %v11467_v59, 0.0  ;;  %v11505_v49 = vpop.f32.mrf.mxu0  ;;  %v4059_v35 = vmax.f32 %v3753_v4, 0.0 }
 0x626   : > { %4216 = vmatmul.f32.gmra.mxu2 %v4053_v28 }
 0x627   : > { %4442 = vmatmul.f32.gmra.mxu0 %v4053_v28 }
 0x628   : > { %4302 = vmatmul.f32.gmra.mxu3 %v14394_v50 }
 0x629   : > { %v11482_v39 = vpop.f32.mrf.mxu2  ;;  %v3945_v38 = vpop.f32.mrf.mxu1 }
 0x62a   : > { %v11484_v44 = vadd.f32 %v3945_v38, %v3833_v55  ;;  %v3836_v55 = vadd.f32 %v11020_v20, %v11390_v9  ;;  %v4057_v20 = vmax.f32 %v3750_v15, 0.0 }
 0x62b   : > { %v11486_v26 = vpop.f32.mrf.mxu3 }
 0x62c   : > { %3992 = vmatmul.f32.gmra.mxu1 %v11194_v23  ;;  %v14396_v28 = vmax.f32 %v11484_v44, 0.0  ;;  %v11526_v53 = vpop.f32.mrf.mxu0 }
 0x62d   : > { %15074 = vst [vmem:[#allocation95_spill] sm:$0xff] %v11526_v53 }
 0x62e   : > { %4219 = vmatmul.f32.gmra.mxu2 %v4055_v63 }
 0x62f   : > { %4445 = vmatmul.f32.gmra.mxu0 %v4055_v63 }
 0x630   : > { %4305 = vmatmul.f32.gmra.mxu3 %v14396_v28  ;;  %v3839_v28 = vadd.f32 %v15073_v22, %v11390_v9  ;;  %v15075_v22 = vld [vmem:[#allocation62_spill] sm:$0xff] }
 0x631   : > { %v11503_v38 = vpop.f32.mrf.mxu2  ;;  %v3948_v63 = vpop.f32.mrf.mxu1  ;;  %v3842_v4 = vadd.f32 %v15075_v22, %v11390_v9  ;;  %v15077_v22 = vld [vmem:[#allocation65_spill] sm:$0xff] }
 0x632   : > { %v11507_v50 = vadd.f32 %v3948_v63, %v3836_v55 }
 0x633   : > { %v11509_v23 = vpop.f32.mrf.mxu3 }
 0x634   : > { %3995 = vmatmul.f32.gmra.mxu1 %v11215_v27  ;;  %v14399_v62 = vmax.f32 %v11507_v50, 0.0 }
 0x636   : > { %4222 = vmatmul.f32.gmra.mxu2 %v4057_v20 }
 0x637   : > { %4448 = vmatmul.f32.gmra.mxu0 %v4057_v20  ;;  %v3643_v20 = vadd.f32 %v11263_v12, %v11227_v30  ;;  %v4770_v12 = vld [vmem:[%s14132_s8 + $0xd0] sm:$0xff] }
 0x638   : > { %4308 = vmatmul.f32.gmra.mxu3 %v14399_v62 }
 0x639   : > { %v11520_v55 = vpop.f32.mrf.mxu2  ;;  %v3951_v15 = vpop.f32.mrf.mxu1  ;;  %4895 = vmatpush.msrb.mxu3 %v4770_v12 }
 0x63a   : > { %v11522_v63 = vadd.f32 %v3951_v15, %v3839_v28  ;;  %v4754_v28 = vld [vmem:[%s14132_s8 + $0x50] sm:$0xff]  ;;  %v3756_v15 = vadd.f32 %v11429_v51, %v3643_v20  ;;  %v3646_v51 = vadd.f32 %v11279_v54, %v11227_v30  ;;  %v11552_v20 = vpop.f32.mrf.mxu0 }
 0x63b   : > { %v11524_v27 = vpop.f32.mrf.mxu3  ;;  %4782 = vmatpush.msrb.mxu2 %v4754_v28  ;;  %15076 = vst [vmem:[#allocation97_spill] sm:$0xff] %v11552_v20 }
 0x63c   : > { %3998 = vmatmul.f32.gmra.mxu1 %v11240_v1  ;;  %v14401_v6 = vmax.f32 %v11522_v63, 0.0  ;;  %v4061_v53 = vmax.f32 %v3756_v15, 0.0 }
 0x63e   : > { %4225 = vmatmul.f32.gmra.mxu2 %v4059_v35 }
 0x63f   : > { %4451 = vmatmul.f32.gmra.mxu0 %v4059_v35 }
 0x640   : > { %4311 = vmatmul.f32.gmra.mxu3 %v14401_v6  ;;  %v3845_v6 = vadd.f32 %v15077_v22, %v11390_v9 }
 0x641   : > { %v11543_v62 = vpop.f32.mrf.mxu2  ;;  %v3954_v35 = vpop.f32.mrf.mxu1 }
 0x642   : > { %v11545_v57 = vadd.f32 %v3954_v35, %v3842_v4  ;;  %v3759_v4 = vadd.f32 %v11446_v43, %v3646_v51  ;;  %v4128_v43 = vld [vmem:[#allocation11 + $0x118] sm:$0xff]  ;;  %v4753_v51 = vld [vmem:[%s14132_s8 + $0x48] sm:$0xff] }
 0x643   : > { %v11547_v1 = vpop.f32.mrf.mxu3  ;;  %4517 = vmatpush.msrb.mxu1 %v4128_v43  ;;  %4783 = vmatpush.msrb.mxu2 %v4753_v51  ;;  %v15080_v51 = vld [vmem:[#allocation71_spill] sm:$0xff] }
 0x644   : > { %4001 = vmatmul.f32.gmra.mxu1 %v11257_v45  ;;  %v14403_v28 = vmax.f32 %v11545_v57, 0.0  ;;  %v4063_v45 = vmax.f32 %v3759_v4, 0.0 }
 0x646   : > { %4228 = vmatmul.f32.gmra.mxu2 %v4061_v53 }
 0x647   : > { %4454 = vmatmul.f32.gmra.mxu0 %v4061_v53  ;;  %v3649_v53 = vadd.f32 %v11295_v8, %v11227_v30 }
 0x648   : > { %4314 = vmatmul.f32.gmra.mxu3 %v14403_v28  ;;  %v11576_v28 = vpop.f32.mrf.mxu0 }
 0x649   : > { %v3957_v15 = vpop.f32.mrf.mxu1  ;;  %v11560_v12 = vpop.f32.mrf.mxu2  ;;  %v3762_v4 = vadd.f32 %v11469_v61, %v3649_v53  ;;  %15079 = vst [vmem:[#allocation99_spill] sm:$0xff] %v11576_v28  ;;  %v3652_v61 = vadd.f32 %v11309_v32, %v11227_v30 }
 0x64a   : > { %v11562_v35 = vadd.f32 %v3957_v15, %v3845_v6  ;;  %v15078_v6 = vld [vmem:[#allocation96_spill] sm:$0xff] }
 0x64b   : > { %v11564_v54 = vpop.f32.mrf.mxu3  ;;  %v3848_v15 = vadd.f32 %v15078_v6, %v11390_v9  ;;  %v4065_v6 = vmax.f32 %v3762_v4, 0.0  ;;  %v3765_v28 = vadd.f32 %v11486_v26, %v3652_v61  ;;  %v4126_v61 = vld [vmem:[#allocation11 + $0x108] sm:$0xff] }
 0x64c   : > { %4004 = vmatmul.f32.gmra.mxu1 %v11273_v31  ;;  %v14405_v22 = vmax.f32 %v11562_v35, 0.0 }
 0x64d   : > { %4518 = vmatpush.msrb.mxu1 %v4126_v61 }
 0x64e   : > { %4231 = vmatmul.f32.gmra.mxu2 %v4063_v45 }
 0x64f   : > { %4457 = vmatmul.f32.gmra.mxu0 %v4063_v45  ;;  %v4769_v45 = vld [vmem:[%s14132_s8 + $0xc8] sm:$0xff] }
 0x650   : > { %4317 = vmatmul.f32.gmra.mxu3 %v14405_v22  ;;  %v3851_v22 = vadd.f32 %v15080_v51, %v11390_v9  ;;  %v11600_v4 = vpop.f32.mrf.mxu0  ;;  %v4752_v51 = vld [vmem:[%s14132_s8 + $0x40] sm:$0xff] }
 0x651   : > { %v3960_v8 = vpop.f32.mrf.mxu1  ;;  %v11583_v43 = vpop.f32.mrf.mxu2  ;;  %4896 = vmatpush.msrb.mxu3 %v4769_v45  ;;  %4784 = vmatpush.msrb.mxu2 %v4752_v51  ;;  %v3857_v51 = vadd.f32 %v11200_v37, %v11390_v9 }
 0x652   : > { %v11585_v31 = vadd.f32 %v3960_v8, %v3848_v15 }
 0x653   : > { %v11587_v20 = vpop.f32.mrf.mxu3 }
 0x654   : > { %4007 = vmatmul.f32.gmra.mxu1 %v11287_v36  ;;  %v14407_v53 = vmax.f32 %v11585_v31, 0.0  ;;  %v4067_v36 = vmax.f32 %v3765_v28, 0.0 }
 0x656   : > { %4234 = vmatmul.f32.gmra.mxu2 %v4065_v6 }
 0x657   : > { %4460 = vmatmul.f32.gmra.mxu0 %v4065_v6  ;;  %v3655_v6 = vadd.f32 %v11325_v56, %v11227_v30  ;;  %v4768_v56 = vld [vmem:[%s14132_s8 + $0xc0] sm:$0xff] }
 0x658   : > { %4320 = vmatmul.f32.gmra.mxu3 %v14407_v53 }
 0x659   : > { %v3963_v15 = vpop.f32.mrf.mxu1  ;;  %v11598_v45 = vpop.f32.mrf.mxu2  ;;  %v3768_v28 = vadd.f32 %v11509_v23, %v3655_v6  ;;  %4897 = vmatpush.msrb.mxu3 %v4768_v56  ;;  %v3658_v23 = vadd.f32 %v11347_v18, %v11227_v30 }
 0x65a   : > { %v11602_v8 = vadd.f32 %v3963_v15, %v3851_v22  ;;  %v3854_v22 = vadd.f32 %v11172_v48, %v11390_v9  ;;  %v11627_v48 = vpop.f32.mrf.mxu0 }
 0x65b   : > { %v11604_v32 = vpop.f32.mrf.mxu3 }
 0x65c   : > { %4010 = vmatmul.f32.gmra.mxu1 %v11303_v2  ;;  %v14409_v26 = vmax.f32 %v11602_v8, 0.0  ;;  %v4069_v2 = vmax.f32 %v3768_v28, 0.0 }
 0x65e   : > { %4237 = vmatmul.f32.gmra.mxu2 %v4067_v36 }
 0x65f   : > { %4463 = vmatmul.f32.gmra.mxu0 %v4067_v36 }
 0x660   : > { %4323 = vmatmul.f32.gmra.mxu3 %v14409_v26 }
 0x661   : > { %v3966_v15 = vpop.f32.mrf.mxu1  ;;  %v11621_v36 = vpop.f32.mrf.mxu2 }
 0x662   : > { %v11623_v61 = vadd.f32 %v3966_v15, %v3854_v22  ;;  %v3771_v22 = vadd.f32 %v11524_v27, %v3658_v23  ;;  %v4751_v27 = vld [vmem:[%s14132_s8 + $0x38] sm:$0xff]  ;;  %v3860_v23 = vadd.f32 %v11229_v24, %v11390_v9  ;;  %v3664_v24 = vadd.f32 %v11385_v17, %v11227_v30 }
 0x663   : > { %v11625_v53 = vpop.f32.mrf.mxu3  ;;  %4785 = vmatpush.msrb.mxu2 %v4751_v27 }
 0x664   : > { %4013 = vmatmul.f32.gmra.mxu1 %v11319_v3  ;;  %v14411_v6 = vmax.f32 %v11623_v61, 0.0  ;;  %v4071_v18 = vmax.f32 %v3771_v22, 0.0  ;;  %v11647_v3 = vpop.f32.mrf.mxu0 }
 0x666   : > { %4240 = vmatmul.f32.gmra.mxu2 %v4069_v2 }
 0x667   : > { %4466 = vmatmul.f32.gmra.mxu0 %v4069_v2  ;;  %v3661_v2 = vadd.f32 %v11363_v34, %v11227_v30  ;;  %v4767_v34 = vld [vmem:[%s14132_s8 + $0xb8] sm:$0xff] }
 0x668   : > { %4326 = vmatmul.f32.gmra.mxu3 %v14411_v6 }
 0x669   : > { %v3969_v28 = vpop.f32.mrf.mxu1  ;;  %v11638_v56 = vpop.f32.mrf.mxu2  ;;  %4898 = vmatpush.msrb.mxu3 %v4767_v34 }
 0x66a   : > { %v11640_v15 = vadd.f32 %v3969_v28, %v3857_v51  ;;  %v3774_v51 = vadd.f32 %v11547_v1, %v3661_v2  ;;  %v3863_v2 = vadd.f32 %v11251_v42, %v11390_v9 }
 0x66b   : > { %v11642_v26 = vpop.f32.mrf.mxu3 }
 0x66c   : > { %4016 = vmatmul.f32.gmra.mxu1 %v11335_v40  ;;  %v14414_v37 = vmax.f32 %v11640_v15, 0.0  ;;  %v4073_v40 = vmax.f32 %v3774_v51, 0.0  ;;  %v11673_v27 = vpop.f32.mrf.mxu0  ;;  %v5050_v51 = vld [vmem:[%s14133_s9 + $0x78] sm:$0xff] }
 0x66d   : > { %5052 = vmatpush.msrb.mxu0 %v5050_v51 }
 0x66e   : > { %4243 = vmatmul.f32.gmra.mxu2 %v4071_v18 }
 0x66f   : > { %4469 = vmatmul.f32.gmra.mxu0 %v4071_v18 }
 0x670   : > { %4329 = vmatmul.f32.gmra.mxu3 %v14414_v37 }
 0x671   : > { %v3972_v22 = vpop.f32.mrf.mxu1  ;;  %v11661_v28 = vpop.f32.mrf.mxu2 }
 0x672   : > { %v11663_v18 = vadd.f32 %v3972_v22, %v3860_v23  ;;  %v3777_v23 = vadd.f32 %v11564_v54, %v3664_v24  ;;  %v3667_v54 = vadd.f32 %v11402_v60, %v11227_v30  ;;  %v4766_v60 = vld [vmem:[%s14132_s8 + $0xb0] sm:$0xff] }
 0x673   : > { %v11665_v6 = vpop.f32.mrf.mxu3  ;;  %4899 = vmatpush.msrb.mxu3 %v4766_v60 }
 0x674   : > { %4019 = vmatmul.f32.gmra.mxu1 %v11357_v13  ;;  %v14413_v1 = vmax.f32 %v11663_v18, 0.0  ;;  %v4075_v42 = vmax.f32 %v3777_v23, 0.0  ;;  %v3780_v51 = vadd.f32 %v11587_v20, %v3667_v54  ;;  %v3670_v20 = vadd.f32 %v11425_v16, %v11227_v30 }
 0x675   : > { %v3869_v54 = vadd.f32 %v11292_v58, %v11390_v9 }
 0x676   : > { %4246 = vmatmul.f32.gmra.mxu2 %v4073_v40  ;;  %v3783_v60 = vadd.f32 %v11604_v32, %v3670_v20  ;;  %v15081_v32 = vmax.f32 %v11406_v29, 0.0  ;;  %v3673_v20 = vadd.f32 %v11442_v33, %v11227_v30  ;;  %v4765_v29 = vld [vmem:[%s14132_s8 + $0xa8] sm:$0xff] }
 0x677   : > { %4472 = vmatmul.f32.gmra.mxu0 %v4073_v40  ;;  %4900 = vmatpush.msrb.mxu3 %v4765_v29  ;;  %v3875_v29 = vadd.f32 %v11329_v46, %v11390_v9  ;;  %v15083_v46 = vmax.f32 %v11444_v19, 0.0  ;;  %v3878_v19 = vadd.f32 %v11355_v7, %v11390_v9  ;;  %v4746_v7 = vld [vmem:[%s14132_s8 + $0x10] sm:$0xff] }
 0x678   : > { %4332 = vmatmul.f32.gmra.mxu3 %v14413_v1  ;;  %v4750_v1 = vld [vmem:[%s14132_s8 + $0x30] sm:$0xff]  ;;  %v4079_v58 = vmax.f32 %v3783_v60, 0.0 }
 0x679   : > { %v3975_v34 = vpop.f32.mrf.mxu1  ;;  %v11681_v17 = vpop.f32.mrf.mxu2  ;;  %4786 = vmatpush.msrb.mxu2 %v4750_v1 }
 0x67a   : > { %v11683_v22 = vadd.f32 %v3975_v34, %v3863_v2  ;;  %v3866_v2 = vadd.f32 %v11271_v0, %v11390_v9  ;;  %v4077_v0 = vmax.f32 %v3780_v51, 0.0 }
 0x67b   : > { %v11685_v40 = vpop.f32.mrf.mxu3 }
 0x67c   : > { %4022 = vmatmul.f32.gmra.mxu1 %v11371_v14  ;;  %v14416_v24 = vmax.f32 %v11683_v22, 0.0 }
 0x67e   : > { %4249 = vmatmul.f32.gmra.mxu2 %v4075_v42 }
 0x67f   : > { %4475 = vmatmul.f32.gmra.mxu0 %v4075_v42  ;;  %v11704_v42 = vpop.f32.mrf.mxu0 }
 0x680   : > { %4335 = vmatmul.f32.gmra.mxu3 %v14416_v24 }
 0x681   : > { %v3978_v23 = vpop.f32.mrf.mxu1  ;;  %v11702_v34 = vpop.f32.mrf.mxu2 }
 0x682   : > { %v11706_v37 = vadd.f32 %v3978_v23, %v3866_v2  ;;  %v5049_v2 = vld [vmem:[%s14133_s9 + $0x70] sm:$0xff] }
 0x683   : > { %v11708_v14 = vpop.f32.mrf.mxu3  ;;  %5053 = vmatpush.msrb.mxu0 %v5049_v2  ;;  %v3872_v2 = vadd.f32 %v11311_v41, %v11390_v9  ;;  %v15082_v41 = vmax.f32 %v11427_v5, 0.0  ;;  %v5048_v5 = vld [vmem:[%s14133_s9 + $0x68] sm:$0xff] }
 0x684   : > { %4025 = vmatmul.f32.gmra.mxu1 %v11396_v21  ;;  %v14417_v1 = vmax.f32 %v11706_v37, 0.0 }
 0x685   : > { %5054 = vmatpush.msrb.mxu0 %v5048_v5 }
 0x686   : > { %4252 = vmatmul.f32.gmra.mxu2 %v4077_v0 }
 0x687   : > { %4478 = vmatmul.f32.gmra.mxu0 %v4077_v0  ;;  %v11728_v0 = vpop.f32.mrf.mxu0 }
 0x688   : > { %4338 = vmatmul.f32.gmra.mxu3 %v14417_v1 }
 0x689   : > { %v3981_v51 = vpop.f32.mrf.mxu1  ;;  %v11722_v23 = vpop.f32.mrf.mxu2 }
 0x68a   : > { %v11724_v16 = vadd.f32 %v3981_v51, %v3869_v54  ;;  %v4749_v54 = vld [vmem:[%s14132_s8 + $0x28] sm:$0xff]  ;;  %v3786_v51 = vadd.f32 %v11625_v53, %v3673_v20  ;;  %v3676_v53 = vadd.f32 %v11465_v11, %v11227_v30 }
 0x68b   : > { %v11726_v24 = vpop.f32.mrf.mxu3  ;;  %4787 = vmatpush.msrb.mxu2 %v4749_v54 }
 0x68c   : > { %4519 = vmatmul.f32.vlgmr.msrb.gmra.mxu1 %v15081_v32  ;;  %v14424_v1 = vmax.f32 %v11724_v16, 0.0  ;;  %v4081_v21 = vmax.f32 %v3786_v51, 0.0 }
 0x68e   : > { %4255 = vmatmul.f32.gmra.mxu2 %v4079_v58 }
 0x68f   : > { %4481 = vmatmul.f32.gmra.mxu0 %v4079_v58  ;;  %v11756_v20 = vpop.f32.mrf.mxu0 }
 0x690   : > { %4341 = vmatmul.f32.gmra.mxu3 %v14424_v1 }
 0x691   : > { %v3984_v33 = vpop.f32.mrf.mxu1  ;;  %v11746_v60 = vpop.f32.mrf.mxu2 }
 0x692   : > { %v11748_v58 = vadd.f32 %v3984_v33, %v3872_v2  ;;  %v3789_v2 = vadd.f32 %v11642_v26, %v3676_v53  ;;  %v4748_v26 = vld [vmem:[%s14132_s8 + $0x20] sm:$0xff]  ;;  %v3679_v53 = vadd.f32 %v11482_v39, %v11227_v30 }
 0x693   : > { %v11750_v32 = vpop.f32.mrf.mxu3  ;;  %4788 = vmatpush.msrb.mxu2 %v4748_v26  ;;  %v4764_v39 = vld [vmem:[%s14132_s8 + $0xa0] sm:$0xff] }
 0x694   : > { %4522 = vmatmul.f32.gmra.mxu1 %v15082_v41  ;;  %v14419_v54 = vmax.f32 %v11748_v58, 0.0  ;;  %v3792_v5 = vadd.f32 %v11665_v6, %v3679_v53  ;;  %4901 = vmatpush.msrb.mxu3 %v4764_v39  ;;  %v4745_v6 = vld [vmem:[%s14132_s8 + $0x8] sm:$0xff] }
 0x696   : > { %4258 = vmatmul.f32.gmra.mxu2 %v4081_v21  ;;  %v4085_v53 = vmax.f32 %v3792_v5, 0.0 }
 0x697   : > { %4484 = vmatmul.f32.gmra.mxu0 %v4081_v21  ;;  %v4083_v21 = vmax.f32 %v3789_v2, 0.0  ;;  %v11786_v2 = vpop.f32.mrf.mxu0 }
 0x698   : > { %4344 = vmatmul.f32.gmra.mxu3 %v14419_v54 }
 0x699   : > { %v3987_v51 = vpop.f32.mrf.mxu1  ;;  %v11767_v11 = vpop.f32.mrf.mxu2 }
 0x69a   : > { %v11769_v33 = vadd.f32 %v3987_v51, %v3875_v29  ;;  %v4747_v29 = vld [vmem:[%s14132_s8 + $0x18] sm:$0xff] }
 0x69b   : > { %v11771_v41 = vpop.f32.mrf.mxu3  ;;  %4789 = vmatpush.msrb.mxu2 %v4747_v29  ;;  %v4744_v29 = vld [vmem:[%s14132_s8] sm:$0xff] }
 0x69c   : > { %4525 = vmatmul.f32.gmra.mxu1 %v15083_v46  ;;  %v14420_v54 = vmax.f32 %v11769_v33, 0.0 }
 0x69d   : > { %4790 = vmatpush.msrb.mxu2 %v4746_v7 }
 0x69e   : > { %4261 = vmatmul.f32.gmra.mxu2 %v4083_v21 }
 0x69f   : > { %4487 = vmatmul.f32.gmra.mxu0 %v4083_v21  ;;  %4791 = vmatpush.msrb.mxu2 %v4745_v6  ;;  %v11826_v6 = vpop.f32.mrf.mxu0 }
 0x6a0   : > { %4347 = vmatmul.f32.gmra.mxu3 %v14420_v54  ;;  %v15084_v54 = vmax.f32 %v11467_v59, 0.0  ;;  %v5047_v59 = vld [vmem:[%s14133_s9 + $0x60] sm:$0xff] }
 0x6a1   : > { %v3990_v51 = vpop.f32.mrf.mxu1  ;;  %v11794_v21 = vpop.f32.mrf.mxu2  ;;  %4792 = vmatpush.msrb.mxu2 %v4744_v29  ;;  %5055 = vmatpush.msrb.mxu0 %v5047_v59  ;;  %v3685_v29 = vadd.f32 %v11520_v55, %v11227_v30  ;;  %v3884_v59 = vadd.f32 %v11404_v47, %v11390_v9  ;;  %v15086_v47 = vmax.f32 %v11507_v50, 0.0 }
 0x6a2   : > { %v11799_v46 = vadd.f32 %v3990_v51, %v3878_v19  ;;  %v3682_v19 = vadd.f32 %v11503_v38, %v11227_v30  ;;  %v3881_v51 = vadd.f32 %v11379_v10, %v11390_v9 }
 0x6a3   : > { %v11801_v26 = vpop.f32.mrf.mxu3 }
 0x6a4   : > { %4528 = vmatmul.f32.gmra.mxu1 %v15084_v54  ;;  %v14422_v39 = vmax.f32 %v11799_v46, 0.0  ;;  %v3795_v5 = vadd.f32 %v11685_v40, %v3682_v19  ;;  %v15085_v40 = vmax.f32 %v11484_v44, 0.0  ;;  %v4763_v44 = vld [vmem:[%s14132_s8 + $0x98] sm:$0xff] }
 0x6a5   : > { %4902 = vmatpush.msrb.mxu3 %v4763_v44 }
 0x6a6   : > { %4264 = vmatmul.f32.gmra.mxu2 %v4085_v53  ;;  %v4087_v10 = vmax.f32 %v3795_v5, 0.0 }
 0x6a7   : > { %4490 = vmatmul.f32.gmra.mxu0 %v4085_v53 }
 0x6a8   : > { %4350 = vmatmul.f32.gmra.mxu3 %v14422_v39 }
 0x6a9   : > { %v3993_v54 = vpop.f32.mrf.mxu1  ;;  %v11822_v7 = vpop.f32.mrf.mxu2 }
 0x6aa   : > { %v11824_v38 = vadd.f32 %v3993_v54, %v3881_v51  ;;  %v3798_v51 = vadd.f32 %v11708_v14, %v3685_v29  ;;  %v11851_v14 = vld [vmem:[#allocation14 + $0x6] ss:$8 sm:$0x3]  ;;  %v11853_v29 = vpop.f32.mrf.mxu0 }
 0x6ab   : > { %v11828_v53 = vpop.f32.mrf.mxu3  ;;  %v11858_v39 = vperm.slane %v11851_v14, 0 }
 0x6ac   : > { %4531 = vmatmul.f32.gmra.mxu1 %v15085_v40  ;;  %v14421_v19 = vmax.f32 %v11824_v38, 0.0 }
 0x6ae   : > { %4267 = vmatmul.f32.gmra.mxu2 %v4087_v10 }
 0x6af   : > { %4493 = vmatmul.f32.gmra.mxu0 %v4087_v10  ;;  %v4089_v10 = vmax.f32 %v3798_v51, 0.0  ;;  %v5046_v51 = vld [vmem:[%s14133_s9 + $0x58] sm:$0xff] }
 0x6b0   : > { %4353 = vmatmul.f32.gmra.mxu3 %v14421_v19  ;;  %v3688_v19 = vadd.f32 %v11543_v62, %v11227_v30  ;;  %5056 = vmatpush.msrb.mxu0 %v5046_v51  ;;  %v15088_v51 = vld [vmem:[#allocation37_spill] sm:$0xff] }
 0x6b1   : > { %v3996_v5 = vpop.f32.mrf.mxu1  ;;  %v11843_v54 = vpop.f32.mrf.mxu2  ;;  %v3890_v13 = vadd.f32 %v15088_v51, %v11390_v9  ;;  %v15090_v51 = vmax.f32 %v11545_v57, 0.0 }
 0x6b2   : > { %v11845_v55 = vadd.f32 %v3996_v5, %v3884_v59  ;;  %v3887_v59 = vadd.f32 %v11431_v52, %v11390_v9  ;;  %v3801_v50 = vadd.f32 %v11726_v24, %v3688_v19  ;;  %v4182_v5 = vadd.f32 %v11560_v12, %v11858_v39  ;;  %v11881_v1 = vpop.f32.mrf.mxu0  ;;  %v15089_v12 = vld [vmem:[#allocation35_spill] sm:$0xff] }
 0x6b3   : > { %v11847_v40 = vpop.f32.mrf.mxu3  ;;  %v15087_v19 = vmax.f32 %v11522_v63, 0.0  ;;  %v4762_v63 = vld [vmem:[%s14132_s8 + $0x90] sm:$0xff] }
 0x6b4   : > { %4534 = vmatmul.f32.gmra.mxu1 %v15086_v47  ;;  %v14423_v44 = vmax.f32 %v11845_v55, 0.0  ;;  %v4091_v52 = vmax.f32 %v3801_v50, 0.0  ;;  %v4295_v24 = vadd.f32 %v11750_v32, %v4182_v5  ;;  %4903 = vmatpush.msrb.mxu3 %v4762_v63  ;;  %v3893_v63 = vadd.f32 %v11478_v25, %v11390_v9 }
 0x6b6   : > { %4270 = vmatmul.f32.gmra.mxu2 %v4089_v10 }
 0x6b7   : > { %4496 = vmatmul.f32.gmra.mxu0 %v4089_v10 }
 0x6b8   : > { %4356 = vmatmul.f32.gmra.mxu3 %v14423_v44 }
 0x6b9   : > { %v3999_v30 = vpop.f32.mrf.mxu1  ;;  %v11869_v62 = vpop.f32.mrf.mxu2 }
 0x6ba   : > { %v11873_v10 = vadd.f32 %v3999_v30, %v3887_v59  ;;  %v11886_v59 = vadd.f32 %v4295_v24, %v15089_v12  ;;  %v4185_v30 = vadd.f32 %v11583_v43, %v11858_v39  ;;  %v15091_v43 = vld [vmem:[#allocation38_spill] sm:$0xff] }
 0x6bb   : > { %v11875_v47 = vpop.f32.mrf.mxu3 }
 0x6bc   : > { %4537 = vmatmul.f32.gmra.mxu1 %v15087_v19  ;;  %v14430_v44 = vmax.f32 %v11873_v10, 0.0  ;;  %v14426_v24 = vmax.f32 %v11886_v59, 0.0  ;;  %v4298_v19 = vadd.f32 %v11771_v41, %v4185_v30  ;;  %v5045_v41 = vld [vmem:[%s14133_s9 + $0x50] sm:$0xff]  ;;  %v4188_v30 = vadd.f32 %v11598_v45, %v11858_v39 }
 0x6bd   : > { %5057 = vmatpush.msrb.mxu0 %v5045_v41  ;;  %v3896_v41 = vadd.f32 %v11505_v49, %v11390_v9  ;;  %v15093_v45 = vld [vmem:[#allocation43_spill] sm:$0xff] }
 0x6be   : > { %4273 = vmatmul.f32.gmra.mxu2 %v4091_v52 }
 0x6bf   : > { %4499 = vmatmul.f32.gmra.mxu0 %v4091_v52 }
 0x6c0   : > { %4359 = vmatmul.f32.gmra.mxu3 %v14430_v44 }
 0x6c1   : > { %v4002_v32 = vpop.f32.mrf.mxu1  ;;  %v11893_v50 = vpop.f32.mrf.mxu2 }
 0x6c2   : > { %v11897_v5 = vadd.f32 %v4002_v32, %v3890_v13  ;;  %v11911_v13 = vadd.f32 %v4298_v19, %v15091_v43  ;;  %v4301_v19 = vadd.f32 %v11801_v26, %v4188_v30  ;;  %v15092_v43 = vmax.f32 %v11562_v35, 0.0  ;;  %v4761_v35 = vld [vmem:[%s14132_s8 + $0x88] sm:$0xff] }
 0x6c3   : > { %v11899_v52 = vpop.f32.mrf.mxu3  ;;  %4904 = vmatpush.msrb.mxu3 %v4761_v35  ;;  %v4191_v30 = vadd.f32 %v11621_v36, %v11858_v39  ;;  %v15096_v35 = vld [vmem:[#allocation95_spill] sm:$0xff]  ;;  %v15097_v36 = vld [vmem:[#allocation98_spill] sm:$0xff] }
 0x6c4   : > { %4540 = vmatmul.f32.gmra.mxu1 %v15090_v51  ;;  %v14427_v12 = vmax.f32 %v11897_v5, 0.0  ;;  %v3899_v44 = vadd.f32 %v15096_v35, %v11390_v9 }
 0x6c6   : > { %4793 = vmatmul.f32.vlgmr.msrb.gmra.mxu2 %v14426_v24  ;;  %v14428_v24 = vmax.f32 %v11911_v13, 0.0 }
 0x6c8   : > { %4362 = vmatmul.f32.gmra.mxu3 %v14427_v12 }
 0x6c9   : > { %v4005_v57 = vpop.f32.mrf.mxu1  ;;  %v11918_v32 = vpop.f32.mrf.mxu2 }
 0x6ca   : > { %v11922_v51 = vadd.f32 %v4005_v57, %v3893_v63  ;;  %v11936_v63 = vadd.f32 %v4301_v19, %v15093_v45  ;;  %v4304_v19 = vadd.f32 %v11828_v53, %v4191_v30  ;;  %v15095_v45 = vmax.f32 %v11585_v31, 0.0  ;;  %v5044_v31 = vld [vmem:[%s14133_s9 + $0x48] sm:$0xff] }
 0x6cb   : > { %v11924_v25 = vpop.f32.mrf.mxu3  ;;  %5058 = vmatpush.msrb.mxu0 %v5044_v31  ;;  %v4194_v30 = vadd.f32 %v11638_v56, %v11858_v39  ;;  %v15100_v31 = vld [vmem:[#allocation97_spill] sm:$0xff]  ;;  %v15101_v56 = vld [vmem:[#allocation102_spill] sm:$0xff] }
 0x6cc   : > { %4543 = vmatmul.f32.gmra.mxu1 %v15092_v43  ;;  %v14429_v12 = vmax.f32 %v11922_v51, 0.0  ;;  %15094 = vst [vmem:[#allocation101_spill] sm:$0xff] %v11936_v63 }
 0x6ce   : > { %4796 = vmatmul.f32.gmra.mxu2 %v14428_v24  ;;  %v14431_v24 = vmax.f32 %v11936_v63, 0.0  ;;  %v3902_v63 = vadd.f32 %v15100_v31, %v11390_v9 }
 0x6d0   : > { %4365 = vmatmul.f32.gmra.mxu3 %v14429_v12 }
 0x6d1   : > { %v4008_v26 = vpop.f32.mrf.mxu1  ;;  %v11943_v57 = vpop.f32.mrf.mxu2 }
 0x6d2   : > { %v11947_v43 = vadd.f32 %v4008_v26, %v3896_v41  ;;  %v11961_v41 = vadd.f32 %v4304_v19, %v15097_v36  ;;  %v4307_v19 = vadd.f32 %v11847_v40, %v4194_v30  ;;  %v15099_v36 = vmax.f32 %v11602_v8, 0.0  ;;  %v4760_v8 = vld [vmem:[%s14132_s8 + $0x80] sm:$0xff] }
 0x6d3   : > { %v11949_v49 = vpop.f32.mrf.mxu3  ;;  %4905 = vmatpush.msrb.mxu3 %v4760_v8  ;;  %v4197_v30 = vadd.f32 %v11661_v28, %v11858_v39  ;;  %v15103_v8 = vld [vmem:[#allocation99_spill] sm:$0xff]  ;;  %v15104_v28 = vld [vmem:[#allocation104_spill] sm:$0xff] }
 0x6d4   : > { %4546 = vmatmul.f32.gmra.mxu1 %v15095_v45  ;;  %v14432_v12 = vmax.f32 %v11947_v43, 0.0  ;;  %15098 = vst [vmem:[#allocation45_spill] sm:$0xff] %v11961_v41 }
 0x6d6   : > { %4799 = vmatmul.f32.gmra.mxu2 %v14431_v24  ;;  %v14434_v24 = vmax.f32 %v11961_v41, 0.0  ;;  %v3905_v41 = vadd.f32 %v15103_v8, %v11390_v9 }
 0x6d8   : > { %4368 = vmatmul.f32.gmra.mxu3 %v14432_v12 }
 0x6d9   : > { %v4011_v53 = vpop.f32.mrf.mxu1  ;;  %v11968_v26 = vpop.f32.mrf.mxu2 }
 0x6da   : > { %v11972_v45 = vadd.f32 %v4011_v53, %v3899_v44  ;;  %v11986_v44 = vadd.f32 %v4307_v19, %v15101_v56  ;;  %v4310_v19 = vadd.f32 %v11875_v47, %v4197_v30  ;;  %v15102_v56 = vmax.f32 %v11623_v61, 0.0  ;;  %v5043_v61 = vld [vmem:[%s14133_s9 + $0x40] sm:$0xff] }
 0x6db   : > { %v11974_v35 = vpop.f32.mrf.mxu3  ;;  %5059 = vmatpush.msrb.mxu0 %v5043_v61  ;;  %v4200_v30 = vadd.f32 %v11681_v17, %v11858_v39  ;;  %v3908_v61 = vadd.f32 %v11600_v4, %v11390_v9  ;;  %v15106_v17 = vld [vmem:[#allocation79_spill] sm:$0xff]  ;;  %v15108_v4 = vmax.f32 %v11663_v18, 0.0  ;;  %v5042_v18 = vld [vmem:[%s14133_s9 + $0x38] sm:$0xff] }
 0x6dc   : > { %4549 = vmatmul.f32.gmra.mxu1 %v15099_v36  ;;  %v14435_v12 = vmax.f32 %v11972_v45, 0.0 }
 0x6dd   : > { %5060 = vmatpush.msrb.mxu0 %v5042_v18 }
 0x6de   : > { %4802 = vmatmul.f32.gmra.mxu2 %v14434_v24  ;;  %v14437_v24 = vmax.f32 %v11986_v44, 0.0 }
 0x6e0   : > { %4371 = vmatmul.f32.gmra.mxu3 %v14435_v12 }
 0x6e1   : > { %v4014_v40 = vpop.f32.mrf.mxu1  ;;  %v11993_v53 = vpop.f32.mrf.mxu2 }
 0x6e2   : > { %v11997_v36 = vadd.f32 %v4014_v40, %v3902_v63  ;;  %v12011_v63 = vadd.f32 %v4310_v19, %v15104_v28  ;;  %v4313_v19 = vadd.f32 %v11899_v52, %v4200_v30  ;;  %v15105_v28 = vmax.f32 %v11640_v15, 0.0 }
 0x6e3   : > { %v11999_v31 = vpop.f32.mrf.mxu3  ;;  %v4203_v15 = vadd.f32 %v11702_v34, %v11858_v39  ;;  %v15109_v34 = vld [vmem:[#allocation30_spill] sm:$0xff] }
 0x6e4   : > { %4552 = vmatmul.f32.gmra.mxu1 %v15102_v56  ;;  %v14438_v12 = vmax.f32 %v11997_v36, 0.0 }
 0x6e6   : > { %4805 = vmatmul.f32.gmra.mxu2 %v14437_v24  ;;  %v14439_v24 = vmax.f32 %v12011_v63, 0.0 }
 0x6e8   : > { %4374 = vmatmul.f32.gmra.mxu3 %v14438_v12 }
 0x6e9   : > { %v4017_v47 = vpop.f32.mrf.mxu1  ;;  %v12018_v40 = vpop.f32.mrf.mxu2 }
 0x6ea   : > { %v12022_v56 = vadd.f32 %v4017_v47, %v3905_v41  ;;  %v12036_v41 = vadd.f32 %v4313_v19, %v15106_v17 }
 0x6eb   : > { %v12024_v8 = vpop.f32.mrf.mxu3 }
 0x6ec   : > { %4555 = vmatmul.f32.gmra.mxu1 %v15105_v28  ;;  %v14440_v12 = vmax.f32 %v12022_v56, 0.0  ;;  %15107 = vst [vmem:[#allocation108_spill] sm:$0xff] %v12036_v41  ;;  %v14441_v19 = vmax.f32 %v12036_v41, 0.0 }
 0x6ee   : > { %4808 = vmatmul.f32.gmra.mxu2 %v14439_v24  ;;  %v4316_v24 = vadd.f32 %v11924_v25, %v4203_v15  ;;  %v4206_v15 = vadd.f32 %v11722_v23, %v11858_v39  ;;  %v3914_v23 = vadd.f32 %v11647_v3, %v11390_v9 }
 0x6f0   : > { %4377 = vmatmul.f32.gmra.mxu3 %v14440_v12  ;;  %v3911_v12 = vadd.f32 %v11627_v48, %v11390_v9  ;;  %v15112_v9 = vmax.f32 %v11706_v37, 0.0  ;;  %v5041_v37 = vld [vmem:[%s14133_s9 + $0x30] sm:$0xff] }
 0x6f1   : > { %v4020_v52 = vpop.f32.mrf.mxu1  ;;  %v12040_v47 = vpop.f32.mrf.mxu2  ;;  %5061 = vmatpush.msrb.mxu0 %v5041_v37 }
 0x6f2   : > { %v12044_v30 = vadd.f32 %v4020_v52, %v3908_v61  ;;  %v12058_v61 = vadd.f32 %v4316_v24, %v15109_v34  ;;  %v4319_v24 = vadd.f32 %v11949_v49, %v4206_v15  ;;  %v15110_v34 = vmax.f32 %v11683_v22, 0.0 }
 0x6f3   : > { %v12046_v28 = vpop.f32.mrf.mxu3 }
 0x6f4   : > { %4558 = vmatmul.f32.gmra.mxu1 %v15108_v4  ;;  %v14442_v17 = vmax.f32 %v12044_v30, 0.0 }
 0x6f6   : > { %4811 = vmatmul.f32.gmra.mxu2 %v14441_v19  ;;  %v14445_v19 = vmax.f32 %v12058_v61, 0.0 }
 0x6f8   : > { %4380 = vmatmul.f32.gmra.mxu3 %v14442_v17  ;;  %v5227_v17 = vld [vmem:[#allocation13 + $0xf0] sm:$0xff] }
 0x6f9   : > { %v4023_v25 = vpop.f32.mrf.mxu1  ;;  %v12065_v52 = vpop.f32.mrf.mxu2  ;;  %5236 = vmatpush.msra.mxu1 %v5227_v17  ;;  %v4209_v17 = vadd.f32 %v11746_v60, %v11858_v39  ;;  %v5228_v60 = vld [vmem:[#allocation13 + $0xf8] sm:$0xff] }
 0x6fa   : > { %v12069_v4 = vadd.f32 %v4023_v25, %v3911_v12  ;;  %v15111_v12 = vld [vmem:[#allocation31_spill] sm:$0xff]  ;;  %5349 = vmatpush.msra.mxu2 %v5228_v60 }
 0x6fb   : > { %v12071_v48 = vpop.f32.mrf.mxu3  ;;  %v12083_v18 = vadd.f32 %v4319_v24, %v15111_v12  ;;  %v4322_v3 = vadd.f32 %v11974_v35, %v4209_v17 }
 0x6fc   : > { %4561 = vmatmul.f32.gmra.mxu1 %v15110_v34  ;;  %v14447_v41 = vmax.f32 %v12069_v4, 0.0  ;;  %v12096_v34 = vperm.slane %v11851_v14, 1 }
 0x6fd   : > { %v14444_v24 = vmax.f32 %v12083_v18, 0.0 }
 0x6fe   : > { %4814 = vmatmul.f32.gmra.mxu2 %v14445_v19  ;;  %v15115_v19 = vmax.f32 %v11724_v16, 0.0 }
 0x700   : > { %4383 = vmatmul.f32.gmra.mxu3 %v14447_v41  ;;  %v5225_v41 = vld [vmem:[#allocation13 + $0xe0] sm:$0xff] }
 0x701   : > { %v4026_v22 = vpop.f32.mrf.mxu1  ;;  %v12087_v49 = vpop.f32.mrf.mxu2  ;;  %5237 = vmatpush.msra.mxu1 %v5225_v41  ;;  %v4215_v41 = vadd.f32 %v11794_v21, %v11858_v39 }
 0x702   : > { %v12091_v25 = vadd.f32 %v4026_v22, %v3914_v23  ;;  %v4408_v23 = vadd.f32 %v11673_v27, %v12096_v34  ;;  %v15113_v22 = vld [vmem:[#allocation32_spill] sm:$0xff] }
 0x703   : > { %v12093_v15 = vpop.f32.mrf.mxu3  ;;  %v12108_v14 = vadd.f32 %v4322_v3, %v15113_v22  ;;  %v15114_v3 = vld [vmem:[#allocation33_spill] sm:$0xff] }
 0x704   : > { %4564 = vmatmul.f32.gmra.mxu1 %v15112_v9  ;;  %v14446_v12 = vmax.f32 %v12091_v25, 0.0  ;;  %v4212_v9 = vadd.f32 %v11767_v11, %v11858_v39  ;;  %v4411_v11 = vadd.f32 %v11704_v42, %v12096_v34  ;;  %v15119_v42 = vmax.f32 %v11748_v58, 0.0  ;;  %v5040_v58 = vld [vmem:[%s14133_s9 + $0x28] sm:$0xff] }
 0x705   : > { %5062 = vmatpush.msrb.mxu0 %v5040_v58 }
 0x706   : > { %4817 = vmatmul.f32.gmra.mxu2 %v14444_v24  ;;  %v4325_v27 = vadd.f32 %v11999_v31, %v4212_v9 }
 0x708   : > { %4386 = vmatmul.f32.gmra.mxu3 %v14446_v12  ;;  %v14448_v12 = vmax.f32 %v12108_v14, 0.0 }
 0x709   : > { %v12115_v35 = vpop.f32.mrf.mxu2  ;;  %v4520_v17 = vpop.f32.mrf.mxu1 }
 0x70a   : > { %v4521_v60 = vadd.f32 %v4520_v17, %v4408_v23  ;;  %v15116_v23 = vld [vmem:[#allocation34_spill] sm:$0xff] }
 0x70b   : > { %v12119_v24 = vpop.f32.mrf.mxu3  ;;  %v12134_v31 = vadd.f32 %v4325_v27, %v15116_v23  ;;  %v12151_v23 = vpop.f32.mrf.mxu0 }
 0x70c   : > { %v12123_v22 = vadd.f32 %v4521_v60, %v15114_v3  ;;  %4567 = vmatmul.f32.gmra.mxu1 %v15115_v19  ;;  %v4328_v60 = vadd.f32 %v12024_v8, %v4215_v41  ;;  %v15118_v3 = vld [vmem:[#allocation36_spill] sm:$0xff]  ;;  %v4414_v8 = vadd.f32 %v11728_v0, %v12096_v34 }
 0x70d   : > { %15117 = vst [vmem:[#allocation48_spill] sm:$0xff] %v12134_v31  ;;  %v14449_v27 = vmax.f32 %v12134_v31, 0.0  ;;  %v5223_v31 = vld [vmem:[#allocation13 + $0xd0] sm:$0xff] }
 0x70e   : > { %v14451_v37 = vmax.f32 %v12123_v22, 0.0  ;;  %4820 = vmatmul.f32.gmra.mxu2 %v14448_v12  ;;  %5238 = vmatpush.msra.mxu1 %v5223_v31  ;;  %v4221_v31 = vadd.f32 %v11843_v54, %v11858_v39  ;;  %v4420_v54 = vadd.f32 %v11786_v2, %v12096_v34 }
 0x710   : > { %4906 = vmatmul.f32.vlgmr.msrb.gmra.mxu3 %v14451_v37 }
 0x711   : > { %v12138_v16 = vpop.f32.mrf.mxu2  ;;  %v4523_v19 = vpop.f32.mrf.mxu1 }
 0x712   : > { %v4524_v17 = vadd.f32 %v4523_v19, %v4411_v11  ;;  %v5226_v11 = vld [vmem:[#allocation13 + $0xe8] sm:$0xff] }
 0x713   : > { %v12142_v9 = vpop.f32.mrf.mxu3  ;;  %5350 = vmatpush.msra.mxu2 %v5226_v11  ;;  %v15120_v19 = vld [vmem:[#allocation82_spill] sm:$0xff]  ;;  %v12184_v58 = vpop.f32.mrf.mxu0 }
 0x714   : > { %v12146_v12 = vadd.f32 %v4524_v17, %v15118_v3  ;;  %4570 = vmatmul.f32.gmra.mxu1 %v15119_v42  ;;  %v12159_v41 = vadd.f32 %v4328_v60, %v15120_v19  ;;  %v4218_v42 = vadd.f32 %v11822_v7, %v11858_v39  ;;  %v15122_v60 = vld [vmem:[#allocation39_spill] sm:$0xff] }
 0x716   : > { %4823 = vmatmul.f32.gmra.mxu2 %v14449_v27  ;;  %v14450_v21 = vmax.f32 %v12146_v12, 0.0  ;;  %15121 = vst [vmem:[#allocation88_spill] sm:$0xff] %v12159_v41  ;;  %v4331_v0 = vadd.f32 %v12046_v28, %v4218_v42  ;;  %v14453_v37 = vmax.f32 %v12159_v41, 0.0  ;;  %v15124_v28 = vld [vmem:[#allocation40_spill] sm:$0xff] }
 0x717   : > { %v5224_v41 = vld [vmem:[#allocation13 + $0xd8] sm:$0xff] }
 0x718   : > { %4909 = vmatmul.f32.gmra.mxu3 %v14450_v21  ;;  %v15123_v21 = vmax.f32 %v11769_v33, 0.0  ;;  %5351 = vmatpush.msra.mxu2 %v5224_v41  ;;  %v4224_v41 = vadd.f32 %v11869_v62, %v11858_v39 }
 0x719   : > { %v12166_v17 = vpop.f32.mrf.mxu2  ;;  %v4526_v3 = vpop.f32.mrf.mxu1 }
 0x71a   : > { %v4527_v11 = vadd.f32 %v4526_v3, %v4414_v8  ;;  %v4417_v8 = vadd.f32 %v11756_v20, %v12096_v34  ;;  %v12187_v3 = vadd.f32 %v4331_v0, %v15124_v28  ;;  %v15126_v20 = vld [vmem:[#allocation42_spill] sm:$0xff]  ;;  %v15127_v0 = vmax.f32 %v11799_v46, 0.0 }
 0x71b   : > { %v12170_v27 = vpop.f32.mrf.mxu3  ;;  %v5039_v46 = vld [vmem:[%s14133_s9 + $0x20] sm:$0xff] }
 0x71c   : > { %v12174_v19 = vadd.f32 %v4527_v11, %v15122_v60  ;;  %4573 = vmatmul.f32.gmra.mxu1 %v15123_v21  ;;  %15125 = vst [vmem:[#allocation90_spill] sm:$0xff] %v12187_v3  ;;  %v4334_v60 = vadd.f32 %v12071_v48, %v4221_v31  ;;  %v14456_v28 = vmax.f32 %v12187_v3, 0.0  ;;  %5063 = vmatpush.msrb.mxu0 %v5039_v46  ;;  %v5221_v3 = vld [vmem:[#allocation13 + $0xc0] sm:$0xff]  ;;  %v15131_v46 = vld [vmem:[#allocation44_spill] sm:$0xff] }
 0x71d   : > { %5239 = vmatpush.msra.mxu1 %v5221_v3 }
 0x71e   : > { %4826 = vmatmul.f32.gmra.mxu2 %v14453_v37  ;;  %v14454_v7 = vmax.f32 %v12174_v19, 0.0 }
 0x720   : > { %4912 = vmatmul.f32.gmra.mxu3 %v14454_v7 }
 0x721   : > { %v12191_v33 = vpop.f32.mrf.mxu2  ;;  %v4529_v21 = vpop.f32.mrf.mxu1 }
 0x722   : > { %v4530_v42 = vadd.f32 %v4529_v21, %v4417_v8  ;;  %v15128_v8 = vld [vmem:[#allocation106_spill] sm:$0xff] }
 0x723   : > { %v12195_v11 = vpop.f32.mrf.mxu3  ;;  %v12210_v48 = vadd.f32 %v4334_v60, %v15128_v8  ;;  %v4337_v60 = vadd.f32 %v12093_v15, %v4224_v41 }
 0x724   : > { %v12199_v37 = vadd.f32 %v4530_v42, %v15126_v20  ;;  %4576 = vmatmul.f32.gmra.mxu1 %v15127_v0  ;;  %v12221_v20 = vpop.f32.mrf.mxu0  ;;  %v15129_v0 = vld [vmem:[#allocation85_spill] sm:$0xff] }
 0x725   : > { %v12238_v15 = vadd.f32 %v4337_v60, %v15131_v46 }
 0x726   : > { %4829 = vmatmul.f32.gmra.mxu2 %v14456_v28  ;;  %v14457_v7 = vmax.f32 %v12199_v37, 0.0  ;;  %v15130_v28 = vmax.f32 %v11824_v38, 0.0 }
 0x727   : > { %15132 = vst [vmem:[#allocation92_spill] sm:$0xff] %v12238_v15  ;;  %v14460_v60 = vmax.f32 %v12238_v15, 0.0 }
 0x728   : > { %4915 = vmatmul.f32.gmra.mxu3 %v14457_v7  ;;  %v14459_v7 = vmax.f32 %v12210_v48, 0.0 }
 0x729   : > { %v12217_v21 = vpop.f32.mrf.mxu2  ;;  %v4532_v31 = vpop.f32.mrf.mxu1 }
 0x72a   : > { %v4533_v42 = vadd.f32 %v4532_v31, %v4420_v54  ;;  %v4423_v54 = vadd.f32 %v11826_v6, %v12096_v34  ;;  %v15134_v6 = vmax.f32 %v11845_v55, 0.0  ;;  %v5038_v55 = vld [vmem:[%s14133_s9 + $0x18] sm:$0xff] }
 0x72b   : > { %v12223_v2 = vpop.f32.mrf.mxu3  ;;  %5064 = vmatpush.msrb.mxu0 %v5038_v55 }
 0x72c   : > { %v12227_v8 = vadd.f32 %v4533_v42, %v15129_v0  ;;  %4579 = vmatmul.f32.gmra.mxu1 %v15130_v28  ;;  %v4227_v28 = vadd.f32 %v11893_v50, %v11858_v39  ;;  %v15133_v0 = vld [vmem:[#allocation94_spill] sm:$0xff]  ;;  %v12255_v46 = vpop.f32.mrf.mxu0 }
 0x72e   : > { %4832 = vmatmul.f32.gmra.mxu2 %v14459_v7  ;;  %v14462_v62 = vmax.f32 %v12227_v8, 0.0  ;;  %v4340_v42 = vadd.f32 %v12119_v24, %v4227_v28  ;;  %v4426_v24 = vadd.f32 %v11853_v29, %v12096_v34 }
 0x730   : > { %4918 = vmatmul.f32.gmra.mxu3 %v14462_v62  ;;  %v5219_v62 = vld [vmem:[#allocation13 + $0xb0] sm:$0xff] }
 0x731   : > { %v4535_v38 = vpop.f32.mrf.mxu1  ;;  %v12244_v3 = vpop.f32.mrf.mxu2  ;;  %5240 = vmatpush.msra.mxu1 %v5219_v62  ;;  %v4233_v62 = vadd.f32 %v11943_v57, %v11858_v39 }
 0x732   : > { %v4536_v31 = vadd.f32 %v4535_v38, %v4423_v54  ;;  %v5222_v54 = vld [vmem:[#allocation13 + $0xc8] sm:$0xff] }
 0x733   : > { %v12246_v41 = vpop.f32.mrf.mxu3  ;;  %5352 = vmatpush.msra.mxu2 %v5222_v54  ;;  %v15135_v38 = vld [vmem:[#allocation46_spill] sm:$0xff] }
 0x734   : > { %v12250_v7 = vadd.f32 %v4536_v31, %v15133_v0  ;;  %4582 = vmatmul.f32.gmra.mxu1 %v15134_v6  ;;  %v12263_v28 = vadd.f32 %v4340_v42, %v15135_v38  ;;  %v4230_v0 = vadd.f32 %v11918_v32, %v11858_v39  ;;  %v15137_v38 = vmax.f32 %v11873_v10, 0.0 }
 0x736   : > { %4835 = vmatmul.f32.gmra.mxu2 %v14460_v60  ;;  %v14461_v50 = vmax.f32 %v12250_v7, 0.0  ;;  %v4343_v29 = vadd.f32 %v12142_v9, %v4230_v0  ;;  %v15136_v60 = vld [vmem:[#allocation47_spill] sm:$0xff]  ;;  %v4429_v9 = vadd.f32 %v11881_v1, %v12096_v34  ;;  %v15141_v1 = vmax.f32 %v11897_v5, 0.0 }
 0x737   : > { %v5037_v5 = vld [vmem:[%s14133_s9 + $0x10] sm:$0xff] }
 0x738   : > { %4921 = vmatmul.f32.gmra.mxu3 %v14461_v50  ;;  %v14464_v50 = vmax.f32 %v12263_v28, 0.0  ;;  %5065 = vmatpush.msrb.mxu0 %v5037_v5  ;;  %v15146_v5 = vld [vmem:[#allocation53_spill] sm:$0xff] }
 0x739   : > { %v4538_v31 = vpop.f32.mrf.mxu1  ;;  %v12281_v15 = vpop.f32.mrf.mxu2 }
 0x73a   : > { %v4539_v6 = vadd.f32 %v4538_v31, %v4426_v24  ;;  %v12286_v24 = vpop.f32.mrf.mxu0 }
 0x73b   : > { %v12272_v54 = vpop.f32.mrf.mxu3 }
 0x73c   : > { %v12276_v42 = vadd.f32 %v4539_v6, %v15136_v60  ;;  %4585 = vmatmul.f32.gmra.mxu1 %v15137_v38  ;;  %v15138_v60 = vld [vmem:[#allocation49_spill] sm:$0xff]  ;;  %v4346_v6 = vadd.f32 %v12170_v27, %v4233_v62  ;;  %v15140_v38 = vld [vmem:[#allocation50_spill] sm:$0xff]  ;;  %v4432_v27 = vadd.f32 %v12151_v23, %v12096_v34 }
 0x73d   : > { %v12291_v55 = vadd.f32 %v4343_v29, %v15138_v60 }
 0x73e   : > { %4838 = vmatmul.f32.gmra.mxu2 %v14464_v50  ;;  %v14465_v32 = vmax.f32 %v12276_v42, 0.0 }
 0x73f   : > { %15139 = vst [vmem:[#allocation59_spill] sm:$0xff] %v12291_v55  ;;  %v14466_v29 = vmax.f32 %v12291_v55, 0.0  ;;  %v5217_v55 = vld [vmem:[#allocation13 + $0xa0] sm:$0xff] }
 0x740   : > { %4924 = vmatmul.f32.gmra.mxu3 %v14465_v32  ;;  %v5220_v32 = vld [vmem:[#allocation13 + $0xb8] sm:$0xff]  ;;  %5241 = vmatpush.msra.mxu1 %v5217_v55  ;;  %v4239_v55 = vadd.f32 %v11993_v53, %v11858_v39 }
 0x741   : > { %v4541_v10 = vpop.f32.mrf.mxu1  ;;  %v12309_v57 = vpop.f32.mrf.mxu2  ;;  %5353 = vmatpush.msra.mxu2 %v5220_v32  ;;  %v4236_v32 = vadd.f32 %v11968_v26, %v11858_v39 }
 0x742   : > { %v4542_v31 = vadd.f32 %v4541_v10, %v4429_v9  ;;  %v15142_v9 = vld [vmem:[#allocation51_spill] sm:$0xff]  ;;  %v12321_v62 = vpop.f32.mrf.mxu0 }
 0x743   : > { %v12297_v0 = vpop.f32.mrf.mxu3  ;;  %v12314_v10 = vadd.f32 %v4346_v6, %v15142_v9  ;;  %v4349_v23 = vadd.f32 %v12195_v11, %v4236_v32  ;;  %v15144_v6 = vld [vmem:[#allocation52_spill] sm:$0xff] }
 0x744   : > { %v12301_v50 = vadd.f32 %v4542_v31, %v15140_v38  ;;  %4588 = vmatmul.f32.gmra.mxu1 %v15141_v1 }
 0x745   : > { %15143 = vst [vmem:[#allocation62_spill] sm:$0xff] %v12314_v10  ;;  %v12340_v11 = vadd.f32 %v4349_v23, %v15146_v5  ;;  %v15149_v23 = vmax.f32 %v11947_v43, 0.0  ;;  %v5036_v43 = vld [vmem:[%s14133_s9 + $0x8] sm:$0xff] }
 0x746   : > { %4841 = vmatmul.f32.gmra.mxu2 %v14466_v29  ;;  %v14467_v60 = vmax.f32 %v12301_v50, 0.0  ;;  %v15145_v29 = vmax.f32 %v11922_v51, 0.0  ;;  %5066 = vmatpush.msrb.mxu0 %v5036_v43 }
 0x747   : > { %15147 = vst [vmem:[#allocation65_spill] sm:$0xff] %v12340_v11  ;;  %v14471_v5 = vmax.f32 %v12340_v11, 0.0  ;;  %v5215_v11 = vld [vmem:[#allocation13 + $0x90] sm:$0xff] }
 0x748   : > { %4927 = vmatmul.f32.gmra.mxu3 %v14467_v60  ;;  %v14469_v60 = vmax.f32 %v12314_v10, 0.0  ;;  %5242 = vmatpush.msra.mxu1 %v5215_v11 }
 0x749   : > { %v4544_v31 = vpop.f32.mrf.mxu1  ;;  %v12344_v51 = vpop.f32.mrf.mxu2 }
 0x74a   : > { %v4545_v38 = vadd.f32 %v4544_v31, %v4432_v27  ;;  %v4435_v27 = vadd.f32 %v12184_v58, %v12096_v34  ;;  %v12348_v32 = vpop.f32.mrf.mxu0  ;;  %v15148_v58 = vld [vmem:[#allocation54_spill] sm:$0xff] }
 0x74b   : > { %v12325_v1 = vpop.f32.mrf.mxu3 }
 0x74c   : > { %v12329_v9 = vadd.f32 %v4545_v38, %v15144_v6  ;;  %4591 = vmatmul.f32.gmra.mxu1 %v15145_v29  ;;  %v4352_v6 = vadd.f32 %v12223_v2, %v4239_v55 }
 0x74e   : > { %4844 = vmatmul.f32.gmra.mxu2 %v14469_v60  ;;  %v14470_v26 = vmax.f32 %v12329_v9, 0.0 }
 0x750   : > { %4930 = vmatmul.f32.gmra.mxu3 %v14470_v26  ;;  %v15150_v26 = vld [vmem:[#allocation55_spill] sm:$0xff] }
 0x751   : > { %v4547_v29 = vpop.f32.mrf.mxu1  ;;  %v12365_v2 = vadd.f32 %v4352_v6, %v15150_v26  ;;  %v15152_v26 = vld [vmem:[#allocation56_spill] sm:$0xff] }
 0x752   : > { %v4548_v31 = vadd.f32 %v4547_v29, %v4435_v27  ;;  %v5218_v27 = vld [vmem:[#allocation13 + $0xa8] sm:$0xff]  ;;  %v4438_v29 = vadd.f32 %v12221_v20, %v12096_v34  ;;  %v12385_v43 = vpop.f32.mrf.mxu0 }
 0x753   : > { %v12350_v38 = vpop.f32.mrf.mxu3  ;;  %5354 = vmatpush.msra.mxu2 %v5218_v27  ;;  %15151 = vst [vmem:[#allocation96_spill] sm:$0xff] %v12365_v2 }
 0x754   : > { %v12354_v60 = vadd.f32 %v4548_v31, %v15148_v58  ;;  %4594 = vmatmul.f32.gmra.mxu1 %v15149_v23  ;;  %v4242_v31 = vadd.f32 %v12018_v40, %v11858_v39  ;;  %v12374_v23 = vpop.f32.mrf.mxu2 }
 0x756   : > { %4847 = vmatmul.f32.gmra.mxu2 %v14471_v5  ;;  %v14472_v53 = vmax.f32 %v12354_v60, 0.0  ;;  %v4355_v20 = vadd.f32 %v12246_v41, %v4242_v31  ;;  %v15153_v5 = vmax.f32 %v11972_v45, 0.0  ;;  %v4441_v41 = vadd.f32 %v12255_v46, %v12096_v34 }
 0x757   : > { %v15157_v46 = vmax.f32 %v11997_v36, 0.0  ;;  %v5035_v36 = vld [vmem:[%s14133_s9] sm:$0xff] }
 0x758   : > { %4933 = vmatmul.f32.gmra.mxu3 %v14472_v53  ;;  %v14474_v53 = vmax.f32 %v12365_v2, 0.0  ;;  %5067 = vmatpush.msrb.mxu0 %v5035_v36  ;;  %v15162_v36 = vld [vmem:[#allocation60_spill] sm:$0xff] }
 0x759   : > { %v4550_v55 = vpop.f32.mrf.mxu1 }
 0x75a   : > { %v4551_v58 = vadd.f32 %v4550_v55, %v4438_v29  ;;  %v15154_v29 = vld [vmem:[#allocation68_spill] sm:$0xff] }
 0x75b   : > { %v12376_v27 = vpop.f32.mrf.mxu3  ;;  %v12393_v55 = vadd.f32 %v4355_v20, %v15154_v29 }
 0x75c   : > { %v12380_v6 = vadd.f32 %v4551_v58, %v15152_v26  ;;  %4597 = vmatmul.f32.gmra.mxu1 %v15153_v5  ;;  %v4245_v5 = vadd.f32 %v12040_v47, %v11858_v39  ;;  %v15156_v26 = vld [vmem:[#allocation57_spill] sm:$0xff]  ;;  %v12408_v29 = vpop.f32.mrf.mxu2 }
 0x75d   : > { %15155 = vst [vmem:[#allocation71_spill] sm:$0xff] %v12393_v55  ;;  %v14475_v20 = vmax.f32 %v12393_v55, 0.0  ;;  %v5213_v55 = vld [vmem:[#allocation13 + $0x80] sm:$0xff] }
 0x75e   : > { %4850 = vmatmul.f32.gmra.mxu2 %v14474_v53  ;;  %v14476_v40 = vmax.f32 %v12380_v6, 0.0  ;;  %v4358_v58 = vadd.f32 %v12272_v54, %v4245_v5  ;;  %v4444_v54 = vadd.f32 %v12286_v24, %v12096_v34  ;;  %v15158_v5 = vld [vmem:[#allocation58_spill] sm:$0xff]  ;;  %5243 = vmatpush.msra.mxu1 %v5213_v55  ;;  %v4251_v55 = vadd.f32 %v12087_v49, %v11858_v39 }
 0x75f   : > { %v4450_v49 = vadd.f32 %v12348_v32, %v12096_v34  ;;  %v15168_v32 = vld [vmem:[#allocation63_spill] sm:$0xff] }
 0x760   : > { %4936 = vmatmul.f32.gmra.mxu3 %v14476_v40  ;;  %v15160_v40 = vld [vmem:[#allocation72_spill] sm:$0xff] }
 0x761   : > { %v4553_v45 = vpop.f32.mrf.mxu1 }
 0x762   : > { %v4554_v31 = vadd.f32 %v4553_v45, %v4441_v41  ;;  %v5216_v41 = vld [vmem:[#allocation13 + $0x98] sm:$0xff]  ;;  %v12413_v45 = vpop.f32.mrf.mxu0 }
 0x763   : > { %v12399_v11 = vpop.f32.mrf.mxu3  ;;  %5355 = vmatpush.msra.mxu2 %v5216_v41 }
 0x764   : > { %v12403_v53 = vadd.f32 %v4554_v31, %v15156_v26  ;;  %4600 = vmatmul.f32.gmra.mxu1 %v15157_v46  ;;  %v12418_v31 = vadd.f32 %v4358_v58, %v15158_v5  ;;  %v4248_v46 = vadd.f32 %v12065_v52, %v11858_v39  ;;  %v15161_v5 = vmax.f32 %v12022_v56, 0.0 }
 0x766   : > { %4853 = vmatmul.f32.gmra.mxu2 %v14475_v20  ;;  %v14477_v47 = vmax.f32 %v12403_v53, 0.0  ;;  %15159 = vst [vmem:[#allocation37_spill] sm:$0xff] %v12418_v31  ;;  %v4361_v24 = vadd.f32 %v12297_v0, %v4248_v46  ;;  %v4447_v0 = vadd.f32 %v12321_v62, %v12096_v34  ;;  %v15165_v62 = vmax.f32 %v12044_v30, 0.0 }
 0x768   : > { %4939 = vmatmul.f32.gmra.mxu3 %v14477_v47  ;;  %v14479_v47 = vmax.f32 %v12418_v31, 0.0 }
 0x769   : > { %v4556_v26 = vpop.f32.mrf.mxu1 }
 0x76a   : > { %v4557_v20 = vadd.f32 %v4556_v26, %v4444_v54  ;;  %v12439_v54 = vpop.f32.mrf.mxu2  ;;  %v12448_v56 = vpop.f32.mrf.mxu0 }
 0x76b   : > { %v12427_v41 = vpop.f32.mrf.mxu3 }
 0x76c   : > { %v12431_v58 = vadd.f32 %v4557_v20, %v15160_v40  ;;  %4603 = vmatmul.f32.gmra.mxu1 %v15161_v5  ;;  %v12444_v40 = vadd.f32 %v4361_v24, %v15162_v36  ;;  %v4364_v5 = vadd.f32 %v12325_v1, %v4251_v55 }
 0x76e   : > { %4856 = vmatmul.f32.gmra.mxu2 %v14479_v47  ;;  %v14481_v52 = vmax.f32 %v12431_v58, 0.0  ;;  %15163 = vst [vmem:[#allocation35_spill] sm:$0xff] %v12444_v40  ;;  %v15164_v47 = vld [vmem:[#allocation109_spill] sm:$0xff]  ;;  %v14482_v24 = vmax.f32 %v12444_v40, 0.0  ;;  %v15179_v40 = vld [vmem:[#allocation70_spill] sm:$0xff] }
 0x770   : > { %4942 = vmatmul.f32.gmra.mxu3 %v14481_v52  ;;  %v5214_v52 = vld [vmem:[#allocation13 + $0x88] sm:$0xff] }
 0x771   : > { %v4559_v20 = vpop.f32.mrf.mxu1  ;;  %5356 = vmatpush.msra.mxu2 %v5214_v52 }
 0x772   : > { %v4560_v26 = vadd.f32 %v4559_v20, %v4447_v0  ;;  %v15166_v0 = vld [vmem:[#allocation61_spill] sm:$0xff]  ;;  %v12471_v30 = vpop.f32.mrf.mxu2  ;;  %v4254_v20 = vadd.f32 %v12115_v35, %v11858_v39 }
 0x773   : > { %v12452_v46 = vpop.f32.mrf.mxu3  ;;  %v12467_v1 = vadd.f32 %v4364_v5, %v15166_v0  ;;  %v15169_v5 = vmax.f32 %v12069_v4, 0.0 }
 0x774   : > { %v12456_v31 = vadd.f32 %v4560_v26, %v15164_v47  ;;  %4606 = vmatmul.f32.gmra.mxu1 %v15165_v62  ;;  %v12475_v26 = vpop.f32.mrf.mxu0  ;;  %v4367_v52 = vadd.f32 %v12350_v38, %v4254_v20  ;;  %v4453_v38 = vadd.f32 %v12385_v43, %v12096_v34  ;;  %v4257_v20 = vadd.f32 %v12138_v16, %v11858_v39 }
 0x775   : > { %15167 = vst [vmem:[#allocation38_spill] sm:$0xff] %v12467_v1  ;;  %v14484_v0 = vmax.f32 %v12467_v1, 0.0  ;;  %v15173_v43 = vmax.f32 %v12091_v25, 0.0 }
 0x776   : > { %4859 = vmatmul.f32.gmra.mxu2 %v14482_v24  ;;  %v14483_v36 = vmax.f32 %v12456_v31, 0.0 }
 0x778   : > { %4945 = vmatmul.f32.gmra.mxu3 %v14483_v36  ;;  %v5211_v36 = vld [vmem:[#allocation13 + $0x70] sm:$0xff] }
 0x779   : > { %v4562_v47 = vpop.f32.mrf.mxu1  ;;  %5244 = vmatpush.msra.mxu1 %v5211_v36 }
 0x77a   : > { %v4563_v55 = vadd.f32 %v4562_v47, %v4450_v49  ;;  %v5605_v49 = vld [vmem:[%s14135_s11 + $0x78] sm:$0xff] }
 0x77b   : > { %v12477_v62 = vpop.f32.mrf.mxu3  ;;  %5623 = vmatpush.msra.mxu3 %v5605_v49  ;;  %v15170_v47 = vld [vmem:[#allocation89_spill] sm:$0xff]  ;;  %v4370_v49 = vadd.f32 %v12376_v27, %v4257_v20  ;;  %v4456_v27 = vadd.f32 %v12413_v45, %v12096_v34  ;;  %v4260_v20 = vadd.f32 %v12166_v17, %v11858_v39  ;;  %v5604_v17 = vld [vmem:[%s14135_s11 + $0x70] sm:$0xff] }
 0x77c   : > { %v12481_v24 = vadd.f32 %v4563_v55, %v15168_v32  ;;  %4609 = vmatmul.f32.gmra.mxu1 %v15169_v5  ;;  %v12495_v4 = vadd.f32 %v4367_v52, %v15170_v47  ;;  %v12501_v32 = vpop.f32.mrf.mxu2  ;;  %v12512_v47 = vpop.f32.mrf.mxu0 }
 0x77d   : > { %5624 = vmatpush.msra.mxu3 %v5604_v17 }
 0x77e   : > { %4862 = vmatmul.f32.gmra.mxu2 %v14484_v0  ;;  %v14487_v35 = vmax.f32 %v12481_v24, 0.0  ;;  %15171 = vst [vmem:[#allocation43_spill] sm:$0xff] %v12495_v4  ;;  %v15172_v0 = vld [vmem:[#allocation64_spill] sm:$0xff]  ;;  %v14486_v52 = vmax.f32 %v12495_v4, 0.0  ;;  %v5209_v4 = vld [vmem:[#allocation13 + $0x60] sm:$0xff] }
 0x77f   : > { %5245 = vmatpush.msra.mxu1 %v5209_v4 }
 0x780   : > { %4948 = vmatmul.f32.gmra.mxu3 %v14487_v35  ;;  %v15176_v35 = vld [vmem:[#allocation67_spill] sm:$0xff] }
 0x781   : > { %v4565_v36 = vpop.f32.mrf.mxu1 }
 0x782   : > { %v4566_v55 = vadd.f32 %v4565_v36, %v4453_v38  ;;  %v5212_v38 = vld [vmem:[#allocation13 + $0x78] sm:$0xff]  ;;  %v15174_v36 = vld [vmem:[#allocation66_spill] sm:$0xff] }
 0x783   : > { %v12503_v5 = vpop.f32.mrf.mxu3  ;;  %5357 = vmatpush.msra.mxu2 %v5212_v38 }
 0x784   : > { %v12507_v1 = vadd.f32 %v4566_v55, %v15172_v0  ;;  %4612 = vmatmul.f32.gmra.mxu1 %v15173_v43  ;;  %v12520_v0 = vadd.f32 %v4370_v49, %v15174_v36  ;;  %v12533_v49 = vpop.f32.mrf.mxu2 }
 0x786   : > { %4865 = vmatmul.f32.gmra.mxu2 %v14486_v52  ;;  %v14490_v16 = vmax.f32 %v12507_v1, 0.0  ;;  %15175 = vst [vmem:[#allocation95_spill] sm:$0xff] %v12520_v0  ;;  %v4373_v52 = vadd.f32 %v12399_v11, %v4260_v20  ;;  %v14489_v45 = vmax.f32 %v12520_v0, 0.0  ;;  %v12543_v11 = vld [vmem:[#allocation14 + $0x7] ss:$0 sm:$0xff] }
 0x788   : > { %4951 = vmatmul.f32.gmra.mxu3 %v14490_v16 }
 0x789   : > { %v4568_v25 = vpop.f32.mrf.mxu1 }
 0x78a   : > { %v4569_v55 = vadd.f32 %v4568_v25, %v4456_v27  ;;  %v12541_v27 = vpop.f32.mrf.mxu0  ;;  %v15177_v25 = vld [vmem:[#allocation69_spill] sm:$0xff] }
 0x78b   : > { %v12526_v43 = vpop.f32.mrf.mxu3  ;;  %v12548_v20 = vadd.f32 %v4373_v52, %v15177_v25 }
 0x78c   : > { %v12530_v38 = vadd.f32 %v4569_v55, %v15176_v35  ;;  %v4459_v35 = vadd.f32 %v12448_v56, %v12096_v34  ;;  %v4263_v55 = vadd.f32 %v12191_v33, %v11858_v39  ;;  %v5210_v33 = vld [vmem:[#allocation13 + $0x68] sm:$0xff]  ;;  %v12564_v10 = vpop.f32.mrf.mxu2 }
 0x78d   : > { %15178 = vst [vmem:[#allocation98_spill] sm:$0xff] %v12548_v20  ;;  %v14496_v52 = vmax.f32 %v12548_v20, 0.0  ;;  %5358 = vmatpush.msra.mxu2 %v5210_v33 }
 0x78e   : > { %4868 = vmatmul.f32.gmra.mxu2 %v14489_v45  ;;  %v14494_v36 = vmax.f32 %v12530_v38, 0.0  ;;  %v4795_v45 = vadd.f32 %v12344_v51, %v12543_v11  ;;  %v4376_v17 = vadd.f32 %v12427_v41, %v4263_v55  ;;  %v4462_v51 = vadd.f32 %v12475_v26, %v12096_v34  ;;  %v15180_v41 = vld [vmem:[#allocation41_spill] sm:$0xff] }
 0x790   : > { %4954 = vmatmul.f32.gmra.mxu3 %v14494_v36 }
 0x791   : > { %v4571_v4 = vpop.f32.mrf.mxu1 }
 0x792   : > { %v4572_v16 = vadd.f32 %v4571_v4, %v4459_v35  ;;  %v12569_v35 = vadd.f32 %v4376_v17, %v15180_v41 }
 0x793   : > { %v4907_v0 = vpop.f32.mrf.mxu3 }
 0x794   : > { %v12558_v2 = vadd.f32 %v4572_v16, %v15179_v40  ;;  %v4908_v56 = vadd.f32 %v4907_v0, %v4795_v45  ;;  %15181 = vst [vmem:[#allocation97_spill] sm:$0xff] %v12569_v35  ;;  %v12573_v40 = vpop.f32.mrf.mxu0  ;;  %v4266_v0 = vadd.f32 %v12217_v21, %v11858_v39  ;;  %v4798_v45 = vadd.f32 %v12374_v23, %v12543_v11  ;;  %v12590_v23 = vld [vmem:[%s14135_s11 + $0xf8] sm:$0xff] }
 0x795   : > { %v14497_v41 = vmax.f32 %v12569_v35, 0.0  ;;  %5736 = vmatpush.msra.mxu0 %v12590_v23 }
 0x796   : > { %v5003_v25 = vmax.f32 %v4908_v56, 0.0  ;;  %4871 = vmatmul.f32.gmra.mxu2 %v14496_v52  ;;  %v14499_v36 = vmax.f32 %v12558_v2, 0.0  ;;  %v4379_v26 = vadd.f32 %v12452_v46, %v4266_v0  ;;  %v15182_v56 = vld [vmem:[#allocation73_spill] sm:$0xff]  ;;  %v5603_v46 = vld [vmem:[%s14135_s11 + $0x68] sm:$0xff] }
 0x797   : > { %5625 = vmatpush.msra.mxu3 %v5603_v46 }
 0x798   : > { %4957 = vmatmul.f32.gmra.mxu3 %v14499_v36  ;;  %5068 = vmatmul.f32.vlgmr.msrb.gmra.mxu0 %v5003_v25  ;;  %v5207_v25 = vld [vmem:[#allocation13 + $0x50] sm:$0xff]  ;;  %v5208_v36 = vld [vmem:[#allocation13 + $0x58] sm:$0xff] }
 0x799   : > { %v4574_v16 = vpop.f32.mrf.mxu1  ;;  %5246 = vmatpush.msra.mxu1 %v5207_v25  ;;  %5359 = vmatpush.msra.mxu2 %v5208_v36 }
 0x79a   : > { %v4575_v4 = vadd.f32 %v4574_v16, %v4462_v51  ;;  %v4465_v51 = vadd.f32 %v12512_v47, %v12096_v34  ;;  %v15183_v16 = vld [vmem:[#allocation74_spill] sm:$0xff] }
 0x79b   : > { %v4910_v55 = vpop.f32.mrf.mxu3  ;;  %v12599_v0 = vadd.f32 %v4379_v26, %v15183_v16  ;;  %v15185_v26 = vld [vmem:[#allocation107_spill] sm:$0xff] }
 0x79c   : > { %v12581_v17 = vadd.f32 %v4575_v4, %v15182_v56  ;;  %v4911_v33 = vadd.f32 %v4910_v55, %v4798_v45  ;;  %v12603_v45 = vpop.f32.mrf.mxu2  ;;  %v4269_v55 = vadd.f32 %v12244_v3, %v11858_v39  ;;  %v4801_v56 = vadd.f32 %v12408_v29, %v12543_v11  ;;  %v4473_v25 = vpop.f32.mrf.mxu0 }
 0x79d   : > { %15184 = vst [vmem:[#allocation102_spill] sm:$0xff] %v12599_v0  ;;  %v4468_v29 = vadd.f32 %v12541_v27, %v12096_v34 }
 0x79e   : > { %v5004_v52 = vmax.f32 %v4911_v33, 0.0  ;;  %4874 = vmatmul.f32.gmra.mxu2 %v14497_v41  ;;  %v14498_v21 = vmax.f32 %v12581_v17, 0.0  ;;  %v4382_v47 = vadd.f32 %v12477_v62, %v4269_v55  ;;  %v4804_v55 = vadd.f32 %v12439_v54, %v12543_v11  ;;  %v12641_v54 = vld [vmem:[%s14135_s11 + $0xf0] sm:$0xff] }
 0x79f   : > { %5737 = vmatpush.msra.mxu0 %v12641_v54 }
 0x7a0   : > { %4960 = vmatmul.f32.gmra.mxu3 %v14498_v21  ;;  %5071 = vmatmul.f32.gmra.mxu0 %v5004_v52  ;;  %v14500_v52 = vmax.f32 %v12599_v0, 0.0 }
 0x7a1   : > { %v4577_v4 = vpop.f32.mrf.mxu1 }
 0x7a2   : > { %v4578_v33 = vadd.f32 %v4577_v4, %v4465_v51  ;;  %v15186_v51 = vld [vmem:[#allocation75_spill] sm:$0xff] }
 0x7a3   : > { %v4913_v46 = vpop.f32.mrf.mxu3  ;;  %v12620_v4 = vadd.f32 %v4382_v47, %v15186_v51 }
 0x7a4   : > { %v12611_v16 = vadd.f32 %v4578_v33, %v15185_v26  ;;  %v4914_v41 = vadd.f32 %v4913_v46, %v4801_v56  ;;  %v12628_v33 = vpop.f32.mrf.mxu2  ;;  %v15188_v46 = vld [vmem:[#allocation76_spill] sm:$0xff] }
 0x7a5   : > { %15187 = vst [vmem:[#allocation99_spill] sm:$0xff] %v12620_v4  ;;  %v14502_v51 = vmax.f32 %v12620_v4, 0.0  ;;  %v5202_v4 = vld [vmem:[#allocation13 + $0x28] sm:$0xff] }
 0x7a6   : > { %v5005_v21 = vmax.f32 %v4914_v41, 0.0  ;;  %4877 = vmatmul.f32.gmra.mxu2 %v14500_v52  ;;  %v14501_v3 = vmax.f32 %v12611_v16, 0.0  ;;  %v4272_v41 = vadd.f32 %v12281_v15, %v11858_v39  ;;  %v4476_v52 = vpop.f32.mrf.mxu0 }
 0x7a8   : > { %4963 = vmatmul.f32.gmra.mxu3 %v14501_v3  ;;  %5074 = vmatmul.f32.gmra.mxu0 %v5005_v21  ;;  %v4385_v27 = vadd.f32 %v12503_v5, %v4272_v41  ;;  %v5205_v21 = vld [vmem:[#allocation13 + $0x40] sm:$0xff] }
 0x7a9   : > { %v4580_v62 = vpop.f32.mrf.mxu1  ;;  %5247 = vmatpush.msra.mxu1 %v5205_v21  ;;  %v5602_v5 = vld [vmem:[%s14135_s11 + $0x60] sm:$0xff] }
 0x7aa   : > { %v4581_v56 = vadd.f32 %v4580_v62, %v4468_v29  ;;  %5626 = vmatpush.msra.mxu3 %v5602_v5  ;;  %v4471_v29 = vadd.f32 %v12573_v40, %v12096_v34  ;;  %v15189_v62 = vld [vmem:[#allocation100_spill] sm:$0xff]  ;;  %v15191_v5 = vld [vmem:[#allocation77_spill] sm:$0xff] }
 0x7ab   : > { %v4916_v36 = vpop.f32.mrf.mxu3  ;;  %v12650_v41 = vadd.f32 %v4385_v27, %v15189_v62 }
 0x7ac   : > { %v12632_v47 = vadd.f32 %v4581_v56, %v15188_v46  ;;  %v4917_v26 = vadd.f32 %v4916_v36, %v4804_v55  ;;  %v4275_v56 = vadd.f32 %v12309_v57, %v11858_v39  ;;  %v4807_v36 = vadd.f32 %v12471_v30, %v12543_v11  ;;  %v5206_v57 = vld [vmem:[#allocation13 + $0x48] sm:$0xff] }
 0x7ad   : > { %15190 = vst [vmem:[#allocation104_spill] sm:$0xff] %v12650_v41  ;;  %v14503_v62 = vmax.f32 %v12650_v41, 0.0  ;;  %5360 = vmatpush.msra.mxu2 %v5206_v57 }
 0x7ae   : > { %v5006_v3 = vmax.f32 %v4917_v26, 0.0  ;;  %4880 = vmatmul.f32.gmra.mxu2 %v14502_v51  ;;  %v14506_v15 = vmax.f32 %v12632_v47, 0.0  ;;  %v4388_v21 = vadd.f32 %v12526_v43, %v4275_v56  ;;  %v12663_v51 = vpop.f32.mrf.mxu2  ;;  %v4479_v30 = vpop.f32.mrf.mxu0  ;;  %v15192_v43 = vld [vmem:[#allocation78_spill] sm:$0xff] }
 0x7b0   : > { %4966 = vmatmul.f32.gmra.mxu3 %v14506_v15  ;;  %5077 = vmatmul.f32.gmra.mxu0 %v5006_v3 }
 0x7b1   : > { %v4583_v55 = vpop.f32.mrf.mxu1 }
 0x7b2   : > { %v4584_v46 = vadd.f32 %v4583_v55, %v4471_v29  ;;  %v4474_v29 = vadd.f32 %v4473_v25, %v12096_v34  ;;  %v12670_v55 = vadd.f32 %v4388_v21, %v15192_v43  ;;  %v5203_v25 = vld [vmem:[#allocation13 + $0x30] sm:$0xff] }
 0x7b3   : > { %v4919_v26 = vpop.f32.mrf.mxu3  ;;  %5248 = vmatpush.msra.mxu1 %v5203_v25  ;;  %v15195_v25 = vld [vmem:[#allocation80_spill] sm:$0xff] }
 0x7b4   : > { %v12660_v40 = vadd.f32 %v4584_v46, %v15191_v5  ;;  %v4920_v27 = vadd.f32 %v4919_v26, %v4807_v36  ;;  %15193 = vst [vmem:[#allocation79_spill] sm:$0xff] %v12670_v55  ;;  %v4810_v36 = vadd.f32 %v12501_v32, %v12543_v11  ;;  %v15194_v5 = vld [vmem:[#allocation103_spill] sm:$0xff]  ;;  %v14504_v57 = vmax.f32 %v12670_v55, 0.0  ;;  %v5204_v55 = vld [vmem:[#allocation13 + $0x38] sm:$0xff] }
 0x7b5   : > { %v12686_v32 = vld [vmem:[%s14135_s11 + $0xe8] sm:$0xff]  ;;  %5361 = vmatpush.msra.mxu2 %v5204_v55  ;;  %v5201_v55 = vld [vmem:[#allocation13 + $0x20] sm:$0xff] }
 0x7b6   : > { %v5007_v3 = vmax.f32 %v4920_v27, 0.0  ;;  %4883 = vmatmul.f32.gmra.mxu2 %v14503_v62  ;;  %v14505_v39 = vmax.f32 %v12660_v40, 0.0  ;;  %v12691_v43 = vpop.f32.mrf.mxu2  ;;  %5738 = vmatpush.msra.mxu0 %v12686_v32 }
 0x7b7   : > { %5249 = vmatpush.msra.mxu1 %v5201_v55  ;;  %5362 = vmatpush.msra.mxu2 %v5202_v4 }
 0x7b8   : > { %4969 = vmatmul.f32.gmra.mxu3 %v14505_v39  ;;  %5080 = vmatmul.f32.gmra.mxu0 %v5007_v3 }
 0x7b9   : > { %v4586_v56 = vpop.f32.mrf.mxu1 }
 0x7ba   : > { %v4587_v46 = vadd.f32 %v4586_v56, %v4474_v29  ;;  %v5601_v29 = vld [vmem:[%s14135_s11 + $0x58] sm:$0xff]  ;;  %v4482_v56 = vpop.f32.mrf.mxu0 }
 0x7bb   : > { %v4922_v26 = vpop.f32.mrf.mxu3  ;;  %5627 = vmatpush.msra.mxu3 %v5601_v29 }
 0x7bc   : > { %v12677_v27 = vadd.f32 %v4587_v46, %v15194_v5  ;;  %v4923_v62 = vadd.f32 %v4922_v26, %v4810_v36  ;;  %v4813_v46 = vadd.f32 %v12533_v49, %v12543_v11 }
 0x7be   : > { %v5008_v21 = vmax.f32 %v4923_v62, 0.0  ;;  %4886 = vmatmul.f32.gmra.mxu2 %v14504_v57  ;;  %v14508_v3 = vmax.f32 %v12677_v27, 0.0  ;;  %v4477_v62 = vadd.f32 %v4476_v52, %v12096_v34  ;;  %v4480_v52 = vadd.f32 %v4479_v30, %v12096_v34 }
 0x7c0   : > { %4972 = vmatmul.f32.gmra.mxu3 %v14508_v3  ;;  %5083 = vmatmul.f32.gmra.mxu0 %v5008_v21  ;;  %v12706_v21 = vpop.f32.mrf.mxu2 }
 0x7c1   : > { %v4589_v36 = vpop.f32.mrf.mxu1 }
 0x7c2   : > { %v4590_v26 = vadd.f32 %v4589_v36, %v4477_v62  ;;  %v4816_v62 = vadd.f32 %v12564_v10, %v12543_v11  ;;  %v5600_v10 = vld [vmem:[%s14135_s11 + $0x50] sm:$0xff] }
 0x7c3   : > { %v4925_v5 = vpop.f32.mrf.mxu3  ;;  %5628 = vmatpush.msra.mxu3 %v5600_v10 }
 0x7c4   : > { %v12700_v57 = vadd.f32 %v4590_v26, %v15195_v25  ;;  %v4926_v39 = vadd.f32 %v4925_v5, %v4813_v46  ;;  %v4485_v26 = vpop.f32.mrf.mxu0 }
 0x7c6   : > { %v5009_v15 = vmax.f32 %v4926_v39, 0.0  ;;  %v14509_v29 = vmax.f32 %v12700_v57, 0.0  ;;  %v15196_v39 = vld [vmem:[#allocation81_spill] sm:$0xff] }
 0x7c8   : > { %4975 = vmatmul.f32.gmra.mxu3 %v14509_v29  ;;  %5086 = vmatmul.f32.gmra.mxu0 %v5009_v15  ;;  %v12717_v15 = vld [vmem:[%s14135_s11 + $0xe0] sm:$0xff] }
 0x7c9   : > { %v4592_v49 = vpop.f32.mrf.mxu1  ;;  %5739 = vmatpush.msra.mxu0 %v12717_v15 }
 0x7ca   : > { %v4593_v36 = vadd.f32 %v4592_v49, %v4480_v52  ;;  %v4483_v52 = vadd.f32 %v4482_v56, %v12096_v34 }
 0x7cb   : > { %v4928_v46 = vpop.f32.mrf.mxu3 }
 0x7cc   : > { %v12711_v5 = vadd.f32 %v4593_v36, %v15196_v39  ;;  %v4929_v25 = vadd.f32 %v4928_v46, %v4816_v62  ;;  %v4819_v62 = vadd.f32 %v12603_v45, %v12543_v11  ;;  %v12728_v46 = vpop.f32.mrf.mxu2  ;;  %v4488_v41 = vpop.f32.mrf.mxu0 }
 0x7ce   : > { %15197 = vst [vmem:[#allocation30_spill] sm:$0xff] %v12711_v5  ;;  %v5010_v30 = vmax.f32 %v4929_v25, 0.0  ;;  %v14512_v3 = vmax.f32 %v12711_v5, 0.0  ;;  %v15198_v25 = vld [vmem:[#allocation83_spill] sm:$0xff] }
 0x7d0   : > { %4978 = vmatmul.f32.gmra.mxu3 %v14512_v3  ;;  %5089 = vmatmul.f32.gmra.mxu0 %v5010_v30  ;;  %v4486_v30 = vadd.f32 %v4485_v26, %v12096_v34 }
 0x7d1   : > { %v4595_v49 = vpop.f32.mrf.mxu1 }
 0x7d2   : > { %v4596_v36 = vadd.f32 %v4595_v49, %v4483_v52  ;;  %v4822_v52 = vadd.f32 %v12628_v33, %v12543_v11  ;;  %v5599_v33 = vld [vmem:[%s14135_s11 + $0x48] sm:$0xff] }
 0x7d3   : > { %v4931_v39 = vpop.f32.mrf.mxu3  ;;  %5629 = vmatpush.msra.mxu3 %v5599_v33  ;;  %v5200_v33 = vld [vmem:[#allocation13 + $0x18] sm:$0xff] }
 0x7d4   : > { %v12731_v55 = vadd.f32 %v4596_v36, %v15198_v25  ;;  %v4932_v29 = vadd.f32 %v4931_v39, %v4819_v62  ;;  %v15200_v25 = vld [vmem:[#allocation84_spill] sm:$0xff]  ;;  %v12742_v3 = vpop.f32.mrf.mxu2  ;;  %5363 = vmatpush.msra.mxu2 %v5200_v33 }
 0x7d5   : > { %v5199_v39 = vld [vmem:[#allocation13 + $0x10] sm:$0xff] }
 0x7d6   : > { %15199 = vst [vmem:[#allocation31_spill] sm:$0xff] %v12731_v55  ;;  %v5011_v10 = vmax.f32 %v4932_v29, 0.0  ;;  %v14513_v56 = vmax.f32 %v12731_v55, 0.0  ;;  %5250 = vmatpush.msra.mxu1 %v5199_v39 }
 0x7d8   : > { %4981 = vmatmul.f32.gmra.mxu3 %v14513_v56  ;;  %5092 = vmatmul.f32.gmra.mxu0 %v5011_v10  ;;  %v12748_v10 = vld [vmem:[%s14135_s11 + $0xd8] sm:$0xff] }
 0x7d9   : > { %v4598_v45 = vpop.f32.mrf.mxu1  ;;  %5740 = vmatpush.msra.mxu0 %v12748_v10 }
 0x7da   : > { %v4599_v49 = vadd.f32 %v4598_v45, %v4486_v30  ;;  %v4491_v30 = vpop.f32.mrf.mxu0  ;;  %v4489_v45 = vadd.f32 %v4488_v41, %v12096_v34 }
 0x7db   : > { %v4934_v36 = vpop.f32.mrf.mxu3  ;;  %v4492_v41 = vadd.f32 %v4491_v30, %v12096_v34 }
 0x7dc   : > { %v12740_v62 = vadd.f32 %v4599_v49, %v15200_v25  ;;  %v4935_v29 = vadd.f32 %v4934_v36, %v4822_v52  ;;  %v4825_v49 = vadd.f32 %v12663_v51, %v12543_v11  ;;  %v12763_v20 = vpop.f32.mrf.mxu2 }
 0x7de   : > { %15201 = vst [vmem:[#allocation32_spill] sm:$0xff] %v12740_v62  ;;  %v5012_v4 = vmax.f32 %v4935_v29, 0.0  ;;  %v14518_v26 = vmax.f32 %v12740_v62, 0.0  ;;  %v15202_v29 = vld [vmem:[#allocation86_spill] sm:$0xff] }
 0x7e0   : > { %4984 = vmatmul.f32.gmra.mxu3 %v14518_v26  ;;  %5095 = vmatmul.f32.gmra.mxu0 %v5012_v4 }
 0x7e1   : > { %v4601_v52 = vpop.f32.mrf.mxu1 }
 0x7e2   : > { %v4602_v36 = vadd.f32 %v4601_v52, %v4489_v45  ;;  %v4494_v51 = vpop.f32.mrf.mxu0  ;;  %v4828_v45 = vadd.f32 %v12691_v43, %v12543_v11  ;;  %v5598_v43 = vld [vmem:[%s14135_s11 + $0x40] sm:$0xff] }
 0x7e3   : > { %v4937_v25 = vpop.f32.mrf.mxu3  ;;  %5630 = vmatpush.msra.mxu3 %v5598_v43 }
 0x7e4   : > { %v12760_v39 = vadd.f32 %v4602_v36, %v15202_v29  ;;  %v4938_v56 = vadd.f32 %v4937_v25, %v4825_v49  ;;  %v5197_v49 = vld [vmem:[#allocation13] sm:$0xff]  ;;  %v15204_v36 = vld [vmem:[#allocation87_spill] sm:$0xff] }
 0x7e5   : > { %5251 = vmatpush.msra.mxu1 %v5197_v49 }
 0x7e6   : > { %15203 = vst [vmem:[#allocation33_spill] sm:$0xff] %v12760_v39  ;;  %v5013_v0 = vmax.f32 %v4938_v56, 0.0  ;;  %v14517_v35 = vmax.f32 %v12760_v39, 0.0 }
 0x7e8   : > { %4987 = vmatmul.f32.gmra.mxu3 %v14517_v35  ;;  %5098 = vmatmul.f32.gmra.mxu0 %v5013_v0  ;;  %v12777_v0 = vld [vmem:[%s14135_s11 + $0xd0] sm:$0xff] }
 0x7e9   : > { %v4604_v4 = vpop.f32.mrf.mxu1  ;;  %5741 = vmatpush.msra.mxu0 %v12777_v0 }
 0x7ea   : > { %v4605_v52 = vadd.f32 %v4604_v4, %v4492_v41  ;;  %v4495_v41 = vadd.f32 %v4494_v51, %v12096_v34  ;;  %v4842_v4 = vpop.f32.mrf.mxu2  ;;  %v5198_v51 = vld [vmem:[#allocation13 + $0x8] sm:$0xff] }
 0x7eb   : > { %v4940_v56 = vpop.f32.mrf.mxu3  ;;  %5364 = vmatpush.msra.mxu2 %v5198_v51 }
 0x7ec   : > { %v12771_v25 = vadd.f32 %v4605_v52, %v15204_v36  ;;  %v4941_v29 = vadd.f32 %v4940_v56, %v4828_v45  ;;  %v4831_v52 = vadd.f32 %v12706_v21, %v12543_v11  ;;  %v4497_v56 = vpop.f32.mrf.mxu0  ;;  %v4834_v21 = vadd.f32 %v12728_v46, %v12543_v11 }
 0x7ee   : > { %15205 = vst [vmem:[#allocation34_spill] sm:$0xff] %v12771_v25  ;;  %v5014_v33 = vmax.f32 %v4941_v29, 0.0  ;;  %v14520_v30 = vmax.f32 %v12771_v25, 0.0  ;;  %v15206_v29 = vld [vmem:[#allocation105_spill] sm:$0xff] }
 0x7f0   : > { %4990 = vmatmul.f32.gmra.mxu3 %v14520_v30  ;;  %5101 = vmatmul.f32.gmra.mxu0 %v5014_v33  ;;  %v4498_v30 = vadd.f32 %v4497_v56, %v12096_v34  ;;  %v12804_v56 = vld [vmem:[%s14135_s11 + $0xc8] sm:$0xff] }
 0x7f1   : > { %v4607_v45 = vpop.f32.mrf.mxu1  ;;  %5742 = vmatpush.msra.mxu0 %v12804_v56 }
 0x7f2   : > { %v4608_v49 = vadd.f32 %v4607_v45, %v4495_v41  ;;  %v4845_v45 = vpop.f32.mrf.mxu2 }
 0x7f3   : > { %v4943_v36 = vpop.f32.mrf.mxu3 }
 0x7f4   : > { %v12789_v35 = vadd.f32 %v4608_v49, %v15206_v29  ;;  %v4944_v26 = vadd.f32 %v4943_v36, %v4831_v52  ;;  %v15208_v29 = vld [vmem:[#allocation91_spill] sm:$0xff]  ;;  %v4500_v36 = vpop.f32.mrf.mxu0 }
 0x7f5   : > { %v4501_v46 = vadd.f32 %v4500_v36, %v12096_v34 }
 0x7f6   : > { %15207 = vst [vmem:[#allocation36_spill] sm:$0xff] %v12789_v35  ;;  %v5015_v39 = vmax.f32 %v4944_v26, 0.0  ;;  %v14523_v43 = vmax.f32 %v12789_v35, 0.0 }
 0x7f8   : > { %4993 = vmatmul.f32.gmra.mxu3 %v14523_v43  ;;  %5104 = vmatmul.f32.gmra.mxu0 %v5015_v39  ;;  %v5597_v39 = vld [vmem:[%s14135_s11 + $0x38] sm:$0xff] }
 0x7f9   : > { %v4610_v33 = vpop.f32.mrf.mxu1  ;;  %5631 = vmatpush.msra.mxu3 %v5597_v39 }
 0x7fa   : > { %v4611_v41 = vadd.f32 %v4610_v33, %v4498_v30  ;;  %v4837_v33 = vadd.f32 %v12742_v3, %v12543_v11  ;;  %v4848_v34 = vpop.f32.mrf.mxu2 }
 0x7fb   : > { %v4946_v49 = vpop.f32.mrf.mxu3 }
 0x7fc   : > { %v12798_v52 = vadd.f32 %v4611_v41, %v15208_v29  ;;  %v4947_v26 = vadd.f32 %v4946_v49, %v4834_v21  ;;  %v15210_v49 = vld [vmem:[#allocation93_spill] sm:$0xff] }
 0x7fe   : > { %15209 = vst [vmem:[#allocation82_spill] sm:$0xff] %v12798_v52  ;;  %v5016_v25 = vmax.f32 %v4947_v26, 0.0  ;;  %v14522_v51 = vmax.f32 %v12798_v52, 0.0 }
 0x800   : > { %4996 = vmatmul.f32.gmra.mxu3 %v14522_v51  ;;  %5107 = vmatmul.f32.gmra.mxu0 %v5016_v25  ;;  %v4840_v25 = vadd.f32 %v12763_v20, %v12543_v11 }
 0x801   : > { %v4613_v30 = vpop.f32.mrf.mxu1 }
 0x802   : > { %v4614_v21 = vadd.f32 %v4613_v30, %v4501_v46  ;;  %v12826_v46 = vld [vmem:[%s14135_s11 + $0xc0] sm:$0xff]  ;;  %v4851_v30 = vpop.f32.mrf.mxu2 }
 0x803   : > { %v4949_v41 = vpop.f32.mrf.mxu3  ;;  %5743 = vmatpush.msra.mxu0 %v12826_v46 }
 0x804   : > { %v12816_v29 = vadd.f32 %v4614_v21, %v15210_v49  ;;  %v4950_v26 = vadd.f32 %v4949_v41, %v4837_v33  ;;  %v5596_v33 = vld [vmem:[%s14135_s11 + $0x30] sm:$0xff]  ;;  %v4843_v21 = vadd.f32 %v4842_v4, %v12543_v11 }
 0x805   : > { %5632 = vmatpush.msra.mxu3 %v5596_v33  ;;  %v12833_v41 = vld [vmem:[#allocation14 + $0x10] ss:$0 sm:$0xff] }
 0x806   : > { %15211 = vst [vmem:[#allocation39_spill] sm:$0xff] %v12816_v29  ;;  %v5017_v36 = vmax.f32 %v4950_v26, 0.0  ;;  %v14524_v51 = vmax.f32 %v12816_v29, 0.0 }
 0x808   : > { %4999 = vmatmul.f32.gmra.mxu3 %v14524_v51  ;;  %5110 = vmatmul.f32.gmra.mxu0 %v5017_v36 }
 0x80b   : > { %v4952_v39 = vpop.f32.mrf.mxu3 }
 0x80c   : > { %v4953_v43 = vadd.f32 %v4952_v39, %v4840_v25  ;;  %v4854_v39 = vpop.f32.mrf.mxu2 }
 0x80e   : > { %v5018_v3 = vmax.f32 %v4953_v43, 0.0 }
 0x810   : > { %5113 = vmatmul.f32.gmra.mxu0 %v5018_v3  ;;  %v4846_v3 = vadd.f32 %v4845_v45, %v12543_v11  ;;  %v5595_v45 = vld [vmem:[%s14135_s11 + $0x28] sm:$0xff] }
 0x811   : > { %5633 = vmatpush.msra.mxu3 %v5595_v45 }
 0x813   : > { %v4955_v20 = vpop.f32.mrf.mxu3 }
 0x814   : > { %v4956_v43 = vadd.f32 %v4955_v20, %v4843_v21  ;;  %v12841_v21 = vld [vmem:[%s14135_s11 + $0xb8] sm:$0xff] }
 0x815   : > { %v5069_v49 = vpop.f32.mrf.mxu0  ;;  %5744 = vmatpush.msra.mxu0 %v12841_v21 }
 0x816   : > { %v5019_v26 = vmax.f32 %v4956_v43, 0.0  ;;  %v5070_v36 = vadd.f32 %v5069_v49, %v12833_v41 }
 0x818   : > { %v5165_v25 = vmax.f32 %v5070_v36, 0.0  ;;  %5116 = vmatmul.f32.gmra.mxu0 %v5019_v26 }
 0x81a   : > { %5252 = vmatmul.f32.vlgmr.msra.gmra.mxu1 %v5165_v25  ;;  %5365 = vmatmul.f32.vlgmr.msra.gmra.mxu2 %v5165_v25 }
 0x81b   : > { %v4958_v51 = vpop.f32.mrf.mxu3 }
 0x81c   : > { %v4959_v29 = vadd.f32 %v4958_v51, %v4846_v3  ;;  %v4849_v51 = vadd.f32 %v4848_v34, %v12543_v11 }
 0x81d   : > { %v5072_v33 = vpop.f32.mrf.mxu0 }
 0x81e   : > { %v5020_v52 = vmax.f32 %v4959_v29, 0.0  ;;  %v5073_v4 = vadd.f32 %v5072_v33, %v12833_v41  ;;  %v4857_v29 = vpop.f32.mrf.mxu2 }
 0x820   : > { %v5166_v20 = vmax.f32 %v5073_v4, 0.0  ;;  %5119 = vmatmul.f32.gmra.mxu0 %v5020_v52  ;;  %v4852_v52 = vadd.f32 %v4851_v30, %v12543_v11  ;;  %v5594_v30 = vld [vmem:[%s14135_s11 + $0x20] sm:$0xff] }
 0x821   : > { %5634 = vmatpush.msra.mxu3 %v5594_v30 }
 0x822   : > { %5255 = vmatmul.f32.gmra.mxu1 %v5166_v20  ;;  %5368 = vmatmul.f32.gmra.mxu2 %v5166_v20 }
 0x823   : > { %v4961_v43 = vpop.f32.mrf.mxu3 }
 0x824   : > { %v4962_v49 = vadd.f32 %v4961_v43, %v4849_v51  ;;  %v12854_v51 = vld [vmem:[%s14135_s11 + $0xb0] sm:$0xff] }
 0x825   : > { %v5075_v26 = vpop.f32.mrf.mxu0  ;;  %5745 = vmatpush.msra.mxu0 %v12854_v51 }
 0x826   : > { %v5021_v36 = vmax.f32 %v4962_v49, 0.0  ;;  %v5076_v25 = vadd.f32 %v5075_v26, %v12833_v41  ;;  %v4860_v45 = vpop.f32.mrf.mxu2  ;;  %v4855_v49 = vadd.f32 %v4854_v39, %v12543_v11 }
 0x828   : > { %v5167_v3 = vmax.f32 %v5076_v25, 0.0  ;;  %5122 = vmatmul.f32.gmra.mxu0 %v5021_v36 }
 0x82a   : > { %5258 = vmatmul.f32.gmra.mxu1 %v5167_v3  ;;  %5371 = vmatmul.f32.gmra.mxu2 %v5167_v3 }
 0x82b   : > { %v4964_v33 = vpop.f32.mrf.mxu3 }
 0x82c   : > { %v4965_v4 = vadd.f32 %v4964_v33, %v4852_v52 }
 0x82d   : > { %v5078_v35 = vpop.f32.mrf.mxu0 }
 0x82e   : > { %v5022_v34 = vmax.f32 %v4965_v4, 0.0  ;;  %v5079_v20 = vadd.f32 %v5078_v35, %v12833_v41  ;;  %v4863_v52 = vpop.f32.mrf.mxu2  ;;  %v4858_v4 = vadd.f32 %v4857_v29, %v12543_v11  ;;  %v5593_v29 = vld [vmem:[%s14135_s11 + $0x18] sm:$0xff] }
 0x82f   : > { %5635 = vmatpush.msra.mxu3 %v5593_v29 }
 0x830   : > { %v5168_v43 = vmax.f32 %v5079_v20, 0.0  ;;  %5125 = vmatmul.f32.gmra.mxu0 %v5022_v34 }
 0x832   : > { %5261 = vmatmul.f32.gmra.mxu1 %v5168_v43  ;;  %5374 = vmatmul.f32.gmra.mxu2 %v5168_v43  ;;  %v12867_v43 = vld [vmem:[%s14135_s11 + $0xa8] sm:$0xff] }
 0x833   : > { %v4967_v26 = vpop.f32.mrf.mxu3  ;;  %5746 = vmatpush.msra.mxu0 %v12867_v43 }
 0x834   : > { %v4968_v35 = vadd.f32 %v4967_v26, %v4855_v49 }
 0x835   : > { %v5081_v36 = vpop.f32.mrf.mxu0 }
 0x836   : > { %v5023_v25 = vmax.f32 %v4968_v35, 0.0  ;;  %v5082_v3 = vadd.f32 %v5081_v36, %v12833_v41  ;;  %v4866_v26 = vpop.f32.mrf.mxu2  ;;  %v4861_v35 = vadd.f32 %v4860_v45, %v12543_v11 }
 0x838   : > { %v5169_v33 = vmax.f32 %v5082_v3, 0.0  ;;  %5128 = vmatmul.f32.gmra.mxu0 %v5023_v25 }
 0x83a   : > { %5264 = vmatmul.f32.gmra.mxu1 %v5169_v33  ;;  %5377 = vmatmul.f32.gmra.mxu2 %v5169_v33 }
 0x83b   : > { %v4970_v34 = vpop.f32.mrf.mxu3 }
 0x83c   : > { %v4971_v20 = vadd.f32 %v4970_v34, %v4858_v4 }
 0x83d   : > { %v5084_v30 = vpop.f32.mrf.mxu0 }
 0x83e   : > { %v5024_v62 = vmax.f32 %v4971_v20, 0.0  ;;  %v5085_v39 = vadd.f32 %v5084_v30, %v12833_v41  ;;  %v4869_v20 = vpop.f32.mrf.mxu2 }
 0x840   : > { %v5170_v49 = vmax.f32 %v5085_v39, 0.0  ;;  %5131 = vmatmul.f32.gmra.mxu0 %v5024_v62  ;;  %v4864_v62 = vadd.f32 %v4863_v52, %v12543_v11  ;;  %v5592_v52 = vld [vmem:[%s14135_s11 + $0x10] sm:$0xff] }
 0x841   : > { %5636 = vmatpush.msra.mxu3 %v5592_v52 }
 0x842   : > { %5267 = vmatmul.f32.gmra.mxu1 %v5170_v49  ;;  %5380 = vmatmul.f32.gmra.mxu2 %v5170_v49  ;;  %v12880_v49 = vld [vmem:[%s14135_s11 + $0xa0] sm:$0xff] }
 0x843   : > { %v4973_v36 = vpop.f32.mrf.mxu3  ;;  %5747 = vmatpush.msra.mxu0 %v12880_v49 }
 0x844   : > { %v4974_v25 = vadd.f32 %v4973_v36, %v4861_v35  ;;  %v4867_v36 = vadd.f32 %v4866_v26, %v12543_v11 }
 0x845   : > { %v5087_v3 = vpop.f32.mrf.mxu0 }
 0x846   : > { %v5025_v33 = vmax.f32 %v4974_v25, 0.0  ;;  %v5088_v4 = vadd.f32 %v5087_v3, %v12833_v41 }
 0x848   : > { %v5171_v34 = vmax.f32 %v5088_v4, 0.0  ;;  %5134 = vmatmul.f32.gmra.mxu0 %v5025_v33  ;;  %v4872_v33 = vpop.f32.mrf.mxu2 }
 0x84a   : > { %5270 = vmatmul.f32.gmra.mxu1 %v5171_v34  ;;  %5383 = vmatmul.f32.gmra.mxu2 %v5171_v34 }
 0x84b   : > { %v4976_v30 = vpop.f32.mrf.mxu3 }
 0x84c   : > { %v4977_v39 = vadd.f32 %v4976_v30, %v4864_v62 }
 0x84d   : > { %v5090_v29 = vpop.f32.mrf.mxu0 }
 0x84e   : > { %v5026_v55 = vmax.f32 %v4977_v39, 0.0  ;;  %v5091_v45 = vadd.f32 %v5090_v29, %v12833_v41 }
 0x850   : > { %v5172_v35 = vmax.f32 %v5091_v45, 0.0  ;;  %5137 = vmatmul.f32.gmra.mxu0 %v5026_v55  ;;  %v4870_v55 = vadd.f32 %v4869_v20, %v12543_v11  ;;  %v5591_v20 = vld [vmem:[%s14135_s11 + $0x8] sm:$0xff] }
 0x851   : > { %5637 = vmatpush.msra.mxu3 %v5591_v20 }
 0x852   : > { %5273 = vmatmul.f32.gmra.mxu1 %v5172_v35  ;;  %5386 = vmatmul.f32.gmra.mxu2 %v5172_v35  ;;  %v12893_v35 = vld [vmem:[%s14135_s11 + $0x98] sm:$0xff] }
 0x853   : > { %v4979_v25 = vpop.f32.mrf.mxu3  ;;  %5748 = vmatpush.msra.mxu0 %v12893_v35 }
 0x854   : > { %v4980_v3 = vadd.f32 %v4979_v25, %v4867_v36  ;;  %v4875_v36 = vpop.f32.mrf.mxu2 }
 0x855   : > { %v5093_v4 = vpop.f32.mrf.mxu0 }
 0x856   : > { %v5027_v34 = vmax.f32 %v4980_v3, 0.0  ;;  %v5094_v62 = vadd.f32 %v5093_v4, %v12833_v41  ;;  %v4873_v3 = vadd.f32 %v4872_v33, %v12543_v11 }
 0x858   : > { %v5173_v30 = vmax.f32 %v5094_v62, 0.0  ;;  %5140 = vmatmul.f32.gmra.mxu0 %v5027_v34 }
 0x85a   : > { %5276 = vmatmul.f32.gmra.mxu1 %v5173_v30  ;;  %5389 = vmatmul.f32.gmra.mxu2 %v5173_v30 }
 0x85b   : > { %v4982_v39 = vpop.f32.mrf.mxu3 }
 0x85c   : > { %v4983_v29 = vadd.f32 %v4982_v39, %v4870_v55 }
 0x85d   : > { %v5096_v45 = vpop.f32.mrf.mxu0 }
 0x85e   : > { %v5028_v52 = vmax.f32 %v4983_v29, 0.0  ;;  %v5097_v26 = vadd.f32 %v5096_v45, %v12833_v41  ;;  %v4878_v29 = vpop.f32.mrf.mxu2  ;;  %v4876_v45 = vadd.f32 %v4875_v36, %v12543_v11 }
 0x85f   : > { %v4879_v36 = vadd.f32 %v4878_v29, %v12543_v11 }
 0x860   : > { %v5174_v25 = vmax.f32 %v5097_v26, 0.0  ;;  %5143 = vmatmul.f32.gmra.mxu0 %v5028_v52 }
 0x862   : > { %5279 = vmatmul.f32.gmra.mxu1 %v5174_v25  ;;  %5392 = vmatmul.f32.gmra.mxu2 %v5174_v25  ;;  %v5608_v25 = vld [vmem:[%s14135_s11 + $0x90] sm:$0xff] }
 0x863   : > { %v4985_v4 = vpop.f32.mrf.mxu3  ;;  %5749 = vmatpush.msra.mxu0 %v5608_v25 }
 0x864   : > { %v4986_v34 = vadd.f32 %v4985_v4, %v4873_v3  ;;  %v5590_v4 = vld [vmem:[%s14135_s11] sm:$0xff] }
 0x865   : > { %v5099_v62 = vpop.f32.mrf.mxu0  ;;  %5638 = vmatpush.msra.mxu3 %v5590_v4 }
 0x866   : > { %v5029_v30 = vmax.f32 %v4986_v34, 0.0  ;;  %v5100_v55 = vadd.f32 %v5099_v62, %v12833_v41  ;;  %v4881_v34 = vpop.f32.mrf.mxu2 }
 0x867   : > { %7073 = vmatpush.msrb.mxu3 %v12590_v23  ;;  %v4882_v29 = vadd.f32 %v4881_v34, %v12543_v11 }
 0x868   : > { %v5175_v39 = vmax.f32 %v5100_v55, 0.0  ;;  %5146 = vmatmul.f32.gmra.mxu0 %v5029_v30 }
 0x869   : > { %7074 = vmatpush.msrb.mxu3 %v12641_v54  ;;  %v5607_v54 = vld [vmem:[%s14135_s11 + $0x88] sm:$0xff] }
 0x86a   : > { %5282 = vmatmul.f32.gmra.mxu1 %v5175_v39  ;;  %5395 = vmatmul.f32.gmra.mxu2 %v5175_v39 }
 0x86b   : > { %v4988_v52 = vpop.f32.mrf.mxu3  ;;  %7075 = vmatpush.msrb.mxu3 %v12686_v32  ;;  %5750 = vmatpush.msra.mxu0 %v5607_v54 }
 0x86c   : > { %v4989_v26 = vadd.f32 %v4988_v52, %v4876_v45 }
 0x86d   : > { %v5102_v20 = vpop.f32.mrf.mxu0  ;;  %7076 = vmatpush.msrb.mxu3 %v12717_v15 }
 0x86e   : > { %v5030_v5 = vmax.f32 %v4989_v26, 0.0  ;;  %v5103_v33 = vadd.f32 %v5102_v20, %v12833_v41  ;;  %v4884_v26 = vpop.f32.mrf.mxu2 }
 0x86f   : > { %7077 = vmatpush.msrb.mxu3 %v12748_v10  ;;  %v4885_v10 = vadd.f32 %v4884_v26, %v12543_v11 }
 0x870   : > { %v5176_v3 = vmax.f32 %v5103_v33, 0.0  ;;  %5149 = vmatmul.f32.gmra.mxu0 %v5030_v5 }
 0x871   : > { %7078 = vmatpush.msrb.mxu3 %v12777_v0 }
 0x872   : > { %5285 = vmatmul.f32.gmra.mxu1 %v5176_v3  ;;  %5398 = vmatmul.f32.gmra.mxu2 %v5176_v3  ;;  %v5606_v3 = vld [vmem:[%s14135_s11 + $0x80] sm:$0xff] }
 0x873   : > { %v4991_v62 = vpop.f32.mrf.mxu3  ;;  %7079 = vmatpush.msrb.mxu3 %v12804_v56  ;;  %5751 = vmatpush.msra.mxu0 %v5606_v3 }
 0x874   : > { %v4992_v30 = vadd.f32 %v4991_v62, %v4879_v36 }
 0x875   : > { %v5105_v55 = vpop.f32.mrf.mxu0  ;;  %7080 = vmatpush.msrb.mxu3 %v12826_v46 }
 0x876   : > { %v5031_v39 = vmax.f32 %v4992_v30, 0.0  ;;  %v5106_v5 = vadd.f32 %v5105_v55, %v12833_v41  ;;  %v4887_v46 = vpop.f32.mrf.mxu2 }
 0x877   : > { %7081 = vmatpush.msrb.mxu3 %v12841_v21  ;;  %v4888_v30 = vadd.f32 %v4887_v46, %v12543_v11 }
 0x878   : > { %v5177_v45 = vmax.f32 %v5106_v5, 0.0  ;;  %5152 = vmatmul.f32.gmra.mxu0 %v5031_v39 }
 0x879   : > { %7082 = vmatpush.msrb.mxu3 %v12854_v51 }
 0x87a   : > { %5288 = vmatmul.f32.gmra.mxu1 %v5177_v45  ;;  %5401 = vmatmul.f32.gmra.mxu2 %v5177_v45 }
 0x87b   : > { %v4994_v52 = vpop.f32.mrf.mxu3  ;;  %7083 = vmatpush.msrb.mxu3 %v12867_v43  ;;  %v5230_v43 = vld [vmem:[#allocation14 + $0x11] ss:$8 sm:$0x3] }
 0x87c   : > { %v4995_v23 = vadd.f32 %v4994_v52, %v4882_v29 }
 0x87d   : > { %v5108_v20 = vpop.f32.mrf.mxu0  ;;  %7084 = vmatpush.msrb.mxu3 %v12880_v49  ;;  %v12936_v49 = vperm.slane %v5230_v43, 0 }
 0x87e   : > { %v5032_v32 = vmax.f32 %v4995_v23, 0.0  ;;  %v5109_v15 = vadd.f32 %v5108_v20, %v12833_v41 }
 0x87f   : > { %7085 = vmatpush.msrb.mxu3 %v12893_v35 }
 0x880   : > { %v5178_v33 = vmax.f32 %v5109_v15, 0.0  ;;  %5155 = vmatmul.f32.gmra.mxu0 %v5032_v32 }
 0x881   : > { %7086 = vmatpush.msrb.mxu3 %v5608_v25  ;;  %v15212_v25 = vmax.f32 %v11886_v59, 0.0 }
 0x882   : > { %5291 = vmatmul.f32.gmra.mxu1 %v5178_v33  ;;  %5404 = vmatmul.f32.gmra.mxu2 %v5178_v33 }
 0x883   : > { %v4997_v4 = vpop.f32.mrf.mxu3  ;;  %7087 = vmatpush.msrb.mxu3 %v5607_v54  ;;  %v12942_v54 = vperm.slane %v5230_v43, 1 }
 0x884   : > { %v4998_v0 = vadd.f32 %v4997_v4, %v4885_v10 }
 0x885   : > { %v5111_v36 = vpop.f32.mrf.mxu0  ;;  %7088 = vmatpush.msrb.mxu3 %v5606_v3 }
 0x886   : > { %v5033_v56 = vmax.f32 %v4998_v0, 0.0  ;;  %v5112_v34 = vadd.f32 %v5111_v36, %v12833_v41  ;;  %v15213_v0 = vmax.f32 %v12123_v22, 0.0 }
 0x888   : > { %v5179_v62 = vmax.f32 %v5112_v34, 0.0  ;;  %5158 = vmatmul.f32.gmra.mxu0 %v5033_v56  ;;  %v15214_v34 = vmax.f32 %v11911_v13, 0.0  ;;  %v15216_v13 = vld [vmem:[#allocation101_spill] sm:$0xff] }
 0x88a   : > { %5294 = vmatmul.f32.gmra.mxu1 %v5179_v62  ;;  %5407 = vmatmul.f32.gmra.mxu2 %v5179_v62 }
 0x88b   : > { %v5000_v55 = vpop.f32.mrf.mxu3 }
 0x88c   : > { %v5001_v21 = vadd.f32 %v5000_v55, %v4888_v30 }
 0x88d   : > { %v5114_v39 = vpop.f32.mrf.mxu0 }
 0x88e   : > { %v5034_v51 = vmax.f32 %v5001_v21, 0.0  ;;  %v5115_v5 = vadd.f32 %v5114_v39, %v12833_v41 }
 0x890   : > { %v5180_v45 = vmax.f32 %v5115_v5, 0.0  ;;  %5161 = vmatmul.f32.gmra.mxu0 %v5034_v51  ;;  %v15215_v5 = vmax.f32 %v12146_v12, 0.0 }
 0x892   : > { %5297 = vmatmul.f32.gmra.mxu1 %v5180_v45  ;;  %5410 = vmatmul.f32.gmra.mxu2 %v5180_v45 }
 0x895   : > { %v5117_v11 = vpop.f32.mrf.mxu0 }
 0x896   : > { %v5118_v29 = vadd.f32 %v5117_v11, %v12833_v41  ;;  %v15217_v11 = vmax.f32 %v15216_v13, 0.0 }
 0x897   : > { %v5253_v52 = vpop.f32.mrf.mxu1 }
 0x898   : > { %v5181_v35 = vmax.f32 %v5118_v29, 0.0  ;;  %v5254_v23 = vadd.f32 %v5253_v52, %v12936_v49 }
 0x89a   : > { %v5462_v26 = vadd.f32 %v5254_v23, %v15212_v25  ;;  %5300 = vmatmul.f32.gmra.mxu1 %v5181_v35  ;;  %5413 = vmatmul.f32.gmra.mxu2 %v5181_v35 }
 0x89c   : > { %v5526_v20 = vmax.f32 %v5462_v26, 0.0 }
 0x89d   : > { %v5120_v32 = vpop.f32.mrf.mxu0  ;;  %v5366_v15 = vpop.f32.mrf.mxu2 }
 0x89e   : > { %v5121_v33 = vadd.f32 %v5120_v32, %v12833_v41  ;;  %v5367_v10 = vadd.f32 %v5366_v15, %v12942_v54  ;;  %5639 = vmatmul.f32.vlgmr.msra.gmra.mxu3 %v5526_v20  ;;  %v15218_v15 = vmax.f32 %v12174_v19, 0.0 }
 0x89f   : > { %v5256_v3 = vpop.f32.mrf.mxu1 }
 0x8a0   : > { %v5182_v4 = vmax.f32 %v5121_v33, 0.0  ;;  %v5463_v36 = vadd.f32 %v5367_v10, %v15213_v0  ;;  %v5257_v59 = vadd.f32 %v5256_v3, %v12936_v49  ;;  %v15219_v3 = vld [vmem:[#allocation45_spill] sm:$0xff] }
 0x8a2   : > { %v5527_v56 = vmax.f32 %v5463_v36, 0.0  ;;  %v5464_v46 = vadd.f32 %v5257_v59, %v15214_v34  ;;  %5303 = vmatmul.f32.gmra.mxu1 %v5182_v4  ;;  %5416 = vmatmul.f32.gmra.mxu2 %v5182_v4  ;;  %v15220_v4 = vmax.f32 %v15219_v3, 0.0 }
 0x8a4   : > { %5752 = vmatmul.f32.vlgmr.msra.gmra.mxu0 %v5527_v56  ;;  %v5528_v62 = vmax.f32 %v5464_v46, 0.0 }
 0x8a5   : > { %v5123_v30 = vpop.f32.mrf.mxu0  ;;  %v5369_v55 = vpop.f32.mrf.mxu2 }
 0x8a6   : > { %v5124_v21 = vadd.f32 %v5123_v30, %v12833_v41  ;;  %v5370_v39 = vadd.f32 %v5369_v55, %v12942_v54  ;;  %5642 = vmatmul.f32.gmra.mxu3 %v5528_v62  ;;  %v15221_v55 = vmax.f32 %v12199_v37, 0.0 }
 0x8a7   : > { %v5259_v51 = vpop.f32.mrf.mxu1 }
 0x8a8   : > { %v5183_v22 = vmax.f32 %v5124_v21, 0.0  ;;  %v5465_v45 = vadd.f32 %v5370_v39, %v15215_v5  ;;  %v5260_v43 = vadd.f32 %v5259_v51, %v12936_v49  ;;  %v15222_v51 = vmax.f32 %v11986_v44, 0.0 }
 0x8aa   : > { %v5466_v29 = vadd.f32 %v5260_v43, %v15217_v11  ;;  %5306 = vmatmul.f32.gmra.mxu1 %v5183_v22  ;;  %5419 = vmatmul.f32.gmra.mxu2 %v5183_v22  ;;  %v5529_v52 = vmax.f32 %v5465_v45, 0.0 }
 0x8ac   : > { %5755 = vmatmul.f32.gmra.mxu0 %v5529_v52  ;;  %v5530_v35 = vmax.f32 %v5466_v29, 0.0 }
 0x8ad   : > { %v5126_v23 = vpop.f32.mrf.mxu0  ;;  %v5372_v25 = vpop.f32.mrf.mxu2 }
 0x8ae   : > { %v5127_v26 = vadd.f32 %v5126_v23, %v12833_v41  ;;  %v5373_v20 = vadd.f32 %v5372_v25, %v12942_v54  ;;  %5645 = vmatmul.f32.gmra.mxu3 %v5530_v35  ;;  %v15223_v35 = vmax.f32 %v12227_v8, 0.0  ;;  %v15224_v25 = vmax.f32 %v12011_v63, 0.0 }
 0x8af   : > { %v5262_v32 = vpop.f32.mrf.mxu1 }
 0x8b0   : > { %v5184_v12 = vmax.f32 %v5127_v26, 0.0  ;;  %v5467_v33 = vadd.f32 %v5373_v20, %v15218_v15  ;;  %v5263_v10 = vadd.f32 %v5262_v32, %v12936_v49 }
 0x8b2   : > { %v5468_v0 = vadd.f32 %v5263_v10, %v15220_v4  ;;  %5309 = vmatmul.f32.gmra.mxu1 %v5184_v12  ;;  %5422 = vmatmul.f32.gmra.mxu2 %v5184_v12  ;;  %v5531_v36 = vmax.f32 %v5467_v33, 0.0  ;;  %v15225_v4 = vmax.f32 %v12250_v7, 0.0 }
 0x8b4   : > { %5758 = vmatmul.f32.gmra.mxu0 %v5531_v36  ;;  %v5532_v59 = vmax.f32 %v5468_v0, 0.0  ;;  %v15226_v36 = vld [vmem:[#allocation108_spill] sm:$0xff] }
 0x8b5   : > { %v5129_v56 = vpop.f32.mrf.mxu0  ;;  %v5375_v34 = vpop.f32.mrf.mxu2 }
 0x8b6   : > { %v5130_v46 = vadd.f32 %v5129_v56, %v12833_v41  ;;  %v5376_v62 = vadd.f32 %v5375_v34, %v12942_v54  ;;  %5648 = vmatmul.f32.gmra.mxu3 %v5532_v59  ;;  %v15227_v59 = vmax.f32 %v15226_v36, 0.0 }
 0x8b7   : > { %v5265_v30 = vpop.f32.mrf.mxu1 }
 0x8b8   : > { %v5185_v19 = vmax.f32 %v5130_v46, 0.0  ;;  %v5469_v21 = vadd.f32 %v5376_v62, %v15221_v55  ;;  %v5266_v39 = vadd.f32 %v5265_v30, %v12936_v49 }
 0x8ba   : > { %v5470_v22 = vadd.f32 %v5266_v39, %v15222_v51  ;;  %5312 = vmatmul.f32.gmra.mxu1 %v5185_v19  ;;  %5425 = vmatmul.f32.gmra.mxu2 %v5185_v19  ;;  %v5533_v5 = vmax.f32 %v5469_v21, 0.0  ;;  %v15228_v39 = vmax.f32 %v12276_v42, 0.0 }
 0x8bc   : > { %5761 = vmatmul.f32.gmra.mxu0 %v5533_v5  ;;  %v5534_v45 = vmax.f32 %v5470_v22, 0.0  ;;  %v15229_v5 = vmax.f32 %v12058_v61, 0.0 }
 0x8bd   : > { %v5132_v43 = vpop.f32.mrf.mxu0  ;;  %v5378_v13 = vpop.f32.mrf.mxu2 }
 0x8be   : > { %v5133_v11 = vadd.f32 %v5132_v43, %v12833_v41  ;;  %v5379_v29 = vadd.f32 %v5378_v13, %v12942_v54  ;;  %5651 = vmatmul.f32.gmra.mxu3 %v5534_v45 }
 0x8bf   : > { %v5268_v52 = vpop.f32.mrf.mxu1 }
 0x8c0   : > { %v5186_v37 = vmax.f32 %v5133_v11, 0.0  ;;  %v5471_v23 = vadd.f32 %v5379_v29, %v15223_v35  ;;  %v5269_v44 = vadd.f32 %v5268_v52, %v12936_v49 }
 0x8c2   : > { %v5472_v26 = vadd.f32 %v5269_v44, %v15224_v25  ;;  %5315 = vmatmul.f32.gmra.mxu1 %v5186_v37  ;;  %5428 = vmatmul.f32.gmra.mxu2 %v5186_v37  ;;  %v5535_v20 = vmax.f32 %v5471_v23, 0.0  ;;  %v15230_v23 = vmax.f32 %v12301_v50, 0.0  ;;  %v15231_v25 = vmax.f32 %v12083_v18, 0.0 }
 0x8c4   : > { %5764 = vmatmul.f32.gmra.mxu0 %v5535_v20  ;;  %v5536_v32 = vmax.f32 %v5472_v26, 0.0 }
 0x8c5   : > { %v5135_v12 = vpop.f32.mrf.mxu0  ;;  %v5381_v15 = vpop.f32.mrf.mxu2 }
 0x8c6   : > { %v5136_v33 = vadd.f32 %v5135_v12, %v12833_v41  ;;  %v5382_v10 = vadd.f32 %v5381_v15, %v12942_v54  ;;  %5654 = vmatmul.f32.gmra.mxu3 %v5536_v32 }
 0x8c7   : > { %v5271_v3 = vpop.f32.mrf.mxu1 }
 0x8c8   : > { %v5187_v8 = vmax.f32 %v5136_v33, 0.0  ;;  %v5473_v0 = vadd.f32 %v5382_v10, %v15225_v4  ;;  %v5272_v63 = vadd.f32 %v5271_v3, %v12936_v49 }
 0x8ca   : > { %v5474_v56 = vadd.f32 %v5272_v63, %v15227_v59  ;;  %5318 = vmatmul.f32.gmra.mxu1 %v5187_v8  ;;  %5431 = vmatmul.f32.gmra.mxu2 %v5187_v8  ;;  %v5537_v34 = vmax.f32 %v5473_v0, 0.0  ;;  %v15232_v8 = vmax.f32 %v12329_v9, 0.0  ;;  %v15233_v63 = vmax.f32 %v12108_v14, 0.0 }
 0x8cc   : > { %5767 = vmatmul.f32.gmra.mxu0 %v5537_v34  ;;  %v5538_v46 = vmax.f32 %v5474_v56, 0.0 }
 0x8cd   : > { %v5138_v62 = vpop.f32.mrf.mxu0  ;;  %v5384_v30 = vpop.f32.mrf.mxu2 }
 0x8ce   : > { %v5139_v19 = vadd.f32 %v5138_v62, %v12833_v41  ;;  %v5385_v55 = vadd.f32 %v5384_v30, %v12942_v54  ;;  %5657 = vmatmul.f32.gmra.mxu3 %v5538_v46 }
 0x8cf   : > { %v5274_v21 = vpop.f32.mrf.mxu1 }
 0x8d0   : > { %v5188_v7 = vmax.f32 %v5139_v19, 0.0  ;;  %v5475_v51 = vadd.f32 %v5385_v55, %v15228_v39  ;;  %v5275_v22 = vadd.f32 %v5274_v21, %v12936_v49  ;;  %v15234_v19 = vmax.f32 %v12354_v60, 0.0 }
 0x8d2   : > { %v5476_v45 = vadd.f32 %v5275_v22, %v15229_v5  ;;  %5321 = vmatmul.f32.gmra.mxu1 %v5188_v7  ;;  %5434 = vmatmul.f32.gmra.mxu2 %v5188_v7  ;;  %v5539_v43 = vmax.f32 %v5475_v51, 0.0  ;;  %v15235_v7 = vld [vmem:[#allocation48_spill] sm:$0xff] }
 0x8d3   : > { %v15236_v39 = vmax.f32 %v15235_v7, 0.0 }
 0x8d4   : > { %5770 = vmatmul.f32.gmra.mxu0 %v5539_v43  ;;  %v5540_v13 = vmax.f32 %v5476_v45, 0.0 }
 0x8d5   : > { %v5141_v11 = vpop.f32.mrf.mxu0  ;;  %v5387_v29 = vpop.f32.mrf.mxu2 }
 0x8d6   : > { %v5142_v52 = vadd.f32 %v5141_v11, %v12833_v41  ;;  %v5388_v37 = vadd.f32 %v5387_v29, %v12942_v54  ;;  %5660 = vmatmul.f32.gmra.mxu3 %v5540_v13  ;;  %v15237_v29 = vmax.f32 %v12380_v6, 0.0 }
 0x8d7   : > { %v5277_v35 = vpop.f32.mrf.mxu1 }
 0x8d8   : > { %v5189_v42 = vmax.f32 %v5142_v52, 0.0  ;;  %v5477_v44 = vadd.f32 %v5388_v37, %v15230_v23  ;;  %v5278_v61 = vadd.f32 %v5277_v35, %v12936_v49  ;;  %v7679_v35 = vmov 0  }
 0x8d9   : > { %7212 = vset.pattern.permute.xlu1 %v7679_v35  ;;  %7213 = vset.pattern.permute.xlu0 %v7679_v35 }
 0x8da   : > { %v5478_v26 = vadd.f32 %v5278_v61, %v15231_v25  ;;  %5324 = vmatmul.f32.gmra.mxu1 %v5189_v42  ;;  %5437 = vmatmul.f32.gmra.mxu2 %v5189_v42  ;;  %v5541_v20 = vmax.f32 %v5477_v44, 0.0  ;;  %v6014_v42 = vld [vmem:[#allocation14 + $0x13] ss:$0 sm:$0xff]  ;;  %v15238_v44 = vld [vmem:[#allocation88_spill] sm:$0xff] }
 0x8db   : > { %v15239_v61 = vmax.f32 %v15238_v44, 0.0  ;;  %6017 = vperm.xlu1 %7212, %v6014_v42  }
 0x8dc   : > { %v5542_v32 = vmax.f32 %v5478_v26, 0.0  ;;  %5773 = vmatmul.f32.gmra.mxu0 %v5541_v20 }
 0x8dd   : > { %v5144_v12 = vpop.f32.mrf.mxu0  ;;  %v5390_v15 = vpop.f32.mrf.mxu2 }
 0x8de   : > { %v5145_v33 = vadd.f32 %v5144_v12, %v12833_v41  ;;  %v5391_v10 = vadd.f32 %v5390_v15, %v12942_v54  ;;  %5663 = vmatmul.f32.gmra.mxu3 %v5542_v32 }
 0x8df   : > { %v5280_v3 = vpop.f32.mrf.mxu1 }
 0x8e0   : > { %v5190_v50 = vmax.f32 %v5145_v33, 0.0  ;;  %v5479_v4 = vadd.f32 %v5391_v10, %v15232_v8  ;;  %v5281_v18 = vadd.f32 %v5280_v3, %v12936_v49  ;;  %v15240_v10 = vmax.f32 %v12403_v53, 0.0 }
 0x8e2   : > { %v5543_v0 = vmax.f32 %v5479_v4, 0.0  ;;  %v5480_v36 = vadd.f32 %v5281_v18, %v15233_v63  ;;  %5327 = vmatmul.f32.gmra.mxu1 %v5190_v50  ;;  %5440 = vmatmul.f32.gmra.mxu2 %v5190_v50  ;;  %v15241_v4 = vld [vmem:[#allocation90_spill] sm:$0xff] }
 0x8e3   : > { %v15242_v18 = vmax.f32 %v15241_v4, 0.0 }
 0x8e4   : > { %v5544_v59 = vmax.f32 %v5480_v36, 0.0  ;;  %5776 = vmatmul.f32.gmra.mxu0 %v5543_v0 }
 0x8e5   : > { %v5147_v56 = vpop.f32.mrf.mxu0  ;;  %v5393_v34 = vpop.f32.mrf.mxu2 }
 0x8e6   : > { %v5148_v46 = vadd.f32 %v5147_v56, %v12833_v41  ;;  %v5394_v62 = vadd.f32 %v5393_v34, %v12942_v54  ;;  %5666 = vmatmul.f32.gmra.mxu3 %v5544_v59 }
 0x8e7   : > { %v5283_v30 = vpop.f32.mrf.mxu1 }
 0x8e8   : > { %v5191_v9 = vmax.f32 %v5148_v46, 0.0  ;;  %v5481_v55 = vadd.f32 %v5394_v62, %v15234_v19  ;;  %v5284_v21 = vadd.f32 %v5283_v30, %v12936_v49  ;;  %v15243_v62 = vmax.f32 %v12431_v58, 0.0 }
 0x8ea   : > { %v5545_v14 = vmax.f32 %v5481_v55, 0.0  ;;  %v5482_v51 = vadd.f32 %v5284_v21, %v15236_v39  ;;  %5330 = vmatmul.f32.gmra.mxu1 %v5191_v9  ;;  %5443 = vmatmul.f32.gmra.mxu2 %v5191_v9  ;;  %v15244_v55 = vmax.f32 %v12210_v48, 0.0 }
 0x8ec   : > { %v5546_v22 = vmax.f32 %v5482_v51, 0.0  ;;  %5779 = vmatmul.f32.gmra.mxu0 %v5545_v14 }
 0x8ed   : > { %v5150_v5 = vpop.f32.mrf.mxu0  ;;  %v5396_v45 = vpop.f32.mrf.mxu2 }
 0x8ee   : > { %v5151_v43 = vadd.f32 %v5150_v5, %v12833_v41  ;;  %v5397_v13 = vadd.f32 %v5396_v45, %v12942_v54  ;;  %5669 = vmatmul.f32.gmra.mxu3 %v5546_v22  ;;  %v15245_v45 = vmax.f32 %v12456_v31, 0.0 }
 0x8ef   : > { %v5286_v11 = vpop.f32.mrf.mxu1 }
 0x8f0   : > { %v5192_v60 = vmax.f32 %v5151_v43, 0.0  ;;  %v5483_v52 = vadd.f32 %v5397_v13, %v15237_v29  ;;  %v5287_v37 = vadd.f32 %v5286_v11, %v12936_v49  ;;  %v15246_v11 = vld [vmem:[#allocation92_spill] sm:$0xff] }
 0x8f2   : > { %v5547_v23 = vmax.f32 %v5483_v52, 0.0  ;;  %v5484_v25 = vadd.f32 %v5287_v37, %v15239_v61  ;;  %5333 = vmatmul.f32.gmra.mxu1 %v5192_v60  ;;  %5446 = vmatmul.f32.gmra.mxu2 %v5192_v60  ;;  %v15247_v60 = vmax.f32 %v15246_v11, 0.0  ;;  %v15248_v61 = vmax.f32 %v12481_v24, 0.0 }
 0x8f4   : > { %v5548_v26 = vmax.f32 %v5484_v25, 0.0  ;;  %5782 = vmatmul.f32.gmra.mxu0 %v5547_v23 }
 0x8f5   : > { %v5153_v20 = vpop.f32.mrf.mxu0  ;;  %v5399_v32 = vpop.f32.mrf.mxu2 }
 0x8f6   : > { %v5154_v6 = vadd.f32 %v5153_v20, %v12833_v41  ;;  %v5400_v12 = vadd.f32 %v5399_v32, %v12942_v54  ;;  %5672 = vmatmul.f32.gmra.mxu3 %v5548_v26  ;;  %v15249_v32 = vmax.f32 %v12263_v28, 0.0 }
 0x8f7   : > { %v5289_v15 = vpop.f32.mrf.mxu1 }
 0x8f8   : > { %v5193_v33 = vmax.f32 %v5154_v6, 0.0  ;;  %v5485_v3 = vadd.f32 %v5400_v12, %v15240_v10  ;;  %v5290_v50 = vadd.f32 %v5289_v15, %v12936_v49  ;;  %v15250_v10 = vmax.f32 %v12507_v1, 0.0 }
 0x8fa   : > { %v5549_v8 = vmax.f32 %v5485_v3, 0.0  ;;  %v5486_v0 = vadd.f32 %v5290_v50, %v15242_v18  ;;  %5336 = vmatmul.f32.gmra.mxu1 %v5193_v33  ;;  %5449 = vmatmul.f32.gmra.mxu2 %v5193_v33 }
 0x8fc   : > { %v5550_v63 = vmax.f32 %v5486_v0, 0.0  ;;  %5785 = vmatmul.f32.gmra.mxu0 %v5549_v8  ;;  %v15251_v8 = vld [vmem:[#allocation59_spill] sm:$0xff] }
 0x8fd   : > { %v5156_v36 = vpop.f32.mrf.mxu0  ;;  %v5402_v59 = vpop.f32.mrf.mxu2  ;;  %v15252_v4 = vmax.f32 %v15251_v8, 0.0 }
 0x8fe   : > { %v5157_v56 = vadd.f32 %v5156_v36, %v12833_v41  ;;  %v5403_v34 = vadd.f32 %v5402_v59, %v12942_v54  ;;  %5675 = vmatmul.f32.gmra.mxu3 %v5550_v63  ;;  %v13056_v59 = vld [vmem:[#allocation14 + $0x12] ss:$0 sm:$0xff] }
 0x8ff   : > { %v5292_v46 = vpop.f32.mrf.mxu1 }
 0x900   : > { %v5194_v53 = vmax.f32 %v5157_v56, 0.0  ;;  %v5487_v30 = vadd.f32 %v5403_v34, %v15243_v62  ;;  %v5293_v9 = vadd.f32 %v5292_v46, %v12936_v49  ;;  %v15253_v56 = vmax.f32 %v12530_v38, 0.0 }
 0x902   : > { %v5551_v19 = vmax.f32 %v5487_v30, 0.0  ;;  %v5488_v21 = vadd.f32 %v5293_v9, %v15244_v55  ;;  %5339 = vmatmul.f32.gmra.mxu1 %v5194_v53  ;;  %5452 = vmatmul.f32.gmra.mxu2 %v5194_v53  ;;  %v15254_v30 = vld [vmem:[#allocation62_spill] sm:$0xff] }
 0x903   : > { %v15255_v9 = vmax.f32 %v15254_v30, 0.0 }
 0x904   : > { %v5552_v14 = vmax.f32 %v5488_v21, 0.0  ;;  %5788 = vmatmul.f32.gmra.mxu0 %v5551_v19 }
 0x905   : > { %v5159_v7 = vpop.f32.mrf.mxu0  ;;  %v5405_v39 = vpop.f32.mrf.mxu2 }
 0x906   : > { %v5160_v51 = vadd.f32 %v5159_v7, %v12833_v41  ;;  %v5406_v22 = vadd.f32 %v5405_v39, %v12942_v54  ;;  %5678 = vmatmul.f32.gmra.mxu3 %v5552_v14  ;;  %v13067_v7 = vld [vmem:[%s14136_s12] ss:$0 sm:$0xff] }
 0x907   : > { %v5295_v5 = vpop.f32.mrf.mxu1 }
 0x908   : > { %v5195_v58 = vmax.f32 %v5160_v51, 0.0  ;;  %v5489_v43 = vadd.f32 %v5406_v22, %v15245_v45  ;;  %v5296_v13 = vadd.f32 %v5295_v5, %v12936_v49  ;;  %v15256_v5 = vmax.f32 %v12558_v2, 0.0 }
 0x90a   : > { %v5553_v48 = vmax.f32 %v5489_v43, 0.0  ;;  %v5490_v29 = vadd.f32 %v5296_v13, %v15247_v60  ;;  %5342 = vmatmul.f32.gmra.mxu1 %v5195_v58  ;;  %5455 = vmatmul.f32.gmra.mxu2 %v5195_v58  ;;  %v15257_v60 = vld [vmem:[#allocation65_spill] sm:$0xff] }
 0x90c   : > { %v5554_v52 = vmax.f32 %v5490_v29, 0.0  ;;  %5791 = vmatmul.f32.gmra.mxu0 %v5553_v48  ;;  %v15258_v29 = vmax.f32 %v15257_v60, 0.0 }
 0x90d   : > { %v5162_v37 = vpop.f32.mrf.mxu0  ;;  %v5408_v35 = vpop.f32.mrf.mxu2 }
 0x90e   : > { %v5163_v42 = vadd.f32 %v5162_v37, %v12833_v41  ;;  %v5409_v23 = vadd.f32 %v5408_v35, %v12942_v54  ;;  %5681 = vmatmul.f32.gmra.mxu3 %v5554_v52 }
 0x90f   : > { %v5298_v44 = vpop.f32.mrf.mxu1 }
 0x910   : > { %v5196_v31 = vmax.f32 %v5163_v42, 0.0  ;;  %v5491_v25 = vadd.f32 %v5409_v23, %v15248_v61  ;;  %v5299_v26 = vadd.f32 %v5298_v44, %v12936_v49 }
 0x912   : > { %v5555_v20 = vmax.f32 %v5491_v25, 0.0  ;;  %v5492_v6 = vadd.f32 %v5299_v26, %v15249_v32  ;;  %5345 = vmatmul.f32.gmra.mxu1 %v5196_v31  ;;  %5458 = vmatmul.f32.gmra.mxu2 %v5196_v31  ;;  %v15259_v25 = vmax.f32 %v12581_v17, 0.0 }
 0x914   : > { %v5556_v12 = vmax.f32 %v5492_v6, 0.0  ;;  %5794 = vmatmul.f32.gmra.mxu0 %v5555_v20 }
 0x915   : > { %v5411_v15 = vpop.f32.mrf.mxu2 }
 0x916   : > { %v5412_v41 = vadd.f32 %v5411_v15, %v12942_v54  ;;  %5684 = vmatmul.f32.gmra.mxu3 %v5556_v12 }
 0x917   : > { %v5301_v33 = vpop.f32.mrf.mxu1 }
 0x918   : > { %v5493_v3 = vadd.f32 %v5412_v41, %v15250_v10  ;;  %v5302_v24 = vadd.f32 %v5301_v33, %v12936_v49  ;;  %v15260_v41 = vld [vmem:[#allocation96_spill] sm:$0xff] }
 0x919   : > { %v15261_v33 = vmax.f32 %v15260_v41, 0.0 }
 0x91a   : > { %v5557_v50 = vmax.f32 %v5493_v3, 0.0  ;;  %v5494_v18 = vadd.f32 %v5302_v24, %v15252_v4 }
 0x91c   : > { %v5558_v28 = vmax.f32 %v5494_v18, 0.0  ;;  %5797 = vmatmul.f32.gmra.mxu0 %v5557_v50 }
 0x91d   : > { %v5414_v0 = vpop.f32.mrf.mxu2 }
 0x91e   : > { %v5415_v63 = vadd.f32 %v5414_v0, %v12942_v54  ;;  %5687 = vmatmul.f32.gmra.mxu3 %v5558_v28  ;;  %v15262_v0 = vmax.f32 %v12611_v16, 0.0 }
 0x91f   : > { %v5304_v36 = vpop.f32.mrf.mxu1 }
 0x920   : > { %v5495_v34 = vadd.f32 %v5415_v63, %v15253_v56  ;;  %v5305_v1 = vadd.f32 %v5304_v36, %v12936_v49 }
 0x921   : > { %v5640_v46 = vpop.f32.mrf.mxu3  ;;  %v5753_v53 = vpop.f32.mrf.mxu0 }
 0x922   : > { %v5559_v62 = vmax.f32 %v5495_v34, 0.0  ;;  %v5496_v19 = vadd.f32 %v5305_v1, %v15255_v9  ;;  %v5641_v55 = vadd.f32 %v5640_v46, %v13056_v59 }
 0x924   : > { %v5560_v21 = vmax.f32 %v5496_v19, 0.0  ;;  %v5754_v14 = vadd.f32 %v5753_v53, %v5641_v55  ;;  %5800 = vmatmul.f32.gmra.mxu0 %v5559_v62  ;;  %v15263_v53 = vld [vmem:[#allocation71_spill] sm:$0xff] }
 0x925   : > { %v5417_v38 = vpop.f32.mrf.mxu2  ;;  %v15264_v62 = vmax.f32 %v15263_v53, 0.0 }
 0x926   : > { %v5849_v39 = vmax.f32 %v5754_v14, 0.0  ;;  %v5418_v51 = vadd.f32 %v5417_v38, %v12942_v54  ;;  %5690 = vmatmul.f32.gmra.mxu3 %v5560_v21 }
 0x927   : > { %v5307_v22 = vpop.f32.mrf.mxu1 }
 0x928   : > { %v5497_v58 = vadd.f32 %v5418_v51, %v15256_v5  ;;  %v5308_v45 = vadd.f32 %v5307_v22, %v12936_v49  ;;  %v5885_v43 = vmul.f32 %v13067_v7, %v5849_v39  ;;  %v15265_v51 = vmax.f32 %v12632_v47, 0.0 }
 0x929   : > { %v5643_v13 = vpop.f32.mrf.mxu3  ;;  %v5756_v48 = vpop.f32.mrf.mxu0 }
 0x92a   : > { %v5561_v11 = vmax.f32 %v5497_v58, 0.0  ;;  %v5498_v52 = vadd.f32 %v5308_v45, %v15258_v29  ;;  %v5644_v37 = vadd.f32 %v5643_v13, %v13056_v59  ;;  %v5918_v35 = vsel %vm5917_vm1, %v5885_v43, 0.0 }
 0x92b   : > { %5919 = vadd.xlane.f32.xlu0 %v5918_v35 }
 0x92c   : > { %v5562_v42 = vmax.f32 %v5498_v52, 0.0  ;;  %v5757_v23 = vadd.f32 %v5756_v48, %v5644_v37  ;;  %5803 = vmatmul.f32.gmra.mxu0 %v5561_v11  ;;  %v15266_v48 = vld [vmem:[#allocation37_spill] sm:$0xff] }
 0x92d   : > { %v5420_v2 = vpop.f32.mrf.mxu2  ;;  %v15267_v11 = vmax.f32 %v15266_v48, 0.0 }
 0x92e   : > { %v5850_v44 = vmax.f32 %v5757_v23, 0.0  ;;  %v5421_v31 = vadd.f32 %v5420_v2, %v12942_v54  ;;  %5693 = vmatmul.f32.gmra.mxu3 %v5562_v42 }
 0x92f   : > { %v5310_v61 = vpop.f32.mrf.mxu1 }
 0x930   : > { %v5499_v26 = vadd.f32 %v5421_v31, %v15259_v25  ;;  %v5311_v20 = vadd.f32 %v5310_v61, %v12936_v49  ;;  %v5886_v32 = vmul.f32 %v13067_v7, %v5850_v44  ;;  %v15268_v44 = vmax.f32 %v12660_v40, 0.0 }
 0x931   : > { %v5646_v6 = vpop.f32.mrf.mxu3  ;;  %v5759_v12 = vpop.f32.mrf.mxu0 }
 0x932   : > { %v5563_v15 = vmax.f32 %v5499_v26, 0.0  ;;  %v5500_v10 = vadd.f32 %v5311_v20, %v15261_v33  ;;  %v5647_v3 = vadd.f32 %v5646_v6, %v13056_v59  ;;  %v5921_v24 = vsel %vm5917_vm1, %v5886_v32, 0.0  ;;  %v15269_v6 = vld [vmem:[#allocation35_spill] sm:$0xff] }
 0x933   : > { %5922 = vadd.xlane.f32.xlu0 %v5921_v24 }
 0x934   : > { %v5564_v50 = vmax.f32 %v5500_v10, 0.0  ;;  %v5760_v8 = vadd.f32 %v5759_v12, %v5647_v3  ;;  %5806 = vmatmul.f32.gmra.mxu0 %v5563_v15  ;;  %v15270_v12 = vmax.f32 %v15269_v6, 0.0 }
 0x935   : > { %v5423_v17 = vpop.f32.mrf.mxu2 }
 0x936   : > { %v5851_v4 = vmax.f32 %v5760_v8, 0.0  ;;  %v5424_v18 = vadd.f32 %v5423_v17, %v12942_v54  ;;  %5696 = vmatmul.f32.gmra.mxu3 %v5564_v50  ;;  %v15271_v17 = vmax.f32 %v12677_v27, 0.0 }
 0x937   : > { %v5313_v28 = vpop.f32.mrf.mxu1 }
 0x938   : > { %v5501_v63 = vadd.f32 %v5424_v18, %v15262_v0  ;;  %v5314_v36 = vadd.f32 %v5313_v28, %v12936_v49  ;;  %v5887_v56 = vmul.f32 %v13067_v7, %v5851_v4 }
 0x939   : > { %v5649_v34 = vpop.f32.mrf.mxu3  ;;  %v5762_v1 = vpop.f32.mrf.mxu0 }
 0x93a   : > { %v5565_v46 = vmax.f32 %v5501_v63, 0.0  ;;  %v5502_v30 = vadd.f32 %v5314_v36, %v15264_v62  ;;  %v5650_v9 = vadd.f32 %v5649_v34, %v13056_v59  ;;  %v5924_v19 = vsel %vm5917_vm1, %v5887_v56, 0.0  ;;  %v15272_v56 = vld [vmem:[#allocation38_spill] sm:$0xff] }
 0x93b   : > { %5925 = vadd.xlane.f32.xlu1 %v5924_v19  ;;  %v15273_v34 = vmax.f32 %v15272_v56, 0.0 }
 0x93c   : > { %v5566_v55 = vmax.f32 %v5502_v30, 0.0  ;;  %v5763_v21 = vadd.f32 %v5762_v1, %v5650_v9  ;;  %5809 = vmatmul.f32.gmra.mxu0 %v5565_v46 }
 0x93d   : > { %v5426_v16 = vpop.f32.mrf.mxu2 }
 0x93e   : > { %v5852_v14 = vmax.f32 %v5763_v21, 0.0  ;;  %v5427_v38 = vadd.f32 %v5426_v16, %v12942_v54  ;;  %5699 = vmatmul.f32.gmra.mxu3 %v5566_v55  ;;  %v15274_v21 = vmax.f32 %v12700_v57, 0.0 }
 0x93f   : > { %v5316_v39 = vpop.f32.mrf.mxu1 }
 0x940   : > { %v5503_v22 = vadd.f32 %v5427_v38, %v15265_v51  ;;  %v5317_v5 = vadd.f32 %v5316_v39, %v12936_v49  ;;  %v5888_v58 = vmul.f32 %v13067_v7, %v5852_v14 }
 0x941   : > { %v5652_v45 = vpop.f32.mrf.mxu3  ;;  %v5765_v43 = vpop.f32.mrf.mxu0 }
 0x942   : > { %v5567_v13 = vmax.f32 %v5503_v22, 0.0  ;;  %v5504_v60 = vadd.f32 %v5317_v5, %v15267_v11  ;;  %v5653_v29 = vadd.f32 %v5652_v45, %v13056_v59  ;;  %v5927_v52 = vsel %vm5917_vm1, %v5888_v58, 0.0  ;;  %v15275_v5 = vld [vmem:[#allocation43_spill] sm:$0xff] }
 0x943   : > { %5928 = vadd.xlane.f32.xlu1 %v5927_v52  ;;  %v15276_v58 = vmax.f32 %v15275_v5, 0.0 }
 0x944   : > { %v5568_v37 = vmax.f32 %v5504_v60, 0.0  ;;  %v5766_v35 = vadd.f32 %v5765_v43, %v5653_v29  ;;  %5812 = vmatmul.f32.gmra.mxu0 %v5567_v13 }
 0x945   : > { %v5429_v47 = vpop.f32.mrf.mxu2 }
 0x946   : > { %v5853_v42 = vmax.f32 %v5766_v35, 0.0  ;;  %v5430_v23 = vadd.f32 %v5429_v47, %v12942_v54  ;;  %5702 = vmatmul.f32.gmra.mxu3 %v5568_v37  ;;  %v15277_v37 = vld [vmem:[#allocation30_spill] sm:$0xff] }
 0x947   : > { %v5319_v2 = vpop.f32.mrf.mxu1  ;;  %v15278_v35 = vmax.f32 %v15277_v37, 0.0 }
 0x948   : > { %v5505_v31 = vadd.f32 %v5430_v23, %v15268_v44  ;;  %v5320_v61 = vadd.f32 %v5319_v2, %v12936_v49  ;;  %v5889_v25 = vmul.f32 %v13067_v7, %v5853_v42 }
 0x949   : > { %v5655_v26 = vpop.f32.mrf.mxu3  ;;  %v5768_v20 = vpop.f32.mrf.mxu0 }
 0x94a   : > { %v5569_v32 = vmax.f32 %v5505_v31, 0.0  ;;  %v5506_v15 = vadd.f32 %v5320_v61, %v15270_v12  ;;  %v5656_v41 = vadd.f32 %v5655_v26, %v13056_v59  ;;  %v5930_v33 = vsel %vm5917_vm1, %v5889_v25, 0.0  ;;  %v15279_v61 = vld [vmem:[#allocation95_spill] sm:$0xff] }
 0x94b   : > { %5931 = vadd.xlane.f32.xlu2 %v5930_v33  ;;  %v15280_v25 = vmax.f32 %v15279_v61, 0.0 }
 0x94c   : > { %v5570_v10 = vmax.f32 %v5506_v15, 0.0  ;;  %v5769_v3 = vadd.f32 %v5768_v20, %v5656_v41  ;;  %5815 = vmatmul.f32.gmra.mxu0 %v5569_v32 }
 0x94d   : > { %v5432_v40 = vpop.f32.mrf.mxu2 }
 0x94e   : > { %v5854_v24 = vmax.f32 %v5769_v3, 0.0  ;;  %v5433_v50 = vadd.f32 %v5432_v40, %v12942_v54  ;;  %5705 = vmatmul.f32.gmra.mxu3 %v5570_v10  ;;  %v15281_v3 = vld [vmem:[#allocation31_spill] sm:$0xff] }
 0x94f   : > { %v5322_v8 = vpop.f32.mrf.mxu1  ;;  %v15282_v40 = vmax.f32 %v15281_v3, 0.0 }
 0x950   : > { %v5507_v4 = vadd.f32 %v5433_v50, %v15271_v17  ;;  %v5323_v18 = vadd.f32 %v5322_v8, %v12936_v49  ;;  %v5890_v28 = vmul.f32 %v13067_v7, %v5854_v24 }
 0x951   : > { %v5658_v0 = vpop.f32.mrf.mxu3  ;;  %v5771_v63 = vpop.f32.mrf.mxu0 }
 0x952   : > { %v5571_v36 = vmax.f32 %v5507_v4, 0.0  ;;  %v5508_v1 = vadd.f32 %v5323_v18, %v15273_v34  ;;  %v5659_v46 = vadd.f32 %v5658_v0, %v13056_v59  ;;  %v5933_v53 = vsel %vm5917_vm1, %v5890_v28, 0.0  ;;  %v15283_v28 = vld [vmem:[#allocation98_spill] sm:$0xff] }
 0x953   : > { %5934 = vadd.xlane.f32.xlu2 %v5933_v53  ;;  %v15284_v0 = vmax.f32 %v15283_v28, 0.0 }
 0x954   : > { %v5572_v62 = vmax.f32 %v5508_v1, 0.0  ;;  %v5772_v30 = vadd.f32 %v5771_v63, %v5659_v46  ;;  %5818 = vmatmul.f32.gmra.mxu0 %v5571_v36 }
 0x955   : > { %v5435_v27 = vpop.f32.mrf.mxu2 }
 0x956   : > { %v5855_v9 = vmax.f32 %v5772_v30, 0.0  ;;  %v5436_v19 = vadd.f32 %v5435_v27, %v12942_v54  ;;  %5708 = vmatmul.f32.gmra.mxu3 %v5572_v62  ;;  %v15285_v27 = vld [vmem:[#allocation32_spill] sm:$0xff] }
 0x957   : > { %v5325_v55 = vpop.f32.mrf.mxu1 }
 0x958   : > { %v5509_v16 = vadd.f32 %v5436_v19, %v15274_v21  ;;  %v5326_v14 = vadd.f32 %v5325_v55, %v12936_v49  ;;  %v5891_v38 = vmul.f32 %v13067_v7, %v5855_v9  ;;  %v15286_v9 = vmax.f32 %v15285_v27, 0.0 }
 0x959   : > { %v5661_v39 = vpop.f32.mrf.mxu3  ;;  %v5774_v51 = vpop.f32.mrf.mxu0 }
 0x95a   : > { %v5573_v22 = vmax.f32 %v5509_v16, 0.0  ;;  %v5510_v45 = vadd.f32 %v5326_v14, %v15276_v58  ;;  %v5662_v43 = vadd.f32 %v5661_v39, %v13056_v59  ;;  %v5936_v13 = vsel %vm5917_vm1, %v5891_v38, 0.0  ;;  %v15287_v39 = vld [vmem:[#allocation97_spill] sm:$0xff] }
 0x95b   : > { %5937 = vadd.xlane.f32.xlu0 %v5936_v13 }
 0x95c   : > { %v5574_v48 = vmax.f32 %v5510_v45, 0.0  ;;  %v5775_v11 = vadd.f32 %v5774_v51, %v5662_v43  ;;  %5821 = vmatmul.f32.gmra.mxu0 %v5573_v22  ;;  %v15288_v51 = vmax.f32 %v15287_v39, 0.0 }
 0x95d   : > { %v5438_v57 = vpop.f32.mrf.mxu2 }
 0x95e   : > { %v5856_v60 = vmax.f32 %v5775_v11, 0.0  ;;  %v5439_v29 = vadd.f32 %v5438_v57, %v12942_v54  ;;  %5711 = vmatmul.f32.gmra.mxu3 %v5574_v48 }
 0x95f   : > { %v5328_v52 = vpop.f32.mrf.mxu1 }
 0x960   : > { %v5511_v47 = vadd.f32 %v5439_v29, %v15278_v35  ;;  %v5329_v42 = vadd.f32 %v5328_v52, %v12936_v49  ;;  %v5892_v23 = vmul.f32 %v13067_v7, %v5856_v60  ;;  %v15289_v60 = vld [vmem:[#allocation33_spill] sm:$0xff] }
 0x961   : > { %v5664_v2 = vpop.f32.mrf.mxu3  ;;  %v5777_v44 = vpop.f32.mrf.mxu0  ;;  %v15290_v29 = vmax.f32 %v15289_v60, 0.0  ;;  %v15301_v60 = vld [vmem:[#allocation79_spill] sm:$0xff] }
 0x962   : > { %v5575_v31 = vmax.f32 %v5511_v47, 0.0  ;;  %v5512_v26 = vadd.f32 %v5329_v42, %v15280_v25  ;;  %v5665_v20 = vadd.f32 %v5664_v2, %v13056_v59  ;;  %v5939_v32 = vsel %vm5917_vm1, %v5892_v23, 0.0  ;;  %v15291_v2 = vld [vmem:[#allocation102_spill] sm:$0xff] }
 0x963   : > { %5940 = vadd.xlane.f32.xlu2 %v5939_v32 }
 0x964   : > { %v5576_v6 = vmax.f32 %v5512_v26, 0.0  ;;  %v5778_v12 = vadd.f32 %v5777_v44, %v5665_v20  ;;  %5824 = vmatmul.f32.gmra.mxu0 %v5575_v31  ;;  %v15292_v44 = vmax.f32 %v15291_v2, 0.0 }
 0x965   : > { %v5441_v15 = vpop.f32.mrf.mxu2 }
 0x966   : > { %v5857_v41 = vmax.f32 %v5778_v12, 0.0  ;;  %v5442_v33 = vadd.f32 %v5441_v15, %v12942_v54  ;;  %5714 = vmatmul.f32.gmra.mxu3 %v5576_v6 }
 0x967   : > { %v5331_v10 = vpop.f32.mrf.mxu1 }
 0x968   : > { %v5513_v24 = vadd.f32 %v5442_v33, %v15282_v40  ;;  %v5332_v50 = vadd.f32 %v5331_v10, %v12936_v49  ;;  %v5893_v8 = vmul.f32 %v13067_v7, %v5857_v41  ;;  %v15293_v41 = vld [vmem:[#allocation34_spill] sm:$0xff] }
 0x969   : > { %v5667_v17 = vpop.f32.mrf.mxu3  ;;  %v5780_v4 = vpop.f32.mrf.mxu0  ;;  %v15294_v33 = vmax.f32 %v15293_v41, 0.0 }
 0x96a   : > { %v5577_v18 = vmax.f32 %v5513_v24, 0.0  ;;  %v5514_v63 = vadd.f32 %v5332_v50, %v15284_v0  ;;  %v5668_v36 = vadd.f32 %v5667_v17, %v13056_v59  ;;  %v5942_v56 = vsel %vm5917_vm1, %v5893_v8, 0.0  ;;  %v15295_v17 = vld [vmem:[#allocation99_spill] sm:$0xff] }
 0x96b   : > { %5943 = vadd.xlane.f32.xlu2 %v5942_v56 }
 0x96c   : > { %v5578_v34 = vmax.f32 %v5514_v63, 0.0  ;;  %v5781_v1 = vadd.f32 %v5780_v4, %v5668_v36  ;;  %5827 = vmatmul.f32.gmra.mxu0 %v5577_v18  ;;  %v15296_v4 = vmax.f32 %v15295_v17, 0.0 }
 0x96d   : > { %v5444_v46 = vpop.f32.mrf.mxu2 }
 0x96e   : > { %v5858_v53 = vmax.f32 %v5781_v1, 0.0  ;;  %v5445_v62 = vadd.f32 %v5444_v46, %v12942_v54  ;;  %5717 = vmatmul.f32.gmra.mxu3 %v5578_v34 }
 0x96f   : > { %v5334_v30 = vpop.f32.mrf.mxu1 }
 0x970   : > { %v5515_v19 = vadd.f32 %v5445_v62, %v15286_v9  ;;  %v5335_v55 = vadd.f32 %v5334_v30, %v12936_v49  ;;  %v5894_v21 = vmul.f32 %v13067_v7, %v5858_v53  ;;  %v15297_v53 = vld [vmem:[#allocation36_spill] sm:$0xff] }
 0x971   : > { %v5670_v16 = vpop.f32.mrf.mxu3  ;;  %v5783_v14 = vpop.f32.mrf.mxu0  ;;  %v15298_v62 = vmax.f32 %v15297_v53, 0.0 }
 0x972   : > { %v5579_v38 = vmax.f32 %v5515_v19, 0.0  ;;  %v5516_v22 = vadd.f32 %v5335_v55, %v15288_v51  ;;  %v5671_v5 = vadd.f32 %v5670_v16, %v13056_v59  ;;  %v5945_v58 = vsel %vm5917_vm1, %v5894_v21, 0.0  ;;  %v15299_v16 = vld [vmem:[#allocation104_spill] sm:$0xff] }
 0x973   : > { %5946 = vadd.xlane.f32.xlu0 %v5945_v58 }
 0x974   : > { %v5580_v45 = vmax.f32 %v5516_v22, 0.0  ;;  %v5784_v43 = vadd.f32 %v5783_v14, %v5671_v5  ;;  %5830 = vmatmul.f32.gmra.mxu0 %v5579_v38  ;;  %v15300_v14 = vmax.f32 %v15299_v16, 0.0 }
 0x975   : > { %v5447_v13 = vpop.f32.mrf.mxu2 }
 0x976   : > { %v5859_v48 = vmax.f32 %v5784_v43, 0.0  ;;  %v5448_v11 = vadd.f32 %v5447_v13, %v12942_v54  ;;  %5720 = vmatmul.f32.gmra.mxu3 %v5580_v45 }
 0x977   : > { %v5337_v57 = vpop.f32.mrf.mxu1 }
 0x978   : > { %v5517_v52 = vadd.f32 %v5448_v11, %v15290_v29  ;;  %v5338_v37 = vadd.f32 %v5337_v57, %v12936_v49  ;;  %v5895_v35 = vmul.f32 %v13067_v7, %v5859_v48  ;;  %v15302_v29 = vmax.f32 %v15301_v60, 0.0 }
 0x979   : > { %v5673_v47 = vpop.f32.mrf.mxu3  ;;  %v5786_v42 = vpop.f32.mrf.mxu0 }
 0x97a   : > { %v5581_v23 = vmax.f32 %v5517_v52, 0.0  ;;  %v5518_v31 = vadd.f32 %v5338_v37, %v15292_v44  ;;  %v5674_v61 = vadd.f32 %v5673_v47, %v13056_v59  ;;  %v5948_v25 = vsel %vm5917_vm1, %v5895_v35, 0.0  ;;  %v15303_v44 = vld [vmem:[#allocation82_spill] sm:$0xff] }
 0x97b   : > { %5949 = vadd.xlane.f32.xlu0 %v5948_v25 }
 0x97c   : > { %v5582_v26 = vmax.f32 %v5518_v31, 0.0  ;;  %v5787_v20 = vadd.f32 %v5786_v42, %v5674_v61  ;;  %5833 = vmatmul.f32.gmra.mxu0 %v5581_v23 }
 0x97d   : > { %v5450_v32 = vpop.f32.mrf.mxu2 }
 0x97e   : > { %v5860_v6 = vmax.f32 %v5787_v20, 0.0  ;;  %v5451_v12 = vadd.f32 %v5450_v32, %v12942_v54  ;;  %5723 = vmatmul.f32.gmra.mxu3 %v5582_v26 }
 0x97f   : > { %v5340_v15 = vpop.f32.mrf.mxu1 }
 0x980   : > { %v5519_v10 = vadd.f32 %v5451_v12, %v15294_v33  ;;  %v5341_v3 = vadd.f32 %v5340_v15, %v12936_v49  ;;  %v5896_v40 = vmul.f32 %v13067_v7, %v5860_v6  ;;  %v13201_v33 = vpop.permute.xlu1 %6017 }
 0x981   : > { %v5676_v24 = vpop.f32.mrf.mxu3  ;;  %v5789_v50 = vpop.f32.mrf.mxu0 }
 0x982   : > { %v5583_v8 = vmax.f32 %v5519_v10, 0.0  ;;  %v5520_v18 = vadd.f32 %v5341_v3, %v15296_v4  ;;  %v5677_v28 = vadd.f32 %v5676_v24, %v13056_v59  ;;  %v5951_v0 = vsel %vm5917_vm1, %v5896_v40, 0.0  ;;  %v15305_v40 = vld [vmem:[#allocation39_spill] sm:$0xff] }
 0x983   : > { %5952 = vadd.xlane.f32.xlu0 %v5951_v0  ;;  %v15306_v24 = vmax.f32 %v15305_v40, 0.0 }
 0x984   : > { %v5584_v63 = vmax.f32 %v5520_v18, 0.0  ;;  %v5790_v36 = vadd.f32 %v5789_v50, %v5677_v28  ;;  %5836 = vmatmul.f32.gmra.mxu0 %v5583_v8 }
 0x985   : > { %v5453_v56 = vpop.f32.mrf.mxu2 }
 0x986   : > { %v5861_v34 = vmax.f32 %v5790_v36, 0.0  ;;  %v5454_v1 = vadd.f32 %v5453_v56, %v12942_v54  ;;  %5726 = vmatmul.f32.gmra.mxu3 %v5584_v63 }
 0x987   : > { %v5343_v46 = vpop.f32.mrf.mxu1 }
 0x988   : > { %v5521_v30 = vadd.f32 %v5454_v1, %v15298_v62  ;;  %v5344_v27 = vadd.f32 %v5343_v46, %v12936_v49  ;;  %v5897_v9 = vmul.f32 %v13067_v7, %v5861_v34 }
 0x989   : > { %v5679_v19 = vpop.f32.mrf.mxu3  ;;  %v5792_v55 = vpop.f32.mrf.mxu0 }
 0x98a   : > { %v5585_v21 = vmax.f32 %v5521_v30, 0.0  ;;  %v5522_v38 = vadd.f32 %v5344_v27, %v15300_v14  ;;  %v5680_v39 = vadd.f32 %v5679_v19, %v13056_v59  ;;  %v5954_v51 = vsel %vm5917_vm1, %v5897_v9, 0.0 }
 0x98b   : > { %5955 = vadd.xlane.f32.xlu0 %v5954_v51 }
 0x98c   : > { %v5586_v22 = vmax.f32 %v5522_v38, 0.0  ;;  %v5793_v5 = vadd.f32 %v5792_v55, %v5680_v39  ;;  %5839 = vmatmul.f32.gmra.mxu0 %v5585_v21 }
 0x98d   : > { %v5456_v45 = vpop.f32.mrf.mxu2 }
 0x98e   : > { %v5862_v58 = vmax.f32 %v5793_v5, 0.0  ;;  %5729 = vmatmul.f32.gmra.mxu3 %v5586_v22  ;;  %v5457_v47 = vadd.f32 %v5456_v45, %v12942_v54 }
 0x98f   : > { %v5346_v43 = vpop.f32.mrf.mxu1 }
 0x990   : > { %v5347_v13 = vadd.f32 %v5346_v43, %v12936_v49  ;;  %v5898_v48 = vmul.f32 %v13067_v7, %v5862_v58  ;;  %v15304_v49 = vmax.f32 %v15303_v44, 0.0 }
 0x991   : > { %v5682_v11 = vpop.f32.mrf.mxu3  ;;  %v5795_v57 = vpop.f32.mrf.mxu0 }
 0x992   : > { %v5524_v52 = vadd.f32 %v5347_v13, %v15302_v29  ;;  %v5683_v37 = vadd.f32 %v5682_v11, %v13056_v59  ;;  %v5957_v35 = vsel %vm5917_vm1, %v5898_v48, 0.0  ;;  %v5523_v31 = vadd.f32 %v5457_v47, %v15304_v49 }
 0x993   : > { %5958 = vadd.xlane.f32.xlu0 %v5957_v35 }
 0x994   : > { %v5588_v42 = vmax.f32 %v5524_v52, 0.0  ;;  %v5796_v23 = vadd.f32 %v5795_v57, %v5683_v37  ;;  %v5587_v12 = vmax.f32 %v5523_v31, 0.0  ;;  %v6692_v37 = vlaneseq }
 0x995   : > { %v5459_v61 = vpop.f32.mrf.mxu2 }
 0x996   : > { %v5863_v2 = vmax.f32 %v5796_v23, 0.0  ;;  %5732 = vmatmul.f32.gmra.mxu3 %v5588_v42  ;;  %v5460_v15 = vadd.f32 %v5459_v61, %v12942_v54 }
 0x998   : > { %v5899_v25 = vmul.f32 %v13067_v7, %v5863_v2  ;;  %v5525_v50 = vadd.f32 %v5460_v15, %v15306_v24  ;;  %v13226_v15 = vand.u32 127, %v6692_v37 }
 0x999   : > { %v5685_v26 = vpop.f32.mrf.mxu3  ;;  %v5798_v20 = vpop.f32.mrf.mxu0 }
 0x99a   : > { %v5686_v32 = vadd.f32 %v5685_v26, %v13056_v59  ;;  %v5960_v6 = vsel %vm5917_vm1, %v5899_v25, 0.0  ;;  %v5589_v28 = vmax.f32 %v5525_v50, 0.0 }
 0x99b   : > { %5961 = vadd.xlane.f32.xlu1 %v5960_v6 }
 0x99c   : > { %v13199_v41 = vadd.f32 %v5798_v20, %v5686_v32 }
 0x99e   : > { %5842 = vmatmul.f32.vlgmr.msrb.gmra.mxu3 %v5587_v12  ;;  %v5920_v10 = vpop.xlane.xlu0 %5919 }
 0x99f   : > { %v6020_v3 = vadd.f32 %v13201_v33, %v5920_v10 }
 0x9a1   : > { %v7031_v8 = vmul.f32 -1.442695, %v6020_v3  ;;  %v5688_v17 = vpop.f32.mrf.mxu3  ;;  %v5801_v4 = vpop.f32.mrf.mxu0 }
 0x9a2   : > { %v5689_v18 = vadd.f32 %v5688_v17, %v13056_v59 }
 0x9a3   : > { %7215 = vpow2.f32 %v7031_v8 }
 0x9a4   : > { %v5802_v0 = vadd.f32 %v5801_v4, %v5689_v18  ;;  %v13233_v18 = vadd.s32 4294967288, %v13226_v15 }
 0x9a6   : > { %v5865_v54 = vmax.f32 %v5802_v0, 0.0  ;;  %5845 = vmatmul.f32.gmra.mxu3 %v5589_v28  ;;  %v5923_v63 = vpop.xlane.xlu0 %5922 }
 0x9a7   : > { %v6021_v36 = vadd.f32 %v13201_v33, %v5923_v63 }
 0x9a8   : > { %v5901_v56 = vmul.f32 %v13067_v7, %v5865_v54 }
 0x9a9   : > { %v7216_v34 = vpop.eup %7215  ;;  %v7032_v1 = vmul.f32 -1.442695, %v6021_v36  ;;  %v5691_v46 = vpop.f32.mrf.mxu3 }
 0x9aa   : > { %v5804_v53 = vpop.f32.mrf.mxu0  ;;  %v6148_v62 = vadd.f32 1.0, %v7216_v34  ;;  %v5692_v30 = vadd.f32 %v5691_v46, %v13056_v59  ;;  %v5966_v27 = vsel %vm5917_vm1, %v5901_v56, 0.0 }
 0x9ab   : > { %7217 = vpow2.f32 %v7032_v1  ;;  %5967 = vadd.xlane.f32.xlu1 %v5966_v27 }
 0x9ac   : > { %7219 = vrcp.f32 %v6148_v62  ;;  %v5805_v9 = vadd.f32 %v5804_v53, %v5692_v30  ;;  %vm6185_vm3 = vweird.f32 %v6148_v62  ;;  %v6189_v25 = vand.u32 2147483647, %v6148_v62 }
 0x9ad   : > { %v6191_v26 = vand.u32 2147483648, %v6148_v62 }
 0x9ae   : > { %v5926_v19 = vpop.xlane.xlu1 %5925  ;;  %v5866_v55 = vmax.f32 %v5805_v9, 0.0  ;;  %vm6190_vm6 = vcmp.eq.f32.partialorder %v6189_v25, 8.507059e+37  ;;  %v13270_v25 = vadd.s32 4294967272, %v13226_v15 }
 0x9af   : > { %v6022_v21 = vadd.f32 %v13201_v33, %v5926_v19  ;;  %v6192_v4 = vor.u32 1.1754944e-38, %v6191_v26 }
 0x9b0   : > { %v5902_v51 = vmul.f32 %v13067_v7, %v5866_v55 }
 0x9b1   : > { %v7218_v16 = vpop.eup %7217  ;;  %v7033_v14 = vmul.f32 -1.442695, %v6022_v21  ;;  %v5694_v38 = vpop.f32.mrf.mxu3 }
 0x9b2   : > { %v5807_v39 = vpop.f32.mrf.mxu0  ;;  %v7220_v22 = vpop.eup %7219  ;;  %v6149_v5 = vadd.f32 1.0, %v7218_v16  ;;  %v5695_v58 = vadd.f32 %v5694_v38, %v13056_v59  ;;  %v5969_v43 = vsel %vm5917_vm1, %v5902_v51, 0.0 }
 0x9b3   : > { %v6181_v45 = vmul.f32 %v7220_v22, %v6148_v62  ;;  %7221 = vpow2.f32 %v7033_v14  ;;  %5970 = vadd.xlane.f32.xlu2 %v5969_v43  ;;  %vm6186_vm2 = vweird.f32 %v7220_v22 }
 0x9b4   : > { %7223 = vrcp.f32 %v6149_v5  ;;  %v5808_v48 = vadd.f32 %v5807_v39, %v5695_v58  ;;  %vm13222_vm4 = vmor %vm6185_vm3, %vm6186_vm2  ;;  %v6206_v6 = vand.u32 2147483648, %v6149_v5  ;;  %v6204_v3 = vand.u32 2147483647, %v6149_v5 }
 0x9b5   : > { %v6182_v13 = vsub.f32 1.0, %v6181_v45  ;;  %vm6200_vm7 = vweird.f32 %v6149_v5 }
 0x9b6   : > { %v5929_v11 = vpop.xlane.xlu1 %5928  ;;  %v5867_v60 = vmax.f32 %v5808_v48, 0.0  ;;  %v6207_v54 = vor.u32 1.1754944e-38, %v6206_v6  ;;  %vm6205_vm9 = vcmp.eq.f32.partialorder %v6204_v3, 8.507059e+37 }
 0x9b7   : > { %v6183_v57 = vmul.f32 %v7220_v22, %v6182_v13  ;;  %v6023_v29 = vadd.f32 %v13201_v33, %v5929_v11 }
 0x9b8   : > { %v5903_v31 = vmul.f32 %v13067_v7, %v5867_v60 }
 0x9b9   : > { %v7222_v52 = vpop.eup %7221  ;;  %v7034_v35 = vmul.f32 -1.442695, %v6023_v29  ;;  %v5697_v47 = vpop.f32.mrf.mxu3  ;;  %v6184_v2 = vadd.f32 %v7220_v22, %v6183_v57 }
 0x9ba   : > { %v5810_v42 = vpop.f32.mrf.mxu0  ;;  %v7224_v23 = vpop.eup %7223  ;;  %v13216_v44 = vadd.f32 1.0, %v7222_v52  ;;  %v5698_v49 = vadd.f32 %v5697_v47, %v13056_v59  ;;  %v5972_v40 = vsel %vm5917_vm1, %v5903_v31, 0.0 }
 0x9bb   : > { %v6196_v61 = vmul.f32 %v7224_v23, %v6149_v5  ;;  %7225 = vpow2.f32 %v7034_v35  ;;  %v6188_v10 = vsel %vm13222_vm4, %v7220_v22, %v6184_v2  ;;  %vm6201_vm5 = vweird.f32 %v7224_v23  ;;  %5973 = vadd.xlane.f32.xlu0 %v5972_v40 }
 0x9bc   : > { %7227 = vrcp.f32 %v13216_v44  ;;  %v5811_v12 = vadd.f32 %v5810_v42, %v5698_v49  ;;  %v6193_v1 = vsel %vm6190_vm6, %v6192_v4, %v6188_v10  ;;  %vm6202_vm8 = vmor %vm6200_vm7, %vm6201_vm5  ;;  %v13261_v35 = vadd.s32 4294967280, %v13226_v15 }
 0x9bd   : > { %v6197_v32 = vsub.f32 1.0, %v6196_v61  ;;  %v6694_v19 = vperm.slane %v6193_v1, %v13226_v15  ;;  %v6219_v2 = vand.u32 2147483647, %v13216_v44  ;;  %v6221_v49 = vand.u32 2147483648, %v13216_v44 }
 0x9be   : > { %v5932_v24 = vpop.xlane.xlu2 %5931  ;;  %v5868_v8 = vmax.f32 %v5811_v12, 0.0  ;;  %vm6215_vm12 = vweird.f32 %v13216_v44  ;;  %vm6701_vm5 = vcmask 195712   ;;  %vm6705_vm6 = vcmask 261312  }
 0x9bf   : > { %v6198_v50 = vmul.f32 %v7224_v23, %v6197_v32  ;;  %v6024_v17 = vadd.f32 %v13201_v33, %v5932_v24  ;;  %vm6220_vm0 = vcmp.eq.f32.partialorder %v6219_v2, 8.507059e+37  ;;  %v6222_v4 = vor.u32 1.1754944e-38, %v6221_v49 }
 0x9c0   : > { %v5904_v62 = vmul.f32 %v13067_v7, %v5868_v8 }
 0x9c1   : > { %v7226_v28 = vpop.eup %7225  ;;  %v6199_v0 = vadd.f32 %v7224_v23, %v6198_v50  ;;  %v7035_v63 = vmul.f32 -1.442695, %v6024_v17  ;;  %v5700_v36 = vpop.f32.mrf.mxu3 }
 0x9c2   : > { %v5813_v56 = vpop.f32.mrf.mxu0  ;;  %v13235_v34 = vpop.eup %7227  ;;  %v13238_v46 = vadd.f32 1.0, %v7226_v28  ;;  %v5701_v53 = vadd.f32 %v5700_v36, %v13056_v59  ;;  %v5975_v14 = vsel %vm5917_vm1, %v5904_v62, 0.0 }
 0x9c3   : > { %v6203_v30 = vsel %vm6202_vm8, %v7224_v23, %v6199_v0  ;;  %v6211_v27 = vmul.f32 %v13235_v34, %v13216_v44  ;;  %7229 = vpow2.f32 %v7035_v63  ;;  %5976 = vadd.xlane.f32.xlu2 %v5975_v14  ;;  %vm6216_vm11 = vweird.f32 %v13235_v34 }
 0x9c4   : > { %v6208_v9 = vsel %vm6205_vm9, %v6207_v54, %v6203_v30  ;;  %7231 = vrcp.f32 %v13238_v46  ;;  %v5814_v21 = vadd.f32 %v5813_v56, %v5701_v53  ;;  %vm13272_vm14 = vmor %vm6215_vm12, %vm6216_vm11  ;;  %v6234_v6 = vand.u32 2147483647, %v13238_v46 }
 0x9c5   : > { %v6696_v55 = vperm.slane %v6208_v9, %v13233_v18  ;;  %v6212_v16 = vsub.f32 1.0, %v6211_v27  ;;  %v6236_v12 = vand.u32 2147483648, %v13238_v46  ;;  %vm6230_vm15 = vweird.f32 %v13238_v46 }
 0x9c6   : > { %v5935_v38 = vpop.xlane.xlu2 %5934  ;;  %v5869_v51 = vmax.f32 %v5814_v21, 0.0  ;;  %vm6235_vm3 = vcmp.eq.f32.partialorder %v6234_v6, 8.507059e+37  ;;  %v13300_v21 = vadd.s32 4294967264, %v13226_v15  ;;  %vm6709_vm11 = vcmask 326912  }
 0x9c7   : > { %v13249_v39 = vsel %vm6697_vm10, %v6696_v55, %v6694_v19  ;;  %v6025_v22 = vadd.f32 %v13201_v33, %v5935_v38  ;;  %v6213_v48 = vmul.f32 %v13235_v34, %v6212_v16  ;;  %v6237_v1 = vor.u32 1.1754944e-38, %v6236_v12 }
 0x9c8   : > { %v5905_v43 = vmul.f32 %v13067_v7, %v5869_v51 }
 0x9c9   : > { %v7230_v5 = vpop.eup %7229  ;;  %v5703_v58 = vpop.f32.mrf.mxu3  ;;  %v7036_v57 = vmul.f32 -1.442695, %v6025_v22  ;;  %v6214_v47 = vadd.f32 %v13235_v34, %v6213_v48 }
 0x9ca   : > { %v5816_v45 = vpop.f32.mrf.mxu0  ;;  %v7232_v13 = vpop.eup %7231  ;;  %v13254_v11 = vadd.f32 1.0, %v7230_v5  ;;  %v5704_v60 = vadd.f32 %v5703_v58, %v13056_v59  ;;  %v5978_v52 = vsel %vm5917_vm1, %v5905_v43, 0.0 }
 0x9cb   : > { %v6226_v29 = vmul.f32 %v7232_v13, %v13238_v46  ;;  %5979 = vadd.xlane.f32.xlu0 %v5978_v52  ;;  %vm6231_vm13 = vweird.f32 %v7232_v13  ;;  %v6218_v44 = vsel %vm13272_vm14, %v13235_v34, %v6214_v47  ;;  %vm6713_vm14 = vcmask 392512  }
 0x9cc   : > { %7233 = vrcp.f32 %v13254_v11  ;;  %v5817_v42 = vadd.f32 %v5816_v45, %v5704_v60  ;;  %vm13285_vm2 = vmor %vm6230_vm15, %vm6231_vm13  ;;  %v6223_v34 = vsel %vm6220_vm0, %v6222_v4, %v6218_v44  ;;  %v6249_v53 = vand.u32 2147483647, %v13254_v11 }
 0x9cd   : > { %v6227_v37 = vsub.f32 1.0, %v6226_v29  ;;  %7235 = vpow2.f32 %v7036_v57  ;;  %v6251_v62 = vand.u32 2147483648, %v13254_v11  ;;  %vm6245_vm7 = vweird.f32 %v13254_v11 }
 0x9ce   : > { %v5938_v23 = vpop.xlane.xlu0 %5937  ;;  %v5870_v26 = vmax.f32 %v5817_v42, 0.0  ;;  %v6700_v14 = vperm.slane %v6223_v34, %v13261_v35  ;;  %vm6250_vm9 = vcmp.eq.f32.partialorder %v6249_v53, 8.507059e+37 }
 0x9cf   : > { %v6228_v31 = vmul.f32 %v7232_v13, %v6227_v37  ;;  %v6026_v61 = vadd.f32 %v13201_v33, %v5938_v23  ;;  %v6252_v43 = vor.u32 1.1754944e-38, %v6251_v62 }
 0x9d0   : > { %v5906_v8 = vmul.f32 %v13067_v7, %v5870_v26  ;;  %v6702_v52 = vsel %vm6701_vm5, %v6700_v14, %v13249_v39 }
 0x9d1   : > { %v6229_v32 = vadd.f32 %v7232_v13, %v6228_v31  ;;  %v7037_v10 = vmul.f32 -1.442695, %v6026_v61  ;;  %v5706_v3 = vpop.f32.mrf.mxu3 }
 0x9d2   : > { %v5819_v40 = vpop.f32.mrf.mxu0  ;;  %v7234_v24 = vpop.eup %7233  ;;  %v5707_v50 = vadd.f32 %v5706_v3, %v13056_v59  ;;  %v5981_v56 = vsel %vm5917_vm1, %v5906_v8, 0.0 }
 0x9d3   : > { %v7236_v17 = vpop.eup %7235  ;;  %v6241_v0 = vmul.f32 %v7234_v24, %v13254_v11  ;;  %7237 = vpow2.f32 %v7037_v10  ;;  %v6233_v54 = vsel %vm13285_vm2, %v7232_v13, %v6229_v32  ;;  %5982 = vadd.xlane.f32.xlu2 %v5981_v56  ;;  %vm6246_vm4 = vweird.f32 %v7234_v24 }
 0x9d4   : > { %v13292_v63 = vadd.f32 1.0, %v7236_v17  ;;  %v5820_v36 = vadd.f32 %v5819_v40, %v5707_v50  ;;  %v6238_v27 = vsel %vm6235_vm3, %v6237_v1, %v6233_v54  ;;  %vm6247_vm8 = vmor %vm6245_vm7, %vm6246_vm4 }
 0x9d5   : > { %v6242_v46 = vsub.f32 1.0, %v6241_v0  ;;  %v6704_v45 = vperm.slane %v6238_v27, %v13270_v25 }
 0x9d6   : > { %7239 = vrcp.f32 %v13292_v63  ;;  %v5941_v30 = vpop.xlane.xlu2 %5940  ;;  %v5871_v19 = vmax.f32 %v5820_v36, 0.0  ;;  %v6264_v26 = vand.u32 2147483647, %v13292_v63  ;;  %v6266_v20 = vand.u32 2147483648, %v13292_v63 }
 0x9d7   : > { %v6243_v9 = vmul.f32 %v7234_v24, %v6242_v46  ;;  %v6027_v55 = vadd.f32 %v13201_v33, %v5941_v30  ;;  %v6706_v42 = vsel %vm6705_vm6, %v6704_v45, %v6702_v52  ;;  %vm6260_vm13 = vweird.f32 %v13292_v63  ;;  %v13350_v45 = vld [vmem:[%s14136_s12] ss:$0 sm:$0xff] }
 0x9d8   : > { %v5907_v58 = vmul.f32 %v13067_v7, %v5871_v19  ;;  %vm6265_vm0 = vcmp.eq.f32.partialorder %v6264_v26, 8.507059e+37  ;;  %v6267_v28 = vor.u32 1.1754944e-38, %v6266_v20  ;;  %v13337_v30 = vadd.s32 4294967248, %v13226_v15 }
 0x9d9   : > { %v7238_v16 = vpop.eup %7237  ;;  %v6244_v38 = vadd.f32 %v7234_v24, %v6243_v9  ;;  %v7038_v51 = vmul.f32 -1.442695, %v6027_v55  ;;  %v5709_v22 = vpop.f32.mrf.mxu3 }
 0x9da   : > { %v5822_v5 = vpop.f32.mrf.mxu0  ;;  %v13307_v13 = vadd.f32 1.0, %v7238_v16  ;;  %v5710_v48 = vadd.f32 %v5709_v22, %v13056_v59  ;;  %v5984_v11 = vsel %vm5917_vm1, %v5907_v58, 0.0 }
 0x9db   : > { %v6248_v57 = vsel %vm6247_vm8, %v7234_v24, %v6244_v38  ;;  %7241 = vpow2.f32 %v7038_v51  ;;  %5985 = vadd.xlane.f32.xlu0 %v5984_v11  ;;  %v13322_v24 = vadd.s32 4294967256, %v13226_v15  ;;  %vm6717_vm8 = vcmask 458112  }
 0x9dc   : > { %v7240_v60 = vpop.eup %7239  ;;  %v6253_v29 = vsel %vm6250_vm9, %v6252_v43, %v6248_v57  ;;  %7243 = vrcp.f32 %v13307_v13  ;;  %v5823_v23 = vadd.f32 %v5822_v5, %v5710_v48  ;;  %vm6275_vm3 = vweird.f32 %v13307_v13  ;;  %v13344_v5 = vld [vmem:[#allocation14 + $0x12] ss:$0 sm:$0xff] }
 0x9dd   : > { %v6708_v37 = vperm.slane %v6253_v29, %v13300_v21  ;;  %v6256_v47 = vmul.f32 %v7240_v60, %v13292_v63  ;;  %vm6261_vm12 = vweird.f32 %v7240_v60  ;;  %v6281_v63 = vand.u32 2147483648, %v13307_v13 }
 0x9de   : > { %v5944_v2 = vpop.xlane.xlu2 %5943  ;;  %v5872_v32 = vmax.f32 %v5823_v23, 0.0  ;;  %vm6262_vm15 = vmor %vm6260_vm13, %vm6261_vm12 }
 0x9df   : > { %v6710_v49 = vsel %vm6709_vm11, %v6708_v37, %v6706_v42  ;;  %v6257_v31 = vsub.f32 1.0, %v6256_v47  ;;  %v6028_v61 = vadd.f32 %v13201_v33, %v5944_v2  ;;  %v6282_v51 = vor.u32 1.1754944e-38, %v6281_v63 }
 0x9e0   : > { %v5908_v8 = vmul.f32 %v13067_v7, %v5872_v32  ;;  %v6279_v7 = vand.u32 2147483647, %v13307_v13 }
 0x9e1   : > { %v7242_v6 = vpop.eup %7241  ;;  %v6258_v39 = vmul.f32 %v7240_v60, %v6257_v31  ;;  %v7039_v12 = vmul.f32 -1.442695, %v6028_v61  ;;  %v5712_v10 = vpop.f32.mrf.mxu3  ;;  %v13361_v31 = vadd.s32 4294967240, %v13226_v15 }
 0x9e2   : > { %v5825_v3 = vpop.f32.mrf.mxu0  ;;  %v7244_v40 = vpop.eup %7243  ;;  %v13324_v44 = vadd.f32 1.0, %v7242_v6  ;;  %v5713_v50 = vadd.f32 %v5712_v10, %v13056_v59  ;;  %v5987_v56 = vsel %vm5917_vm1, %v5908_v8, 0.0  ;;  %vm6280_vm7 = vcmp.eq.f32.partialorder %v6279_v7, 8.507059e+37 }
 0x9e3   : > { %v6259_v17 = vadd.f32 %v7240_v60, %v6258_v39  ;;  %v6271_v4 = vmul.f32 %v7244_v40, %v13307_v13  ;;  %7245 = vpow2.f32 %v7039_v12  ;;  %vm6276_vm2 = vweird.f32 %v7244_v40  ;;  %5988 = vadd.xlane.f32.xlu0 %v5987_v56 }
 0x9e4   : > { %7247 = vrcp.f32 %v13324_v44  ;;  %v5826_v36 = vadd.f32 %v5825_v3, %v5713_v50  ;;  %vm6277_vm4 = vmor %vm6275_vm3, %vm6276_vm2  ;;  %v6294_v52 = vand.u32 2147483647, %v13324_v44  ;;  %v6296_v37 = vand.u32 2147483648, %v13324_v44 }
 0x9e5   : > { %v6263_v0 = vsel %vm6262_vm15, %v7240_v60, %v6259_v17  ;;  %v6272_v54 = vsub.f32 1.0, %v6271_v4  ;;  %vm6290_vm12 = vweird.f32 %v13324_v44 }
 0x9e6   : > { %v6268_v59 = vsel %vm6265_vm0, %v6267_v28, %v6263_v0  ;;  %v5947_v34 = vpop.xlane.xlu0 %5946  ;;  %v5873_v53 = vmax.f32 %v5826_v36, 0.0  ;;  %v6297_v39 = vor.u32 1.1754944e-38, %v6296_v37  ;;  %vm6295_vm15 = vcmp.eq.f32.partialorder %v6294_v52, 8.507059e+37 }
 0x9e7   : > { %v6712_v1 = vperm.slane %v6268_v59, %v13322_v24  ;;  %v6273_v46 = vmul.f32 %v7244_v40, %v6272_v54  ;;  %v6029_v62 = vadd.f32 %v13201_v33, %v5947_v34  ;;  %vm14535_vm0 = vcmask 523712  }
 0x9e8   : > { %v5909_v43 = vmul.f32 %v13350_v45, %v5873_v53  ;;  %v13373_v59 = vadd.s32 4294967232, %v13226_v15 }
 0x9e9   : > { %v7246_v27 = vpop.eup %7245  ;;  %v6714_v9 = vsel %vm6713_vm14, %v6712_v1, %v6710_v49  ;;  %v6274_v19 = vadd.f32 %v7244_v40, %v6273_v46  ;;  %v7040_v55 = vmul.f32 -1.442695, %v6029_v62  ;;  %v5715_v16 = vpop.f32.mrf.mxu3 }
 0x9ea   : > { %v5828_v14 = vpop.f32.mrf.mxu0  ;;  %v7248_v38 = vpop.eup %7247  ;;  %v13342_v22 = vadd.f32 1.0, %v7246_v27  ;;  %v5716_v58 = vadd.f32 %v13344_v5, %v5715_v16  ;;  %v5990_v47 = vsel %vm5917_vm1, %v5909_v43, 0.0 }
 0x9eb   : > { %v6278_v13 = vsel %vm6277_vm4, %v7244_v40, %v6274_v19  ;;  %v6286_v48 = vmul.f32 %v7248_v38, %v13324_v44  ;;  %7249 = vpow2.f32 %v7040_v55  ;;  %vm6291_vm9 = vweird.f32 %v7248_v38  ;;  %5991 = vadd.xlane.f32.xlu1 %v5990_v47 }
 0x9ec   : > { %v6283_v57 = vsel %vm6280_vm7, %v6282_v51, %v6278_v13  ;;  %7251 = vrcp.f32 %v13342_v22  ;;  %v5829_v29 = vadd.f32 %v5828_v14, %v5716_v58  ;;  %vm6292_vm13 = vmor %vm6290_vm12, %vm6291_vm9  ;;  %v6311_v4 = vand.u32 2147483648, %v13342_v22 }
 0x9ed   : > { %v6716_v11 = vperm.slane %v6283_v57, %v13337_v30  ;;  %v6287_v60 = vsub.f32 1.0, %v6286_v48  ;;  %v6309_v36 = vand.u32 2147483647, %v13342_v22  ;;  %vm6305_vm3 = vweird.f32 %v13342_v22 }
 0x9ee   : > { %v5874_v2 = vmax.f32 %v5829_v29, 0.0  ;;  %v6312_v46 = vor.u32 1.1754944e-38, %v6311_v4  ;;  %vm14534_vm9 = vcmask 589312   ;;  %v13382_v48 = vadd.s32 4294967224, %v13226_v15 }
 0x9ef   : > { %v6718_v42 = vsel %vm6717_vm8, %v6716_v11, %v6714_v9  ;;  %v6288_v23 = vmul.f32 %v7248_v38, %v6287_v60  ;;  %vm6310_vm7 = vcmp.eq.f32.partialorder %v6309_v36, 8.507059e+37 }
 0x9f0   : > { %v5910_v32 = vmul.f32 %v13350_v45, %v5874_v2 }
 0x9f1   : > { %v7250_v49 = vpop.eup %7249  ;;  %v6289_v61 = vadd.f32 %v7248_v38, %v6288_v23  ;;  %v5718_v26 = vpop.f32.mrf.mxu3 }
 0x9f2   : > { %v5831_v20 = vpop.f32.mrf.mxu0  ;;  %v7252_v6 = vpop.eup %7251  ;;  %v6157_v12 = vadd.f32 1.0, %v7250_v49  ;;  %v5719_v10 = vadd.f32 %v13344_v5, %v5718_v26  ;;  %v5993_v50 = vsel %vm5917_vm1, %v5910_v32, 0.0 }
 0x9f3   : > { %v6293_v3 = vsel %vm6292_vm13, %v7248_v38, %v6289_v61  ;;  %v6301_v40 = vmul.f32 %v7252_v6, %v13342_v22  ;;  %5994 = vadd.xlane.f32.xlu2 %v5993_v50  ;;  %vm6306_vm2 = vweird.f32 %v7252_v6 }
 0x9f4   : > { %v6298_v8 = vsel %vm6295_vm15, %v6297_v39, %v6293_v3  ;;  %7253 = vrcp.f32 %v6157_v12  ;;  %v5832_v28 = vadd.f32 %v5831_v20, %v5719_v10  ;;  %vm6307_vm4 = vmor %vm6305_vm3, %vm6306_vm2  ;;  %v6324_v51 = vand.u32 2147483647, %v6157_v12 }
 0x9f5   : > { %v6720_v44 = vperm.slane %v6298_v8, %v13361_v31  ;;  %v6302_v17 = vsub.f32 1.0, %v6301_v40  ;;  %v6326_v22 = vand.u32 2147483648, %v6157_v12  ;;  %vm6320_vm13 = vweird.f32 %v6157_v12 }
 0x9f6   : > { %v5875_v56 = vmax.f32 %v5832_v28, 0.0  ;;  %vm6325_vm2 = vcmp.eq.f32.partialorder %v6324_v51, 8.507059e+37  ;;  %vm14533_vm3 = vcmask 654912   ;;  %v5864_v8 = vmax.f32 %v13199_v41, 0.0 }
 0x9f7   : > { %v6722_v0 = vsel %vm14535_vm0, %v6720_v44, %v6718_v42  ;;  %v6303_v54 = vmul.f32 %v7252_v6, %v6302_v17  ;;  %v6327_v29 = vor.u32 1.1754944e-38, %v6326_v22 }
 0x9f8   : > { %v5911_v62 = vmul.f32 %v13350_v45, %v5875_v56  ;;  %v5900_v4 = vmul.f32 %v13350_v45, %v5864_v8 }
 0x9f9   : > { %v6304_v7 = vadd.f32 %v7252_v6, %v6303_v54  ;;  %v5721_v63 = vpop.f32.mrf.mxu3 }
 0x9fa   : > { %v5834_v34 = vpop.f32.mrf.mxu0  ;;  %v7254_v1 = vpop.eup %7253  ;;  %v5722_v53 = vadd.f32 %v13344_v5, %v5721_v63  ;;  %v5996_v16 = vsel %vm5917_vm1, %v5911_v62, 0.0  ;;  %v5963_v28 = vsel %vm5917_vm1, %v5900_v4, 0.0 }
 0x9fb   : > { %v6308_v27 = vsel %vm6307_vm4, %v7252_v6, %v6304_v7  ;;  %v6316_v9 = vmul.f32 %v7254_v1, %v6157_v12  ;;  %5997 = vadd.xlane.f32.xlu2 %v5996_v16  ;;  %vm6321_vm12 = vweird.f32 %v7254_v1 }
 0x9fc   : > { %v6313_v19 = vsel %vm6310_vm7, %v6312_v46, %v6308_v27  ;;  %v5835_v55 = vadd.f32 %v5834_v34, %v5722_v53  ;;  %vm6322_vm15 = vmor %vm6320_vm13, %vm6321_vm12  ;;  %v5950_v46 = vpop.xlane.xlu0 %5949 }
 0x9fd   : > { %v6724_v14 = vperm.slane %v6313_v19, %v13373_v59  ;;  %v6317_v38 = vsub.f32 1.0, %v6316_v9  ;;  %v6030_v19 = vadd.f32 %v13201_v33, %v5950_v46  ;;  %v13440_v46 = vadd.s32 4294967216, %v13226_v15 }
 0x9fe   : > { %v5876_v13 = vmax.f32 %v5835_v55, 0.0 }
 0x9ff   : > { %v6726_v58 = vsel %vm14534_vm9, %v6724_v14, %v6722_v0  ;;  %v6318_v43 = vmul.f32 %v7254_v1, %v6317_v38  ;;  %v7041_v14 = vmul.f32 -1.442695, %v6030_v19 }
 0xa00   : > { %v5912_v60 = vmul.f32 %v13350_v45, %v5876_v13 }
 0xa01   : > { %v6319_v57 = vadd.f32 %v7254_v1, %v6318_v43  ;;  %v5724_v11 = vpop.f32.mrf.mxu3  ;;  %7255 = vpow2.f32 %v7041_v14 }
 0xa02   : > { %v5725_v52 = vadd.f32 %v13344_v5, %v5724_v11  ;;  %v5837_v37 = vpop.f32.mrf.mxu0  ;;  %v5999_v42 = vsel %vm5917_vm1, %v5912_v60, 0.0 }
 0xa03   : > { %v6323_v47 = vsel %vm6322_vm15, %v7254_v1, %v6319_v57  ;;  %6000 = vadd.xlane.f32.xlu2 %v5999_v42 }
 0xa04   : > { %v6328_v23 = vsel %vm6325_vm2, %v6327_v29, %v6323_v47  ;;  %v5838_v49 = vadd.f32 %v5837_v37, %v5725_v52  ;;  %v5953_v9 = vpop.xlane.xlu0 %5952 }
 0xa05   : > { %v6728_v2 = vperm.slane %v6328_v23, %v13382_v48  ;;  %v6031_v55 = vadd.f32 %v13201_v33, %v5953_v9 }
 0xa06   : > { %v5877_v26 = vmax.f32 %v5838_v49, 0.0 }
 0xa07   : > { %v13389_v61 = vsel %vm14533_vm3, %v6728_v2, %v6726_v58  ;;  %v7042_v38 = vmul.f32 -1.442695, %v6031_v55  ;;  %v7256_v58 = vpop.eup %7255 }
 0xa08   : > { %v5913_v6 = vmul.f32 %v13350_v45, %v5877_v26  ;;  %v13408_v13 = vadd.f32 1.0, %v7256_v58 }
 0xa09   : > { %v5727_v20 = vpop.f32.mrf.mxu3  ;;  %7257 = vpow2.f32 %v7042_v38 }
 0xa0a   : > { %v5728_v32 = vadd.f32 %v13344_v5, %v5727_v20  ;;  %v5840_v39 = vpop.f32.mrf.mxu0  ;;  %v6002_v10 = vsel %vm5917_vm1, %v5913_v6, 0.0  ;;  %vm6335_vm4 = vweird.f32 %v13408_v13  ;;  %v6339_v58 = vand.u32 2147483647, %v13408_v13 }
 0xa0b   : > { %6003 = vadd.xlane.f32.xlu2 %v6002_v10 }
 0xa0c   : > { %v5841_v12 = vadd.f32 %v5840_v39, %v5728_v32  ;;  %v5956_v16 = vpop.xlane.xlu0 %5955  ;;  %vm6340_vm15 = vcmp.eq.f32.partialorder %v6339_v58, 8.507059e+37 }
 0xa0e   : > { %v5878_v3 = vmax.f32 %v5841_v12, 0.0  ;;  %v5962_v51 = vpop.xlane.xlu1 %5961 }
 0xa0f   : > { %v7258_v43 = vpop.eup %7257  ;;  %v6034_v32 = vadd.f32 %v13201_v33, %v5962_v51  ;;  %v6341_v51 = vand.u32 2147483648, %v13408_v13 }
 0xa10   : > { %v5914_v50 = vmul.f32 %v13350_v45, %v5878_v3  ;;  %v13410_v29 = vadd.f32 1.0, %v7258_v43 }
 0xa11   : > { %v5730_v40 = vpop.f32.mrf.mxu3  ;;  %v7045_v10 = vmul.f32 -1.442695, %v6034_v32 }
 0xa12   : > { %v6005_v44 = vsel %vm5917_vm1, %v5914_v50, 0.0  ;;  %v5731_v0 = vadd.f32 %v13344_v5, %v5730_v40  ;;  %vm6350_vm13 = vweird.f32 %v13410_v29 }
 0xa13   : > { %6006 = vadd.xlane.f32.xlu2 %v6005_v44 }
 0xa19   : > { %v5733_v17 = vpop.f32.mrf.mxu3 }
 0xa1a   : > { %v5734_v63 = vadd.f32 %v13344_v5, %v5733_v17  ;;  %v6032_v5 = vadd.f32 %v13201_v33, %v5956_v16 }
 0xa1b   : > { %5964 = vadd.xlane.f32.xlu2 %v5963_v28 }
 0xa1c   : > { %v7043_v22 = vmul.f32 -1.442695, %v6032_v5 }
 0xa1e   : > { %7259 = vpow2.f32 %v7043_v22  ;;  %v5968_v57 = vpop.xlane.xlu1 %5967 }
 0xa1f   : > { %v6036_v52 = vadd.f32 %v13201_v33, %v5968_v57  ;;  %7261 = vrcp.f32 %v13408_v13  ;;  %v13542_v57 = vadd.s32 4294967184, %v13226_v15 }
 0xa20   : > { %7263 = vrcp.f32 %v13410_v29 }
 0xa21   : > { %v5843_v54 = vpop.f32.mrf.mxu3  ;;  %v7047_v42 = vmul.f32 -1.442695, %v6036_v52  ;;  %v6356_v52 = vand.u32 2147483648, %v13410_v29 }
 0xa22   : > { %v5844_v36 = vadd.f32 %v5843_v54, %v5731_v0 }
 0xa24   : > { %v5879_v56 = vmax.f32 %v5844_v36, 0.0  ;;  %v7260_v60 = vpop.eup %7259 }
 0xa25   : > { %v13414_v37 = vadd.f32 1.0, %v7260_v60  ;;  %v13419_v26 = vpop.eup %7261 }
 0xa26   : > { %v5915_v7 = vmul.f32 %v13350_v45, %v5879_v56  ;;  %v5971_v11 = vpop.xlane.xlu2 %5970  ;;  %v13423_v39 = vpop.eup %7263  ;;  %v6331_v12 = vmul.f32 %v13419_v26, %v13408_v13 }
 0xa27   : > { %v6037_v23 = vadd.f32 %v13201_v33, %v5971_v11  ;;  %7265 = vrcp.f32 %v13414_v37  ;;  %v6346_v40 = vmul.f32 %v13423_v39, %v13410_v29  ;;  %vm6351_vm12 = vweird.f32 %v13423_v39 }
 0xa28   : > { %v6008_v41 = vsel %vm5917_vm1, %v5915_v7, 0.0  ;;  %7267 = vpow2.f32 %v7047_v42  ;;  %v6332_v17 = vsub.f32 1.0, %v6331_v12  ;;  %vm13482_vm2 = vmor %vm6350_vm13, %vm6351_vm12  ;;  %vm6365_vm12 = vweird.f32 %v13414_v37 }
 0xa29   : > { %v5846_v34 = vpop.f32.mrf.mxu3  ;;  %6009 = vadd.xlane.f32.xlu0 %v6008_v41  ;;  %v7048_v6 = vmul.f32 -1.442695, %v6037_v23  ;;  %v6347_v54 = vsub.f32 1.0, %v6346_v40 }
 0xa2a   : > { %v5847_v1 = vadd.f32 %v5846_v34, %v5734_v63  ;;  %v6333_v63 = vmul.f32 %v13419_v26, %v6332_v17 }
 0xa2b   : > { %v6348_v9 = vmul.f32 %v13423_v39, %v6347_v54 }
 0xa2c   : > { %v5880_v53 = vmax.f32 %v5847_v1, 0.0  ;;  %v6334_v5 = vadd.f32 %v13419_v26, %v6333_v63 }
 0xa2d   : > { %v13427_v3 = vpop.eup %7265  ;;  %v6349_v11 = vadd.f32 %v13423_v39, %v6348_v9  ;;  %v13527_v9 = vadd.s32 4294967192, %v13226_v15 }
 0xa2e   : > { %v5916_v62 = vmul.f32 %v13350_v45, %v5880_v53  ;;  %v5959_v45 = vpop.xlane.xlu0 %5958  ;;  %v7268_v44 = vpop.eup %7267  ;;  %v6361_v36 = vmul.f32 %v13427_v3, %v13414_v37  ;;  %v13443_v53 = vadd.s32 4294967208, %v13226_v15 }
 0xa2f   : > { %v6033_v47 = vadd.f32 %v13201_v33, %v5959_v45  ;;  %v13435_v56 = vadd.f32 1.0, %v7268_v44  ;;  %v6354_v45 = vand.u32 2147483647, %v13410_v29  ;;  %v6353_v29 = vsel %vm13482_vm2, %v13423_v39, %v6349_v11 }
 0xa30   : > { %v6011_v27 = vsel %vm5917_vm1, %v5916_v62, 0.0  ;;  %v6362_v19 = vsub.f32 1.0, %v6361_v36  ;;  %vm6336_vm1 = vweird.f32 %v13419_v26  ;;  %v6369_v39 = vand.u32 2147483647, %v13414_v37 }
 0xa31   : > { %6012 = vadd.xlane.f32.xlu1 %v6011_v27  ;;  %v7044_v20 = vmul.f32 -1.442695, %v6033_v47  ;;  %vm13463_vm7 = vmor %vm6335_vm4, %vm6336_vm1  ;;  %vm13486_vm1 = vcmp.eq.f32.partialorder %v6354_v45, 8.507059e+37  ;;  %vm14532_vm4 = vcmask 720512  }
 0xa32   : > { %v6363_v60 = vmul.f32 %v13427_v3, %v6362_v19  ;;  %v6338_v13 = vsel %vm13463_vm7, %v13419_v26, %v6334_v5  ;;  %vm6366_vm7 = vweird.f32 %v13427_v3  ;;  %vm6370_vm2 = vcmp.eq.f32.partialorder %v6369_v39, 8.507059e+37 }
 0xa33   : > { %7269 = vpow2.f32 %v7044_v20  ;;  %vm13514_vm13 = vmor %vm6365_vm12, %vm6366_vm7 }
 0xa34   : > { %7271 = vpow2.f32 %v7048_v6 }
 0xa35   : > { %7273 = vpow2.f32 %v7045_v10  ;;  %v6364_v10 = vadd.f32 %v13427_v3, %v6363_v60 }
 0xa36   : > { %v5974_v2 = vpop.xlane.xlu0 %5973  ;;  %v5977_v49 = vpop.xlane.xlu2 %5976  ;;  %7275 = vrcp.f32 %v13435_v56 }
 0xa37   : > { %v6038_v4 = vadd.f32 %v13201_v33, %v5974_v2  ;;  %v6039_v28 = vadd.f32 %v13201_v33, %v5977_v49  ;;  %v6342_v2 = vor.u32 1.1754944e-38, %v6341_v51  ;;  %v13480_v49 = vadd.s32 4294967200, %v13226_v15 }
 0xa39   : > { %v7270_v0 = vpop.eup %7269  ;;  %v7049_v41 = vmul.f32 -1.442695, %v6038_v4  ;;  %v7050_v34 = vmul.f32 -1.442695, %v6039_v28  ;;  %v6343_v12 = vsel %vm6340_vm15, %v6342_v2, %v6338_v13  ;;  %v6371_v28 = vand.u32 2147483648, %v13414_v37 }
 0xa3a   : > { %v7272_v7 = vpop.eup %7271  ;;  %v13445_v62 = vadd.f32 1.0, %v7270_v0  ;;  %v6732_v36 = vperm.slane %v6343_v12, %v13440_v46  ;;  %vm14531_vm15 = vcmask 786112   ;;  %v6368_v37 = vsel %vm13514_vm13, %v13427_v3, %v6364_v10 }
 0xa3b   : > { %v7274_v27 = vpop.eup %7273  ;;  %v13449_v55 = vadd.f32 1.0, %v7272_v7  ;;  %7277 = vpow2.f32 %v7049_v41  ;;  %v6372_v3 = vor.u32 1.1754944e-38, %v6371_v28  ;;  %vm6425_vm13 = vweird.f32 %v13435_v56 }
 0xa3c   : > { %7279 = vpow2.f32 %v7050_v34  ;;  %v13461_v43 = vadd.f32 1.0, %v7274_v27  ;;  %v13476_v23 = vpop.eup %7275  ;;  %v6386_v27 = vand.u32 2147483648, %v13445_v62  ;;  %v6734_v45 = vsel %vm14532_vm4, %v6732_v36, %v13389_v61 }
 0xa3d   : > { %7281 = vrcp.f32 %v13445_v62  ;;  %v13544_v11 = vsel %vm6370_vm2, %v6372_v3, %v6368_v37  ;;  %v6384_v13 = vand.u32 2147483647, %v13445_v62  ;;  %vm6380_vm7 = vweird.f32 %v13445_v62 }
 0xa3e   : > { %v5980_v50 = vpop.xlane.xlu0 %5979  ;;  %7283 = vrcp.f32 %v13449_v55  ;;  %v6401_v61 = vand.u32 2147483648, %v13461_v43  ;;  %vm6426_vm12 = vweird.f32 %v13476_v23 }
 0xa3f   : > { %v6040_v1 = vadd.f32 %v13201_v33, %v5980_v50  ;;  %v6357_v50 = vor.u32 1.1754944e-38, %v6356_v52  ;;  %vm13591_vm2 = vmor %vm6425_vm13, %vm6426_vm12  ;;  %vm6440_vm12 = vweird.f32 %v13449_v55 }
 0xa40   : > { %v13576_v37 = vor.u32 1.1754944e-38, %v6401_v61 }
 0xa41   : > { %v7051_v22 = vmul.f32 -1.442695, %v6040_v1  ;;  %v7278_v20 = vpop.eup %7277  ;;  %v6358_v7 = vsel %vm13486_vm1, %v6357_v50, %v6353_v29 }
 0xa42   : > { %v7280_v6 = vpop.eup %7279  ;;  %v13507_v0 = vadd.f32 1.0, %v7278_v20  ;;  %v6736_v51 = vperm.slane %v6358_v7, %v13443_v53 }
 0xa43   : > { %7285 = vpow2.f32 %v7051_v22  ;;  %v13496_v40 = vpop.eup %7281  ;;  %v13518_v41 = vadd.f32 1.0, %v7280_v6 }
 0xa44   : > { %7287 = vrcp.f32 %v13461_v43  ;;  %v13502_v4 = vpop.eup %7283  ;;  %v6376_v1 = vmul.f32 %v13496_v40, %v13445_v62  ;;  %vm6381_vm1 = vweird.f32 %v13496_v40  ;;  %v13557_v12 = vsel %vm14531_vm15, %v6736_v51, %v6734_v45 }
 0xa45   : > { %v6436_v5 = vmul.f32 %v13502_v4, %v13449_v55  ;;  %vm6441_vm4 = vweird.f32 %v13502_v4 }
 0xa46   : > { %v5983_v8 = vpop.xlane.xlu2 %5982  ;;  %v6377_v60 = vsub.f32 1.0, %v6376_v1  ;;  %v6431_v1 = vand.u32 2147483648, %v13435_v56  ;;  %vm13612_vm13 = vmor %vm6440_vm12, %vm6441_vm4 }
 0xa47   : > { %v6041_v38 = vadd.f32 %v13201_v33, %v5983_v8  ;;  %v6421_v8 = vmul.f32 %v13476_v23, %v13435_v56  ;;  %v6437_v20 = vsub.f32 1.0, %v6436_v5 }
 0xa48   : > { %v6378_v39 = vmul.f32 %v13496_v40, %v6377_v60 }
 0xa49   : > { %v7052_v47 = vmul.f32 -1.442695, %v6041_v38  ;;  %v7286_v34 = vpop.eup %7285 }
 0xa4a   : > { %v13529_v19 = vpop.eup %7287  ;;  %v13537_v58 = vadd.f32 1.0, %v7286_v34  ;;  %v6438_v34 = vmul.f32 %v13502_v4, %v6437_v20 }
 0xa4b   : > { %7289 = vpow2.f32 %v7052_v47  ;;  %v6391_v52 = vmul.f32 %v13529_v19, %v13461_v43 }
 0xa4d   : > { %v6392_v28 = vsub.f32 1.0, %v6391_v52  ;;  %v6432_v52 = vor.u32 1.1754944e-38, %v6431_v1 }
 0xa4e   : > { %v5986_v16 = vpop.xlane.xlu0 %5985 }
 0xa4f   : > { %v6042_v42 = vadd.f32 %v13201_v33, %v5986_v16  ;;  %v6422_v16 = vsub.f32 1.0, %v6421_v8  ;;  %v6393_v51 = vmul.f32 %v13529_v19, %v6392_v28 }
 0xa51   : > { %v7053_v44 = vmul.f32 -1.442695, %v6042_v42  ;;  %v7290_v22 = vpop.eup %7289  ;;  %v13549_v42 = vor.u32 1.1754944e-38, %v6386_v27  ;;  %v6423_v2 = vmul.f32 %v13476_v23, %v6422_v16 }
 0xa52   : > { %v13554_v6 = vadd.f32 1.0, %v7290_v22 }
 0xa53   : > { %7291 = vpow2.f32 %v7053_v44  ;;  %v6424_v63 = vadd.f32 %v13476_v23, %v6423_v2 }
 0xa54   : > { %7293 = vrcp.f32 %v13507_v0 }
 0xa55   : > { %7295 = vrcp.f32 %v13518_v41  ;;  %v6428_v60 = vsel %vm13591_vm2, %v13476_v23, %v6424_v63  ;;  %vm13622_vm2 = vmor %vm6380_vm7, %vm6381_vm1  ;;  %v6459_v63 = vand.u32 2147483647, %v13507_v0 }
 0xa56   : > { %v5989_v54 = vpop.xlane.xlu0 %5988  ;;  %7297 = vrcp.f32 %v13537_v58 }
 0xa57   : > { %v6043_v38 = vadd.f32 %v13201_v33, %v5989_v54  ;;  %v6429_v54 = vand.u32 2147483647, %v13435_v56  ;;  %vm13652_vm1 = vcmp.eq.f32.partialorder %v6459_v63, 8.507059e+37 }
 0xa59   : > { %v7054_v32 = vmul.f32 -1.442695, %v6043_v38  ;;  %v7292_v29 = vpop.eup %7291  ;;  %v13588_v38 = vadd.f32 %v13496_v40, %v6378_v39  ;;  %vm6430_vm15 = vcmp.eq.f32.partialorder %v6429_v54, 8.507059e+37  ;;  %v6476_v39 = vand.u32 2147483648, %v13518_v41 }
 0xa5a   : > { %v13564_v44 = vpop.eup %7293  ;;  %v13580_v27 = vadd.f32 1.0, %v7292_v29 }
 0xa5b   : > { %v13571_v7 = vpop.eup %7295  ;;  %7299 = vpow2.f32 %v7054_v32  ;;  %v6444_v32 = vand.u32 2147483647, %v13449_v55  ;;  %vm6456_vm7 = vweird.f32 %v13564_v44 }
 0xa5c   : > { %7301 = vrcp.f32 %v13554_v6  ;;  %v6466_v22 = vmul.f32 %v13571_v7, %v13518_v41  ;;  %v13597_v45 = vpop.eup %7297  ;;  %vm6471_vm12 = vweird.f32 %v13571_v7 }
 0xa5d   : > { %7303 = vrcp.f32 %v13580_v27  ;;  %v6481_v54 = vmul.f32 %v13597_v45, %v13537_v58  ;;  %vm6445_vm4 = vcmp.eq.f32.partialorder %v6444_v32, 8.507059e+37 }
 0xa5e   : > { %v5992_v47 = vpop.xlane.xlu1 %5991  ;;  %v6467_v28 = vsub.f32 1.0, %v6466_v22 }
 0xa5f   : > { %v6044_v8 = vadd.f32 %v13201_v33, %v5992_v47  ;;  %v6446_v47 = vand.u32 2147483648, %v13449_v55 }
 0xa61   : > { %v7055_v16 = vmul.f32 -1.442695, %v6044_v8  ;;  %v7300_v20 = vpop.eup %7299  ;;  %v13610_v8 = vsel %vm6430_vm15, %v6432_v52, %v6428_v60  ;;  %vm6455_vm15 = vweird.f32 %v13507_v0 }
 0xa62   : > { %v13608_v23 = vpop.eup %7301  ;;  %v13639_v3 = vadd.f32 1.0, %v7300_v20 }
 0xa63   : > { %7305 = vpow2.f32 %v7055_v16  ;;  %v13637_v16 = vadd.f32 %v13529_v19, %v6393_v51  ;;  %v6496_v22 = vmul.f32 %v13608_v23, %v13554_v6  ;;  %v6468_v51 = vmul.f32 %v13571_v7, %v6467_v28 }
 0xa64   : > { %vm6501_vm0 = vweird.f32 %v13608_v23 }
 0xa66   : > { %v13451_v14 = vpop.xlane.xlu2 %5994 }
 0xa67   : > { %v6045_v36 = vadd.f32 %v13201_v33, %v13451_v14  ;;  %v6451_v14 = vmul.f32 %v13564_v44, %v13507_v0 }
 0xa69   : > { %v7056_v56 = vmul.f32 -1.442695, %v6045_v36  ;;  %v6452_v61 = vsub.f32 1.0, %v6451_v14 }
 0xa6b   : > { %7307 = vpow2.f32 %v7056_v56  ;;  %v13644_v56 = vpop.eup %7303 }
 0xa6c   : > { %v7306_v52 = vpop.eup %7305 }
 0xa6d   : > { %v13667_v10 = vadd.f32 1.0, %v7306_v52 }
 0xa6e   : > { %v13500_v17 = vpop.xlane.xlu2 %5997 }
 0xa6f   : > { %v6046_v5 = vadd.f32 %v13201_v33, %v13500_v17  ;;  %v6439_v17 = vadd.f32 %v13502_v4, %v6438_v34  ;;  %v6461_v34 = vand.u32 2147483648, %v13507_v0  ;;  %v6489_v0 = vand.u32 2147483647, %v13537_v58 }
 0xa71   : > { %v7057_v29 = vmul.f32 -1.442695, %v6046_v5  ;;  %v6443_v36 = vsel %vm13612_vm13, %v13502_v4, %v6439_v17  ;;  %v6447_v5 = vor.u32 1.1754944e-38, %v6446_v47  ;;  %v6453_v4 = vmul.f32 %v13564_v44, %v6452_v61  ;;  %v7308_v61 = vpop.eup %7307  ;;  %vm13676_vm13 = vmor %vm6455_vm15, %vm6456_vm7 }
 0xa72   : > { %v6482_v17 = vsub.f32 1.0, %v6481_v54  ;;  %v6462_v20 = vor.u32 1.1754944e-38, %v6461_v34  ;;  %v6469_v34 = vadd.f32 %v13571_v7, %v6468_v51  ;;  %v13671_v14 = vadd.f32 1.0, %v7308_v61 }
 0xa73   : > { %7309 = vpow2.f32 %v7057_v29  ;;  %v13648_v60 = vsel %vm6445_vm4, %v6447_v5, %v6443_v36  ;;  %v6474_v29 = vand.u32 2147483647, %v13518_v41  ;;  %v6454_v63 = vadd.f32 %v13564_v44, %v6453_v4 }
 0xa74   : > { %7311 = vrcp.f32 %v13639_v3  ;;  %v6756_v54 = vperm.slane %v13648_v60, %v13233_v18  ;;  %v6497_v5 = vsub.f32 1.0, %v6496_v22  ;;  %vm6470_vm4 = vweird.f32 %v13518_v41 }
 0xa75   : > { %vm13681_vm3 = vcmp.eq.f32.partialorder %v6474_v29, 8.507059e+37  ;;  %v6477_v60 = vor.u32 1.1754944e-38, %v6476_v39  ;;  %vm13688_vm9 = vmor %vm6470_vm4, %vm6471_vm12  ;;  %vm6485_vm15 = vweird.f32 %v13537_v58  ;;  %vm6396_vm7 = vweird.f32 %v13529_v19 }
 0xa76   : > { %v6001_v26 = vpop.xlane.xlu2 %6000  ;;  %v6498_v41 = vmul.f32 %v13608_v23, %v6497_v5  ;;  %v6473_v61 = vsel %vm13688_vm9, %v13571_v7, %v6469_v34  ;;  %vm6395_vm12 = vweird.f32 %v13461_v43  ;;  %vm6500_vm9 = vweird.f32 %v13554_v6 }
 0xa77   : > { %v6047_v1 = vadd.f32 %v13201_v33, %v6001_v26  ;;  %v6755_v26 = vperm.slane %v13610_v8, %v13226_v15  ;;  %vm13714_vm4 = vcmp.eq.f32.partialorder %v6384_v13, 8.507059e+37  ;;  %v6504_v13 = vand.u32 2147483647, %v13554_v6 }
 0xa78   : > { %v6499_v34 = vadd.f32 %v13608_v23, %v6498_v41 }
 0xa79   : > { %v7058_v32 = vmul.f32 -1.442695, %v6047_v1  ;;  %v6483_v1 = vmul.f32 %v13597_v45, %v6482_v17  ;;  %v7310_v50 = vpop.eup %7309  ;;  %v6458_v17 = vsel %vm13676_vm13, %v13564_v44, %v6454_v63  ;;  %vm6486_vm13 = vweird.f32 %v13597_v45 }
 0xa7a   : > { %v13703_v44 = vadd.f32 1.0, %v7310_v50  ;;  %v6491_v63 = vand.u32 2147483648, %v13537_v58  ;;  %v6757_v58 = vsel %vm6697_vm10, %v6756_v54, %v6755_v26  ;;  %vm6505_vm10 = vcmp.eq.f32.partialorder %v6504_v13, 8.507059e+37 }
 0xa7b   : > { %7313 = vpow2.f32 %v7058_v32  ;;  %v13695_v32 = vpop.eup %7311  ;;  %v6484_v29 = vadd.f32 %v13597_v45, %v6483_v1  ;;  %v6478_v1 = vsel %vm13681_vm3, %v6477_v60, %v6473_v61  ;;  %vm13751_vm3 = vmor %vm6500_vm9, %vm6501_vm0  ;;  %vm6516_vm0 = vweird.f32 %v13644_v56 }
 0xa7c   : > { %7315 = vrcp.f32 %v13667_v10  ;;  %v6526_v47 = vmul.f32 %v13695_v32, %v13639_v3  ;;  %v6503_v8 = vsel %vm13751_vm3, %v13608_v23, %v6499_v34  ;;  %v6760_v54 = vperm.slane %v6478_v1, %v13270_v25 }
 0xa7d   : > { %7317 = vrcp.f32 %v13671_v14  ;;  %vm6515_vm9 = vweird.f32 %v13580_v27 }
 0xa7e   : > { %v6004_v2 = vpop.xlane.xlu2 %6003  ;;  %v6527_v26 = vsub.f32 1.0, %v6526_v47 }
 0xa7f   : > { %v6048_v36 = vadd.f32 %v13201_v33, %v6004_v2  ;;  %v6511_v2 = vmul.f32 %v13644_v56, %v13580_v27 }
 0xa81   : > { %v7059_v51 = vmul.f32 -1.442695, %v6048_v36  ;;  %v6512_v39 = vsub.f32 1.0, %v6511_v2  ;;  %v7314_v5 = vpop.eup %7313  ;;  %v6506_v2 = vand.u32 2147483648, %v13554_v6 }
 0xa82   : > { %v13740_v60 = vpop.eup %7315  ;;  %v13755_v52 = vadd.f32 1.0, %v7314_v5  ;;  %v6528_v5 = vmul.f32 %v13695_v32, %v6527_v26 }
 0xa83   : > { %7319 = vpow2.f32 %v7059_v51  ;;  %v6513_v4 = vmul.f32 %v13644_v56, %v6512_v39  ;;  %v13757_v41 = vpop.eup %7317  ;;  %v6507_v6 = vor.u32 1.1754944e-38, %v6506_v2  ;;  %v6519_v39 = vand.u32 2147483647, %v13580_v27 }
 0xa84   : > { %7321 = vrcp.f32 %v13703_v44  ;;  %v6556_v34 = vmul.f32 %v13757_v41, %v13671_v14 }
 0xa86   : > { %v6007_v28 = vpop.xlane.xlu2 %6006 }
 0xa87   : > { %v6049_v18 = vadd.f32 %v13201_v33, %v6007_v28  ;;  %v6463_v28 = vsel %vm13652_vm1, %v6462_v20, %v6458_v17  ;;  %vm13729_vm1 = vmor %vm6485_vm15, %vm6486_vm13  ;;  %v6492_v17 = vor.u32 1.1754944e-38, %v6491_v63  ;;  %vm6490_vm15 = vcmp.eq.f32.partialorder %v6489_v0, 8.507059e+37 }
 0xa88   : > { %v6758_v51 = vperm.slane %v6463_v28, %v13261_v35  ;;  %v6521_v0 = vand.u32 2147483648, %v13580_v27  ;;  %v6508_v28 = vsel %vm6505_vm10, %v6507_v6, %v6503_v8  ;;  %v6541_v63 = vmul.f32 %v13740_v60, %v13667_v10  ;;  %vm13777_vm13 = vmor %vm6395_vm12, %vm6396_vm7 }
 0xa89   : > { %v7060_v36 = vmul.f32 -1.442695, %v6049_v18  ;;  %v6488_v18 = vsel %vm13729_vm1, %v13597_v45, %v6484_v29  ;;  %v7320_v35 = vpop.eup %7319  ;;  %v6514_v29 = vadd.f32 %v13644_v56, %v6513_v4  ;;  %v6398_v27 = vsel %vm13777_vm13, %v13529_v19, %v13637_v16 }
 0xa8a   : > { %v6493_v61 = vsel %vm6490_vm15, %v6492_v17, %v6488_v18  ;;  %v6759_v23 = vsel %vm6701_vm5, %v6758_v51, %v6757_v58  ;;  %v13785_v47 = vadd.f32 1.0, %v7320_v35  ;;  %vm13805_vm5 = vmor %vm6515_vm9, %vm6516_vm0  ;;  %v6522_v2 = vor.u32 1.1754944e-38, %v6521_v0 }
 0xa8b   : > { %7323 = vpow2.f32 %v7060_v36  ;;  %v13767_v36 = vpop.eup %7321  ;;  %v6761_v62 = vsel %vm6705_vm6, %v6760_v54, %v6759_v23  ;;  %v6762_v13 = vperm.slane %v6493_v61, %v13300_v21  ;;  %v6542_v21 = vsub.f32 1.0, %v6541_v63 }
 0xa8c   : > { %v6571_v4 = vmul.f32 %v13767_v36, %v13703_v44  ;;  %vm6531_vm6 = vweird.f32 %v13695_v32  ;;  %v6557_v51 = vsub.f32 1.0, %v6556_v34  ;;  %v6534_v45 = vand.u32 2147483647, %v13639_v3 }
 0xa8d   : > { %v6763_v17 = vsel %vm6709_vm11, %v6762_v13, %v6761_v62  ;;  %v6536_v8 = vand.u32 2147483648, %v13639_v3  ;;  %vm6530_vm7 = vweird.f32 %v13639_v3  ;;  %v6549_v54 = vand.u32 2147483647, %v13667_v10 }
 0xa8e   : > { %v5965_v7 = vpop.xlane.xlu2 %5964  ;;  %vm13837_vm12 = vmor %vm6530_vm7, %vm6531_vm6  ;;  %v6572_v0 = vsub.f32 1.0, %v6571_v4  ;;  %v6558_v3 = vmul.f32 %v13757_v41, %v6557_v51  ;;  %vm6535_vm11 = vcmp.eq.f32.partialorder %v6534_v45, 8.507059e+37  ;;  %vm6546_vm1 = vweird.f32 %v13740_v60 }
 0xa8f   : > { %v6035_v20 = vadd.f32 %v13201_v33, %v5965_v7  ;;  %v6537_v63 = vor.u32 1.1754944e-38, %v6536_v8  ;;  %vm6561_vm15 = vweird.f32 %v13757_v41  ;;  %vm6560_vm10 = vweird.f32 %v13671_v14 }
 0xa90   : > { %v6573_v55 = vmul.f32 %v13767_v36, %v6572_v0  ;;  %v6564_v4 = vand.u32 2147483647, %v13671_v14  ;;  %vm13895_vm9 = vmor %vm6560_vm10, %vm6561_vm15  ;;  %v13984_v51 = vadd.s32 4294967176, %v13226_v15 }
 0xa91   : > { %v7046_v22 = vmul.f32 -1.442695, %v6035_v20  ;;  %v7324_v25 = vpop.eup %7323  ;;  %v15343_v20 = vsel %vm13622_vm2, %v13496_v40, %v13588_v38  ;;  %v6764_v38 = vperm.slane %v6508_v28, %v13322_v24  ;;  %vm13813_vm2 = vcmp.eq.f32.partialorder %v6519_v39, 8.507059e+37 }
 0xa92   : > { %v13795_v1 = vsel %vm13714_vm4, %v13549_v42, %v15343_v20  ;;  %v6518_v42 = vsel %vm13805_vm5, %v13644_v56, %v6514_v29  ;;  %v6529_v24 = vadd.f32 %v13695_v32, %v6528_v5  ;;  %v6543_v39 = vmul.f32 %v13740_v60, %v6542_v21 }
 0xa93   : > { %7325 = vpow2.f32 %v7046_v22  ;;  %v13819_v22 = vadd.f32 1.0, %v7324_v25  ;;  %v6765_v35 = vsel %vm6713_vm14, %v6764_v38, %v6763_v17  ;;  %v6523_v6 = vsel %vm13813_vm2, %v6522_v2, %v6518_v42 }
 0xa94   : > { %7327 = vrcp.f32 %v13755_v52  ;;  %v6533_v23 = vsel %vm13837_vm12, %v13695_v32, %v6529_v24  ;;  %v6551_v25 = vand.u32 2147483648, %v13667_v10  ;;  %v6766_v34 = vperm.slane %v6523_v6, %v13337_v30 }
 0xa95   : > { %7329 = vrcp.f32 %v13785_v47  ;;  %vm6545_vm14 = vweird.f32 %v13667_v10  ;;  %vm13855_vm4 = vcmp.eq.f32.partialorder %v6549_v54, 8.507059e+37  ;;  %v6566_v20 = vand.u32 2147483648, %v13671_v14 }
 0xa96   : > { %7331 = vrcp.f32 %v13819_v22  ;;  %v6538_v62 = vsel %vm6535_vm11, %v6537_v63, %v6533_v23  ;;  %v6544_v13 = vadd.f32 %v13740_v60, %v6543_v39  ;;  %v15352_v38 = vand.u32 2147483647, %v13461_v43  ;;  %vm13883_vm0 = vmor %vm6545_vm14, %vm6546_vm1 }
 0xa97   : > { %v6559_v42 = vadd.f32 %v13757_v41, %v6558_v3  ;;  %v6552_v21 = vor.u32 1.1754944e-38, %v6551_v25  ;;  %v6768_v24 = vperm.slane %v6538_v62, %v13361_v31  ;;  %v6581_v17 = vand.u32 2147483648, %v13703_v44 }
 0xa98   : > { %vm13865_vm3 = vcmp.eq.f32.partialorder %v15352_v38, 8.507059e+37  ;;  %v6548_v14 = vsel %vm13883_vm0, %v13740_v60, %v6544_v13  ;;  %v6574_v10 = vadd.f32 %v13767_v36, %v6573_v55  ;;  %vm6576_vm5 = vweird.f32 %v13767_v36 }
 0xa99   : > { %v7326_v40 = vpop.eup %7325  ;;  %vm6575_vm2 = vweird.f32 %v13703_v44  ;;  %v6579_v29 = vand.u32 2147483647, %v13703_v44  ;;  %v6767_v0 = vsel %vm6717_vm8, %v6766_v34, %v6765_v35  ;;  %v13915_v23 = vsel %vm13855_vm4, %v6552_v21, %v6548_v14 }
 0xa9a   : > { %v13825_v56 = vpop.eup %7327  ;;  %v13830_v26 = vadd.f32 1.0, %v7326_v40  ;;  %vm6565_vm6 = vcmp.eq.f32.partialorder %v6564_v4, 8.507059e+37  ;;  %vm13917_vm7 = vmor %vm6575_vm2, %vm6576_vm5  ;;  %v6582_v63 = vor.u32 1.1754944e-38, %v6581_v17  ;;  %v6594_v35 = vand.u32 2147483647, %v13755_v52 }
 0xa9b   : > { %v6586_v28 = vmul.f32 %v13825_v56, %v13755_v52  ;;  %v13851_v5 = vpop.eup %7329  ;;  %v6578_v44 = vsel %vm13917_vm7, %v13767_v36, %v6574_v10  ;;  %vm6591_vm8 = vweird.f32 %v13825_v56  ;;  %v6596_v34 = vand.u32 2147483648, %v13755_v52 }
 0xa9c   : > { %v6010_v18 = vpop.xlane.xlu0 %6009  ;;  %v6601_v43 = vmul.f32 %v13851_v5, %v13785_v47  ;;  %vm15361_vm12 = vcmask 523712   ;;  %vm6580_vm11 = vcmp.eq.f32.partialorder %v6579_v29, 8.507059e+37  ;;  %v13944_v36 = vsel %vm13865_vm3, %v13576_v37, %v6398_v27 }
 0xa9d   : > { %v6050_v58 = vadd.f32 %v13201_v33, %v6010_v18  ;;  %v6587_v50 = vsub.f32 1.0, %v6586_v28  ;;  %v13872_v18 = vpop.eup %7331  ;;  %v6770_v55 = vperm.slane %v13915_v23, %v13373_v59  ;;  %vm6590_vm14 = vweird.f32 %v13755_v52 }
 0xa9e   : > { %v6616_v60 = vmul.f32 %v13872_v18, %v13819_v22  ;;  %v6602_v39 = vsub.f32 1.0, %v6601_v43  ;;  %vm13955_vm13 = vmor %vm6590_vm14, %vm6591_vm8  ;;  %vm6595_vm4 = vcmp.eq.f32.partialorder %v6594_v35, 8.507059e+37  ;;  %v6609_v37 = vand.u32 2147483647, %v13785_v47 }
 0xa9f   : > { %v7061_v61 = vmul.f32 -1.442695, %v6050_v58  ;;  %v6588_v6 = vmul.f32 %v13825_v56, %v6587_v50  ;;  %v6597_v52 = vor.u32 1.1754944e-38, %v6596_v34  ;;  %vm6606_vm1 = vweird.f32 %v13851_v5 }
 0xaa0   : > { %v6617_v32 = vsub.f32 1.0, %v6616_v60  ;;  %v6603_v62 = vmul.f32 %v13851_v5, %v6602_v39  ;;  %vm6605_vm3 = vweird.f32 %v13785_v47  ;;  %v6611_v4 = vand.u32 2147483648, %v13785_v47 }
 0xaa1   : > { %7333 = vpow2.f32 %v7061_v61  ;;  %v6563_v61 = vsel %vm13895_vm9, %v13757_v41, %v6559_v42  ;;  %v6589_v25 = vadd.f32 %v13825_v56, %v6588_v6  ;;  %vm13978_vm15 = vcmp.eq.f32.partialorder %v6609_v37, 8.507059e+37  ;;  %vm13986_vm0 = vmor %vm6605_vm3, %vm6606_vm1 }
 0xaa2   : > { %7335 = vrcp.f32 %v13830_v26  ;;  %v6618_v30 = vmul.f32 %v13872_v18, %v6617_v32  ;;  %v6604_v21 = vadd.f32 %v13851_v5, %v6603_v62  ;;  %vm6620_vm10 = vweird.f32 %v13819_v22 }
 0xaa3   : > { %v6593_v27 = vsel %vm13955_vm13, %v13825_v56, %v6589_v25  ;;  %vm6621_vm9 = vweird.f32 %v13872_v18  ;;  %v6624_v17 = vand.u32 2147483647, %v13819_v22  ;;  %v6626_v31 = vand.u32 2147483648, %v13819_v22 }
 0xaa4   : > { %v6013_v40 = vpop.xlane.xlu1 %6012  ;;  %v6619_v47 = vadd.f32 %v13872_v18, %v6618_v30  ;;  %v6608_v14 = vsel %vm13986_vm0, %v13851_v5, %v6604_v21  ;;  %v6414_v15 = vand.u32 2147483647, %v13830_v26  ;;  %v6612_v29 = vor.u32 1.1754944e-38, %v6611_v4  ;;  %vm14006_vm7 = vmor %vm6620_vm10, %vm6621_vm9 }
 0xaa5   : > { %v6051_v2 = vadd.f32 %v13201_v33, %v6013_v40  ;;  %v6567_v33 = vor.u32 1.1754944e-38, %v6566_v20  ;;  %v13933_v20 = vsel %vm15361_vm12, %v6768_v24, %v6767_v0  ;;  %v13948_v40 = vsel %vm6580_vm11, %v6582_v63, %v6578_v44 }
 0xaa6   : > { %v6416_v39 = vand.u32 2147483648, %v13830_v26  ;;  %vm6745_vm12 = vcmask 917312   ;;  %vm6410_vm11 = vweird.f32 %v13830_v26  ;;  %vm6749_vm13 = vcmask 982912  }
 0xaa7   : > { %v7334_v58 = vpop.eup %7333  ;;  %v7062_v45 = vmul.f32 -1.442695, %v6051_v2  ;;  %v13923_v28 = vsel %vm6565_vm6, %v6567_v33, %v6563_v61  ;;  %v6774_v2 = vperm.slane %v13948_v40, %v13440_v46  ;;  %vm6741_vm6 = vcmask 851712  }
 0xaa8   : > { %v13888_v8 = vpop.eup %7335  ;;  %v13901_v54 = vadd.f32 1.0, %v7334_v58  ;;  %v6772_v7 = vperm.slane %v13923_v28, %v13382_v48  ;;  %v13976_v58 = vsel %vm6595_vm4, %v6597_v52, %v6593_v27  ;;  %vm6625_vm4 = vcmp.eq.f32.partialorder %v6624_v17, 8.507059e+37 }
 0xaa9   : > { %7337 = vpow2.f32 %v7062_v45  ;;  %v6406_v3 = vmul.f32 %v13888_v8, %v13830_v26  ;;  %vm6411_vm2 = vweird.f32 %v13888_v8  ;;  %v6776_v41 = vperm.slane %v13976_v58, %v13443_v53 }
 0xaaa   : > { %7339 = vrcp.f32 %v13901_v54  ;;  %v6641_v6 = vand.u32 2147483648, %v13901_v54  ;;  %vm6635_vm8 = vweird.f32 %v13901_v54  ;;  %v6639_v0 = vand.u32 2147483647, %v13901_v54  ;;  %vm14031_vm1 = vmor %vm6410_vm11, %vm6411_vm2 }
 0xaab   : > { %v6407_v38 = vsub.f32 1.0, %v6406_v3  ;;  %v6623_v3 = vsel %vm14006_vm7, %v13872_v18, %v6619_v47  ;;  %v6613_v53 = vsel %vm13978_vm15, %v6612_v29, %v6608_v14  ;;  %vm14038_vm3 = vcmp.eq.f32.partialorder %v6414_v15, 8.507059e+37 }
 0xaac   : > { %v6642_v35 = vor.u32 1.1754944e-38, %v6641_v6  ;;  %v6417_v62 = vor.u32 1.1754944e-38, %v6416_v39  ;;  %vm6640_vm15 = vcmp.eq.f32.partialorder %v6639_v0, 8.507059e+37  ;;  %vm15376_vm0 = vcmask 589312  }
 0xaad   : > { %v6408_v56 = vmul.f32 %v13888_v8, %v6407_v38  ;;  %v6778_v37 = vperm.slane %v6613_v53, %v13480_v49  ;;  %v6744_v52 = vperm.slane %v13795_v1, %v13527_v9  ;;  %v6748_v1 = vperm.slane %v13944_v36, %v13542_v57 }
 0xaae   : > { %vm15378_vm7 = vcmask 720512   ;;  %vm15379_vm11 = vcmask 786112  }
 0xaaf   : > { %v7338_v13 = vpop.eup %7337  ;;  %v6409_v10 = vadd.f32 %v13888_v8, %v6408_v56 }
 0xab0   : > { %v13951_v42 = vpop.eup %7339  ;;  %v13960_v16 = vadd.f32 1.0, %v7338_v13 }
 0xab1   : > { %v6631_v50 = vmul.f32 %v13951_v42, %v13901_v54  ;;  %vm6636_vm5 = vweird.f32 %v13951_v42  ;;  %v6627_v54 = vor.u32 1.1754944e-38, %v6626_v31  ;;  %v6413_v34 = vsel %vm14031_vm1, %v13888_v8, %v6409_v10 }
 0xab2   : > { %7341 = vrcp.f32 %v13960_v16  ;;  %vm14021_vm14 = vmor %vm6635_vm8, %vm6636_vm5  ;;  %v6656_v13 = vand.u32 2147483648, %v13960_v16  ;;  %v6771_v8 = vsel %vm15376_vm0, %v6770_v55, %v13933_v20  ;;  %v6418_v27 = vsel %vm14038_vm3, %v6417_v62, %v6413_v34 }
 0xab3   : > { %v6632_v43 = vsub.f32 1.0, %v6631_v50  ;;  %v6628_v32 = vsel %vm6625_vm4, %v6627_v54, %v6623_v3  ;;  %vm6650_vm9 = vweird.f32 %v13960_v16  ;;  %vm15377_vm5 = vcmask 654912  }
 0xab4   : > { %v6773_v50 = vsel %vm15377_vm5, %v6772_v7, %v6771_v8  ;;  %v6780_v59 = vperm.slane %v6628_v32, %v13527_v9  ;;  %v6657_v23 = vor.u32 1.1754944e-38, %v6656_v13  ;;  %v6752_v9 = vperm.slane %v6418_v27, %v13984_v51 }
 0xab5   : > { %v6633_v45 = vmul.f32 %v13951_v42, %v6632_v43  ;;  %v6775_v20 = vsel %vm15378_vm7, %v6774_v2, %v6773_v50  ;;  %vm6786_vm4 = vcmask 1041409  }
 0xab6   : > { %v6777_v55 = vsel %vm15379_vm11, %v6776_v41, %v6775_v20 }
 0xab7   : > { %v6634_v61 = vadd.f32 %v13951_v42, %v6633_v45  ;;  %v6779_v46 = vsel %vm6741_vm6, %v6778_v37, %v6777_v55 }
 0xab8   : > { %v7342_v60 = vpop.eup %7341  ;;  %v6781_v40 = vsel %vm6745_vm12, %v6780_v59, %v6779_v46 }
 0xab9   : > { %v6646_v44 = vmul.f32 %v7342_v60, %v13960_v16  ;;  %v6638_v18 = vsel %vm14021_vm14, %v13951_v42, %v6634_v61  ;;  %vm6651_vm10 = vweird.f32 %v7342_v60  ;;  %v6654_v42 = vand.u32 2147483647, %v13960_v16 }
 0xaba   : > { %v6643_v19 = vsel %vm6640_vm15, %v6642_v35, %v6638_v18  ;;  %vm6652_vm2 = vmor %vm6650_vm9, %vm6651_vm10  ;;  %v15380_v16 = vperm.slane %v13544_v11, %v13480_v49  ;;  %vm6753_vm14 = vcmask 1048512  }
 0xabb   : > { %v6647_v25 = vsub.f32 1.0, %v6646_v44  ;;  %v6782_v48 = vperm.slane %v6643_v19, %v13542_v57  ;;  %vm6655_vm8 = vcmp.eq.f32.partialorder %v6654_v42, 8.507059e+37 }
 0xabc   : > { %v6742_v36 = vsel %vm6741_vm6, %v15380_v16, %v13557_v12 }
 0xabd   : > { %v6648_v38 = vmul.f32 %v7342_v60, %v6647_v25  ;;  %v6746_v57 = vsel %vm6745_vm12, %v6744_v52, %v6742_v36  ;;  %v6783_v11 = vsel %vm6749_vm13, %v6782_v48, %v6781_v40 }
 0xabe   : > { %v6750_v49 = vsel %vm6749_vm13, %v6748_v1, %v6746_v57 }
 0xabf   : > { %v6649_v30 = vadd.f32 %v7342_v60, %v6648_v38  ;;  %v6754_v12 = vsel %vm6753_vm14, %v6752_v9, %v6750_v49 }
 0xac1   : > { %v6653_v28 = vsel %vm6652_vm2, %v7342_v60, %v6649_v30 }
 0xac2   : > { %v6658_v7 = vsel %vm6655_vm8, %v6657_v23, %v6653_v28 }
 0xac3   : > { %v6784_v2 = vperm.slane %v6658_v7, %v13984_v51 }
 0xac5   : > { %v6785_v21 = vsel %vm6753_vm14, %v6784_v2, %v6783_v11 }
 0xac6   : > { %v6787_v4 = vsel %vm6786_vm4, %v6785_v21, %v6754_v12 }
 0xac7   : > { %6789 = vst [vmem:[%s594_s3] sm:$0x3] %v6787_v4 }
 0xac8   : > { %7612 = shalt.err (!%p7609_p8)
}
 0xac9   : > { %7121 = dma.vmem_to_hbm [thread:$0]  (%p7793_p5), %s6804_s28, 32, %s6806_s18, %s6791_s16  }
 0xaca PF: > { %s15382_s19 = sld [smem:[#allocation25_spill]] }
 0xacb   : > { %s15383_s25 = sld [smem:[#allocation23_spill]] }
 0xad0   : > { %p7168_p9 = scmp.ge.s32.totalorder %s15382_s19, 2 }
 0xad1   : > { %s6817_s26 = sand.u32 1, %s15383_s25  }
 0xad2   : > { %p7149_p10 = pnand %p7168_p9, %p7797_p6  ;;  %s6818_s27 = scalar_lea.sflag [#allocation4], %s6817_s26 }
 0xad4   : > { %p7150_p11 = pneg %p7149_p10 }
 0xad6   : > { %7650 = dma.done.wait (%p7150_p11), %s6818_s27, 32  }
 0xad7   : > { %7652 = vsyncadd (%p7150_p11), %s6818_s27, 4294967264  ;;  %s15385_s16 = sld [smem:[#allocation26_spill]]  ;;  %s15388_s29 = smov %s7659_s30 }
 0xad8   : > { %s15386_s3 = sld [smem:[#allocation24_spill]] }
 0xad9   : > { %s15387_s15 = sld [smem:[#allocation27_spill]] }
 0xadd   : > { %p29_p12 = scmp.ge.s32.totalorder %s15385_s16, 4  }
 0xade   : > { %s15389_s30 = smov %s15386_s3 }
 0xadf   :  { %31 = sbr.rel (!%p29_p12) target bundleno = 11 (0xb), region = 151 }
 0xae4   :  { %6824 = vsyncpa [#allocation3], 1 }
 0xae5   :  { %6826 = vsyncpa [#allocation3 + $0x1], 1 }
 0xae6   :  { %6827 = vsyncpa [#allocation6], 1 }
 0xae7   :  { %6828 = vsyncpa [#allocation9], 1 }
 0xae8   :  { %6829 = vsyncpa [#allocation12], 1 }
 0xae9   :  { %6830 = vsyncpa [#allocation15], 1 }
 0xaea   :  { %6831 = vsyncpa [#allocation4], 1 }
 0xaeb   :  { %6833 = vsyncpa [#allocation4 + $0x1], 1 }

</bundles_post_ra>
